<compile_context>
chip_gen: v6e
topology: v6e:2x2x1
jax: 0.10.0
libtpu: 0.0.40
codegen_flags: <defaults>
</compile_context>

<pallas_src>
import numpy as np
import jax
import jax.numpy as jnp
from jax.experimental import pallas as pl
from jax.experimental.pallas import tpu as pltpu

F32 = jnp.float32
BF16 = jnp.bfloat16
DCOL = 4 * 4 * 4 * 3      # real decoder lanes: (tap1, tap2, tap3, channel) = 192
DPAD = 256                # lane-dense padded decoder width


def _rup(x, m):
    return ((x + m - 1) // m) * m


# ------------------------------- parameters --------------------------------

def init_params(key):
    ks = jax.random.split(key, 12)

    def wn(k, shape, fan_in):
        return jax.random.normal(k, shape, F32) / jnp.sqrt(float(fan_in))

    def bn(k, n):
        return 0.01 * jax.random.normal(k, (n,), F32)

    return {
        # Conv2d(3,16,3,p=2) / (16,64,3,p=2) / (64,256,3,p=2) as HWIO
        "w1": wn(ks[0], (3, 3, 3, 16), 3 * 9), "b1": bn(ks[1], 16),
        "w2": wn(ks[2], (3, 3, 16, 64), 16 * 9), "b2": bn(ks[3], 64),
        "w3": wn(ks[4], (3, 3, 64, 256), 64 * 9), "b3": bn(ks[5], 256),
        # ConvTranspose2d(256,64,2,s=2)/(64,16,2,s=2)/(16,3,2,s=2) as (Cin,2,2,Cout)
        "tw1": wn(ks[6], (256, 2, 2, 64), 256), "tb1": bn(ks[7], 64),
        "tw2": wn(ks[8], (64, 2, 2, 16), 64), "tb2": bn(ks[9], 16),
        "tw3": wn(ks[10], (16, 2, 2, 3), 16), "tb3": bn(ks[11], 3),
    }


def pack_params(p):
    """Repack natural-layout params into the kernel operand forms."""
    def bd(w_ihwo, blocks):
        # (Cin,2,2,Cout) -> (Cin, 4*Cout), columns ordered (kh, kw, cout),
        # block-diagonal over the taps of all previous t_conv layers.
        cin, _, _, cout = w_ihwo.shape
        flat = w_ihwo.reshape(cin, 4 * cout)
        return flat if blocks == 1 else jnp.kron(jnp.eye(blocks, dtype=flat.dtype), flat)

    tw3 = bd(p["tw3"], 16)                                      # (256, 192)
    tw3 = jnp.pad(tw3, ((0, 0), (0, DPAD - DCOL)))              # lane-dense (256,256)
    tb3 = jnp.pad(jnp.tile(p["tb3"], 64), (0, DPAD - DCOL))

    return {
        # encoder conv weights with all 9 taps stacked on the contraction dim
        "w1": p["w1"].reshape(27, 16).astype(BF16),
        "b1": p["b1"].reshape(1, 16).astype(F32),
        "w2": p["w2"].reshape(144, 64).astype(BF16),
        "b2": p["b2"].reshape(1, 64).astype(F32),
        "w3": p["w3"].reshape(576, 256).astype(BF16),
        "b3": p["b3"].reshape(1, 256).astype(F32),
        # decoder t_conv(2,2) weights: taps live on lanes (block-diagonal)
        "tw1": bd(p["tw1"], 1).astype(BF16),                    # (256, 256)
        "tb1": jnp.tile(p["tb1"], 4).reshape(1, 256).astype(F32),
        "tw2": bd(p["tw2"], 4).astype(BF16),                    # (256, 256)
        "tb2": jnp.tile(p["tb2"], 16).reshape(1, 256).astype(F32),
        "tw3": tw3.astype(BF16),                                # (256, 256) padded
        "tb3": tb3.reshape(1, DPAD).astype(F32),
    }


# ------------------------------ fused forward -------------------------------

def make_forward(x_shape, images_per_step=8):
    N, C, H, W = x_shape
    assert C == 3

    # encoder geometry (pad=2 conv, 2x2/2 maxpool); flat row = h*Wf + w
    geoms = []
    h, w = H, W
    for _ in range(3):
        g = dict(Hf=h + 4, Wf=w + 4, Ho=h + 2, Wo=w + 2,
                 Hq=(h + 2) // 2, Wq=(w + 2) // 2)
        g["CROWS"] = _rup(g["Hf"] * g["Wf"], 8)   # conv-out rows stored per image
        g["MROWS"] = _rup(2 * (g["Hq"] - 1) * g["Wf"] + 2 * (g["Wq"] - 1) + 1, 8)
        geoms.append(g)
        h, w = g["Hq"], g["Wq"]
    g1, g2, g3 = geoms
    HQ3, WQ3 = g3["Hq"], g3["Wq"]

    # every pooled read must stay inside the rows the conv wrote (no tails)
    for g in geoms:
        assert g["MROWS"] + g["Wf"] + 1 <= g["CROWS"]

    Wf1, Wf2, Wf3 = g1["Wf"], g2["Wf"], g3["Wf"]
    C1R, C2R, C3R = g1["CROWS"], g2["CROWS"], g3["CROWS"]
    M1, M2, M3 = g1["MROWS"], g2["MROWS"], g3["MROWS"]
    # per-image row strides of the re-padded conv-input slabs (cover all taps)
    S1S = _rup(C2R + 2 * Wf2 + 2, 8)
    S2S = _rup(C3R + 2 * Wf3 + 2, 8)
    S3R = _rup(HQ3 * WQ3, 8)

    B = max(1, min(images_per_step, N))           # images per grid step
    NP = _rup(N, B)                               # zero-padded batch
    G = NP // B                                   # grid length

    # 0/1 scatter matrices: decimate the 2x2-max rows and re-zero-pad the pool
    # output into the NEXT layer's flat layout in one matmul.  They produce
    # every destination row, so the scratch never needs explicit zeroing.
    def pool_scatter(g, dst_w, dst_off, dst_rows):
        assert (g["Hq"] - 1 + dst_off) * dst_w + (g["Wq"] - 1 + dst_off) < dst_rows
        P = np.zeros((dst_rows, g["MROWS"]), np.float32)
        for p_ in range(g["Hq"]):
            for q_ in range(g["Wq"]):
                P[(p_ + dst_off) * dst_w + q_ + dst_off,
                  2 * p_ * g["Wf"] + 2 * q_] = 1.0
        return jnp.asarray(P, BF16)

    P1 = pool_scatter(g1, Wf2, 2, S1S)            # -> conv2's padded flat layout
    P2 = pool_scatter(g2, Wf3, 2, S2S)            # -> conv3's padded flat layout
    P3 = pool_scatter(g3, WQ3, 0, S3R)            # -> decoder's tight layout

    # ---------------- fused kernel: one grid step = B images -----------------
    def kernel(x_ref, w1, b1, w2, b2, w3, b3, p1, p2, p3,
               tw1, tb1, tw2, tb2, tw3, tb3, out_ref,
               c1, s1, c2, s2, c3):

        def conv(x, w_ref, b_ref, dst):
            a = jnp.dot(x, w_ref[...], preferred_element_type=F32)
            dst[...] = jnp.maximum(a + b_ref[...], 0.0).astype(BF16)

        def max4(ref, base, wf, rows):            # fused 2x2 max over 4 offset reads
            return jnp.maximum(
                jnp.maximum(ref[pl.ds(base, rows), :], ref[pl.ds(base + 1, rows), :]),
                jnp.maximum(ref[pl.ds(base + wf, rows), :],
                            ref[pl.ds(base + wf + 1, rows), :]))

        def taps9(ref, base, wf, rows):           # 9 shifted slices -> lanes (K dim)
            return jnp.concatenate(
                [ref[pl.ds(base + kh * wf + kw, rows), :]
                 for kh in range(3) for kw in range(3)], axis=-1)

        # --- conv1: taps pre-stacked in the wrapper -> one K=27 MXU pass ------
        conv(x_ref[...], w1, b1, c1)

        # --- pool1 + re-pad into conv2 layout (0/1 scatter matmul, per image) -
        p1v = p1[...]
        for b in range(B):
            s1[pl.ds(b * S1S, S1S), :] = jnp.dot(
                p1v, max4(c1, b * C1R, Wf1, M1),
                preferred_element_type=F32).astype(BF16)

        # --- conv2: lane-concat 9 taps per image -> one K=144 dot over B*rows -
        conv(jnp.concatenate([taps9(s1, b * S1S, Wf2, C2R) for b in range(B)],
                             axis=0), w2, b2, c2)

        p2v = p2[...]
        for b in range(B):
            s2[pl.ds(b * S2S, S2S), :] = jnp.dot(
                p2v, max4(c2, b * C2R, Wf2, M2),
                preferred_element_type=F32).astype(BF16)

        # --- conv3: one K=576 dot over B*rows ---------------------------------
        conv(jnp.concatenate([taps9(s2, b * S2S, Wf3, C3R) for b in range(B)],
                             axis=0), w3, b3, c3)

        # --- pool3 -> decoder input (B*S3R, 256) ------------------------------
        p3v = p3[...]
        v = jnp.concatenate(
            [jnp.dot(p3v, max4(c3, b * C3R, Wf3, M3), preferred_element_type=F32)
             for b in range(B)], axis=0).astype(BF16)

        # --- decoder: t_conv(2,2) taps on lanes (block-diagonal weights) ------
        v = jnp.maximum(jnp.dot(v, tw1[...], preferred_element_type=F32)
                        + tb1[...], 0.0).astype(BF16)
        v = jnp.maximum(jnp.dot(v, tw2[...], preferred_element_type=F32)
                        + tb2[...], 0.0).astype(BF16)
        v = jnp.dot(v, tw3[...], preferred_element_type=F32) + tb3[...]
        out_ref[...] = 0.5 * (jnp.tanh(0.5 * v) + 1.0)   # sigmoid via EUP tanh

    # -------------------------------- specs ---------------------------------
    def full(shape):
        return pl.BlockSpec(shape, lambda i, _s=shape: (0,) * len(_s))

    param_shapes = [
        (27, 16), (1, 16), (144, 64), (1, 64), (576, 256), (1, 256),
        (S1S, M1), (S2S, M2), (S3R, M3),
        (256, 256), (1, 256), (256, 256), (1, 256), (256, DPAD), (1, DPAD),
    ]
    in_specs = [pl.BlockSpec((B * C1R, 27), lambda i: (i, 0))]
    in_specs += [full(s) for s in param_shapes]

    per_img_mm = [(C1R, 27, 16), (S1S, M1, 16), (C2R, 144, 64), (S2S, M2, 64),
                  (C3R, 576, 256), (S3R, M3, 256),
                  (S3R, 256, 256), (S3R, 256, 256), (S3R, 256, DPAD)]
    flops = 2 * NP * sum(m * k * n for m, k, n in per_img_mm)
    bytes_accessed = int(NP * C1R * 27 * 2 + NP * S3R * DPAD * 4 +
                         sum(int(np.prod(s)) * (4 if s[0] == 1 else 2)
                             for s in param_shapes))

    fused = pl.pallas_call(
        kernel,
        out_shape=jax.ShapeDtypeStruct((NP * S3R, DPAD), F32),
        grid=(G,),
        in_specs=in_specs,
        out_specs=pl.BlockSpec((B * S3R, DPAD), lambda i: (i, 0)),
        scratch_shapes=[
            pltpu.VMEM((B * C1R, 16), BF16), pltpu.VMEM((B * S1S, 16), BF16),
            pltpu.VMEM((B * C2R, 64), BF16), pltpu.VMEM((B * S2S, 64), BF16),
            pltpu.VMEM((B * C3R, 256), BF16),
        ],
        compiler_params=pltpu.CompilerParams(
            dimension_semantics=("parallel",),
            vmem_limit_bytes=32 * 1024 * 1024),   # headroom for larger B; <= all gens
        cost_estimate=pl.CostEstimate(flops=flops, transcendentals=NP * S3R * DPAD,
                                      bytes_accessed=bytes_accessed),
    )

    def forward(x_nchw, packed):
        n0, c0, h0, w0 = x_nchw.shape
        # NCHW -> flat padded slab, then stack the 9 conv1 taps on lanes (one-time
        # XLA layout glue on a (H+4)x(W+4) image) -> the whole conv1 is one dot.
        x = jnp.transpose(x_nchw, (0, 2, 3, 1))
        x = jnp.pad(x, ((0, NP - n0), (2, 2), (2, 2), (0, 0)))
        x = x.reshape(NP, g1["Hf"] * g1["Wf"], 3)
        x = jnp.pad(x, ((0, 0),
                        (0, C1R + 2 * Wf1 + 2 - g1["Hf"] * g1["Wf"]), (0, 0)))
        x27 = jnp.concatenate(
            [x[:, kh * Wf1 + kw: kh * Wf1 + kw + C1R, :]
             for kh in range(3) for kw in range(3)], axis=-1)
        x27 = x27.reshape(NP * C1R, 27).astype(BF16)

        slab = fused(
            x27, packed["w1"], packed["b1"], packed["w2"], packed["b2"],
            packed["w3"], packed["b3"], P1, P2, P3,
            packed["tw1"], packed["tb1"], packed["tw2"], packed["tb2"],
            packed["tw3"], packed["tb3"])

        # un-scramble decoder taps (lanes) back to spatial NHWC, then NCHW + crop
        y = slab.reshape(NP, S3R, DPAD)[:N, :HQ3 * WQ3, :DCOL]
        y = y.reshape(N, HQ3, WQ3, 2, 2, 2, 2, 2, 2, 3)
        y = jnp.transpose(y, (0, 1, 3, 5, 7, 2, 4, 6, 8, 9))
        y = y.reshape(N, 8 * HQ3, 8 * WQ3, 3)
        y = jnp.transpose(y, (0, 3, 1, 2))
        return y[:n0, :c0, :h0, :w0]

    return forward


# ------------------------- pure-JAX reference (f32) -------------------------

def reference_forward(x_nchw, p):
    z = x_nchw.shape
    x = jnp.transpose(x_nchw, (0, 2, 3, 1))

    def conv(x, w, b):
        y = jax.lax.conv_general_dilated(
            x, w, (1, 1), ((2, 2), (2, 2)),
            dimension_numbers=("NHWC", "HWIO", "NHWC"))
        return jax.nn.relu(y + b)

    def pool(x):
        return jax.lax.reduce_window(x, -jnp.inf, jax.lax.max,
                                     (1, 2, 2, 1), (1, 2, 2, 1), "VALID")

    def tconv(x, w_ihwo, b):
        n, h, w, _ = x.shape
        co = w_ihwo.shape[-1]
        y = jnp.einsum("nhwc,cijo->nhiwjo", x, w_ihwo) + b
        return y.reshape(n, 2 * h, 2 * w, co)

    x = pool(conv(x, p["w1"], p["b1"]))
    x = pool(conv(x, p["w2"], p["b2"]))
    x = pool(conv(x, p["w3"], p["b3"]))
    x = jax.nn.relu(tconv(x, p["tw1"], p["tb1"]))
    x = jax.nn.relu(tconv(x, p["tw2"], p["tb2"]))
    x = jax.nn.sigmoid(tconv(x, p["tw3"], p["tb3"]))
    x = jnp.transpose(x, (0, 3, 1, 2))
    return x[: z[0], : z[1], : z[2], : z[3]]


if __name__ == "__main__":
    key = jax.random.PRNGKey(0)
    k_x, k_p = jax.random.split(key)
    x = jax.random.normal(k_x, (2, 3, 16, 16), jnp.float32)   # NCHW like PyTorch
    params = init_params(k_p)
    packed = pack_params(params)

    fwd = jax.jit(make_forward(x.shape))
    out = jax.block_until_ready(fwd(x, packed))

    assert out.shape == (2, 3, 16, 16), out.shape
    assert bool(jnp.all(jnp.isfinite(out)))
    assert bool(jnp.all((out >= 0.0) & (out <= 1.0)))         # sigmoid output range

    ref = jax.block_until_ready(jax.jit(reference_forward)(x, params))
    err = float(jnp.max(jnp.abs(out - ref)))
    assert err < 5e-2, f"max |kernel - reference| = {err}"

    print("KERNEL_OK")
</pallas_src>

<mosaic_0001>
module attributes {stable_mosaic.version = 11 : i64} {
  func.func @kernel(%arg0: i32, %arg1: memref<800x27xbf16, #tpu.memory_space<vmem>>, %arg2: memref<27x16xbf16, #tpu.memory_space<vmem>>, %arg3: memref<1x16xf32, #tpu.memory_space<vmem>>, %arg4: memref<144x64xbf16, #tpu.memory_space<vmem>>, %arg5: memref<1x64xf32, #tpu.memory_space<vmem>>, %arg6: memref<576x256xbf16, #tpu.memory_space<vmem>>, %arg7: memref<1x256xf32, #tpu.memory_space<vmem>>, %arg8: memref<208x344xbf16, #tpu.memory_space<vmem>>, %arg9: memref<112x120xbf16, #tpu.memory_space<vmem>>, %arg10: memref<16x48xbf16, #tpu.memory_space<vmem>>, %arg11: memref<256x256xbf16, #tpu.memory_space<vmem>>, %arg12: memref<1x256xf32, #tpu.memory_space<vmem>>, %arg13: memref<256x256xbf16, #tpu.memory_space<vmem>>, %arg14: memref<1x256xf32, #tpu.memory_space<vmem>>, %arg15: memref<256x256xbf16, #tpu.memory_space<vmem>>, %arg16: memref<1x256xf32, #tpu.memory_space<vmem>>, %arg17: memref<32x256xf32, #tpu.memory_space<vmem>>, %arg18: memref<800x16xbf16, #tpu.memory_space<vmem>>, %arg19: memref<416x16xbf16, #tpu.memory_space<vmem>>, %arg20: memref<352x64xbf16, #tpu.memory_space<vmem>>, %arg21: memref<224x64xbf16, #tpu.memory_space<vmem>>, %arg22: memref<176x256xbf16, #tpu.memory_space<vmem>>) attributes {dimension_semantics = [#tpu.dimension_semantics<parallel>], iteration_bounds = array<i64: 1>, scalar_prefetch = 0 : i64, scratch_operands = 5 : i64, tpu.core_type = #tpu.core_type<tc>, window_params = [{transform_indices = @transform_0, window_bounds = array<i64: 800, 27>}, {pipeline_mode = #tpu.pipeline_mode<synchronous>, transform_indices = @transform_1, window_bounds = array<i64: 27, 16>}, {pipeline_mode = #tpu.pipeline_mode<synchronous>, transform_indices = @transform_2, window_bounds = array<i64: 1, 16>}, {pipeline_mode = #tpu.pipeline_mode<synchronous>, transform_indices = @transform_3, window_bounds = array<i64: 144, 64>}, {pipeline_mode = #tpu.pipeline_mode<synchronous>, transform_indices = @transform_4, window_bounds = array<i64: 1, 64>}, {pipeline_mode = #tpu.pipeline_mode<synchronous>, transform_indices = @transform_5, window_bounds = array<i64: 576, 256>}, {pipeline_mode = #tpu.pipeline_mode<synchronous>, transform_indices = @transform_6, window_bounds = array<i64: 1, 256>}, {pipeline_mode = #tpu.pipeline_mode<synchronous>, transform_indices = @transform_7, window_bounds = array<i64: 208, 344>}, {pipeline_mode = #tpu.pipeline_mode<synchronous>, transform_indices = @transform_8, window_bounds = array<i64: 112, 120>}, {pipeline_mode = #tpu.pipeline_mode<synchronous>, transform_indices = @transform_9, window_bounds = array<i64: 16, 48>}, {pipeline_mode = #tpu.pipeline_mode<synchronous>, transform_indices = @transform_10, window_bounds = array<i64: 256, 256>}, {pipeline_mode = #tpu.pipeline_mode<synchronous>, transform_indices = @transform_11, window_bounds = array<i64: 1, 256>}, {pipeline_mode = #tpu.pipeline_mode<synchronous>, transform_indices = @transform_12, window_bounds = array<i64: 256, 256>}, {pipeline_mode = #tpu.pipeline_mode<synchronous>, transform_indices = @transform_13, window_bounds = array<i64: 1, 256>}, {pipeline_mode = #tpu.pipeline_mode<synchronous>, transform_indices = @transform_14, window_bounds = array<i64: 256, 256>}, {pipeline_mode = #tpu.pipeline_mode<synchronous>, transform_indices = @transform_15, window_bounds = array<i64: 1, 256>}, {transform_indices = @transform_16, window_bounds = array<i64: 32, 256>}]} {
    %c0 = arith.constant 0 : index
    %c0_0 = arith.constant 0 : index
    %0 = vector.load %arg1[%c0, %c0_0] : memref<800x27xbf16, #tpu.memory_space<vmem>>, vector<800x27xbf16>
    %c0_1 = arith.constant 0 : index
    %c0_2 = arith.constant 0 : index
    %1 = vector.load %arg2[%c0_1, %c0_2] : memref<27x16xbf16, #tpu.memory_space<vmem>>, vector<27x16xbf16>
    %cst = arith.constant dense<0.000000e+00> : vector<800x16xf32>
    %2 = tpu.matmul %0, %1, %cst {dimension_numbers = #tpu.dot_dimension_numbers<[1], [0], [0], [1], [0, 0, 1, 1], [], []>} : vector<800x27xbf16>, vector<27x16xbf16>, vector<800x16xf32> -> vector<800x16xf32>
    %c0_3 = arith.constant 0 : index
    %c0_4 = arith.constant 0 : index
    %3 = vector.load %arg3[%c0_3, %c0_4] : memref<1x16xf32, #tpu.memory_space<vmem>>, vector<1x16xf32>
    %4 = vector.broadcast %3 : vector<1x16xf32> to vector<800x16xf32>
    %5 = arith.addf %2, %4 : vector<800x16xf32>
    %cst_5 = arith.constant 0.000000e+00 : f32
    %6 = vector.broadcast %cst_5 : f32 to vector<800x16xf32>
    %7 = arith.maximumf %5, %6 : vector<800x16xf32>
    %8 = arith.truncf %7 : vector<800x16xf32> to vector<800x16xbf16>
    %c0_6 = arith.constant 0 : index
    %c0_7 = arith.constant 0 : index
    %9 = vector.load %arg18[%c0_6, %c0_7] : memref<800x16xbf16, #tpu.memory_space<vmem>>, vector<800x16xbf16>
    tpu.vector_store %arg18[%c0_6, %c0_7], %8 {strides = array<i32>} : memref<800x16xbf16, #tpu.memory_space<vmem>>, vector<800x16xbf16>,
    %c0_8 = arith.constant 0 : index
    %c0_9 = arith.constant 0 : index
    %10 = vector.load %arg8[%c0_8, %c0_9] : memref<208x344xbf16, #tpu.memory_space<vmem>>, vector<208x344xbf16>
    %c0_10 = arith.constant 0 : index
    %c0_11 = arith.constant 0 : index
    %11 = vector.load %arg18[%c0_10, %c0_11] : memref<800x16xbf16, #tpu.memory_space<vmem>>, vector<344x16xbf16>
    %c1 = arith.constant 1 : index
    %c0_12 = arith.constant 0 : index
    %12 = vector.load %arg18[%c1, %c0_12] : memref<800x16xbf16, #tpu.memory_space<vmem>>, vector<344x16xbf16>
    %13 = arith.maximumf %11, %12 : vector<344x16xbf16>
    %c20 = arith.constant 20 : index
    %c0_13 = arith.constant 0 : index
    %14 = vector.load %arg18[%c20, %c0_13] : memref<800x16xbf16, #tpu.memory_space<vmem>>, vector<344x16xbf16>
    %c21 = arith.constant 21 : index
    %c0_14 = arith.constant 0 : index
    %15 = vector.load %arg18[%c21, %c0_14] : memref<800x16xbf16, #tpu.memory_space<vmem>>, vector<344x16xbf16>
    %16 = arith.maximumf %14, %15 : vector<344x16xbf16>
    %17 = arith.maximumf %13, %16 : vector<344x16xbf16>
    %cst_15 = arith.constant dense<0.000000e+00> : vector<208x16xf32>
    %18 = tpu.matmul %10, %17, %cst_15 {dimension_numbers = #tpu.dot_dimension_numbers<[1], [0], [0], [1], [0, 0, 1, 1], [], []>} : vector<208x344xbf16>, vector<344x16xbf16>, vector<208x16xf32> -> vector<208x16xf32>
    %19 = arith.truncf %18 : vector<208x16xf32> to vector<208x16xbf16>
    %c0_16 = arith.constant 0 : index
    %c0_17 = arith.constant 0 : index
    %20 = vector.load %arg19[%c0_16, %c0_17] : memref<416x16xbf16, #tpu.memory_space<vmem>>, vector<208x16xbf16>
    tpu.vector_store %arg19[%c0_16, %c0_17], %19 {strides = array<i32>} : memref<416x16xbf16, #tpu.memory_space<vmem>>, vector<208x16xbf16>,
    %c400 = arith.constant 400 : index
    %c0_18 = arith.constant 0 : index
    %21 = vector.load %arg18[%c400, %c0_18] : memref<800x16xbf16, #tpu.memory_space<vmem>>, vector<344x16xbf16>
    %c401 = arith.constant 401 : index
    %c0_19 = arith.constant 0 : index
    %22 = vector.load %arg18[%c401, %c0_19] : memref<800x16xbf16, #tpu.memory_space<vmem>>, vector<344x16xbf16>
    %23 = arith.maximumf %21, %22 : vector<344x16xbf16>
    %c420 = arith.constant 420 : index
    %c0_20 = arith.constant 0 : index
    %24 = vector.load %arg18[%c420, %c0_20] : memref<800x16xbf16, #tpu.memory_space<vmem>>, vector<344x16xbf16>
    %c421 = arith.constant 421 : index
    %c0_21 = arith.constant 0 : index
    %25 = vector.load %arg18[%c421, %c0_21] : memref<800x16xbf16, #tpu.memory_space<vmem>>, vector<344x16xbf16>
    %26 = arith.maximumf %24, %25 : vector<344x16xbf16>
    %27 = arith.maximumf %23, %26 : vector<344x16xbf16>
    %cst_22 = arith.constant dense<0.000000e+00> : vector<208x16xf32>
    %28 = tpu.matmul %10, %27, %cst_22 {dimension_numbers = #tpu.dot_dimension_numbers<[1], [0], [0], [1], [0, 0, 1, 1], [], []>} : vector<208x344xbf16>, vector<344x16xbf16>, vector<208x16xf32> -> vector<208x16xf32>
    %29 = arith.truncf %28 : vector<208x16xf32> to vector<208x16xbf16>
    %c208 = arith.constant 208 : index
    %c0_23 = arith.constant 0 : index
    %30 = vector.load %arg19[%c208, %c0_23] : memref<416x16xbf16, #tpu.memory_space<vmem>>, vector<208x16xbf16>
    tpu.vector_store %arg19[%c208, %c0_23], %29 {strides = array<i32>} : memref<416x16xbf16, #tpu.memory_space<vmem>>, vector<208x16xbf16>,
    %c0_24 = arith.constant 0 : index
    %c0_25 = arith.constant 0 : index
    %31 = vector.load %arg19[%c0_24, %c0_25] : memref<416x16xbf16, #tpu.memory_space<vmem>>, vector<176x16xbf16>
    %c1_26 = arith.constant 1 : index
    %c0_27 = arith.constant 0 : index
    %32 = vector.load %arg19[%c1_26, %c0_27] : memref<416x16xbf16, #tpu.memory_space<vmem>>, vector<176x16xbf16>
    %c2 = arith.constant 2 : index
    %c0_28 = arith.constant 0 : index
    %33 = vector.load %arg19[%c2, %c0_28] : memref<416x16xbf16, #tpu.memory_space<vmem>>, vector<176x16xbf16>
    %c13 = arith.constant 13 : index
    %c0_29 = arith.constant 0 : index
    %34 = vector.load %arg19[%c13, %c0_29] : memref<416x16xbf16, #tpu.memory_space<vmem>>, vector<176x16xbf16>
    %c14 = arith.constant 14 : index
    %c0_30 = arith.constant 0 : index
    %35 = vector.load %arg19[%c14, %c0_30] : memref<416x16xbf16, #tpu.memory_space<vmem>>, vector<176x16xbf16>
    %c15 = arith.constant 15 : index
    %c0_31 = arith.constant 0 : index
    %36 = vector.load %arg19[%c15, %c0_31] : memref<416x16xbf16, #tpu.memory_space<vmem>>, vector<176x16xbf16>
    %c26 = arith.constant 26 : index
    %c0_32 = arith.constant 0 : index
    %37 = vector.load %arg19[%c26, %c0_32] : memref<416x16xbf16, #tpu.memory_space<vmem>>, vector<176x16xbf16>
    %c27 = arith.constant 27 : index
    %c0_33 = arith.constant 0 : index
    %38 = vector.load %arg19[%c27, %c0_33] : memref<416x16xbf16, #tpu.memory_space<vmem>>, vector<176x16xbf16>
    %c28 = arith.constant 28 : index
    %c0_34 = arith.constant 0 : index
    %39 = vector.load %arg19[%c28, %c0_34] : memref<416x16xbf16, #tpu.memory_space<vmem>>, vector<176x16xbf16>
    %40 = tpu.concatenate %31, %32, %33, %34, %35, %36, %37, %38, %39 in 1 : vector<176x16xbf16>, vector<176x16xbf16>, vector<176x16xbf16>, vector<176x16xbf16>, vector<176x16xbf16>, vector<176x16xbf16>, vector<176x16xbf16>, vector<176x16xbf16>, vector<176x16xbf16> -> vector<176x144xbf16>
    %c208_35 = arith.constant 208 : index
    %c0_36 = arith.constant 0 : index
    %41 = vector.load %arg19[%c208_35, %c0_36] : memref<416x16xbf16, #tpu.memory_space<vmem>>, vector<176x16xbf16>
    %c209 = arith.constant 209 : index
    %c0_37 = arith.constant 0 : index
    %42 = vector.load %arg19[%c209, %c0_37] : memref<416x16xbf16, #tpu.memory_space<vmem>>, vector<176x16xbf16>
    %c210 = arith.constant 210 : index
    %c0_38 = arith.constant 0 : index
    %43 = vector.load %arg19[%c210, %c0_38] : memref<416x16xbf16, #tpu.memory_space<vmem>>, vector<176x16xbf16>
    %c221 = arith.constant 221 : index
    %c0_39 = arith.constant 0 : index
    %44 = vector.load %arg19[%c221, %c0_39] : memref<416x16xbf16, #tpu.memory_space<vmem>>, vector<176x16xbf16>
    %c222 = arith.constant 222 : index
    %c0_40 = arith.constant 0 : index
    %45 = vector.load %arg19[%c222, %c0_40] : memref<416x16xbf16, #tpu.memory_space<vmem>>, vector<176x16xbf16>
    %c223 = arith.constant 223 : index
    %c0_41 = arith.constant 0 : index
    %46 = vector.load %arg19[%c223, %c0_41] : memref<416x16xbf16, #tpu.memory_space<vmem>>, vector<176x16xbf16>
    %c234 = arith.constant 234 : index
    %c0_42 = arith.constant 0 : index
    %47 = vector.load %arg19[%c234, %c0_42] : memref<416x16xbf16, #tpu.memory_space<vmem>>, vector<176x16xbf16>
    %c235 = arith.constant 235 : index
    %c0_43 = arith.constant 0 : index
    %48 = vector.load %arg19[%c235, %c0_43] : memref<416x16xbf16, #tpu.memory_space<vmem>>, vector<176x16xbf16>
    %c236 = arith.constant 236 : index
    %c0_44 = arith.constant 0 : index
    %49 = vector.load %arg19[%c236, %c0_44] : memref<416x16xbf16, #tpu.memory_space<vmem>>, vector<176x16xbf16>
    %50 = tpu.concatenate %41, %42, %43, %44, %45, %46, %47, %48, %49 in 1 : vector<176x16xbf16>, vector<176x16xbf16>, vector<176x16xbf16>, vector<176x16xbf16>, vector<176x16xbf16>, vector<176x16xbf16>, vector<176x16xbf16>, vector<176x16xbf16>, vector<176x16xbf16> -> vector<176x144xbf16>
    %51 = tpu.concatenate %40, %50 in 0 : vector<176x144xbf16>, vector<176x144xbf16> -> vector<352x144xbf16>
    %c0_45 = arith.constant 0 : index
    %c0_46 = arith.constant 0 : index
    %52 = vector.load %arg4[%c0_45, %c0_46] : memref<144x64xbf16, #tpu.memory_space<vmem>>, vector<144x64xbf16>
    %cst_47 = arith.constant dense<0.000000e+00> : vector<352x64xf32>
    %53 = tpu.matmul %51, %52, %cst_47 {dimension_numbers = #tpu.dot_dimension_numbers<[1], [0], [0], [1], [0, 0, 1, 1], [], []>} : vector<352x144xbf16>, vector<144x64xbf16>, vector<352x64xf32> -> vector<352x64xf32>
    %c0_48 = arith.constant 0 : index
    %c0_49 = arith.constant 0 : index
    %54 = vector.load %arg5[%c0_48, %c0_49] : memref<1x64xf32, #tpu.memory_space<vmem>>, vector<1x64xf32>
    %55 = vector.broadcast %54 : vector<1x64xf32> to vector<352x64xf32>
    %56 = arith.addf %53, %55 : vector<352x64xf32>
    %cst_50 = arith.constant 0.000000e+00 : f32
    %57 = vector.broadcast %cst_50 : f32 to vector<352x64xf32>
    %58 = arith.maximumf %56, %57 : vector<352x64xf32>
    %59 = arith.truncf %58 : vector<352x64xf32> to vector<352x64xbf16>
    %c0_51 = arith.constant 0 : index
    %c0_52 = arith.constant 0 : index
    %60 = vector.load %arg20[%c0_51, %c0_52] : memref<352x64xbf16, #tpu.memory_space<vmem>>, vector<352x64xbf16>
    tpu.vector_store %arg20[%c0_51, %c0_52], %59 {strides = array<i32>} : memref<352x64xbf16, #tpu.memory_space<vmem>>, vector<352x64xbf16>,
    %c0_53 = arith.constant 0 : index
    %c0_54 = arith.constant 0 : index
    %61 = vector.load %arg9[%c0_53, %c0_54] : memref<112x120xbf16, #tpu.memory_space<vmem>>, vector<112x120xbf16>
    %c0_55 = arith.constant 0 : index
    %c0_56 = arith.constant 0 : index
    %62 = vector.load %arg20[%c0_55, %c0_56] : memref<352x64xbf16, #tpu.memory_space<vmem>>, vector<120x64xbf16>
    %c1_57 = arith.constant 1 : index
    %c0_58 = arith.constant 0 : index
    %63 = vector.load %arg20[%c1_57, %c0_58] : memref<352x64xbf16, #tpu.memory_space<vmem>>, vector<120x64xbf16>
    %64 = arith.maximumf %62, %63 : vector<120x64xbf16>
    %c13_59 = arith.constant 13 : index
    %c0_60 = arith.constant 0 : index
    %65 = vector.load %arg20[%c13_59, %c0_60] : memref<352x64xbf16, #tpu.memory_space<vmem>>, vector<120x64xbf16>
    %c14_61 = arith.constant 14 : index
    %c0_62 = arith.constant 0 : index
    %66 = vector.load %arg20[%c14_61, %c0_62] : memref<352x64xbf16, #tpu.memory_space<vmem>>, vector<120x64xbf16>
    %67 = arith.maximumf %65, %66 : vector<120x64xbf16>
    %68 = arith.maximumf %64, %67 : vector<120x64xbf16>
    %cst_63 = arith.constant dense<0.000000e+00> : vector<112x64xf32>
    %69 = tpu.matmul %61, %68, %cst_63 {dimension_numbers = #tpu.dot_dimension_numbers<[1], [0], [0], [1], [0, 0, 1, 1], [], []>} : vector<112x120xbf16>, vector<120x64xbf16>, vector<112x64xf32> -> vector<112x64xf32>
    %70 = arith.truncf %69 : vector<112x64xf32> to vector<112x64xbf16>
    %c0_64 = arith.constant 0 : index
    %c0_65 = arith.constant 0 : index
    %71 = vector.load %arg21[%c0_64, %c0_65] : memref<224x64xbf16, #tpu.memory_space<vmem>>, vector<112x64xbf16>
    tpu.vector_store %arg21[%c0_64, %c0_65], %70 {strides = array<i32>} : memref<224x64xbf16, #tpu.memory_space<vmem>>, vector<112x64xbf16>,
    %c176 = arith.constant 176 : index
    %c0_66 = arith.constant 0 : index
    %72 = vector.load %arg20[%c176, %c0_66] : memref<352x64xbf16, #tpu.memory_space<vmem>>, vector<120x64xbf16>
    %c177 = arith.constant 177 : index
    %c0_67 = arith.constant 0 : index
    %73 = vector.load %arg20[%c177, %c0_67] : memref<352x64xbf16, #tpu.memory_space<vmem>>, vector<120x64xbf16>
    %74 = arith.maximumf %72, %73 : vector<120x64xbf16>
    %c189 = arith.constant 189 : index
    %c0_68 = arith.constant 0 : index
    %75 = vector.load %arg20[%c189, %c0_68] : memref<352x64xbf16, #tpu.memory_space<vmem>>, vector<120x64xbf16>
    %c190 = arith.constant 190 : index
    %c0_69 = arith.constant 0 : index
    %76 = vector.load %arg20[%c190, %c0_69] : memref<352x64xbf16, #tpu.memory_space<vmem>>, vector<120x64xbf16>
    %77 = arith.maximumf %75, %76 : vector<120x64xbf16>
    %78 = arith.maximumf %74, %77 : vector<120x64xbf16>
    %cst_70 = arith.constant dense<0.000000e+00> : vector<112x64xf32>
    %79 = tpu.matmul %61, %78, %cst_70 {dimension_numbers = #tpu.dot_dimension_numbers<[1], [0], [0], [1], [0, 0, 1, 1], [], []>} : vector<112x120xbf16>, vector<120x64xbf16>, vector<112x64xf32> -> vector<112x64xf32>
    %80 = arith.truncf %79 : vector<112x64xf32> to vector<112x64xbf16>
    %c112 = arith.constant 112 : index
    %c0_71 = arith.constant 0 : index
    %81 = vector.load %arg21[%c112, %c0_71] : memref<224x64xbf16, #tpu.memory_space<vmem>>, vector<112x64xbf16>
    tpu.vector_store %arg21[%c112, %c0_71], %80 {strides = array<i32>} : memref<224x64xbf16, #tpu.memory_space<vmem>>, vector<112x64xbf16>,
    %c0_72 = arith.constant 0 : index
    %c0_73 = arith.constant 0 : index
    %82 = vector.load %arg21[%c0_72, %c0_73] : memref<224x64xbf16, #tpu.memory_space<vmem>>, vector<88x64xbf16>
    %c1_74 = arith.constant 1 : index
    %c0_75 = arith.constant 0 : index
    %83 = vector.load %arg21[%c1_74, %c0_75] : memref<224x64xbf16, #tpu.memory_space<vmem>>, vector<88x64xbf16>
    %c2_76 = arith.constant 2 : index
    %c0_77 = arith.constant 0 : index
    %84 = vector.load %arg21[%c2_76, %c0_77] : memref<224x64xbf16, #tpu.memory_space<vmem>>, vector<88x64xbf16>
    %c9 = arith.constant 9 : index
    %c0_78 = arith.constant 0 : index
    %85 = vector.load %arg21[%c9, %c0_78] : memref<224x64xbf16, #tpu.memory_space<vmem>>, vector<88x64xbf16>
    %c10 = arith.constant 10 : index
    %c0_79 = arith.constant 0 : index
    %86 = vector.load %arg21[%c10, %c0_79] : memref<224x64xbf16, #tpu.memory_space<vmem>>, vector<88x64xbf16>
    %c11 = arith.constant 11 : index
    %c0_80 = arith.constant 0 : index
    %87 = vector.load %arg21[%c11, %c0_80] : memref<224x64xbf16, #tpu.memory_space<vmem>>, vector<88x64xbf16>
    %c18 = arith.constant 18 : index
    %c0_81 = arith.constant 0 : index
    %88 = vector.load %arg21[%c18, %c0_81] : memref<224x64xbf16, #tpu.memory_space<vmem>>, vector<88x64xbf16>
    %c19 = arith.constant 19 : index
    %c0_82 = arith.constant 0 : index
    %89 = vector.load %arg21[%c19, %c0_82] : memref<224x64xbf16, #tpu.memory_space<vmem>>, vector<88x64xbf16>
    %c20_83 = arith.constant 20 : index
    %c0_84 = arith.constant 0 : index
    %90 = vector.load %arg21[%c20_83, %c0_84] : memref<224x64xbf16, #tpu.memory_space<vmem>>, vector<88x64xbf16>
    %91 = tpu.concatenate %82, %83, %84, %85, %86, %87, %88, %89, %90 in 1 : vector<88x64xbf16>, vector<88x64xbf16>, vector<88x64xbf16>, vector<88x64xbf16>, vector<88x64xbf16>, vector<88x64xbf16>, vector<88x64xbf16>, vector<88x64xbf16>, vector<88x64xbf16> -> vector<88x576xbf16>
    %c112_85 = arith.constant 112 : index
    %c0_86 = arith.constant 0 : index
    %92 = vector.load %arg21[%c112_85, %c0_86] : memref<224x64xbf16, #tpu.memory_space<vmem>>, vector<88x64xbf16>
    %c113 = arith.constant 113 : index
    %c0_87 = arith.constant 0 : index
    %93 = vector.load %arg21[%c113, %c0_87] : memref<224x64xbf16, #tpu.memory_space<vmem>>, vector<88x64xbf16>
    %c114 = arith.constant 114 : index
    %c0_88 = arith.constant 0 : index
    %94 = vector.load %arg21[%c114, %c0_88] : memref<224x64xbf16, #tpu.memory_space<vmem>>, vector<88x64xbf16>
    %c121 = arith.constant 121 : index
    %c0_89 = arith.constant 0 : index
    %95 = vector.load %arg21[%c121, %c0_89] : memref<224x64xbf16, #tpu.memory_space<vmem>>, vector<88x64xbf16>
    %c122 = arith.constant 122 : index
    %c0_90 = arith.constant 0 : index
    %96 = vector.load %arg21[%c122, %c0_90] : memref<224x64xbf16, #tpu.memory_space<vmem>>, vector<88x64xbf16>
    %c123 = arith.constant 123 : index
    %c0_91 = arith.constant 0 : index
    %97 = vector.load %arg21[%c123, %c0_91] : memref<224x64xbf16, #tpu.memory_space<vmem>>, vector<88x64xbf16>
    %c130 = arith.constant 130 : index
    %c0_92 = arith.constant 0 : index
    %98 = vector.load %arg21[%c130, %c0_92] : memref<224x64xbf16, #tpu.memory_space<vmem>>, vector<88x64xbf16>
    %c131 = arith.constant 131 : index
    %c0_93 = arith.constant 0 : index
    %99 = vector.load %arg21[%c131, %c0_93] : memref<224x64xbf16, #tpu.memory_space<vmem>>, vector<88x64xbf16>
    %c132 = arith.constant 132 : index
    %c0_94 = arith.constant 0 : index
    %100 = vector.load %arg21[%c132, %c0_94] : memref<224x64xbf16, #tpu.memory_space<vmem>>, vector<88x64xbf16>
    %101 = tpu.concatenate %92, %93, %94, %95, %96, %97, %98, %99, %100 in 1 : vector<88x64xbf16>, vector<88x64xbf16>, vector<88x64xbf16>, vector<88x64xbf16>, vector<88x64xbf16>, vector<88x64xbf16>, vector<88x64xbf16>, vector<88x64xbf16>, vector<88x64xbf16> -> vector<88x576xbf16>
    %102 = tpu.concatenate %91, %101 in 0 : vector<88x576xbf16>, vector<88x576xbf16> -> vector<176x576xbf16>
    %c0_95 = arith.constant 0 : index
    %c0_96 = arith.constant 0 : index
    %103 = vector.load %arg6[%c0_95, %c0_96] : memref<576x256xbf16, #tpu.memory_space<vmem>>, vector<576x256xbf16>
    %cst_97 = arith.constant dense<0.000000e+00> : vector<176x256xf32>
    %104 = tpu.matmul %102, %103, %cst_97 {dimension_numbers = #tpu.dot_dimension_numbers<[1], [0], [0], [1], [0, 0, 1, 1], [], []>} : vector<176x576xbf16>, vector<576x256xbf16>, vector<176x256xf32> -> vector<176x256xf32>
    %c0_98 = arith.constant 0 : index
    %c0_99 = arith.constant 0 : index
    %105 = vector.load %arg7[%c0_98, %c0_99] : memref<1x256xf32, #tpu.memory_space<vmem>>, vector<1x256xf32>
    %106 = vector.broadcast %105 : vector<1x256xf32> to vector<176x256xf32>
    %107 = arith.addf %104, %106 : vector<176x256xf32>
    %cst_100 = arith.constant 0.000000e+00 : f32
    %108 = vector.broadcast %cst_100 : f32 to vector<176x256xf32>
    %109 = arith.maximumf %107, %108 : vector<176x256xf32>
    %110 = arith.truncf %109 : vector<176x256xf32> to vector<176x256xbf16>
    %c0_101 = arith.constant 0 : index
    %c0_102 = arith.constant 0 : index
    %111 = vector.load %arg22[%c0_101, %c0_102] : memref<176x256xbf16, #tpu.memory_space<vmem>>, vector<176x256xbf16>
    tpu.vector_store %arg22[%c0_101, %c0_102], %110 {strides = array<i32>} : memref<176x256xbf16, #tpu.memory_space<vmem>>, vector<176x256xbf16>,
    %c0_103 = arith.constant 0 : index
    %c0_104 = arith.constant 0 : index
    %112 = vector.load %arg10[%c0_103, %c0_104] : memref<16x48xbf16, #tpu.memory_space<vmem>>, vector<16x48xbf16>
    %c0_105 = arith.constant 0 : index
    %c0_106 = arith.constant 0 : index
    %113 = vector.load %arg22[%c0_105, %c0_106] : memref<176x256xbf16, #tpu.memory_space<vmem>>, vector<48x256xbf16>
    %c1_107 = arith.constant 1 : index
    %c0_108 = arith.constant 0 : index
    %114 = vector.load %arg22[%c1_107, %c0_108] : memref<176x256xbf16, #tpu.memory_space<vmem>>, vector<48x256xbf16>
    %115 = arith.maximumf %113, %114 : vector<48x256xbf16>
    %c9_109 = arith.constant 9 : index
    %c0_110 = arith.constant 0 : index
    %116 = vector.load %arg22[%c9_109, %c0_110] : memref<176x256xbf16, #tpu.memory_space<vmem>>, vector<48x256xbf16>
    %c10_111 = arith.constant 10 : index
    %c0_112 = arith.constant 0 : index
    %117 = vector.load %arg22[%c10_111, %c0_112] : memref<176x256xbf16, #tpu.memory_space<vmem>>, vector<48x256xbf16>
    %118 = arith.maximumf %116, %117 : vector<48x256xbf16>
    %119 = arith.maximumf %115, %118 : vector<48x256xbf16>
    %cst_113 = arith.constant dense<0.000000e+00> : vector<16x256xf32>
    %120 = tpu.matmul %112, %119, %cst_113 {dimension_numbers = #tpu.dot_dimension_numbers<[1], [0], [0], [1], [0, 0, 1, 1], [], []>} : vector<16x48xbf16>, vector<48x256xbf16>, vector<16x256xf32> -> vector<16x256xf32>
    %c88 = arith.constant 88 : index
    %c0_114 = arith.constant 0 : index
    %121 = vector.load %arg22[%c88, %c0_114] : memref<176x256xbf16, #tpu.memory_space<vmem>>, vector<48x256xbf16>
    %c89 = arith.constant 89 : index
    %c0_115 = arith.constant 0 : index
    %122 = vector.load %arg22[%c89, %c0_115] : memref<176x256xbf16, #tpu.memory_space<vmem>>, vector<48x256xbf16>
    %123 = arith.maximumf %121, %122 : vector<48x256xbf16>
    %c97 = arith.constant 97 : index
    %c0_116 = arith.constant 0 : index
    %124 = vector.load %arg22[%c97, %c0_116] : memref<176x256xbf16, #tpu.memory_space<vmem>>, vector<48x256xbf16>
    %c98 = arith.constant 98 : index
    %c0_117 = arith.constant 0 : index
    %125 = vector.load %arg22[%c98, %c0_117] : memref<176x256xbf16, #tpu.memory_space<vmem>>, vector<48x256xbf16>
    %126 = arith.maximumf %124, %125 : vector<48x256xbf16>
    %127 = arith.maximumf %123, %126 : vector<48x256xbf16>
    %cst_118 = arith.constant dense<0.000000e+00> : vector<16x256xf32>
    %128 = tpu.matmul %112, %127, %cst_118 {dimension_numbers = #tpu.dot_dimension_numbers<[1], [0], [0], [1], [0, 0, 1, 1], [], []>} : vector<16x48xbf16>, vector<48x256xbf16>, vector<16x256xf32> -> vector<16x256xf32>
    %129 = tpu.concatenate %120, %128 in 0 : vector<16x256xf32>, vector<16x256xf32> -> vector<32x256xf32>
    %130 = arith.truncf %129 : vector<32x256xf32> to vector<32x256xbf16>
    %c0_119 = arith.constant 0 : index
    %c0_120 = arith.constant 0 : index
    %131 = vector.load %arg11[%c0_119, %c0_120] : memref<256x256xbf16, #tpu.memory_space<vmem>>, vector<256x256xbf16>
    %cst_121 = arith.constant dense<0.000000e+00> : vector<32x256xf32>
    %132 = tpu.matmul %130, %131, %cst_121 {dimension_numbers = #tpu.dot_dimension_numbers<[1], [0], [0], [1], [0, 0, 1, 1], [], []>} : vector<32x256xbf16>, vector<256x256xbf16>, vector<32x256xf32> -> vector<32x256xf32>
    %c0_122 = arith.constant 0 : index
    %c0_123 = arith.constant 0 : index
    %133 = vector.load %arg12[%c0_122, %c0_123] : memref<1x256xf32, #tpu.memory_space<vmem>>, vector<1x256xf32>
    %134 = vector.broadcast %133 : vector<1x256xf32> to vector<32x256xf32>
    %135 = arith.addf %132, %134 : vector<32x256xf32>
    %cst_124 = arith.constant 0.000000e+00 : f32
    %136 = vector.broadcast %cst_124 : f32 to vector<32x256xf32>
    %137 = arith.maximumf %135, %136 : vector<32x256xf32>
    %138 = arith.truncf %137 : vector<32x256xf32> to vector<32x256xbf16>
    %c0_125 = arith.constant 0 : index
    %c0_126 = arith.constant 0 : index
    %139 = vector.load %arg13[%c0_125, %c0_126] : memref<256x256xbf16, #tpu.memory_space<vmem>>, vector<256x256xbf16>
    %cst_127 = arith.constant dense<0.000000e+00> : vector<32x256xf32>
    %140 = tpu.matmul %138, %139, %cst_127 {dimension_numbers = #tpu.dot_dimension_numbers<[1], [0], [0], [1], [0, 0, 1, 1], [], []>} : vector<32x256xbf16>, vector<256x256xbf16>, vector<32x256xf32> -> vector<32x256xf32>
    %c0_128 = arith.constant 0 : index
    %c0_129 = arith.constant 0 : index
    %141 = vector.load %arg14[%c0_128, %c0_129] : memref<1x256xf32, #tpu.memory_space<vmem>>, vector<1x256xf32>
    %142 = vector.broadcast %141 : vector<1x256xf32> to vector<32x256xf32>
    %143 = arith.addf %140, %142 : vector<32x256xf32>
    %cst_130 = arith.constant 0.000000e+00 : f32
    %144 = vector.broadcast %cst_130 : f32 to vector<32x256xf32>
    %145 = arith.maximumf %143, %144 : vector<32x256xf32>
    %146 = arith.truncf %145 : vector<32x256xf32> to vector<32x256xbf16>
    %c0_131 = arith.constant 0 : index
    %c0_132 = arith.constant 0 : index
    %147 = vector.load %arg15[%c0_131, %c0_132] : memref<256x256xbf16, #tpu.memory_space<vmem>>, vector<256x256xbf16>
    %cst_133 = arith.constant dense<0.000000e+00> : vector<32x256xf32>
    %148 = tpu.matmul %146, %147, %cst_133 {dimension_numbers = #tpu.dot_dimension_numbers<[1], [0], [0], [1], [0, 0, 1, 1], [], []>} : vector<32x256xbf16>, vector<256x256xbf16>, vector<32x256xf32> -> vector<32x256xf32>
    %c0_134 = arith.constant 0 : index
    %c0_135 = arith.constant 0 : index
    %149 = vector.load %arg16[%c0_134, %c0_135] : memref<1x256xf32, #tpu.memory_space<vmem>>, vector<1x256xf32>
    %150 = vector.broadcast %149 : vector<1x256xf32> to vector<32x256xf32>
    %151 = arith.addf %148, %150 : vector<32x256xf32>
    %cst_136 = arith.constant 5.000000e-01 : f32
    %152 = vector.broadcast %cst_136 : f32 to vector<32x256xf32>
    %153 = arith.mulf %152, %151 : vector<32x256xf32>
    %154 = math.tanh %153 : vector<32x256xf32>
    %cst_137 = arith.constant 1.000000e+00 : f32
    %155 = vector.broadcast %cst_137 : f32 to vector<32x256xf32>
    %156 = arith.addf %154, %155 : vector<32x256xf32>
    %cst_138 = arith.constant 5.000000e-01 : f32
    %157 = vector.broadcast %cst_138 : f32 to vector<32x256xf32>
    %158 = arith.mulf %157, %156 : vector<32x256xf32>
    %c0_139 = arith.constant 0 : index
    %c0_140 = arith.constant 0 : index
    %159 = vector.load %arg17[%c0_139, %c0_140] : memref<32x256xf32, #tpu.memory_space<vmem>>, vector<32x256xf32>
    tpu.vector_store %arg17[%c0_139, %c0_140], %158 {strides = array<i32>} : memref<32x256xf32, #tpu.memory_space<vmem>>, vector<32x256xf32>,
    return
  }
  func.func @transform_0(%arg0: i32) -> (i32, i32) {
    %c0_i32 = arith.constant 0 : i32
    %c0_i32_0 = arith.constant 0 : i32
    return %arg0, %c0_i32 : i32, i32
  }
  func.func @transform_1(%arg0: i32) -> (i32, i32) {
    %c0_i32 = arith.constant 0 : i32
    %c0_i32_0 = arith.constant 0 : i32
    %c0_i32_1 = arith.constant 0 : i32
    return %c0_i32, %c0_i32_0 : i32, i32
  }
  func.func @transform_2(%arg0: i32) -> (i32, i32) {
    %c0_i32 = arith.constant 0 : i32
    %c0_i32_0 = arith.constant 0 : i32
    %c0_i32_1 = arith.constant 0 : i32
    return %c0_i32, %c0_i32_0 : i32, i32
  }
  func.func @transform_3(%arg0: i32) -> (i32, i32) {
    %c0_i32 = arith.constant 0 : i32
    %c0_i32_0 = arith.constant 0 : i32
    %c0_i32_1 = arith.constant 0 : i32
    return %c0_i32, %c0_i32_0 : i32, i32
  }
  func.func @transform_4(%arg0: i32) -> (i32, i32) {
    %c0_i32 = arith.constant 0 : i32
    %c0_i32_0 = arith.constant 0 : i32
    %c0_i32_1 = arith.constant 0 : i32
    return %c0_i32, %c0_i32_0 : i32, i32
  }
  func.func @transform_5(%arg0: i32) -> (i32, i32) {
    %c0_i32 = arith.constant 0 : i32
    %c0_i32_0 = arith.constant 0 : i32
    %c0_i32_1 = arith.constant 0 : i32
    return %c0_i32, %c0_i32_0 : i32, i32
  }
  func.func @transform_6(%arg0: i32) -> (i32, i32) {
    %c0_i32 = arith.constant 0 : i32
    %c0_i32_0 = arith.constant 0 : i32
    %c0_i32_1 = arith.constant 0 : i32
    return %c0_i32, %c0_i32_0 : i32, i32
  }
  func.func @transform_7(%arg0: i32) -> (i32, i32) {
    %c0_i32 = arith.constant 0 : i32
    %c0_i32_0 = arith.constant 0 : i32
    %c0_i32_1 = arith.constant 0 : i32
    return %c0_i32, %c0_i32_0 : i32, i32
  }
  func.func @transform_8(%arg0: i32) -> (i32, i32) {
    %c0_i32 = arith.constant 0 : i32
    %c0_i32_0 = arith.constant 0 : i32
    %c0_i32_1 = arith.constant 0 : i32
    return %c0_i32, %c0_i32_0 : i32, i32
  }
  func.func @transform_9(%arg0: i32) -> (i32, i32) {
    %c0_i32 = arith.constant 0 : i32
    %c0_i32_0 = arith.constant 0 : i32
    %c0_i32_1 = arith.constant 0 : i32
    return %c0_i32, %c0_i32_0 : i32, i32
  }
  func.func @transform_10(%arg0: i32) -> (i32, i32) {
    %c0_i32 = arith.constant 0 : i32
    %c0_i32_0 = arith.constant 0 : i32
    %c0_i32_1 = arith.constant 0 : i32
    return %c0_i32, %c0_i32_0 : i32, i32
  }
  func.func @transform_11(%arg0: i32) -> (i32, i32) {
    %c0_i32 = arith.constant 0 : i32
    %c0_i32_0 = arith.constant 0 : i32
    %c0_i32_1 = arith.constant 0 : i32
    return %c0_i32, %c0_i32_0 : i32, i32
  }
  func.func @transform_12(%arg0: i32) -> (i32, i32) {
    %c0_i32 = arith.constant 0 : i32
    %c0_i32_0 = arith.constant 0 : i32
    %c0_i32_1 = arith.constant 0 : i32
    return %c0_i32, %c0_i32_0 : i32, i32
  }
  func.func @transform_13(%arg0: i32) -> (i32, i32) {
    %c0_i32 = arith.constant 0 : i32
    %c0_i32_0 = arith.constant 0 : i32
    %c0_i32_1 = arith.constant 0 : i32
    return %c0_i32, %c0_i32_0 : i32, i32
  }
  func.func @transform_14(%arg0: i32) -> (i32, i32) {
    %c0_i32 = arith.constant 0 : i32
    %c0_i32_0 = arith.constant 0 : i32
    %c0_i32_1 = arith.constant 0 : i32
    return %c0_i32, %c0_i32_0 : i32, i32
  }
  func.func @transform_15(%arg0: i32) -> (i32, i32) {
    %c0_i32 = arith.constant 0 : i32
    %c0_i32_0 = arith.constant 0 : i32
    %c0_i32_1 = arith.constant 0 : i32
    return %c0_i32, %c0_i32_0 : i32, i32
  }
  func.func @transform_16(%arg0: i32) -> (i32, i32) {
    %c0_i32 = arith.constant 0 : i32
    %c0_i32_0 = arith.constant 0 : i32
    return %arg0, %c0_i32 : i32, i32
  }
}

</mosaic_0001>

<bundles_post_ra>
// kernel: forward.1
= control target key start
LH: loop header
LB: loop body
LE: loop exit
PB: predicated region body
PF: predicated region fallthrough
CT: control target
= control target key end

     0   :  { %vm577_vm0 = vcmask 1044480   ;;  %vm578_vm1 = vcmask 1045504   ;;  %v14111_v1 = vmov 65535   ;;  %vm426_vm2 = vcmask 220160   ;;  %s14115_s20 = smov 32   ;;  %s14119_s26 = smov 80   ;;  %s20584_s1 = inlined_call_operand.vmem [shape: bf16[27,16], index: 1, kind: input, shape index: {}]   ;;  %s20585_s0 = inlined_call_operand.vmem [shape: bf16[800,27], index: 0, kind: input, shape index: {}]   ;;  %s20586_s2 = inlined_call_operand.vmem [shape: f32[1,16], index: 2, kind: input, shape index: {}]   ;;  %s20587_s7 = inlined_call_operand.vmem [shape: bf16[208,344], index: 7, kind: input, shape index: {}]   ;;  %s20588_s3 = inlined_call_operand.vmem [shape: bf16[144,64], index: 3, kind: input, shape index: {}]   ;;  %s20589_s4 = inlined_call_operand.vmem [shape: f32[1,64], index: 4, kind: input, shape index: {}]   ;;  %s20590_s8 = inlined_call_operand.vmem [shape: bf16[112,120], index: 8, kind: input, shape index: {}]   ;;  %s20591_s5 = inlined_call_operand.vmem [shape: bf16[576,256], index: 5, kind: input, shape index: {}]   ;;  %s20592_s6 = inlined_call_operand.vmem [shape: f32[1,256], index: 6, kind: input, shape index: {}]   ;;  %s20593_s9 = inlined_call_operand.vmem [shape: bf16[16,48], index: 9, kind: input, shape index: {}]   ;;  %s20594_s10 = inlined_call_operand.vmem [shape: bf16[256,256], index: 10, kind: input, shape index: {}]   ;;  %s20595_s12 = inlined_call_operand.vmem [shape: bf16[256,256], index: 12, kind: input, shape index: {}]   ;;  %s20596_s14 = inlined_call_operand.vmem [shape: bf16[256,256], index: 14, kind: input, shape index: {}]   ;;  %s20597_s11 = inlined_call_operand.vmem [shape: f32[1,256], index: 11, kind: input, shape index: {}]   ;;  %s20598_s13 = inlined_call_operand.vmem [shape: f32[1,256], index: 13, kind: input, shape index: {}]   ;;  %s20599_s15 = inlined_call_operand.vmem [shape: f32[1,256], index: 15, kind: input, shape index: {}]   ;;  %s20600_s16 = inlined_call_operand.vmem [shape: f32[32,256], index: 16, kind: output, shape index: {}]  }
   0x1   :  { %20649 = sst [smem:[#allocation22_spill]] %s20584_s1  ;;  %v579_v2 = vsel %vm577_vm0, 4294967295, %v14111_v1  ;;  %v13618_v4 = vld [vmem:[%s20585_s0] sm:$0xff]   ;;  %v13619_v7 = vld [vmem:[%s20585_s0 + $0x8] sm:$0xff]   ;;  %v13620_v8 = vld [vmem:[%s20585_s0 + $0x10] sm:$0xff]   ;;  %vm1517_vm3 = vcmask 125952  }
   0x2   :  { %s20650_s23 = sld [smem:[#allocation22_spill]]  ;;  %v580_v3 = vsel %vm578_vm1, %v579_v2, 0  ;;  %13281 = vmatprep.mubr.msk.bf16.mxu0 %vm426_vm2, %v13618_v4  ;;  %v13621_v9 = vld [vmem:[%s20585_s0 + $0x18] sm:$0xff]   ;;  %v13622_v10 = vld [vmem:[%s20585_s0 + $0x20] sm:$0xff]   ;;  %v13623_v11 = vld [vmem:[%s20585_s0 + $0x28] sm:$0xff]   ;;  %vm2336_vm7 = vcmask 1041408  }
   0x3   :  { %v13624_v12 = vld [vmem:[%s20585_s0 + $0x30] sm:$0xff]   ;;  %v13625_v13 = vld [vmem:[%s20585_s0 + $0x38] sm:$0xff]   ;;  %v13626_v14 = vld [vmem:[%s20585_s0 + $0x40] sm:$0xff]   ;;  %vm1714_vm4 = vsmask.f32 3328  ;;  %vm2337_vm8 = vcmask 1045508  }
   0x4   :  { %v13627_v15 = vld [vmem:[%s20585_s0 + $0x48] sm:$0xff]   ;;  %v13628_v16 = vld [vmem:[%s20585_s0 + $0x50] sm:$0xff]   ;;  %v13629_v17 = vld [vmem:[%s20585_s0 + $0x58] sm:$0xff]   ;;  %vm1715_vm5 = vsmask.f32 7440  ;;  %vm20631_vm10 = vcmask 1043456  }
   0x5   :  { %v13630_v18 = vld [vmem:[%s20585_s0 + $0x60] sm:$0xff]   ;;  %v13631_v19 = vld [vmem:[%s20585_s0 + $0x68] sm:$0xff]   ;;  %v13632_v20 = vld [vmem:[%s20585_s0 + $0x70] sm:$0xff]   ;;  %vm2879_vm11 = vcmask 719872   ;;  %vm20628_vm12 = vmmov 0   ;;  %vm4952_vm13 = vcmask 1046528  }
   0x6   :  { %v13633_v21 = vld [vmem:[%s20585_s0 + $0x78] sm:$0xff]   ;;  %v13634_v22 = vld [vmem:[%s20585_s0 + $0x80] sm:$0xff]   ;;  %v13635_v23 = vld [vmem:[%s20585_s0 + $0x88] sm:$0xff]   ;;  %vm4834_vm14 = vsmask.f32 7424  ;;  %s14120_s27 = smov 96  }
   0x7   :  { %v13636_v24 = vld [vmem:[%s20585_s0 + $0x90] sm:$0xff]   ;;  %v13637_v25 = vld [vmem:[%s20585_s0 + $0x98] sm:$0xff]   ;;  %v13638_v26 = vld [vmem:[%s20585_s0 + $0xa0] sm:$0xff]   ;;  %vm5016_vm15 = vsmask.f32 5376  ;;  %s14121_s28 = smov 112  }
   0x8   :  { %v13616_v0 = vld [vmem:[%s20650_s23 + $0x8] sm:$0x3f]   ;;  %v13617_v6 = vld [vmem:[%s20650_s23] sm:$0xff]   ;;  %v13640_v28 = vld [vmem:[%s20585_s0 + $0xb0] sm:$0xff]   ;;  %s14116_s23 = smov 64  }
   0x9   :  { %v582_v5 = vand.u32 %v13616_v0, %v580_v3  ;;  %v13639_v27 = vld [vmem:[%s20585_s0 + $0xa8] sm:$0xff]   ;;  %v13641_v29 = vld [vmem:[%s20585_s0 + $0xb8] sm:$0xff]   ;;  %v13642_v30 = vld [vmem:[%s20585_s0 + $0xc0] sm:$0xff]  }
   0xa   :  { %v13643_v31 = vld [vmem:[%s20585_s0 + $0xc8] sm:$0xff]   ;;  %v13644_v32 = vld [vmem:[%s20585_s0 + $0xd0] sm:$0xff]   ;;  %v13645_v33 = vld [vmem:[%s20585_s0 + $0xd8] sm:$0xff]  }
   0xb   :  { %13277 = vmatprep.subr.bf16.mxu0 %v582_v5  ;;  %v13646_v34 = vld [vmem:[%s20585_s0 + $0xe0] sm:$0xff]   ;;  %v13647_v35 = vld [vmem:[%s20585_s0 + $0xe8] sm:$0xff]   ;;  %v13648_v36 = vld [vmem:[%s20585_s0 + $0xf0] sm:$0xff]  }
   0xc   :  { %13278 = vmatpush3.bf16.msra.mxu0 %v582_v5  ;;  %v13649_v37 = vld [vmem:[%s20585_s0 + $0xf8] sm:$0xff]   ;;  %v13650_v38 = vld [vmem:[%s20585_s0 + $0x100] sm:$0xff]   ;;  %v13651_v39 = vld [vmem:[%s20585_s0 + $0x108] sm:$0xff]  }
   0xd   :  { %13279 = vmatprep.subr.bf16.mxu0 %v13617_v6  ;;  %v13652_v40 = vld [vmem:[%s20585_s0 + $0x110] sm:$0xff]   ;;  %v13653_v41 = vld [vmem:[%s20585_s0 + $0x118] sm:$0xff]   ;;  %v13654_v42 = vld [vmem:[%s20585_s0 + $0x120] sm:$0xff]  }
   0xe   :  { %v13655_v43 = vld [vmem:[%s20585_s0 + $0x128] sm:$0xff]   ;;  %v13656_v44 = vld [vmem:[%s20585_s0 + $0x130] sm:$0xff]   ;;  %v13657_v45 = vld [vmem:[%s20585_s0 + $0x138] sm:$0xff]  }
   0xf   :  { %v13658_v46 = vld [vmem:[%s20585_s0 + $0x140] sm:$0xff]   ;;  %v13659_v47 = vld [vmem:[%s20585_s0 + $0x148] sm:$0xff]   ;;  %v13660_v48 = vld [vmem:[%s20585_s0 + $0x150] sm:$0xff]  }
  0x10   :  { %13280 = vmatpush3.bf16.msra.mxu0 %v13617_v6  ;;  %v13661_v49 = vld [vmem:[%s20585_s0 + $0x158] sm:$0xff]   ;;  %v13662_v50 = vld [vmem:[%s20585_s0 + $0x160] sm:$0xff]   ;;  %v13663_v51 = vld [vmem:[%s20585_s0 + $0x168] sm:$0xff]  }
  0x11   :  { %v13664_v52 = vld [vmem:[%s20585_s0 + $0x170] sm:$0xff]   ;;  %v13665_v53 = vld [vmem:[%s20585_s0 + $0x178] sm:$0xff]   ;;  %v14410_v54 = vld [vmem:[%s20586_s2] ss:$0 sm:$0xff] }
  0x12   :  { %vm14436_vm6 = vmor %vm1714_vm4, %vm1715_vm5  ;;  %vm5447_vm4 = vcmask 130048   ;;  %vm5335_vm5 = vsmask.f32 6400 }
  0x13   :  { %13282 = vmatmul.mubr.msk.bf16.vlgmr.msra.gmra.mxu0 %vm426_vm2, %v13619_v7  ;;  %vm14617_vm9 = vmor %vm2336_vm7, %vm2337_vm8  ;;  %vm5470_vm7 = vcmask 261120   ;;  %vm5493_vm8 = vcmask 392192  }
  0x14   :  { %13285 = vmatprep.mubr.msk.bf16.mxu0 %vm426_vm2, %v13620_v8 }
  0x1b   :  { %13286 = vmatmul.mubr.msk.bf16.gmra.mxu0 %vm426_vm2, %v13621_v9 }
  0x1c   :  { %13289 = vmatprep.mubr.msk.bf16.mxu0 %vm426_vm2, %v13622_v10 }
  0x23   :  { %13290 = vmatmul.mubr.msk.bf16.gmra.mxu0 %vm426_vm2, %v13623_v11 }
  0x24   :  { %13293 = vmatprep.mubr.msk.bf16.mxu0 %vm426_vm2, %v13624_v12 }
  0x2b   :  { %13294 = vmatmul.mubr.msk.bf16.gmra.mxu0 %vm426_vm2, %v13625_v13 }
  0x2c   :  { %13297 = vmatprep.mubr.msk.bf16.mxu0 %vm426_vm2, %v13626_v14 }
  0x33   :  { %13298 = vmatmul.mubr.msk.bf16.gmra.mxu0 %vm426_vm2, %v13627_v15 }
  0x34   :  { %13301 = vmatprep.mubr.msk.bf16.mxu0 %vm426_vm2, %v13628_v16 }
  0x3b   :  { %13302 = vmatmul.mubr.msk.bf16.gmra.mxu0 %vm426_vm2, %v13629_v17 }
  0x3c   :  { %13305 = vmatprep.mubr.msk.bf16.mxu0 %vm426_vm2, %v13630_v18 }
  0x43   :  { %13306 = vmatmul.mubr.msk.bf16.gmra.mxu0 %vm426_vm2, %v13631_v19 }
  0x44   :  { %13309 = vmatprep.mubr.msk.bf16.mxu0 %vm426_vm2, %v13632_v20 }
  0x4b   :  { %13310 = vmatmul.mubr.msk.bf16.gmra.mxu0 %vm426_vm2, %v13633_v21 }
  0x4c   :  { %13313 = vmatprep.mubr.msk.bf16.mxu0 %vm426_vm2, %v13634_v22 }
  0x53   :  { %13314 = vmatmul.mubr.msk.bf16.gmra.mxu0 %vm426_vm2, %v13635_v23 }
  0x54   :  { %13317 = vmatprep.mubr.msk.bf16.mxu0 %vm426_vm2, %v13636_v24 }
  0x5b   :  { %13318 = vmatmul.mubr.msk.bf16.gmra.mxu0 %vm426_vm2, %v13637_v25 }
  0x5c   :  { %13321 = vmatprep.mubr.msk.bf16.mxu0 %vm426_vm2, %v13638_v26 }
  0x63   :  { %13322 = vmatmul.mubr.msk.bf16.gmra.mxu0 %vm426_vm2, %v13639_v27 }
  0x64   :  { %13325 = vmatprep.mubr.msk.bf16.mxu0 %vm426_vm2, %v13640_v28 }
  0x6b   :  { %13326 = vmatmul.mubr.msk.bf16.gmra.mxu0 %vm426_vm2, %v13641_v29 }
  0x6c   :  { %13329 = vmatprep.mubr.msk.bf16.mxu0 %vm426_vm2, %v13642_v30 }
  0x73   :  { %13330 = vmatmul.mubr.msk.bf16.gmra.mxu0 %vm426_vm2, %v13643_v31 }
  0x74   :  { %13333 = vmatprep.mubr.msk.bf16.mxu0 %vm426_vm2, %v13644_v32 }
  0x7b   :  { %13334 = vmatmul.mubr.msk.bf16.gmra.mxu0 %vm426_vm2, %v13645_v33 }
  0x7c   :  { %13337 = vmatprep.mubr.msk.bf16.mxu0 %vm426_vm2, %v13646_v34 }
  0x83   :  { %13338 = vmatmul.mubr.msk.bf16.gmra.mxu0 %vm426_vm2, %v13647_v35 }
  0x84   :  { %13341 = vmatprep.mubr.msk.bf16.mxu0 %vm426_vm2, %v13648_v36 }
  0x8b   :  { %13342 = vmatmul.mubr.msk.bf16.gmra.mxu0 %vm426_vm2, %v13649_v37 }
  0x8c   :  { %13345 = vmatprep.mubr.msk.bf16.mxu0 %vm426_vm2, %v13650_v38 }
  0x93   :  { %13346 = vmatmul.mubr.msk.bf16.gmra.mxu0 %vm426_vm2, %v13651_v39 }
  0x94   :  { %13349 = vmatprep.mubr.msk.bf16.mxu0 %vm426_vm2, %v13652_v40 }
  0x9b   :  { %13350 = vmatmul.mubr.msk.bf16.gmra.mxu0 %vm426_vm2, %v13653_v41  ;;  %v20652_v41 = vmov 0 }
  0x9c   :  { %13353 = vmatprep.mubr.msk.bf16.mxu0 %vm426_vm2, %v13654_v42  ;;  %v20653_v41 = vsel %vm14436_vm6, 4294967295, %v20652_v41 }
  0x9d   :  { %20654 = vst [vmem:[#allocation8_spill] sm:$0xff] %v20653_v41 }
  0xa3   :  { %13354 = vmatmul.mubr.msk.bf16.gmra.mxu0 %vm426_vm2, %v13655_v43 }
  0xa4   :  { %13357 = vmatprep.mubr.msk.bf16.mxu0 %vm426_vm2, %v13656_v44 }
  0xab   :  { %13358 = vmatmul.mubr.msk.bf16.gmra.mxu0 %vm426_vm2, %v13657_v45 }
  0xac   :  { %13361 = vmatprep.mubr.msk.bf16.mxu0 %vm426_vm2, %v13658_v46 }
  0xb3   :  { %13362 = vmatmul.mubr.msk.bf16.gmra.mxu0 %vm426_vm2, %v13659_v47 }
  0xb4   :  { %13365 = vmatprep.mubr.msk.bf16.mxu0 %vm426_vm2, %v13660_v48 }
  0xbb   :  { %13366 = vmatmul.mubr.msk.bf16.gmra.mxu0 %vm426_vm2, %v13661_v49 }
  0xbc   :  { %13369 = vmatprep.mubr.msk.bf16.mxu0 %vm426_vm2, %v13662_v50 }
  0xc3   :  { %13370 = vmatmul.mubr.msk.bf16.gmra.mxu0 %vm426_vm2, %v13663_v51 }
  0xc4   :  { %13373 = vmatprep.mubr.msk.bf16.mxu0 %vm426_vm2, %v13664_v52 }
  0xcb   :  { %13374 = vmatmul.mubr.msk.bf16.gmra.mxu0 %vm426_vm2, %v13665_v53 }
  0xd3   :  { %v13283_v55 = vpop.f32.mrf.mxu0 }
  0xd4   :  { %v627_v56 = vadd.f32 %v13283_v55, %v14410_v54 }
  0xd5   :  { %v618_v57 = vpop.f32.mrf.mxu0 }
  0xd6   :  { %v1019_v58 = vmax.f32 %v627_v56, 0.0  ;;  %v619_v59 = vadd.f32 %v14410_v54, %v618_v57 }
  0xd7   :  { %v13284_v60 = vpop.f32.mrf.mxu0 }
  0xd8   :  { %v12725_v61 = vpack.c.bf16 %v1019_v58, %v1019_v58  ;;  %v1017_v62 = vmax.f32 %v619_v59, 0.0  ;;  %v630_v63 = vadd.f32 %v13284_v60, %v14410_v54 }
  0xd9   :  { %v621_v0 = vpop.f32.mrf.mxu0 }
  0xda   :  { %1520 = vst.msk [vmem:[#allocation2 + $0x8] sm:$0xf] %vm1517_vm3, %v12725_v61  ;;  %v12723_v1 = vpack.c.bf16 %v1017_v62, %v1017_v62  ;;  %v1020_v2 = vmax.f32 %v630_v63, 0.0  ;;  %v622_v3 = vadd.f32 %v14410_v54, %v621_v0 }
  0xdb   :  { %v13287_v4 = vpop.f32.mrf.mxu0 }
  0xdc   :  { %1518 = vst.msk [vmem:[#allocation2] sm:$0xf] %vm1517_vm3, %v12723_v1  ;;  %v12726_v5 = vpack.c.bf16 %v1020_v2, %v1020_v2  ;;  %v1018_v6 = vmax.f32 %v622_v3, 0.0  ;;  %v643_v7 = vadd.f32 %v13287_v4, %v14410_v54 }
  0xdd   :  { %v634_v8 = vpop.f32.mrf.mxu0 }
  0xde   :  { %1521 = vst.msk [vmem:[#allocation2 + $0xc] sm:$0xf] %vm1517_vm3, %v12726_v5  ;;  %v12724_v9 = vpack.c.bf16 %v1018_v6, %v1018_v6  ;;  %v1023_v10 = vmax.f32 %v643_v7, 0.0  ;;  %v635_v11 = vadd.f32 %v14410_v54, %v634_v8 }
  0xdf   :  { %v13288_v12 = vpop.f32.mrf.mxu0 }
  0xe0   :  { %1519 = vst.msk [vmem:[#allocation2 + $0x4] sm:$0xf] %vm1517_vm3, %v12724_v9  ;;  %v12729_v13 = vpack.c.bf16 %v1023_v10, %v1023_v10  ;;  %v1021_v14 = vmax.f32 %v635_v11, 0.0  ;;  %v646_v15 = vadd.f32 %v13288_v12, %v14410_v54 }
  0xe1   :  { %v637_v16 = vpop.f32.mrf.mxu0  ;;  %v1672_v17 = vld [vmem:[#allocation2 + $0x8] sm:$0xf] }
  0xe2   :  { %1524 = vst.msk [vmem:[#allocation2 + $0x18] sm:$0xf] %vm1517_vm3, %v12729_v13  ;;  %v12727_v18 = vpack.c.bf16 %v1021_v14, %v1021_v14  ;;  %v1024_v19 = vmax.f32 %v646_v15, 0.0  ;;  %v638_v20 = vadd.f32 %v14410_v54, %v637_v16  ;;  %v1737_v21 = vshll.u32 %v1672_v17, 16 }
  0xe3   :  { %v13291_v22 = vpop.f32.mrf.mxu0  ;;  %v1741_v23 = vshrl.u32 %v1672_v17, 16  ;;  %v14442_v43 = vld [vmem:[#allocation2] sm:$0xf] }
  0xe4   :  { %1522 = vst.msk [vmem:[#allocation2 + $0x10] sm:$0xf] %vm1517_vm3, %v12727_v18  ;;  %v12730_v24 = vpack.c.bf16 %v1024_v19, %v1024_v19  ;;  %v1022_v25 = vmax.f32 %v638_v20, 0.0  ;;  %v659_v26 = vadd.f32 %v13291_v22, %v14410_v54  ;;  %v14427_v27 = vrot.slane %v1737_v21, 5  ;;  %20656 = vst [vmem:[#allocation10_spill] sm:$0xff] %v14442_v43 }
  0xe5   :  { %v650_v28 = vpop.f32.mrf.mxu0  ;;  %v1673_v29 = vld [vmem:[#allocation2 + $0xc] sm:$0xf]  ;;  %v1743_v30 = vrot.slane %v1741_v23, 4  ;;  %v1718_v48 = vshrl.u32 %v14442_v43, 16 }
  0xe6   :  { %20651 = vst [vmem:[#allocation7_spill] sm:$0xff] %v14427_v27  ;;  %1525 = vst.msk [vmem:[#allocation2 + $0x1c] sm:$0xf] %vm1517_vm3, %v12730_v24  ;;  %v12728_v31 = vpack.c.bf16 %v1022_v25, %v1022_v25  ;;  %v1027_v32 = vmax.f32 %v659_v26, 0.0  ;;  %v651_v33 = vadd.f32 %v14410_v54, %v650_v28  ;;  %v1747_v34 = vshll.u32 %v1673_v29, 16 }
  0xe7   :  { %v13292_v35 = vpop.f32.mrf.mxu0  ;;  %v1744_v36 = vor.u32 %v1743_v30, %v14427_v27  ;;  %v1751_v37 = vshrl.u32 %v1673_v29, 16  ;;  %v14459_v5 = vrot.slane %v1718_v48, 4 }
  0xe8   :  { %1523 = vst.msk [vmem:[#allocation2 + $0x14] sm:$0xf] %vm1517_vm3, %v12728_v31  ;;  %v12733_v38 = vpack.c.bf16 %v1027_v32, %v1027_v32  ;;  %v1025_v39 = vmax.f32 %v651_v33, 0.0  ;;  %v662_v40 = vadd.f32 %v13292_v35, %v14410_v54  ;;  %v14440_v42 = vrot.slane %v1747_v34, 5 }
  0xe9   :  { %v653_v44 = vpop.f32.mrf.mxu0  ;;  %v1676_v45 = vld [vmem:[#allocation2 + $0x18] sm:$0xf]  ;;  %v14444_v46 = vrot.slane %v1744_v36, 4  ;;  %v1753_v47 = vrot.slane %v1751_v37, 4  ;;  %20659 = vst [vmem:[#allocation13_spill] sm:$0xff] %v14459_v5 }
  0xea   :  { %20655 = vst [vmem:[#allocation9_spill] sm:$0xff] %v14440_v42  ;;  %1528 = vst.msk [vmem:[#allocation2 + $0x28] sm:$0xf] %vm1517_vm3, %v12733_v38  ;;  %v12731_v49 = vpack.c.bf16 %v1025_v39, %v1025_v39  ;;  %v1028_v50 = vmax.f32 %v662_v40, 0.0  ;;  %v654_v51 = vadd.f32 %v14410_v54, %v653_v44  ;;  %v1777_v52 = vshll.u32 %v1676_v45, 16 }
  0xeb   :  { %20657 = vst [vmem:[#allocation11_spill] sm:$0xff] %v14444_v46  ;;  %v13295_v53 = vpop.f32.mrf.mxu0  ;;  %v1781_v55 = vshrl.u32 %v1676_v45, 16  ;;  %v1674_v56 = vld [vmem:[#allocation2 + $0x10] sm:$0xf]  ;;  %v1754_v58 = vor.u32 %v1753_v47, %v14440_v42 }
  0xec   :  { %1526 = vst.msk [vmem:[#allocation2 + $0x20] sm:$0xf] %vm1517_vm3, %v12731_v49  ;;  %v12734_v60 = vpack.c.bf16 %v1028_v50, %v1028_v50  ;;  %v1026_v61 = vmax.f32 %v654_v51, 0.0  ;;  %v675_v62 = vadd.f32 %v13295_v53, %v14410_v54  ;;  %v14457_v63 = vrot.slane %v1777_v52, 5 }
  0xed   :  { %v666_v0 = vpop.f32.mrf.mxu0  ;;  %v1677_v1 = vld [vmem:[#allocation2 + $0x1c] sm:$0xf]  ;;  %v1783_v2 = vrot.slane %v1781_v55, 4  ;;  %v1757_v3 = vshll.u32 %v1674_v56, 16  ;;  %v1761_v4 = vshrl.u32 %v1674_v56, 16  ;;  %v14477_v25 = vrot.slane %v1754_v58, 4 }
  0xee   :  { %20658 = vst [vmem:[#allocation12_spill] sm:$0xff] %v14457_v63  ;;  %1529 = vst.msk [vmem:[#allocation2 + $0x2c] sm:$0xf] %vm1517_vm3, %v12734_v60  ;;  %v12732_v6 = vpack.c.bf16 %v1026_v61, %v1026_v61  ;;  %v1031_v7 = vmax.f32 %v675_v62, 0.0  ;;  %v667_v8 = vadd.f32 %v14410_v54, %v666_v0  ;;  %v1787_v9 = vshll.u32 %v1677_v1, 16 }
  0xef   :  { %v13296_v10 = vpop.f32.mrf.mxu0  ;;  %v1784_v11 = vor.u32 %v1783_v2, %v14457_v63  ;;  %v1791_v12 = vshrl.u32 %v1677_v1, 16  ;;  %v14464_v13 = vrot.slane %v1757_v3, 5  ;;  %v1763_v14 = vrot.slane %v1761_v4, 4  ;;  %v14470_v19 = vld [vmem:[#allocation2 + $0x14] sm:$0xf]  ;;  %20661 = vst [vmem:[#allocation15_spill] sm:$0xff] %v14477_v25 }
  0xf0   :  { %1527 = vst.msk [vmem:[#allocation2 + $0x24] sm:$0xf] %vm1517_vm3, %v12732_v6  ;;  %v12737_v15 = vpack.c.bf16 %v1031_v7, %v1031_v7  ;;  %v1029_v16 = vmax.f32 %v667_v8, 0.0  ;;  %v678_v17 = vadd.f32 %v13296_v10, %v14410_v54  ;;  %v14468_v18 = vrot.slane %v1787_v9, 5 }
  0xf1   :  { %20660 = vst [vmem:[#allocation14_spill] sm:$0xff] %v14464_v13  ;;  %v669_v20 = vpop.f32.mrf.mxu0  ;;  %v14472_v21 = vld [vmem:[#allocation2 + $0x28] sm:$0xf]  ;;  %v14474_v22 = vrot.slane %v1784_v11, 4  ;;  %v1793_v23 = vrot.slane %v1791_v12, 4  ;;  %v1764_v24 = vor.u32 %v1763_v14, %v14464_v13 }
  0xf2   :  { %1532 = vst.msk [vmem:[#allocation2 + $0x38] sm:$0xf] %vm1517_vm3, %v12737_v15  ;;  %v12735_v26 = vpack.c.bf16 %v1029_v16, %v1029_v16  ;;  %v1032_v28 = vmax.f32 %v678_v17, 0.0  ;;  %v670_v29 = vadd.f32 %v14410_v54, %v669_v20  ;;  %v1817_v30 = vshll.u32 %v14472_v21, 16 }
  0xf3   :  { %v13299_v31 = vpop.f32.mrf.mxu0  ;;  %v1821_v32 = vshrl.u32 %v14472_v21, 16  ;;  %v1678_v33 = vld [vmem:[#allocation2 + $0x20] sm:$0xf]  ;;  %v1794_v35 = vor.u32 %v1793_v23, %v14468_v18  ;;  %v14495_v50 = vrot.slane %v1764_v24, 4 }
  0xf4   :  { %1530 = vst.msk [vmem:[#allocation2 + $0x30] sm:$0xf] %vm1517_vm3, %v12735_v26  ;;  %v12738_v37 = vpack.c.bf16 %v1032_v28, %v1032_v28  ;;  %v1030_v38 = vmax.f32 %v670_v29, 0.0  ;;  %v691_v39 = vadd.f32 %v13299_v31, %v14410_v54  ;;  %v14491_v40 = vrot.slane %v1817_v30, 5 }
  0xf5   :  { %v682_v44 = vpop.f32.mrf.mxu0  ;;  %v14493_v45 = vld [vmem:[#allocation2 + $0x2c] sm:$0xf]  ;;  %v1823_v47 = vrot.slane %v1821_v32, 4  ;;  %v1797_v48 = vshll.u32 %v1678_v33, 16  ;;  %v1801_v49 = vshrl.u32 %v1678_v33, 16  ;;  %20662 = vst [vmem:[#allocation16_spill] sm:$0xff] %v14495_v50 }
  0xf6   :  { %1533 = vst.msk [vmem:[#allocation2 + $0x3c] sm:$0xf] %vm1517_vm3, %v12738_v37  ;;  %v12736_v51 = vpack.c.bf16 %v1030_v38, %v1030_v38  ;;  %v1035_v52 = vmax.f32 %v691_v39, 0.0  ;;  %v683_v53 = vadd.f32 %v14410_v54, %v682_v44  ;;  %v1827_v55 = vshll.u32 %v14493_v45, 16 }
  0xf7   :  { %v13300_v56 = vpop.f32.mrf.mxu0  ;;  %v1824_v58 = vor.u32 %v1823_v47, %v14491_v40  ;;  %v1831_v60 = vshrl.u32 %v14493_v45, 16  ;;  %v14502_v61 = vrot.slane %v1797_v48, 5  ;;  %v1803_v62 = vrot.slane %v1801_v49, 4  ;;  %v14508_v4 = vld [vmem:[#allocation2 + $0x24] sm:$0xf] }
  0xf8   :  { %1531 = vst.msk [vmem:[#allocation2 + $0x34] sm:$0xf] %vm1517_vm3, %v12736_v51  ;;  %v12741_v0 = vpack.c.bf16 %v1035_v52, %v1035_v52  ;;  %v1033_v1 = vmax.f32 %v683_v53, 0.0  ;;  %v694_v2 = vadd.f32 %v13300_v56, %v14410_v54  ;;  %v14506_v3 = vrot.slane %v1827_v55, 5 }
  0xf9   :  { %v685_v6 = vpop.f32.mrf.mxu0  ;;  %v14510_v7 = vld [vmem:[#allocation2 + $0x38] sm:$0xf]  ;;  %v14512_v8 = vrot.slane %v1824_v58, 4  ;;  %v1833_v9 = vrot.slane %v1831_v60, 4  ;;  %v1804_v10 = vor.u32 %v1803_v62, %v14502_v61  ;;  %v14515_v11 = vrot.slane %v1794_v35, 4 }
  0xfa   :  { %1536 = vst.msk [vmem:[#allocation2 + $0x48] sm:$0xf] %vm1517_vm3, %v12741_v0  ;;  %v12739_v12 = vpack.c.bf16 %v1033_v1, %v1033_v1  ;;  %v1036_v14 = vmax.f32 %v694_v2, 0.0  ;;  %v686_v15 = vadd.f32 %v14410_v54, %v685_v6  ;;  %v1857_v16 = vshll.u32 %v14510_v7, 16 }
  0xfb   :  { %v13303_v17 = vpop.f32.mrf.mxu0  ;;  %v1861_v20 = vshrl.u32 %v14510_v7, 16  ;;  %v14521_v23 = vld [vmem:[#allocation2 + $0x30] sm:$0xf]  ;;  %v1834_v24 = vor.u32 %v1833_v9, %v14506_v3  ;;  %v14524_v26 = vrot.slane %v1804_v10, 4 }
  0xfc   :  { %1534 = vst.msk [vmem:[#allocation2 + $0x40] sm:$0xf] %vm1517_vm3, %v12739_v12  ;;  %v12742_v29 = vpack.c.bf16 %v1036_v14, %v1036_v14  ;;  %v1034_v30 = vmax.f32 %v686_v15, 0.0  ;;  %v707_v31 = vadd.f32 %v13303_v17, %v14410_v54  ;;  %v14529_v32 = vrot.slane %v1857_v16, 5 }
  0xfd   :  { %v698_v33 = vpop.f32.mrf.mxu0  ;;  %v14531_v35 = vld [vmem:[#allocation2 + $0x3c] sm:$0xf]  ;;  %v1863_v37 = vrot.slane %v1861_v20, 4  ;;  %v1837_v38 = vshll.u32 %v14521_v23, 16  ;;  %v1841_v39 = vshrl.u32 %v14521_v23, 16  ;;  %v14535_v44 = vrot.slane %v1834_v24, 4 }
  0xfe   :  { %1537 = vst.msk [vmem:[#allocation2 + $0x4c] sm:$0xf] %vm1517_vm3, %v12742_v29  ;;  %v12740_v47 = vpack.c.bf16 %v1034_v30, %v1034_v30  ;;  %v1039_v48 = vmax.f32 %v707_v31, 0.0  ;;  %v699_v49 = vadd.f32 %v14410_v54, %v698_v33  ;;  %v1867_v51 = vshll.u32 %v14531_v35, 16 }
  0xff   :  { %v13304_v52 = vpop.f32.mrf.mxu0  ;;  %v1864_v53 = vor.u32 %v1863_v37, %v14529_v32  ;;  %v1871_v55 = vshrl.u32 %v14531_v35, 16  ;;  %v14542_v56 = vld [vmem:[#allocation2 + $0x34] sm:$0xf]  ;;  %v14544_v58 = vrot.slane %v1837_v38, 5  ;;  %v1843_v60 = vrot.slane %v1841_v39, 4 }
 0x100   :  { %1535 = vst.msk [vmem:[#allocation2 + $0x44] sm:$0xf] %vm1517_vm3, %v12740_v47  ;;  %v12745_v62 = vpack.c.bf16 %v1039_v48, %v1039_v48  ;;  %v1037_v0 = vmax.f32 %v699_v49, 0.0  ;;  %v710_v1 = vadd.f32 %v13304_v52, %v14410_v54  ;;  %v1869_v2 = vrot.slane %v1867_v51, 5 }
 0x101   :  { %v701_v6 = vpop.f32.mrf.mxu0  ;;  %v14548_v9 = vld [vmem:[#allocation2 + $0x48] sm:$0xf]  ;;  %v1865_v10 = vrot.slane %v1864_v53, 4  ;;  %v1873_v12 = vrot.slane %v1871_v55, 4  ;;  %v1844_v14 = vor.u32 %v1843_v60, %v14544_v58  ;;  %v1847_v15 = vshll.u32 %v14542_v56, 16 }
 0x102   :  { %1540 = vst.msk [vmem:[#allocation2 + $0x58] sm:$0xf] %vm1517_vm3, %v12745_v62  ;;  %v12743_v16 = vpack.c.bf16 %v1037_v0, %v1037_v0  ;;  %v1040_v17 = vmax.f32 %v710_v1, 0.0  ;;  %v702_v20 = vadd.f32 %v14410_v54, %v701_v6  ;;  %v1897_v24 = vshll.u32 %v14548_v9, 16 }
 0x103   :  { %v13307_v29 = vpop.f32.mrf.mxu0  ;;  %v14555_v30 = vld [vmem:[#allocation2 + $0x40] sm:$0xf]  ;;  %v1870_v31 = vsel %vm14436_vm6, %v1865_v10, %v1869_v2  ;;  %v1874_v33 = vor.u32 %v1873_v12, %v1869_v2  ;;  %v1901_v37 = vshrl.u32 %v14548_v9, 16  ;;  %v14560_v38 = vrot.slane %v1844_v14, 4 }
 0x104   :  { %1538 = vst.msk [vmem:[#allocation2 + $0x50] sm:$0xf] %vm1517_vm3, %v12743_v16  ;;  %v12746_v39 = vpack.c.bf16 %v1040_v17, %v1040_v17  ;;  %v1038_v47 = vmax.f32 %v702_v20, 0.0  ;;  %v723_v48 = vadd.f32 %v13307_v29, %v14410_v54  ;;  %v1877_v49 = vshll.u32 %v14555_v30, 16 }
 0x105   :  { %v714_v51 = vpop.f32.mrf.mxu0  ;;  %v1689_v52 = vld [vmem:[#allocation2 + $0x4c] sm:$0xf]  ;;  %v1875_v53 = vrot.slane %v1874_v33, 4  ;;  %v1881_v55 = vshrl.u32 %v14555_v30, 16  ;;  %v14566_v60 = vrot.slane %v1897_v24, 5  ;;  %v1903_v62 = vrot.slane %v1901_v37, 4 }
 0x106   :  { %1541 = vst.msk [vmem:[#allocation2 + $0x5c] sm:$0xf] %vm1517_vm3, %v12746_v39  ;;  %v12744_v0 = vpack.c.bf16 %v1038_v47, %v1038_v47  ;;  %v1043_v1 = vmax.f32 %v723_v48, 0.0  ;;  %v715_v2 = vadd.f32 %v14410_v54, %v714_v51  ;;  %v1879_v6 = vrot.slane %v1877_v49, 5 }
 0x107   :  { %v13308_v10 = vpop.f32.mrf.mxu0  ;;  %v14570_v12 = vld [vmem:[#allocation2 + $0x44] sm:$0xf]  ;;  %v1883_v14 = vrot.slane %v1881_v55, 4  ;;  %v1904_v16 = vor.u32 %v1903_v62, %v14566_v60  ;;  %v1907_v17 = vshll.u32 %v1689_v52, 16  ;;  %v14574_v20 = vmax.bf16 %v1870_v31, %v14510_v7 }
 0x108   :  { %1539 = vst.msk [vmem:[#allocation2 + $0x54] sm:$0xf] %vm1517_vm3, %v12744_v0  ;;  %v12749_v24 = vpack.c.bf16 %v1043_v1, %v1043_v1  ;;  %v1041_v29 = vmax.f32 %v715_v2, 0.0  ;;  %v726_v33 = vadd.f32 %v13308_v10, %v14410_v54  ;;  %v1880_v37 = vsel %vm14436_vm6, %v1875_v53, %v1879_v6 }
 0x109   :  { %v717_v39 = vpop.f32.mrf.mxu0  ;;  %v1884_v47 = vor.u32 %v1883_v14, %v1879_v6  ;;  %v1887_v48 = vshll.u32 %v14570_v12, 16  ;;  %v1891_v49 = vshrl.u32 %v14570_v12, 16  ;;  %v1905_v51 = vrot.slane %v1904_v16, 4 }
 0x10a   :  { %1544 = vst.msk [vmem:[#allocation2 + $0x68] sm:$0xf] %vm1517_vm3, %v12749_v24  ;;  %v12747_v7 = vpack.c.bf16 %v1041_v29, %v1041_v29  ;;  %v1044_v31 = vmax.f32 %v726_v33, 0.0  ;;  %v718_v52 = vadd.f32 %v14410_v54, %v717_v39  ;;  %v14584_v55 = vrot.slane %v1907_v17, 5 }
 0x10b   :  { %v13311_v62 = vpop.f32.mrf.mxu0  ;;  %v1885_v0 = vrot.slane %v1884_v47, 4  ;;  %v1889_v1 = vrot.slane %v1887_v48, 5  ;;  %v1893_v2 = vrot.slane %v1891_v49, 4  ;;  %v14587_v53 = vmax.bf16 %v1880_v37, %v14531_v35  ;;  %v13668_v49 = vld [vmem:[%s20587_s7 + $0x4] ss:$12 sps:$4 sm:$0xff]  }
 0x10c   :  { %20663 = vst [vmem:[#allocation17_spill] sm:$0xff] %v14584_v55  ;;  %1542 = vst.msk [vmem:[#allocation2 + $0x60] sm:$0xf] %vm1517_vm3, %v12747_v7  ;;  %v12750_v6 = vpack.c.bf16 %v1044_v31, %v1044_v31  ;;  %v1042_v10 = vmax.f32 %v718_v52, 0.0  ;;  %v739_v14 = vadd.f32 %v13311_v62, %v14410_v54  ;;  %v1910_v16 = vsel %vm14436_vm6, %v1905_v51, %v14584_v55 }
 0x10d   :  { %v730_v24 = vpop.f32.mrf.mxu0  ;;  %v1890_v17 = vsel %vm14436_vm6, %v1885_v0, %v1889_v1  ;;  %v1894_v29 = vor.u32 %v1893_v2, %v1889_v1  ;;  %v14597_v33 = vmax.bf16 %v1910_v16, %v14548_v9  ;;  %v20602_v35 = vrot.slane %v14574_v20, 6  ;;  %2955 = vmatprep.mubr.bf16.mxu1 %v13668_v49 }
 0x10e   :  { %1545 = vst.msk [vmem:[#allocation2 + $0x6c] sm:$0xf] %vm1517_vm3, %v12750_v6  ;;  %v12748_v37 = vpack.c.bf16 %v1042_v10, %v1042_v10  ;;  %v1047_v39 = vmax.f32 %v739_v14, 0.0  ;;  %v731_v47 = vadd.f32 %v14410_v54, %v730_v24  ;;  %v14603_v48 = vmax.bf16 %v1890_v17, %v14555_v30 }
 0x10f   :  { %20664 = vst [vmem:[#allocation18_spill] sm:$0xff] %v14597_v33  ;;  %v13312_v51 = vpop.f32.mrf.mxu0  ;;  %v1895_v7 = vrot.slane %v1894_v29, 4  ;;  %v2376_v9 = vrot.slane %v20602_v35, 4  ;;  %v2377_v31 = vrot.slane %v14587_v53, 6  ;;  %v2386_v52 = vrot.slane %v14597_v33, 6 }
 0x110   :  { %20665 = vst [vmem:[#allocation19_spill] sm:$0xff] %v14603_v48  ;;  %1543 = vst.msk [vmem:[#allocation2 + $0x64] sm:$0xf] %vm1517_vm3, %v12748_v37  ;;  %v12753_v62 = vpack.c.bf16 %v1047_v39, %v1047_v39  ;;  %v1045_v0 = vmax.f32 %v731_v47, 0.0  ;;  %v742_v30 = vadd.f32 %v13312_v51, %v14410_v54  ;;  %v2380_v1 = vrot.slane %v14603_v48, 6 }
 0x111   :  { %v733_v2 = vpop.f32.mrf.mxu0  ;;  %v1900_v10 = vsel %vm14436_vm6, %v1895_v7, %v14566_v60  ;;  %v2379_v14 = vrot.slane %v2377_v31, 4  ;;  %v14624_v16 = vrot.slane %v2386_v52, 4  ;;  %v1849_v24 = vrot.slane %v1847_v15, 5  ;;  %v14637_v7 = vld [vmem:[#allocation2 + $0x68] sm:$0xf] }
 0x112   :  { %1548 = vst.msk [vmem:[#allocation2 + $0x78] sm:$0xf] %vm1517_vm3, %v12753_v62  ;;  %v12751_v17 = vpack.c.bf16 %v1045_v0, %v1045_v0  ;;  %v1048_v29 = vmax.f32 %v742_v30, 0.0  ;;  %v734_v37 = vadd.f32 %v14410_v54, %v733_v2  ;;  %v14631_v39 = vmax.bf16 %v1900_v10, %v14570_v12 }
 0x113   :  { %20668 = vst [vmem:[#allocation20_spill] sm:$0xff] %v14624_v16  ;;  %v13315_v47 = vpop.f32.mrf.mxu0  ;;  %v2382_v49 = vrot.slane %v2380_v1, 4  ;;  %v1850_v60 = vsel %vm14436_vm6, %v14560_v38, %v1849_v24  ;;  %v1851_v51 = vshrl.u32 %v14542_v56, 16  ;;  %v14651_v59 = vsel %vm14617_vm9, %v2376_v9, %v2377_v31 }
 0x114   :  { %20669 = vst [vmem:[#allocation21_spill] sm:$0xff] %v14631_v39  ;;  %1546 = vst.msk [vmem:[#allocation2 + $0x70] sm:$0xf] %vm1517_vm3, %v12751_v17  ;;  %v12754_v62 = vpack.c.bf16 %v1048_v29, %v1048_v29  ;;  %v1046_v12 = vmax.f32 %v734_v37, 0.0  ;;  %v755_v0 = vadd.f32 %v13315_v47, %v14410_v54  ;;  %v2383_v30 = vrot.slane %v14631_v39, 6 }
 0x115   :  { %v746_v2 = vpop.f32.mrf.mxu0  ;;  %v1853_v10 = vrot.slane %v1851_v51, 4  ;;  %v14647_v38 = vmax.bf16 %v1850_v60, %v14521_v23  ;;  %v14655_v57 = vsel %vm14617_vm9, %v2379_v14, %v2380_v1  ;;  %v1977_v9 = vshll.u32 %v14637_v7, 16 }
 0x116   :  { %1549 = vst.msk [vmem:[#allocation2 + $0x7c] sm:$0xf] %vm1517_vm3, %v12754_v62  ;;  %v12752_v17 = vpack.c.bf16 %v1046_v12, %v1046_v12  ;;  %v1051_v29 = vmax.f32 %v755_v0, 0.0  ;;  %v747_v37 = vadd.f32 %v14410_v54, %v746_v2  ;;  %v2384_v47 = vsel %vm14617_vm9, %v2382_v49, %v2383_v30 }
 0x117   :  { %v13316_v51 = vpop.f32.mrf.mxu0  ;;  %v2385_v23 = vrot.slane %v2383_v30, 4  ;;  %v2526_v60 = vmax.bf16 %v2384_v47, %v14574_v20  ;;  %v1854_v36 = vor.u32 %v1853_v10, %v1849_v24  ;;  %v1981_v2 = vshrl.u32 %v14637_v7, 16 }
 0x118   :  { %1547 = vst.msk [vmem:[#allocation2 + $0x74] sm:$0xf] %vm1517_vm3, %v12752_v17  ;;  %v12757_v31 = vpack.c.bf16 %v1051_v29, %v1051_v29  ;;  %v1049_v1 = vmax.f32 %v747_v37, 0.0  ;;  %v758_v14 = vadd.f32 %v13316_v51, %v14410_v54  ;;  %v14686_v34 = vrot.slane %v1977_v9, 5 }
 0x119   :  { %v749_v12 = vpop.f32.mrf.mxu0  ;;  %v14666_v0 = vld [vmem:[#allocation2 + $0x78] sm:$0xf]  ;;  %v2387_v49 = vsel %vm14617_vm9, %v2385_v23, %v2386_v52  ;;  %v14670_v30 = vrot.slane %v1854_v36, 4  ;;  %v14696_v15 = vrot.slane %v1981_v2, 4 }
 0x11a   :  { %1552 = vst.msk [vmem:[#allocation2 + $0x88] sm:$0xf] %vm1517_vm3, %v12757_v31  ;;  %v12755_v10 = vpack.c.bf16 %v1049_v1, %v1049_v1  ;;  %v1052_v17 = vmax.f32 %v758_v14, 0.0  ;;  %v750_v29 = vadd.f32 %v14410_v54, %v749_v12  ;;  %v2017_v37 = vshll.u32 %v14666_v0, 16 }
 0x11b   :  { %v13319_v47 = vpop.f32.mrf.mxu0  ;;  %v2021_v51 = vshrl.u32 %v14666_v0, 16  ;;  %v2527_v52 = vmax.bf16 %v2387_v49, %v14587_v53  ;;  %v14680_v36 = vld [vmem:[#allocation2 + $0x70] sm:$0xf] }
 0x11c   :  { %1550 = vst.msk [vmem:[#allocation2 + $0x80] sm:$0xf] %vm1517_vm3, %v12755_v10  ;;  %v12758_v31 = vpack.c.bf16 %v1052_v17, %v1052_v17  ;;  %v1050_v1 = vmax.f32 %v750_v29, 0.0  ;;  %v771_v14 = vadd.f32 %v13319_v47, %v14410_v54  ;;  %v14690_v12 = vrot.slane %v2017_v37, 5 }
 0x11d   :  { %v762_v28 = vpop.f32.mrf.mxu0  ;;  %v14692_v35 = vld [vmem:[#allocation2 + $0x7c] sm:$0xf]  ;;  %v2023_v53 = vrot.slane %v2021_v51, 4  ;;  %v1997_v49 = vshll.u32 %v14680_v36, 16  ;;  %v2001_v62 = vshrl.u32 %v14680_v36, 16  ;;  %v14715_v16 = vcombine.low %v2526_v60, %v2527_v52 }
 0x11e   :  { %1553 = vst.msk [vmem:[#allocation2 + $0x8c] sm:$0xf] %vm1517_vm3, %v12758_v31  ;;  %v12756_v9 = vpack.c.bf16 %v1050_v1, %v1050_v1  ;;  %v1055_v10 = vmax.f32 %v771_v14, 0.0  ;;  %v763_v17 = vadd.f32 %v14410_v54, %v762_v28  ;;  %v2027_v29 = vshll.u32 %v14692_v35, 16 }
 0x11f   :  { %v13320_v37 = vpop.f32.mrf.mxu0  ;;  %v2024_v47 = vor.u32 %v2023_v53, %v14690_v12  ;;  %v2031_v24 = vshrl.u32 %v14692_v35, 16  ;;  %v14703_v51 = vrot.slane %v1997_v49, 5  ;;  %v2003_v23 = vrot.slane %v2001_v62, 4  ;;  %v14709_v14 = vld [vmem:[#allocation2 + $0x74] sm:$0xf] }
 0x120   :  { %1551 = vst.msk [vmem:[#allocation2 + $0x84] sm:$0xf] %vm1517_vm3, %v12756_v9  ;;  %v12761_v2 = vpack.c.bf16 %v1055_v10, %v1055_v10  ;;  %v1053_v27 = vmax.f32 %v763_v17, 0.0  ;;  %v774_v31 = vadd.f32 %v13320_v37, %v14410_v54  ;;  %v14707_v1 = vrot.slane %v2027_v29, 5 }
 0x121   :  { %v765_v28 = vpop.f32.mrf.mxu0  ;;  %v14711_v39 = vld [vmem:[#allocation2 + $0x88] sm:$0xf]  ;;  %v14713_v48 = vrot.slane %v2024_v47, 4  ;;  %v2033_v53 = vrot.slane %v2031_v24, 4  ;;  %v2004_v62 = vor.u32 %v2003_v23, %v14703_v51 }
 0x122   :  { %1556 = vst.msk [vmem:[#allocation2 + $0x98] sm:$0xf] %vm1517_vm3, %v12761_v2  ;;  %v12759_v49 = vpack.c.bf16 %v1053_v27, %v1053_v27  ;;  %v1056_v9 = vmax.f32 %v774_v31, 0.0  ;;  %v766_v10 = vadd.f32 %v14410_v54, %v765_v28  ;;  %v2057_v17 = vshll.u32 %v14711_v39, 16 }
 0x123   :  { %v13323_v29 = vpop.f32.mrf.mxu0  ;;  %v1702_v37 = vld [vmem:[#allocation2 + $0x80] sm:$0xf]  ;;  %v2030_v47 = vsel %vm14436_vm6, %v14713_v48, %v14707_v1  ;;  %v2034_v60 = vor.u32 %v2033_v53, %v14707_v1  ;;  %v2061_v24 = vshrl.u32 %v14711_v39, 16  ;;  %v14732_v48 = vrot.slane %v2004_v62, 4 }
 0x124   :  { %1554 = vst.msk [vmem:[#allocation2 + $0x90] sm:$0xf] %vm1517_vm3, %v12759_v49  ;;  %v12762_v27 = vpack.c.bf16 %v1056_v9, %v1056_v9  ;;  %v1054_v23 = vmax.f32 %v766_v10, 0.0  ;;  %v787_v2 = vadd.f32 %v13323_v29, %v14410_v54  ;;  %v2037_v31 = vshll.u32 %v1702_v37, 16 }
 0x125   :  { %v778_v28 = vpop.f32.mrf.mxu0  ;;  %v1705_v5 = vld [vmem:[#allocation2 + $0x8c] sm:$0xf]  ;;  %v2041_v43 = vshrl.u32 %v1702_v37, 16  ;;  %v14730_v33 = vrot.slane %v2057_v17, 5  ;;  %v2063_v42 = vrot.slane %v2061_v24, 4  ;;  %v2035_v46 = vrot.slane %v2034_v60, 4 }
 0x126   :  { %1557 = vst.msk [vmem:[#allocation2 + $0x9c] sm:$0xf] %vm1517_vm3, %v12762_v27  ;;  %v12760_v1 = vpack.c.bf16 %v1054_v23, %v1054_v23  ;;  %v1059_v53 = vmax.f32 %v787_v2, 0.0  ;;  %v779_v52 = vadd.f32 %v14410_v54, %v778_v28  ;;  %v2039_v49 = vrot.slane %v2037_v31, 5 }
 0x127   :  { %v13324_v9 = vpop.f32.mrf.mxu0  ;;  %v1703_v10 = vld [vmem:[#allocation2 + $0x84] sm:$0xf]  ;;  %v2043_v29 = vrot.slane %v2041_v43, 4  ;;  %v2064_v55 = vor.u32 %v2063_v42, %v14730_v33  ;;  %v2067_v63 = vshll.u32 %v1705_v5, 16  ;;  %v2071_v25 = vshrl.u32 %v1705_v5, 16 }
 0x128   :  { %1555 = vst.msk [vmem:[#allocation2 + $0x94] sm:$0xf] %vm1517_vm3, %v12760_v1  ;;  %v12765_v17 = vpack.c.bf16 %v1059_v53, %v1059_v53  ;;  %v1057_v24 = vmax.f32 %v779_v52, 0.0  ;;  %v790_v62 = vadd.f32 %v13324_v9, %v14410_v54  ;;  %v2047_v2 = vshll.u32 %v1703_v10, 16 }
 0x129   :  { %v781_v27 = vpop.f32.mrf.mxu0  ;;  %v2044_v23 = vor.u32 %v2043_v29, %v2039_v49  ;;  %v2051_v13 = vshrl.u32 %v1703_v10, 16  ;;  %v2065_v28 = vrot.slane %v2064_v55, 4  ;;  %v14741_v42 = vrot.slane %v2067_v63, 5 }
 0x12a   :  { %1560 = vst.msk [vmem:[#allocation2 + $0xa8] sm:$0xf] %vm1517_vm3, %v12765_v17  ;;  %v12763_v31 = vpack.c.bf16 %v1057_v24, %v1057_v24  ;;  %v1060_v60 = vmax.f32 %v790_v62, 0.0  ;;  %v782_v43 = vadd.f32 %v14410_v54, %v781_v27  ;;  %v2040_v52 = vsel %vm14436_vm6, %v2035_v46, %v2039_v49 }
 0x12b   :  { %v13327_v50 = vpop.f32.mrf.mxu0  ;;  %v2045_v1 = vrot.slane %v2044_v23, 4  ;;  %v2049_v53 = vrot.slane %v2047_v2, 5  ;;  %v2053_v5 = vrot.slane %v2051_v13, 4  ;;  %v2070_v55 = vsel %vm14436_vm6, %v2065_v28, %v14741_v42 }
 0x12c   :  { %1558 = vst.msk [vmem:[#allocation2 + $0xa0] sm:$0xf] %vm1517_vm3, %v12763_v31  ;;  %v12766_v9 = vpack.c.bf16 %v1060_v60, %v1060_v60  ;;  %v1058_v29 = vmax.f32 %v782_v43, 0.0  ;;  %v14751_v50 = vrot.slane %v2071_v25, 4  ;;  %v14754_v46 = vmax.bf16 %v2030_v47, %v14666_v0  ;;  %v14777_v43 = vld [vmem:[%s20586_s2] ss:$0 sm:$0xff] }
 0x12d   :  { %v794_v17 = vpop.f32.mrf.mxu0  ;;  %v2050_v63 = vsel %vm14436_vm6, %v2045_v1, %v2049_v53  ;;  %v2054_v24 = vor.u32 %v2053_v5, %v2049_v53  ;;  %v2225_v62 = vmax.bf16 %v2040_v52, %v14692_v35  ;;  %v14762_v28 = vmax.bf16 %v2070_v55, %v14711_v39 }
 0x12e   :  { %1561 = vst.msk [vmem:[#allocation2 + $0xac] sm:$0xf] %vm1517_vm3, %v12766_v9  ;;  %v12764_v13 = vpack.c.bf16 %v1058_v29, %v1058_v29  ;;  %v795_v49 = vadd.f32 %v14410_v54, %v794_v17  ;;  %v14759_v2 = vmax.bf16 %v2050_v63, %v1702_v37  ;;  %v2422_v25 = vrot.slane %v14754_v46, 6 }
 0x12f   :  { %v13328_v27 = vpop.f32.mrf.mxu0  ;;  %v2055_v23 = vrot.slane %v2054_v24, 4  ;;  %v2425_v47 = vrot.slane %v2225_v62, 6  ;;  %v2074_v35 = vor.u32 %v14751_v50, %v14741_v42  ;;  %v2434_v9 = vrot.slane %v14762_v28, 6 }
 0x130   :  { %1559 = vst.msk [vmem:[#allocation2 + $0xa4] sm:$0xf] %vm1517_vm3, %v12764_v13  ;;  %v1061_v0 = vmax.f32 %v795_v49, 0.0  ;;  %v2424_v37 = vrot.slane %v2422_v25, 4  ;;  %v2428_v39 = vrot.slane %v14759_v2, 6  ;;  %v20670_v29 = vshll.u32 %v14709_v14, 16 }
 0x131   :  { %v797_v31 = vpop.f32.mrf.mxu0  ;;  %v2060_v54 = vsel %vm14436_vm6, %v2055_v23, %v14730_v33  ;;  %v2427_v33 = vrot.slane %v2425_v47, 4  ;;  %v2011_v49 = vshrl.u32 %v14709_v14, 16 }
 0x132   :  { %v12767_v60 = vpack.c.bf16 %v1061_v0, %v1061_v0  ;;  %v798_v52 = vadd.f32 %v14777_v43, %v797_v31  ;;  %v14780_v1 = vmax.bf16 %v2060_v54, %v1703_v10  ;;  %v2430_v5 = vrot.slane %v2428_v39, 4 }
 0x133   :  { %v13331_v53 = vpop.f32.mrf.mxu0  ;;  %v2009_v55 = vrot.slane %v20670_v29, 5  ;;  %v2426_v27 = vsel %vm14617_vm9, %v2424_v37, %v2425_v47  ;;  %v2429_v23 = vsel %vm14617_vm9, %v2427_v33, %v2428_v39  ;;  %v2013_v29 = vrot.slane %v2011_v49, 4  ;;  %v14819_v49 = vld [vmem:[#allocation2 + $0x6c] sm:$0xf] }
 0x134   :  { %1562 = vst.msk [vmem:[#allocation2 + $0xb0] sm:$0xf] %vm1517_vm3, %v12767_v60  ;;  %v1062_v17 = vmax.f32 %v798_v52, 0.0  ;;  %v819_v63 = vadd.f32 %v14777_v43, %v13331_v53  ;;  %v2431_v24 = vrot.slane %v14780_v1, 6  ;;  %v20671_v37 = vsel %vm14436_vm6, %v14670_v30, %v14529_v32 }
 0x135   :  { %v810_v13 = vpop.f32.mrf.mxu0  ;;  %v2010_v10 = vsel %vm14436_vm6, %v14732_v48, %v2009_v55  ;;  %v14810_v39 = vmax.bf16 %v20671_v37, %v14542_v56 }
 0x136   :  { %v12768_v0 = vpack.c.bf16 %v1062_v17, %v1062_v17  ;;  %v1067_v31 = vmax.f32 %v819_v63, 0.0  ;;  %v2432_v54 = vsel %vm14617_vm9, %v2430_v5, %v2431_v24  ;;  %v2433_v52 = vrot.slane %v2431_v24, 4 }
 0x137   :  { %v13332_v60 = vpop.f32.mrf.mxu0  ;;  %v2542_v53 = vmax.bf16 %v2432_v54, %v14754_v46  ;;  %v14800_v48 = vmax.bf16 %v2010_v10, %v14680_v36  ;;  %v2014_v5 = vor.u32 %v2013_v29, %v2009_v55  ;;  %v2371_v30 = vrot.slane %v14810_v39, 6 }
 0x138   :  { %1563 = vst.msk [vmem:[#allocation2 + $0xb4] sm:$0xf] %vm1517_vm3, %v12768_v0  ;;  %v12773_v13 = vpack.c.bf16 %v1067_v31, %v1067_v31  ;;  %v822_v47 = vadd.f32 %v14777_v43, %v13332_v60  ;;  %v2435_v36 = vsel %vm14617_vm9, %v2433_v52, %v2434_v9  ;;  %v2525_v0 = vmax.bf16 %v14655_v57, %v14810_v39 }
 0x139   :  { %v813_v33 = vpop.f32.mrf.mxu0  ;;  %v2416_v17 = vrot.slane %v14800_v48, 6  ;;  %v2540_v63 = vmax.bf16 %v2426_v27, %v14800_v48  ;;  %v2543_v10 = vmax.bf16 %v2435_v36, %v2225_v62  ;;  %v2015_v56 = vrot.slane %v2014_v5, 4 }
 0x13a   :  { %1568 = vst.msk [vmem:[#allocation2 + $0xc8] sm:$0xf] %vm1517_vm3, %v12773_v13  ;;  %v1068_v24 = vmax.f32 %v822_v47, 0.0  ;;  %v1984_v55 = vor.u32 %v14696_v15, %v14686_v34  ;;  %v20672_v52 = vmax.bf16 %v14651_v59, %v14647_v38  ;;  %v1987_v47 = vshll.u32 %v14819_v49, 16 }
 0x13b   :  { %v13335_v32 = vpop.f32.mrf.mxu0  ;;  %v12150_v27 = vcombine.low %v2542_v53, %v2543_v10  ;;  %v2020_v62 = vsel %vm14436_vm6, %v2015_v56, %v14690_v12  ;;  %v1991_v12 = vshrl.u32 %v14819_v49, 16  ;;  %v2418_v59 = vrot.slane %v2416_v17, 4 }
 0x13c   :  { %v12774_v31 = vpack.c.bf16 %v1068_v24, %v1068_v24  ;;  %v835_v54 = vadd.f32 %v14777_v43, %v13335_v32  ;;  %v12141_v29 = vcombine.low %v20672_v52, %v2525_v0  ;;  %v1985_v13 = vrot.slane %v1984_v55, 4 }
 0x13d   :  { %v826_v60 = vpop.f32.mrf.mxu0  ;;  %13021 = vmatprep.subr.bf16.mxu1 %v12150_v27  ;;  %v2223_v53 = vmax.bf16 %v2020_v62, %v14709_v14  ;;  %v1989_v33 = vrot.slane %v1987_v47, 5  ;;  %v1840_v36 = vsel %vm14436_vm6, %v14535_v44, %v14544_v58  ;;  %v1993_v0 = vrot.slane %v1991_v12, 4 }
 0x13e   :  { %1569 = vst.msk [vmem:[#allocation2 + $0xcc] sm:$0xf] %vm1517_vm3, %v12774_v31  ;;  %v1071_v57 = vmax.f32 %v835_v54, 0.0  ;;  %v827_v15 = vadd.f32 %v14777_v43, %v826_v60  ;;  %13022 = vmatpush3.bf16.msra.mxu1 %v14715_v16  ;;  %v20673_v55 = vsel %vm14436_vm6, %v14512_v8, %v14506_v3 }
 0x13f   :  { %v13336_v37 = vpop.f32.mrf.mxu0  ;;  %v2419_v10 = vrot.slane %v2223_v53, 6  ;;  %v2541_v32 = vmax.bf16 %v2429_v23, %v2223_v53  ;;  %v1990_v16 = vsel %vm14436_vm6, %v1985_v13, %v1989_v33  ;;  %v14854_v31 = vmax.bf16 %v20673_v55, %v14472_v21 }
 0x140   :  { %v12777_v5 = vpack.c.bf16 %v1071_v57, %v1071_v57  ;;  %v1069_v24 = vmax.f32 %v827_v15, 0.0  ;;  %v838_v14 = vadd.f32 %v14777_v43, %v13336_v37  ;;  %v14859_v54 = vmax.bf16 %v1990_v16, %v14637_v7  ;;  %v14874_v37 = vld [vmem:[#allocation2 + $0x60] sm:$0xf] }
 0x141   :  { %v829_v56 = vpop.f32.mrf.mxu0  ;;  %v12149_v58 = vcombine.low %v2540_v63, %v2541_v32  ;;  %v1994_v60 = vor.u32 %v1993_v0, %v1989_v33  ;;  %v2420_v62 = vsel %vm14617_vm9, %v2418_v59, %v2419_v10  ;;  %v2421_v52 = vrot.slane %v2419_v10, 4 }
 0x142   :  { %1572 = vst.msk [vmem:[#allocation2 + $0xd8] sm:$0xf] %vm1517_vm3, %v12777_v5  ;;  %v12775_v44 = vpack.c.bf16 %v1069_v24, %v1069_v24  ;;  %v830_v23 = vadd.f32 %v14777_v43, %v829_v56  ;;  %v1072_v27 = vmax.f32 %v838_v14, 0.0  ;;  %v2410_v3 = vrot.slane %v14859_v54, 6  ;;  %v14878_v24 = vld [vmem:[#allocation2 + $0x64] sm:$0xf] }
 0x143   :  { %v13339_v13 = vpop.f32.mrf.mxu0  ;;  %13023 = vmatprep.subr.bf16.mxu1 %v12149_v58  ;;  %v2538_v8 = vmax.bf16 %v2420_v62, %v14859_v54  ;;  %v1995_v7 = vrot.slane %v1994_v60, 4  ;;  %v2423_v57 = vsel %vm14617_vm9, %v2421_v52, %v2422_v25  ;;  %v14872_v53 = vmax.bf16 %v1840_v36, %v14493_v45 }
 0x144   :  { %1570 = vst.msk [vmem:[#allocation2 + $0xd0] sm:$0xf] %vm1517_vm3, %v12775_v44  ;;  %v1070_v21 = vmax.f32 %v830_v23, 0.0  ;;  %v851_v63 = vadd.f32 %v14777_v43, %v13339_v13  ;;  %v12778_v47 = vpack.c.bf16 %v1072_v27, %v1072_v27  ;;  %13024 = vmatpush3.bf16.msra.mxu1 %v12141_v29  ;;  %v2362_v5 = vrot.slane %v14854_v31, 6 }
 0x145   :  { %v842_v15 = vpop.f32.mrf.mxu0  ;;  %v2000_v46 = vsel %vm14436_vm6, %v1995_v7, %v14703_v51  ;;  %v2365_v25 = vrot.slane %v14872_v53, 6  ;;  %v20674_v45 = vrot.slane %v14647_v38, 6  ;;  %v2373_v36 = vrot.slane %v2371_v30, 4 }
 0x146   :  { %v12776_v33 = vpack.c.bf16 %v1070_v21, %v1070_v21  ;;  %v1075_v12 = vmax.f32 %v851_v63, 0.0  ;;  %v843_v59 = vadd.f32 %v14777_v43, %v842_v15  ;;  %1573 = vst.msk [vmem:[#allocation2 + $0xdc] sm:$0xf] %vm1517_vm3, %v12778_v47  ;;  %v2221_v32 = vmax.bf16 %v2000_v46, %v14819_v49 }
 0x147   :  { %v2370_v29 = vrot.slane %v20674_v45, 4  ;;  %v13340_v10 = vpop.f32.mrf.mxu0  ;;  %v1957_v16 = vshll.u32 %v14874_v37, 16  ;;  %v20675_v0 = vrot.slane %v14574_v20, 6  ;;  %v1961_v44 = vshrl.u32 %v14874_v37, 16 }
 0x148   :  { %1571 = vst.msk [vmem:[#allocation2 + $0xd4] sm:$0xf] %vm1517_vm3, %v12776_v33  ;;  %v12781_v14 = vpack.c.bf16 %v1075_v12, %v1075_v12  ;;  %v1073_v56 = vmax.f32 %v843_v59, 0.0  ;;  %v1967_v58 = vshll.u32 %v14878_v24, 16  ;;  %v2413_v49 = vrot.slane %v2221_v32, 6 }
 0x149   :  { %v2372_v51 = vsel %vm14617_vm9, %v2370_v29, %v2371_v30  ;;  %v2375_v55 = vsel %vm14617_vm9, %v2373_v36, %v20675_v0  ;;  %v845_v23 = vpop.f32.mrf.mxu0  ;;  %v2539_v27 = vmax.bf16 %v2423_v57, %v2221_v32  ;;  %v14905_v30 = vrot.slane %v1957_v16, 5 }
 0x14a   :  { %1576 = vst.msk [vmem:[#allocation2 + $0xe8] sm:$0xf] %vm1517_vm3, %v12781_v14  ;;  %v12779_v60 = vpack.c.bf16 %v1073_v56, %v1073_v56  ;;  %v2522_v39 = vmax.bf16 %v2372_v51, %v14854_v31  ;;  %v2523_v62 = vmax.bf16 %v2375_v55, %v14872_v53  ;;  %v1963_v20 = vrot.slane %v1961_v44, 4  ;;  %v14064_v14 = vld [vmem:[#allocation2 + $0x24] sm:$0xf] }
 0x14b   :  { %v1969_v52 = vrot.slane %v1967_v58, 5  ;;  %v14907_v13 = vpop.f32.mrf.mxu0  ;;  %v12148_v21 = vcombine.low %v2538_v8, %v2539_v27  ;;  %v1971_v63 = vshrl.u32 %v14878_v24, 16  ;;  %v2412_v47 = vrot.slane %v2410_v3, 4  ;;  %v1692_v55 = vld [vmem:[#allocation2 + $0x58] sm:$0xf] }
 0x14c   :  { %1574 = vst.msk [vmem:[#allocation2 + $0xe0] sm:$0xf] %vm1517_vm3, %v12779_v60  ;;  %v2415_v7 = vrot.slane %v2413_v49, 4  ;;  %v12140_v57 = vcombine.low %v2522_v39, %v2523_v62  ;;  %v1964_v15 = vor.u32 %v1963_v20, %v14905_v30  ;;  %v854_v53 = vadd.f32 %v14777_v43, %v13340_v10  ;;  %v14065_v39 = vld [vmem:[#allocation2 + $0x20] sm:$0xf] }
 0x14d   :  { %v846_v33 = vadd.f32 %v14777_v43, %v845_v23  ;;  %v14916_v12 = vpop.f32.mrf.mxu0  ;;  %13025 = vmatprep.subr.bf16.mxu1 %v12148_v21  ;;  %v1973_v59 = vrot.slane %v1971_v63, 4  ;;  %v2414_v8 = vsel %vm14617_vm9, %v2412_v47, %v2413_v49  ;;  %v20676_v45 = vshll.u32 %v14508_v4, 16  ;;  %v1693_v63 = vld [vmem:[#allocation2 + $0x5c] sm:$0xf] }
 0x14e   :  { %v2417_v46 = vsel %vm14617_vm9, %v2415_v7, %v2416_v17  ;;  %13026 = vmatpush3.bf16.msra.mxu1 %v12140_v57  ;;  %v1965_v36 = vrot.slane %v1964_v15, 4  ;;  %v1076_v10 = vmax.f32 %v854_v53, 0.0  ;;  %v1811_v56 = vshrl.u32 %v14064_v14, 16 }
 0x14f   :  { %v1809_v29 = vrot.slane %v20676_v45, 5  ;;  %v1074_v32 = vmax.f32 %v846_v33, 0.0  ;;  %v14926_v16 = vpop.f32.mrf.mxu0  ;;  %v1974_v51 = vor.u32 %v1973_v59, %v1969_v52  ;;  %v2364_v48 = vrot.slane %v2362_v5, 4 }
 0x150   :  { %v2367_v17 = vrot.slane %v2365_v25, 4  ;;  %v1970_v4 = vsel %vm14436_vm6, %v1965_v36, %v1969_v52  ;;  %v12782_v44 = vpack.c.bf16 %v1076_v10, %v1076_v10  ;;  %v1813_v23 = vrot.slane %v1811_v56, 4 }
 0x151   :  { %v1810_v0 = vsel %vm14436_vm6, %v14524_v26, %v1809_v29  ;;  %v12780_v58 = vpack.c.bf16 %v1074_v32, %v1074_v32  ;;  %v14935_v49 = vpop.f32.mrf.mxu0  ;;  %v1975_v27 = vrot.slane %v1974_v51, 4  ;;  %v14938_v60 = vmax.bf16 %v1970_v4, %v14874_v37 }
 0x152   :  { %v14940_v62 = vmax.bf16 %v14065_v39, %v1810_v0  ;;  %v2366_v26 = vsel %vm14617_vm9, %v2364_v48, %v2365_v25  ;;  %1577 = vst.msk [vmem:[#allocation2 + $0xec] sm:$0xf] %vm1517_vm3, %v12782_v44  ;;  %v1814_v20 = vor.u32 %v1813_v23, %v1809_v29  ;;  %v20677_v52 = vrot.slane %v14647_v38, 6 }
 0x153   :  { %1575 = vst.msk [vmem:[#allocation2 + $0xe4] sm:$0xf] %vm1517_vm3, %v12780_v58  ;;  %v1937_v47 = vshll.u32 %v1692_v55, 16  ;;  %v1941_v37 = vshrl.u32 %v1692_v55, 16  ;;  %v14950_v7 = vpop.f32.mrf.mxu0  ;;  %v1980_v57 = vsel %vm14436_vm6, %v1975_v27, %v14686_v34  ;;  %v2404_v25 = vrot.slane %v14938_v60, 6 }
 0x154   :  { %v2369_v21 = vsel %vm14617_vm9, %v2367_v17, %v20677_v52  ;;  %v2536_v15 = vmax.bf16 %v2414_v8, %v14938_v60  ;;  %v2356_v53 = vrot.slane %v14940_v62, 6  ;;  %v2219_v38 = vmax.bf16 %v1980_v57, %v14878_v24  ;;  %v14988_v57 = vld [vmem:[#allocation2 + $0x50] sm:$0xf] }
 0x155   :  { %v1815_v33 = vrot.slane %v1814_v20, 4  ;;  %v2520_v59 = vmax.bf16 %v2366_v26, %v14940_v62  ;;  %v14960_v45 = vrot.slane %v1937_v47, 5  ;;  %v14962_v29 = vpop.f32.mrf.mxu0  ;;  %v1943_v36 = vrot.slane %v1941_v37, 4 }
 0x156   :  { %v1947_v10 = vshll.u32 %v1693_v63, 16  ;;  %v1951_v32 = vshrl.u32 %v1693_v63, 16  ;;  %v2406_v34 = vrot.slane %v2404_v25, 4  ;;  %v2407_v56 = vrot.slane %v2219_v38, 6 }
 0x157   :  { %v2537_v51 = vmax.bf16 %v2417_v46, %v2219_v38  ;;  %v1820_v8 = vsel %vm14436_vm6, %v1815_v33, %v14491_v40  ;;  %v867_v24 = vadd.f32 %v14777_v43, %v14907_v13  ;;  %v14971_v0 = vpop.f32.mrf.mxu0  ;;  %v1944_v17 = vor.u32 %v1943_v36, %v14960_v45  ;;  %v14066_v33 = vld [vmem:[#allocation2 + $0x18] sm:$0xf] }
 0x158   :  { %v2203_v48 = vmax.bf16 %v14064_v14, %v1820_v8  ;;  %v1949_v4 = vrot.slane %v1947_v10, 5  ;;  %v1953_v44 = vrot.slane %v1951_v32, 4  ;;  %v2408_v23 = vsel %vm14617_vm9, %v2406_v34, %v2407_v56 }
 0x159   :  { %v12147_v58 = vcombine.low %v2536_v15, %v2537_v51  ;;  %v2409_v27 = vrot.slane %v2407_v56, 4  ;;  %v1079_v46 = vmax.f32 %v867_v24, 0.0  ;;  %v14976_v39 = vpop.f32.mrf.mxu0  ;;  %v1945_v20 = vrot.slane %v1944_v17, 4 }
 0x15a   :  { %v2359_v26 = vrot.slane %v2203_v48, 6  ;;  %v2521_v40 = vmax.bf16 %v2369_v21, %v2203_v48  ;;  %v1954_v52 = vor.u32 %v1953_v44, %v1949_v4  ;;  %v859_v47 = vadd.f32 %v14777_v43, %v14916_v12  ;;  %v1691_v48 = vld [vmem:[#allocation2 + $0x54] sm:$0xf] }
 0x15b   :  { %13027 = vmatprep.subr.bf16.mxu1 %v12147_v58  ;;  %v2411_v13 = vsel %vm14617_vm9, %v2409_v27, %v2410_v3  ;;  %v12785_v14 = vpack.c.bf16 %v1079_v46, %v1079_v46  ;;  %v1800_v37 = vsel %vm14436_vm6, %v14515_v11, %v14502_v61  ;;  %v14990_v21 = vpop.f32.mrf.mxu0  ;;  %v1950_v54 = vsel %vm14436_vm6, %v1945_v20, %v1949_v4  ;;  %v14067_v11 = vld [vmem:[#allocation2 + $0x1c] sm:$0xf] }
 0x15c   :  { %v12139_v15 = vcombine.low %v2520_v59, %v2521_v40  ;;  %v1955_v38 = vrot.slane %v1954_v52, 4  ;;  %v20678_v3 = vsel %vm14436_vm6, %v14474_v22, %v14468_v18  ;;  %v15001_v36 = vmax.bf16 %v1950_v54, %v1692_v55 }
 0x15d   :  { %v14999_v12 = vmax.bf16 %v14066_v33, %v20678_v3  ;;  %1580 = vst.msk [vmem:[#allocation2 + $0xf8] sm:$0xf] %vm1517_vm3, %v12785_v14  ;;  %v1077_v61 = vmax.f32 %v859_v47, 0.0  ;;  %v2201_v10 = vmax.bf16 %v14067_v11, %v1800_v37  ;;  %v2358_v59 = vrot.slane %v2356_v53, 4  ;;  %v15006_v32 = vpop.f32.mrf.mxu0 }
 0x15e   :  { %13028 = vmatpush3.bf16.msra.mxu1 %v12139_v15  ;;  %v1960_v34 = vsel %vm14436_vm6, %v1955_v38, %v14905_v30  ;;  %v2361_v22 = vrot.slane %v2359_v26, 4  ;;  %v1917_v55 = vshll.u32 %v14988_v57, 16  ;;  %v2398_v51 = vrot.slane %v15001_v36, 6 }
 0x15f   :  { %v2350_v18 = vrot.slane %v14999_v12, 6  ;;  %v2217_v56 = vmax.bf16 %v1960_v34, %v1693_v63  ;;  %v2534_v8 = vmax.bf16 %v2408_v23, %v15001_v36  ;;  %v12783_v24 = vpack.c.bf16 %v1077_v61, %v1077_v61  ;;  %v15015_v17 = vpop.f32.mrf.mxu0 }
 0x160   :  { %v2353_v4 = vrot.slane %v2201_v10, 6  ;;  %v2360_v44 = vsel %vm14617_vm9, %v2358_v59, %v2359_v26  ;;  %v2363_v30 = vsel %vm14617_vm9, %v2361_v22, %v2362_v5  ;;  %v15023_v58 = vrot.slane %v1917_v55, 5  ;;  %v14068_v22 = vld [vmem:[#allocation2 + $0x14] sm:$0xf] }
 0x161   :  { %v2401_v63 = vrot.slane %v2217_v56, 6  ;;  %v2535_v27 = vmax.bf16 %v2411_v13, %v2217_v56  ;;  %1578 = vst.msk [vmem:[#allocation2 + $0xf0] sm:$0xf] %vm1517_vm3, %v12783_v24  ;;  %v2518_v23 = vmax.bf16 %v2360_v44, %v14999_v12  ;;  %v2519_v46 = vmax.bf16 %v2363_v30, %v2201_v10  ;;  %v15027_v40 = vpop.f32.mrf.mxu0  ;;  %v20680_v24 = vld [vmem:[#allocation16_spill] sm:$0xff] }
 0x162   :  { %v1921_v20 = vshrl.u32 %v14988_v57, 16  ;;  %v1927_v52 = vshll.u32 %v1691_v48, 16  ;;  %v1931_v26 = vshrl.u32 %v1691_v48, 16  ;;  %v2400_v31 = vrot.slane %v2398_v51, 4 }
 0x163   :  { %v12146_v14 = vcombine.low %v2534_v8, %v2535_v27  ;;  %v12138_v5 = vcombine.low %v2518_v23, %v2519_v46  ;;  %v2403_v47 = vrot.slane %v2401_v63, 4  ;;  %v870_v13 = vadd.f32 %v14777_v43, %v14926_v16  ;;  %v15034_v37 = vpop.f32.mrf.mxu0  ;;  %v14069_v27 = vld [vmem:[#allocation2 + $0x10] sm:$0xf] }
 0x164   :  { %v1923_v15 = vrot.slane %v1921_v20, 4  ;;  %v1929_v54 = vrot.slane %v1927_v52, 5  ;;  %v1933_v38 = vrot.slane %v1931_v26, 4  ;;  %v2402_v33 = vsel %vm14617_vm9, %v2400_v31, %v2401_v63  ;;  %v14070_v26 = vld [vmem:[#allocation2 + $0x4c] sm:$0xf] }
 0x165   :  { %13029 = vmatprep.subr.bf16.mxu1 %v12146_v14  ;;  %v2405_v3 = vsel %vm14617_vm9, %v2403_v47, %v2404_v25  ;;  %v1080_v61 = vmax.f32 %v870_v13, 0.0  ;;  %v862_v11 = vadd.f32 %v14777_v43, %v14935_v49  ;;  %v20679_v16 = vshll.u32 %v14470_v19, 16  ;;  %v15049_v60 = vpop.f32.mrf.mxu0 }
 0x166   :  { %13030 = vmatpush3.bf16.msra.mxu1 %v12138_v5  ;;  %v1924_v59 = vor.u32 %v1923_v15, %v15023_v58  ;;  %v1934_v34 = vor.u32 %v1933_v38, %v1929_v54  ;;  %v1771_v55 = vshrl.u32 %v14068_v22, 16  ;;  %v2352_v56 = vrot.slane %v2350_v18, 4 }
 0x167   :  { %v1769_v10 = vrot.slane %v20679_v16, 5  ;;  %v12786_v8 = vpack.c.bf16 %v1080_v61, %v1080_v61  ;;  %v1078_v25 = vmax.f32 %v862_v11, 0.0  ;;  %v2355_v44 = vrot.slane %v2353_v4, 4  ;;  %v15069_v15 = vpop.f32.mrf.mxu0  ;;  %v20681_v11 = vld [vmem:[#allocation14_spill] sm:$0xff]  ;;  %v20682_v16 = vld [vmem:[#allocation15_spill] sm:$0xff] }
 0x168   :  { %v1925_v19 = vrot.slane %v1924_v59, 4  ;;  %v1935_v30 = vrot.slane %v1934_v34, 4  ;;  %v1773_v63 = vrot.slane %v1771_v55, 4  ;;  %v2354_v20 = vsel %vm14617_vm9, %v2352_v56, %v2353_v4  ;;  %v20683_v55 = vld [vmem:[#allocation12_spill] sm:$0xff] }
 0x169   :  { %v1770_v49 = vsel %vm14436_vm6, %v20680_v24, %v1769_v10  ;;  %1581 = vst.msk [vmem:[#allocation2 + $0xfc] sm:$0xf] %vm1517_vm3, %v12786_v8  ;;  %v12784_v46 = vpack.c.bf16 %v1078_v25, %v1078_v25  ;;  %v2357_v52 = vsel %vm14617_vm9, %v2355_v44, %v2356_v53  ;;  %v1911_v31 = vshrl.u32 %v14070_v26, 16  ;;  %v20684_v8 = vld [vmem:[#allocation17_spill] sm:$0xff] }
 0x16a   :  { %v15054_v23 = vmax.bf16 %v14069_v27, %v1770_v49  ;;  %v1930_v14 = vsel %vm14436_vm6, %v1925_v19, %v1929_v54  ;;  %v1940_v5 = vsel %vm14436_vm6, %v1935_v30, %v14960_v45  ;;  %v1774_v47 = vor.u32 %v1773_v63, %v1769_v10 }
 0x16b   :  { %v15072_v4 = vmax.bf16 %v1930_v14, %v14988_v57  ;;  %v2215_v62 = vmax.bf16 %v1940_v5, %v1691_v48  ;;  %1579 = vst.msk [vmem:[#allocation2 + $0xf4] sm:$0xf] %vm1517_vm3, %v12784_v46  ;;  %v1913_v38 = vrot.slane %v1911_v31, 4  ;;  %v883_v54 = vadd.f32 %v14777_v43, %v14950_v7 }
 0x16c   :  { %v2344_v13 = vrot.slane %v15054_v23, 6  ;;  %v2516_v53 = vmax.bf16 %v2354_v20, %v15054_v23  ;;  %v1775_v61 = vrot.slane %v1774_v47, 4  ;;  %v875_v45 = vadd.f32 %v14777_v43, %v14962_v29  ;;  %v15090_v29 = vpop.f32.mrf.mxu0  ;;  %v14071_v20 = vld [vmem:[#allocation2 + $0x8] sm:$0xf] }
 0x16d   :  { %v1760_v10 = vsel %vm14436_vm6, %v20682_v16, %v20681_v11  ;;  %v2392_v57 = vrot.slane %v15072_v4, 6  ;;  %v2395_v48 = vrot.slane %v2215_v62, 6  ;;  %v2532_v59 = vmax.bf16 %v2402_v33, %v15072_v4  ;;  %v20685_v33 = vld [vmem:[#allocation11_spill] sm:$0xff] }
 0x16e   :  { %v2533_v34 = vmax.bf16 %v2405_v3, %v2215_v62  ;;  %v1780_v56 = vsel %vm14436_vm6, %v1775_v61, %v20683_v55  ;;  %v1914_v7 = vor.u32 %v1913_v38, %v20684_v8  ;;  %v1083_v25 = vmax.f32 %v883_v54, 0.0  ;;  %v20686_v3 = vld [vmem:[#allocation9_spill] sm:$0xff]  ;;  %v20688_v38 = vld [vmem:[#allocation18_spill] sm:$0xff]  ;;  %v15113_v36 = vpop.f32.mrf.mxu0 }
 0x16f   :  { %v1081_v24 = vmax.f32 %v875_v45, 0.0  ;;  %v2199_v44 = vmax.bf16 %v14068_v22, %v1780_v56  ;;  %v2394_v19 = vrot.slane %v2392_v57, 4  ;;  %v2397_v30 = vrot.slane %v2395_v48, 4  ;;  %v14072_v54 = vld [vmem:[#allocation2 + $0xc] sm:$0xf] }
 0x170   :  { %v12145_v49 = vcombine.low %v2532_v59, %v2533_v34  ;;  %v1915_v63 = vrot.slane %v1914_v7, 4  ;;  %v12789_v27 = vpack.c.bf16 %v1083_v25, %v1083_v25  ;;  %v20687_v31 = vsel %vm14436_vm6, %v20685_v33, %v20686_v3  ;;  %v15122_v34 = vld [vmem:[#allocation2 + $0x4] sm:$0xf]  ;;  %v20689_v55 = vld [vmem:[#allocation10_spill] sm:$0xff] }
 0x171   :  { %v12787_v46 = vpack.c.bf16 %v1081_v24, %v1081_v24  ;;  %v2196_v14 = vmax.bf16 %v14071_v20, %v20687_v31  ;;  %v2347_v5 = vrot.slane %v2199_v44, 6  ;;  %v2517_v47 = vmax.bf16 %v2357_v52, %v2199_v44  ;;  %v20691_v44 = vld [vmem:[#allocation13_spill] sm:$0xff]  ;;  %v2237_v20 = vld [vmem:[#allocation2 + $0x8] sm:$0xc] }
 0x172   :  { %13031 = vmatprep.subr.bf16.mxu1 %v12145_v49  ;;  %v2396_v4 = vsel %vm14617_vm9, %v2394_v19, %v2395_v48  ;;  %v2399_v22 = vsel %vm14617_vm9, %v2397_v30, %v2398_v51  ;;  %v1920_v62 = vsel %vm14436_vm6, %v1915_v63, %v15023_v58  ;;  %1584 = vst.msk [vmem:[#allocation2 + $0x108] sm:$0xf] %vm1517_vm3, %v12789_v27  ;;  %v2346_v45 = vrot.slane %v2344_v13, 4  ;;  %v15132_v19 = vpop.f32.mrf.mxu0  ;;  %v20692_v63 = vld [vmem:[#allocation20_spill] sm:$0xff] }
 0x173   :  { %v2530_v61 = vmax.bf16 %v2396_v4, %v20688_v38  ;;  %1582 = vst.msk [vmem:[#allocation2 + $0x100] sm:$0xf] %vm1517_vm3, %v12787_v46  ;;  %v15109_v52 = vmax.bf16 %v14072_v54, %v1760_v10  ;;  %v12137_v11 = vcombine.low %v2516_v53, %v2517_v47  ;;  %v2213_v51 = vmax.bf16 %v14070_v26, %v1920_v62  ;;  %v20693_v62 = vld [vmem:[#allocation19_spill] sm:$0xff] }
 0x174   :  { %v2349_v16 = vrot.slane %v2347_v5, 4  ;;  %v886_v58 = vadd.f32 %v14777_v43, %v14971_v0  ;;  %v2348_v59 = vsel %vm14617_vm9, %v2346_v45, %v2347_v5  ;;  %v878_v10 = vadd.f32 %v14777_v43, %v14976_v39 }
 0x175   :  { %v2341_v48 = vrot.slane %v15109_v52, 6  ;;  %v20690_v56 = vshll.u32 %v20689_v55, 16  ;;  %13032 = vmatpush3.bf16.msra.mxu1 %v12137_v11  ;;  %v2389_v53 = vrot.slane %v2213_v51, 6  ;;  %v2531_v26 = vmax.bf16 %v2399_v22, %v2213_v51  ;;  %v15149_v11 = vpop.f32.mrf.mxu0 }
 0x176   :  { %v2351_v0 = vsel %vm14617_vm9, %v2349_v16, %v2350_v18  ;;  %v2514_v7 = vmax.bf16 %v2348_v59, %v2196_v14  ;;  %v1084_v24 = vmax.f32 %v886_v58, 0.0  ;;  %v1082_v49 = vmax.f32 %v878_v10, 0.0  ;;  %v1712_v59 = vld [vmem:[#allocation2 + $0xa8] sm:$0xf]  ;;  %v1713_v10 = vld [vmem:[#allocation2 + $0xac] sm:$0x1] }
 0x177   :  { %v1723_v8 = vrot.slane %v20690_v56, 5  ;;  %v2515_v25 = vmax.bf16 %v2351_v0, %v15109_v52  ;;  %v12144_v30 = vcombine.low %v2530_v61, %v2531_v26  ;;  %v2390_v27 = vsel %vm14617_vm9, %v20692_v63, %v2389_v53  ;;  %v20694_v61 = vld [vmem:[#allocation21_spill] sm:$0xff]  ;;  %v15163_v63 = vpop.f32.mrf.mxu0 }
 0x178   :  { %v2391_v46 = vrot.slane %v2389_v53, 4  ;;  %v1727_v12 = vshll.u32 %v15122_v34, 16  ;;  %v15140_v18 = vrot.slane %v2434_v9, 4  ;;  %v12790_v31 = vpack.c.bf16 %v1084_v24, %v1084_v24  ;;  %v14073_v26 = vld [vmem:[#allocation2] sm:$0xf] }
 0x179   :  { %v1724_v39 = vor.u32 %v1723_v8, %v20691_v44  ;;  %v12136_v33 = vcombine.low %v2514_v7, %v2515_v25  ;;  %v12788_v14 = vpack.c.bf16 %v1082_v49, %v1082_v49  ;;  %13033 = vmatprep.subr.bf16.mxu1 %v12144_v30  ;;  %v1731_v22 = vshrl.u32 %v15122_v34, 16  ;;  %v15161_v24 = vld [vmem:[#allocation2 + $0xac] sm:$0xf]  ;;  %v2239_v30 = vld [vmem:[#allocation2 + $0xb0] sm:$0xf] }
 0x17a   :  { %v2393_v5 = vsel %vm14617_vm9, %v2391_v46, %v2392_v57  ;;  %v1729_v4 = vrot.slane %v1727_v12, 5  ;;  %v2528_v38 = vmax.bf16 %v2390_v27, %v20693_v62  ;;  %1585 = vst.msk [vmem:[#allocation2 + $0x10c] sm:$0xf] %vm1517_vm3, %v12790_v31  ;;  %v2243_v9 = vshrl.u32 %v2237_v20, 16 }
 0x17b   :  { %v1725_v47 = vrot.slane %v1724_v39, 4  ;;  %13034 = vmatpush3.bf16.msra.mxu1 %v12136_v33  ;;  %v2529_v54 = vmax.bf16 %v2393_v5, %v20694_v61  ;;  %1583 = vst.msk [vmem:[#allocation2 + $0x104] sm:$0xf] %vm1517_vm3, %v12788_v14  ;;  %v2246_v45 = vshll.u32 %v2237_v20, 16  ;;  %v1733_v51 = vrot.slane %v1731_v22, 4 }
 0x17c   :  { %v2343_v16 = vrot.slane %v2341_v48, 4  ;;  %v899_v58 = vadd.f32 %v14777_v43, %v14990_v21  ;;  %v2245_v56 = vrot.slane %v2243_v9, 4  ;;  %v891_v25 = vadd.f32 %v14777_v43, %v15006_v32  ;;  %v2241_v5 = vld [vmem:[#allocation2 + $0xb4] sm:$0x7] }
 0x17d   :  { %v1730_v57 = vsel %vm14436_vm6, %v1725_v47, %v1729_v4  ;;  %v12143_v55 = vcombine.low %v2528_v38, %v2529_v54  ;;  %v2248_v8 = vrot.slane %v2246_v45, 5  ;;  %v1734_v53 = vor.u32 %v1733_v51, %v1729_v4  ;;  %v20695_v4 = vld [vmem:[#allocation7_spill] sm:$0xff]  ;;  %v15181_v45 = vpop.f32.mrf.mxu0 }
 0x17e   :  { %v15157_v0 = vmax.bf16 %v14073_v26, %v1730_v57  ;;  %v1087_v7 = vmax.f32 %v899_v58, 0.0  ;;  %v2137_v44 = vshll.u32 %v1712_v59, 16  ;;  %v2141_v39 = vshrl.u32 %v1712_v59, 16 }
 0x17f   :  { %13035 = vmatprep.subr.bf16.mxu1 %v12143_v55  ;;  %v2249_v49 = vor.u32 %v2248_v8, %v2245_v56  ;;  %v2147_v21 = vshll.u32 %v1713_v10, 16  ;;  %v1735_v27 = vrot.slane %v1734_v53, 4  ;;  %v2345_v46 = vsel %vm14617_vm9, %v2343_v16, %v2344_v13 }
 0x180   :  { %v12793_v12 = vpack.c.bf16 %v1087_v7, %v1087_v7  ;;  %v1085_v33 = vmax.f32 %v891_v25, 0.0  ;;  %v15169_v32 = vrot.slane %v2137_v44, 5  ;;  %v2143_v14 = vrot.slane %v2141_v39, 4  ;;  %v15198_v44 = vld [vmem:[#allocation2 + $0xa0] sm:$0xf]  ;;  %v15200_v39 = vpop.f32.mrf.mxu0 }
 0x181   :  { %v2250_v31 = vrot.slane %v2249_v49, 4  ;;  %v2253_v47 = vshll.u32 %v15161_v24, 16  ;;  %v1740_v22 = vsel %vm14436_vm6, %v1735_v27, %v20695_v4  ;;  %v2149_v23 = vrot.slane %v2147_v21, 5  ;;  %v15210_v4 = vld [vmem:[#allocation2 + $0xa4] sm:$0xf] }
 0x182   :  { %1588 = vst.msk [vmem:[#allocation2 + $0x118] sm:$0xf] %vm1517_vm3, %v12793_v12  ;;  %v12791_v62 = vpack.c.bf16 %v1085_v33, %v1085_v33  ;;  %v2263_v38 = vshll.u32 %v2239_v30, 16  ;;  %v2195_v13 = vmax.bf16 %v1740_v22, %v15122_v34  ;;  %v2144_v54 = vor.u32 %v2143_v14, %v15169_v32  ;;  %v2240_v33 = vld [vmem:[#allocation2 + $0xb4] sm:$0x3] }
 0x183   :  { %v2251_v61 = vsel %vm14436_vm6, %v2250_v31, %v20686_v3  ;;  %v2267_v9 = vshrl.u32 %v2239_v30, 16  ;;  %v2273_v16 = vshll.u32 %v2241_v5, 16  ;;  %v2277_v58 = vshrl.u32 %v2241_v5, 16 }
 0x184   :  { %v2287_v57 = vmax.bf16 %v2251_v61, %v2237_v20  ;;  %1586 = vst.msk [vmem:[#allocation2 + $0x110] sm:$0xf] %vm1517_vm3, %v12791_v62  ;;  %v15184_v51 = vrot.slane %v2263_v38, 5  ;;  %v2513_v10 = vmax.bf16 %v2345_v46, %v2195_v13  ;;  %v2145_v55 = vrot.slane %v2144_v54, 4  ;;  %v13666_v38 = vld [vmem:[%s20587_s7] ss:$12 sps:$4 sm:$0xff]  }
 0x185   :  { %v15186_v56 = vrot.slane %v2253_v47, 5  ;;  %v2269_v34 = vrot.slane %v2267_v9, 4  ;;  %v2275_v53 = vrot.slane %v2273_v16, 5  ;;  %v2279_v3 = vrot.slane %v2277_v58, 4 }
 0x186   :  { %v12095_v8 = vrot.slane %v2287_v57, 10  ;;  %v902_v26 = vadd.f32 %v14777_v43, %v15015_v17  ;;  %v2150_v20 = vsel %vm14436_vm6, %v2145_v55, %v2149_v23  ;;  %v894_v49 = vadd.f32 %v14777_v43, %v15027_v40  ;;  %v13669_v57 = vld [vmem:[%s20587_s7 + $0x1c] ss:$12 sps:$4 sm:$0xff]  }
 0x187   :  { %v2256_v7 = vsel %vm14436_vm6, %v2145_v55, %v15186_v56  ;;  %v2270_v25 = vor.u32 %v2269_v34, %v15184_v51  ;;  %v2236_v21 = vmax.bf16 %v2150_v20, %v1712_v59  ;;  %v2280_v27 = vor.u32 %v2279_v3, %v2275_v53  ;;  %v15237_v55 = vld [vmem:[#allocation2 + $0x98] sm:$0xf] }
 0x188   :  { %v2342_v17 = vsel %vm14617_vm9, %v12095_v8, %v2341_v48  ;;  %v15206_v46 = vmax.bf16 %v2256_v7, %v1712_v59  ;;  %v1088_v14 = vmax.f32 %v902_v26, 0.0  ;;  %v1086_v5 = vmax.f32 %v894_v49, 0.0 }
 0x189   :  { %v2512_v12 = vmax.bf16 %v2342_v17, %v15157_v0  ;;  %v2271_v31 = vrot.slane %v2270_v25, 4  ;;  %v2281_v40 = vrot.slane %v2280_v27, 4  ;;  %v2117_v52 = vshll.u32 %v15198_v44, 16  ;;  %v15216_v0 = vpop.f32.mrf.mxu0 }
 0x18a   :  { %v2458_v47 = vrot.slane %v15206_v46, 6  ;;  %v2121_v22 = vshrl.u32 %v15198_v44, 16  ;;  %v12794_v62 = vpack.c.bf16 %v1088_v14, %v1088_v14  ;;  %v12792_v23 = vpack.c.bf16 %v1086_v5, %v1086_v5 }
 0x18b   :  { %v12135_v48 = vcombine.low %v2512_v12, %v2513_v10  ;;  %v2276_v59 = vsel %vm14436_vm6, %v2271_v31, %v2275_v53  ;;  %v2291_v61 = vmax.bf16 %v2281_v40, %v2240_v33  ;;  %v15223_v54 = vrot.slane %v2117_v52, 5  ;;  %v15246_v17 = vpop.f32.mrf.mxu0  ;;  %v15252_v40 = vld [vmem:[#allocation2 + $0x9c] sm:$0xf] }
 0x18c   :  { %v15221_v13 = vmax.bf16 %v2276_v59, %v2239_v30  ;;  %v2123_v9 = vrot.slane %v2121_v22, 4  ;;  %1589 = vst.msk [vmem:[#allocation2 + $0x11c] sm:$0xf] %vm1517_vm3, %v12794_v62  ;;  %1587 = vst.msk [vmem:[#allocation2 + $0x114] sm:$0xf] %vm1517_vm3, %v12792_v23  ;;  %v2127_v16 = vshll.u32 %v15210_v4, 16  ;;  %v915_v26 = vadd.f32 %v14777_v43, %v15034_v37 }
 0x18d   :  { %13036 = vmatpush3.bf16.msra.mxu1 %v12135_v48  ;;  %v2131_v58 = vshrl.u32 %v15210_v4, 16  ;;  %v2257_v30 = vshrl.u32 %v15161_v24, 16  ;;  %v15235_v10 = vrot.slane %v2458_v47, 4  ;;  %v20614_v34 = vmov 0.0  }
 0x18e   :  { %13381 = vmatprep.subr.bf16.mxu1 %v20614_v34  ;;  %v2464_v8 = vrot.slane %v15221_v13, 6  ;;  %v2467_v53 = vrot.slane %v2291_v61, 6  ;;  %v2124_v3 = vor.u32 %v2123_v9, %v15223_v54  ;;  %v2129_v20 = vrot.slane %v2127_v16, 5 }
 0x18f   :  { %v2133_v7 = vrot.slane %v2131_v58, 4  ;;  %v2259_v25 = vrot.slane %v2257_v30, 4  ;;  %v907_v49 = vadd.f32 %v14777_v43, %v15049_v60  ;;  %v1091_v33 = vmax.f32 %v915_v26, 0.0 }
 0x190   :  { %2956 = vmatmul.mubr.bf16.vlgmr.msra.gmra.mxu1 %v13666_v38  ;;  %v2466_v27 = vrot.slane %v2464_v8, 4  ;;  %v2125_v12 = vrot.slane %v2124_v3, 4  ;;  %v2097_v31 = vshll.u32 %v15237_v55, 16  ;;  %v2101_v52 = vshrl.u32 %v15237_v55, 16  ;;  %v15264_v38 = vpop.f32.mrf.mxu0 }
 0x191   :  { %v2134_v14 = vor.u32 %v2133_v7, %v2129_v20  ;;  %v2260_v5 = vor.u32 %v2259_v25, %v15186_v56  ;;  %2963 = vmatprep.mubr.bf16.mxu1 %v13669_v57  ;;  %v1089_v37 = vmax.f32 %v907_v49, 0.0  ;;  %v12797_v22 = vpack.c.bf16 %v1091_v33, %v1091_v33 }
 0x192   :  { %v2468_v43 = vsel %vm14617_vm9, %v2466_v27, %v2467_v53  ;;  %v2130_v60 = vsel %vm14436_vm6, %v2125_v12, %v2129_v20  ;;  %v15259_v48 = vrot.slane %v2097_v31, 5  ;;  %v2103_v9 = vrot.slane %v2101_v52, 4  ;;  %v13671_v53 = vld [vmem:[%s20587_s7 + $0x18] ss:$12 sps:$4 sm:$0xff]   ;;  %v15298_v12 = vpop.f32.mrf.mxu0 }
 0x193   :  { %v2554_v59 = vmax.bf16 %v2468_v43, %v2236_v21  ;;  %v2135_v62 = vrot.slane %v2134_v14, 4  ;;  %v15262_v23 = vmax.bf16 %v2130_v60, %v15198_v44  ;;  %v2261_v56 = vrot.slane %v2260_v5, 4  ;;  %1592 = vst.msk [vmem:[#allocation2 + $0x128] sm:$0xf] %vm1517_vm3, %v12797_v22 }
 0x194   :  { %v12795_v61 = vpack.c.bf16 %v1089_v37, %v1089_v37  ;;  %v2107_v57 = vshll.u32 %v15252_v40, 16  ;;  %v2111_v16 = vshrl.u32 %v15252_v40, 16  ;;  %v2104_v20 = vor.u32 %v2103_v9, %v15259_v48 }
 0x195   :  { %v12156_v58 = vcombine.low %v2554_v59, %v2554_v59  ;;  %v2140_v21 = vsel %vm14436_vm6, %v2135_v62, %v15169_v32  ;;  %v2266_v44 = vsel %vm14436_vm6, %v2261_v56, %v15184_v51  ;;  %v2452_v30 = vrot.slane %v15262_v23, 6  ;;  %v15283_v32 = vld [vmem:[#allocation2 + $0x90] sm:$0xf]  ;;  %v13672_v51 = vld [vmem:[%s20587_s7 + $0x34] ss:$12 sps:$4 sm:$0xff]  }
 0x196   :  { %v2235_v3 = vmax.bf16 %v2140_v21, %v15210_v4  ;;  %v2289_v26 = vmax.bf16 %v2266_v44, %v15161_v24  ;;  %1590 = vst.msk [vmem:[#allocation2 + $0x120] sm:$0xf] %vm1517_vm3, %v12795_v61  ;;  %v2109_v7 = vrot.slane %v2107_v57, 5  ;;  %v2113_v49 = vrot.slane %v2111_v16, 4  ;;  %v15294_v24 = vld [vmem:[%s20586_s2] ss:$0 sm:$0xff]  ;;  %v15316_v57 = vpop.f32.mrf.mxu0 }
 0x197   :  { %v2921_v25 = vsel %vm20631_vm10, %v12156_v58, 0  ;;  %v2454_v27 = vrot.slane %v2452_v30, 4  ;;  %v918_v4 = vadd.f32 %v15294_v24, %v15069_v15  ;;  %v2105_v14 = vrot.slane %v2104_v20, 4  ;;  %v15322_v21 = vld [vmem:[#allocation2 + $0x94] sm:$0xf] }
 0x198   :  { %13382 = vmatpush3.bf16.msra.mxu1 %v2921_v25  ;;  %v2455_v33 = vrot.slane %v2235_v3, 6  ;;  %v2461_v31 = vrot.slane %v2289_v26, 6  ;;  %v910_v5 = vadd.f32 %v15294_v24, %v15090_v29  ;;  %v2114_v37 = vor.u32 %v2113_v49, %v2109_v7  ;;  %v15345_v49 = vpop.f32.mrf.mxu0 }
 0x199   :  { %13383 = vmatprep.subr.bf16.mxu1 %v20614_v34  ;;  %2964 = vmatmul.mubr.bf16.gmra.mxu1 %v13671_v53  ;;  %v1092_v52 = vmax.f32 %v918_v4, 0.0  ;;  %v2077_v43 = vshll.u32 %v15283_v32, 16  ;;  %v2081_v60 = vshrl.u32 %v15283_v32, 16  ;;  %v2110_v59 = vsel %vm14436_vm6, %v2105_v14, %v2109_v7 }
 0x19a   :  { %v2462_v15 = vsel %vm14617_vm9, %v15235_v10, %v2461_v31  ;;  %v2463_v22 = vrot.slane %v2461_v31, 4  ;;  %v2456_v29 = vsel %vm14617_vm9, %v2454_v27, %v2455_v33  ;;  %2971 = vmatprep.mubr.bf16.mxu1 %v13672_v51  ;;  %v2115_v56 = vrot.slane %v2114_v37, 4 }
 0x19b   :  { %v2552_v62 = vmax.bf16 %v2462_v15, %v15262_v23  ;;  %v15314_v61 = vmax.bf16 %v2110_v59, %v15237_v55  ;;  %v2457_v9 = vrot.slane %v2455_v33, 4  ;;  %v12798_v16 = vpack.c.bf16 %v1092_v52, %v1092_v52 }
 0x19c   :  { %v2465_v10 = vsel %vm14617_vm9, %v2463_v22, %v2464_v8  ;;  %v1090_v58 = vmax.f32 %v910_v5, 0.0  ;;  %v2079_v44 = vrot.slane %v2077_v43, 5  ;;  %v2120_v26 = vsel %vm14436_vm6, %v2115_v56, %v15223_v54  ;;  %v15355_v43 = vpop.f32.mrf.mxu0 }
 0x19d   :  { %v2553_v53 = vmax.bf16 %v2465_v10, %v2235_v3  ;;  %v2446_v55 = vrot.slane %v15314_v61, 6  ;;  %v2459_v13 = vsel %vm14617_vm9, %v2457_v9, %v2458_v47  ;;  %v2233_v20 = vmax.bf16 %v2120_v26, %v15252_v40  ;;  %1593 = vst.msk [vmem:[#allocation2 + $0x12c] sm:$0xf] %vm1517_vm3, %v12798_v16  ;;  %v13674_v3 = vld [vmem:[%s20587_s7 + $0x30] ss:$12 sps:$4 sm:$0xff]  }
 0x19e   :  { %v2550_v8 = vmax.bf16 %v2456_v29, %v15314_v61  ;;  %v12796_v7 = vpack.c.bf16 %v1090_v58, %v1090_v58  ;;  %v2083_v51 = vrot.slane %v2081_v60, 4  ;;  %v2087_v25 = vshll.u32 %v15322_v21, 16  ;;  %v13675_v40 = vld [vmem:[%s20587_s7 + $0x4c] ss:$12 sps:$4 sm:$0xff]  }
 0x19f   :  { %v12155_v54 = vcombine.low %v2552_v62, %v2553_v53  ;;  %v2091_v46 = vshrl.u32 %v15322_v21, 16  ;;  %v2448_v47 = vrot.slane %v2446_v55, 4  ;;  %v2449_v27 = vrot.slane %v2233_v20, 6  ;;  %v15373_v53 = vpop.f32.mrf.mxu0 }
 0x1a0   :  { %v2551_v4 = vmax.bf16 %v2459_v13, %v2233_v20  ;;  %1591 = vst.msk [vmem:[#allocation2 + $0x124] sm:$0xf] %vm1517_vm3, %v12796_v7  ;;  %v2084_v33 = vor.u32 %v2083_v51, %v2079_v44  ;;  %v931_v31 = vadd.f32 %v15294_v24, %v15113_v36  ;;  %v2089_v14 = vrot.slane %v2087_v25, 5 }
 0x1a1   :  { %13384 = vmatpush3.bf16.msra.mxu1 %v12155_v54  ;;  %v2093_v5 = vrot.slane %v2091_v46, 4  ;;  %v923_v37 = vadd.f32 %v15294_v24, %v15132_v19  ;;  %v2075_v52 = vrot.slane %v2074_v35, 4  ;;  %v2450_v22 = vsel %vm14617_vm9, %v2448_v47, %v2449_v27  ;;  %v14075_v35 = vld [vmem:[#allocation2 + $0x8c] sm:$0xf] }
 0x1a2   :  { %13385 = vmatprep.subr.bf16.mxu1 %v20614_v34  ;;  %v12154_v60 = vcombine.low %v2550_v8, %v2551_v4  ;;  %v2085_v15 = vrot.slane %v2084_v33, 4  ;;  %v2451_v36 = vrot.slane %v2449_v27, 4  ;;  %2972 = vmatmul.mubr.bf16.gmra.mxu1 %v13674_v3  ;;  %v1095_v29 = vmax.f32 %v931_v31, 0.0 }
 0x1a3   :  { %v2094_v59 = vor.u32 %v2093_v5, %v2089_v14  ;;  %v1093_v62 = vmax.f32 %v923_v37, 0.0  ;;  %v2080_v19 = vsel %vm14436_vm6, %v2075_v52, %v2079_v44  ;;  %2979 = vmatprep.mubr.bf16.mxu1 %v13675_v40  ;;  %v934_v9 = vadd.f32 %v15294_v24, %v15149_v11  ;;  %v13677_v11 = vld [vmem:[%s20587_s7 + $0x48] ss:$12 sps:$4 sm:$0xff]   ;;  %v13372_v40 = vpop.f32.mrf.mxu0 }
 0x1a4   :  { %v2090_v42 = vsel %vm14436_vm6, %v2085_v15, %v2089_v14  ;;  %v2453_v50 = vsel %vm14617_vm9, %v2451_v36, %v2452_v30  ;;  %v15368_v56 = vmax.bf16 %v14075_v35, %v2080_v19  ;;  %v12801_v58 = vpack.c.bf16 %v1095_v29, %v1095_v29 }
 0x1a5   :  { %13386 = vmatpush3.bf16.msra.mxu1 %v12154_v60  ;;  %v2095_v10 = vrot.slane %v2094_v59, 4  ;;  %v2230_v16 = vmax.bf16 %v2090_v42, %v15283_v32  ;;  %v12799_v44 = vpack.c.bf16 %v1093_v62, %v1093_v62  ;;  %v1096_v26 = vmax.f32 %v934_v9, 0.0  ;;  %v973_v36 = vpop.f32.mrf.mxu0 }
 0x1a6   :  { %13387 = vmatprep.subr.bf16.mxu1 %v20614_v34  ;;  %v2437_v23 = vrot.slane %v15368_v56, 6  ;;  %v926_v30 = vadd.f32 %v15294_v24, %v15163_v63  ;;  %v947_v13 = vadd.f32 %v15294_v24, %v15181_v45  ;;  %1596 = vst.msk [vmem:[#allocation2 + $0x138] sm:$0xf] %vm1517_vm3, %v12801_v58  ;;  %v939_v63 = vadd.f32 %v15294_v24, %v15200_v39  ;;  %v13678_v45 = vld [vmem:[%s20587_s7 + $0x64] ss:$12 sps:$4 sm:$0xff]  }
 0x1a7   :  { %v2100_v32 = vsel %vm14436_vm6, %v2095_v10, %v15259_v48  ;;  %v2440_v20 = vrot.slane %v2230_v16, 6  ;;  %v2548_v8 = vmax.bf16 %v2450_v22, %v2230_v16  ;;  %1594 = vst.msk [vmem:[#allocation2 + $0x130] sm:$0xf] %vm1517_vm3, %v12799_v44  ;;  %v12802_v51 = vpack.c.bf16 %v1096_v26, %v1096_v26  ;;  %v13375_v16 = vpop.f32.mrf.mxu0  ;;  %v15440_v58 = vld [vmem:[#allocation2 + $0x100] sm:$0xf] }
 0x1a8   :  { %v2231_v7 = vmax.bf16 %v2100_v32, %v15322_v21  ;;  %v1094_v3 = vmax.f32 %v926_v30, 0.0  ;;  %v2438_v48 = vsel %vm14617_vm9, %v15140_v18, %v2437_v23  ;;  %v2439_v25 = vrot.slane %v2437_v23, 4 }
 0x1a9   :  { %v2442_v54 = vrot.slane %v2440_v20, 4  ;;  %v2544_v46 = vmax.bf16 %v2438_v48, %v14759_v2  ;;  %v1099_v47 = vmax.f32 %v947_v13, 0.0  ;;  %1597 = vst.msk [vmem:[#allocation2 + $0x13c] sm:$0xf] %vm1517_vm3, %v12802_v51  ;;  %v1097_v33 = vmax.f32 %v939_v63, 0.0 }
 0x1aa   :  { %v2443_v27 = vrot.slane %v2231_v7, 6  ;;  %v2549_v39 = vmax.bf16 %v2453_v50, %v2231_v7  ;;  %v12800_v4 = vpack.c.bf16 %v1094_v3, %v1094_v3  ;;  %2980 = vmatmul.mubr.bf16.gmra.mxu1 %v13677_v11  ;;  %v2441_v21 = vsel %vm14617_vm9, %v2439_v25, %v2440_v20  ;;  %v13684_v48 = vld [vmem:[%s20587_s7 + $0x94] ss:$12 sps:$4 sm:$0xff]  }
 0x1ab   :  { %v12805_v31 = vpack.c.bf16 %v1099_v47, %v1099_v47  ;;  %v950_v18 = vadd.f32 %v15294_v24, %v15216_v0  ;;  %v942_v14 = vadd.f32 %v15294_v24, %v15246_v17  ;;  %2987 = vmatprep.mubr.bf16.mxu1 %v13678_v45  ;;  %v2545_v52 = vmax.bf16 %v2441_v21, %v14780_v1  ;;  %v13683_v45 = vld [vmem:[%s20587_s7 + $0x78] ss:$12 sps:$4 sm:$0xff]  }
 0x1ac   :  { %v12153_v2 = vcombine.low %v2548_v8, %v2549_v39  ;;  %v2444_v5 = vsel %vm14617_vm9, %v2442_v54, %v2443_v27  ;;  %v2445_v37 = vrot.slane %v2443_v27, 4  ;;  %1595 = vst.msk [vmem:[#allocation2 + $0x134] sm:$0xf] %vm1517_vm3, %v12800_v4  ;;  %v12803_v15 = vpack.c.bf16 %v1097_v33, %v1097_v33 }
 0x1ad   :  { %v2546_v60 = vmax.bf16 %v2444_v5, %v14762_v28  ;;  %1600 = vst.msk [vmem:[#allocation2 + $0x148] sm:$0xf] %vm1517_vm3, %v12805_v31  ;;  %v1100_v22 = vmax.f32 %v950_v18, 0.0  ;;  %v1098_v0 = vmax.f32 %v942_v14, 0.0  ;;  %v12151_v59 = vcombine.low %v2544_v46, %v2545_v52  ;;  %v13680_v28 = vld [vmem:[%s20587_s7 + $0x60] ss:$12 sps:$4 sm:$0xff]  }
 0x1ae   :  { %13388 = vmatpush3.bf16.msra.mxu1 %v12153_v2  ;;  %v2447_v17 = vsel %vm14617_vm9, %v2445_v37, %v2446_v55  ;;  %v963_v29 = vadd.f32 %v15294_v24, %v15264_v38  ;;  %v955_v1 = vadd.f32 %v15294_v24, %v15298_v12  ;;  %1598 = vst.msk [vmem:[#allocation2 + $0x140] sm:$0xf] %vm1517_vm3, %v12803_v15  ;;  %v13681_v38 = vld [vmem:[%s20587_s7 + $0x7c] ss:$12 sps:$4 sm:$0xff]   ;;  %v3511_v63 = vshll.u32 %v15440_v58, 16 }
 0x1af   :  { %13389 = vmatprep.subr.bf16.mxu1 %v20614_v34  ;;  %v2547_v62 = vmax.bf16 %v2447_v17, %v15368_v56  ;;  %v12806_v61 = vpack.c.bf16 %v1100_v22, %v1100_v22  ;;  %v12804_v19 = vpack.c.bf16 %v1098_v0, %v1098_v0  ;;  %v966_v55 = vadd.f32 %v15294_v24, %v15316_v57  ;;  %v15466_v31 = vld [vmem:[#allocation2 + $0x104] sm:$0xf] }
 0x1b0   :  { %v1103_v42 = vmax.f32 %v963_v29, 0.0  ;;  %v1101_v50 = vmax.f32 %v955_v1, 0.0  ;;  %v958_v12 = vadd.f32 %v15294_v24, %v15345_v49  ;;  %v979_v35 = vadd.f32 %v15294_v24, %v15355_v43 }
 0x1b1   :  { %v12152_v56 = vcombine.low %v2546_v60, %v2547_v62  ;;  %1601 = vst.msk [vmem:[#allocation2 + $0x14c] sm:$0xf] %vm1517_vm3, %v12806_v61  ;;  %1599 = vst.msk [vmem:[#allocation2 + $0x144] sm:$0xf] %vm1517_vm3, %v12804_v19  ;;  %v1104_v9 = vmax.f32 %v966_v55, 0.0  ;;  %v971_v57 = vadd.f32 %v15294_v24, %v15373_v53  ;;  %v982_v10 = vadd.f32 %v15294_v24, %v13372_v40 }
 0x1b2   :  { %v12809_v44 = vpack.c.bf16 %v1103_v42, %v1103_v42  ;;  %2988 = vmatmul.mubr.bf16.gmra.mxu1 %v13680_v28  ;;  %v12807_v49 = vpack.c.bf16 %v1101_v50, %v1101_v50  ;;  %v1102_v23 = vmax.f32 %v958_v12, 0.0  ;;  %v1107_v26 = vmax.f32 %v979_v35, 0.0 }
 0x1b3   :  { %13390 = vmatpush3.bf16.msra.mxu1 %v12152_v56  ;;  %v12810_v43 = vpack.c.bf16 %v1104_v9, %v1104_v9  ;;  %2995 = vmatprep.mubr.bf16.mxu1 %v13681_v38  ;;  %v1105_v30 = vmax.f32 %v971_v57, 0.0  ;;  %v1108_v13 = vmax.f32 %v982_v10, 0.0  ;;  %v974_v11 = vadd.f32 %v15294_v24, %v973_v36  ;;  %v13686_v57 = vld [vmem:[%s20587_s7 + $0x90] ss:$12 sps:$4 sm:$0xff]  }
 0x1b4   :  { %13391 = vmatprep.subr.bf16.mxu1 %v20614_v34  ;;  %1604 = vst.msk [vmem:[#allocation2 + $0x158] sm:$0xf] %vm1517_vm3, %v12809_v44  ;;  %1602 = vst.msk [vmem:[#allocation2 + $0x150] sm:$0xf] %vm1517_vm3, %v12807_v49  ;;  %v12808_v53 = vpack.c.bf16 %v1102_v23, %v1102_v23  ;;  %v12813_v32 = vpack.c.bf16 %v1107_v26, %v1107_v26  ;;  %v15446_v20 = vld [vmem:[#allocation2 + $0x148] sm:$0xf]  ;;  %v995_v8 = vadd.f32 %v15294_v24, %v13375_v16 }
 0x1b5   :  { %1605 = vst.msk [vmem:[#allocation2 + $0x15c] sm:$0xf] %vm1517_vm3, %v12810_v43  ;;  %v12811_v7 = vpack.c.bf16 %v1105_v30, %v1105_v30  ;;  %v12814_v51 = vpack.c.bf16 %v1108_v13, %v1108_v13  ;;  %v1106_v3 = vmax.f32 %v974_v11, 0.0  ;;  %v3691_v54 = vshll.u32 %v15446_v20, 16  ;;  %v3357_v25 = vld [vmem:[#allocation2 + $0x140] sm:$0xf] }
 0x1b6   :  { %1603 = vst.msk [vmem:[#allocation2 + $0x154] sm:$0xf] %vm1517_vm3, %v12808_v53  ;;  %1608 = vst.msk [vmem:[#allocation2 + $0x168] sm:$0xf] %vm1517_vm3, %v12813_v32  ;;  %v3695_v46 = vshrl.u32 %v15446_v20, 16  ;;  %v1111_v47 = vmax.f32 %v995_v8, 0.0 }
 0x1b7   :  { %v15461_v40 = vrot.slane %v3511_v63, 5  ;;  %v3515_v27 = vshrl.u32 %v15440_v58, 16  ;;  %13392 = vmatpush3.bf16.msra.mxu1 %v12151_v59  ;;  %1606 = vst.msk [vmem:[#allocation2 + $0x160] sm:$0xf] %vm1517_vm3, %v12811_v7  ;;  %1609 = vst.msk [vmem:[#allocation2 + $0x16c] sm:$0xf] %vm1517_vm3, %v12814_v51  ;;  %v12812_v39 = vpack.c.bf16 %v1106_v3, %v1106_v3 }
 0x1b8   :  { %v3671_v4 = vshll.u32 %v3357_v25, 16  ;;  %v3675_v33 = vshrl.u32 %v3357_v25, 16  ;;  %v3693_v21 = vrot.slane %v3691_v54, 5  ;;  %v3358_v18 = vld [vmem:[#allocation2 + $0x144] sm:$0xf]  ;;  %v3697_v2 = vrot.slane %v3695_v46, 4  ;;  %13445 = vmatprep.subr.bf16.mxu1 %v20614_v34  ;;  %v986_v54 = vpop.f32.mrf.mxu0 }
 0x1b9   :  { %v3360_v14 = vld [vmem:[#allocation2 + $0x14c] sm:$0xf]  ;;  %v12817_v5 = vpack.c.bf16 %v1111_v47, %v1111_v47  ;;  %v3517_v37 = vrot.slane %v3515_v27, 4  ;;  %1607 = vst.msk [vmem:[#allocation2 + $0x164] sm:$0xf] %vm1517_vm3, %v12812_v39  ;;  %v3681_v15 = vshll.u32 %v3358_v18, 16  ;;  %v15505_v47 = vadd.f32 %v15294_v24, %v986_v54 }
 0x1ba   :  { %v15470_v52 = vrot.slane %v3671_v4, 5  ;;  %v3677_v60 = vrot.slane %v3675_v33, 4  ;;  %v3685_v22 = vshrl.u32 %v3358_v18, 16  ;;  %2996 = vmatmul.mubr.bf16.gmra.mxu1 %v13683_v45  ;;  %v3698_v0 = vor.u32 %v3697_v2, %v3693_v21  ;;  %v13687_v23 = vld [vmem:[%s20587_s7 + $0xac] ss:$12 sps:$4 sm:$0xff]  }
 0x1bb   :  { %v3701_v36 = vshll.u32 %v3360_v14, 16  ;;  %v3705_v17 = vshrl.u32 %v3360_v14, 16  ;;  %1612 = vst.msk [vmem:[#allocation2 + $0x178] sm:$0xf] %vm1517_vm3, %v12817_v5  ;;  %v3518_v59 = vor.u32 %v3517_v37, %v15461_v40  ;;  %3003 = vmatprep.mubr.bf16.mxu1 %v13684_v48  ;;  %v3361_v29 = vld [vmem:[#allocation2 + $0x150] sm:$0xf] }
 0x1bc   :  { %v3678_v28 = vor.u32 %v3677_v60, %v15470_v52  ;;  %v3683_v1 = vrot.slane %v3681_v15, 5  ;;  %v3687_v62 = vrot.slane %v3685_v22, 4  ;;  %v3521_v61 = vshll.u32 %v15466_v31, 16  ;;  %v3343_v51 = vld [vmem:[#allocation2 + $0x108] sm:$0xf] }
 0x1bd   :  { %v3699_v19 = vrot.slane %v3698_v0, 4  ;;  %v3703_v55 = vrot.slane %v3701_v36, 5  ;;  %v3707_v38 = vrot.slane %v3705_v17, 4  ;;  %v3711_v42 = vshll.u32 %v3361_v29, 16  ;;  %v3362_v50 = vld [vmem:[#allocation2 + $0x154] sm:$0xf] }
 0x1be   :  { %v3679_v12 = vrot.slane %v3678_v28, 4  ;;  %v3688_v35 = vor.u32 %v3687_v62, %v3683_v1  ;;  %v3715_v56 = vshrl.u32 %v3361_v29, 16  ;;  %v15476_v9 = vrot.slane %v3518_v59, 4  ;;  %v3344_v3 = vld [vmem:[#allocation2 + $0x10c] sm:$0xf] }
 0x1bf   :  { %v3704_v10 = vsel %vm14436_vm6, %v3699_v19, %v3703_v55  ;;  %v3708_v16 = vor.u32 %v3707_v38, %v3703_v55  ;;  %v3713_v44 = vrot.slane %v3711_v42, 5  ;;  %v3721_v49 = vshll.u32 %v3362_v50, 16  ;;  %v13689_v37 = vld [vmem:[%s20587_s7 + $0xa8] ss:$12 sps:$4 sm:$0xff]   ;;  %v3345_v15 = vld [vmem:[#allocation2 + $0x110] sm:$0xf] }
 0x1c0   :  { %v3684_v26 = vsel %vm14436_vm6, %v3679_v12, %v3683_v1  ;;  %v3689_v43 = vrot.slane %v3688_v35, 4  ;;  %v3717_v30 = vrot.slane %v3715_v56, 4  ;;  %v15489_v13 = vmax.bf16 %v3704_v10, %v15446_v20  ;;  %v15523_v17 = vld [vmem:[#allocation2 + $0x114] sm:$0xf]  ;;  %v13690_v62 = vld [vmem:[%s20587_s7 + $0xc4] ss:$12 sps:$4 sm:$0xff]  }
 0x1c1   :  { %v3709_v11 = vrot.slane %v3708_v16, 4  ;;  %v15491_v53 = vrot.slane %v3721_v49, 5  ;;  %v15493_v32 = vmax.bf16 %v3684_v26, %v3357_v25  ;;  %v3523_v8 = vrot.slane %v3521_v61, 5  ;;  %v15535_v10 = vld [vmem:[#allocation2 + $0x138] sm:$0xf] }
 0x1c2   :  { %v3694_v63 = vsel %vm14436_vm6, %v3689_v43, %v3693_v21  ;;  %v3718_v45 = vor.u32 %v3717_v30, %v3713_v44  ;;  %v4079_v7 = vrot.slane %v15489_v13, 6  ;;  %v3525_v48 = vshrl.u32 %v15466_v31, 16  ;;  %3004 = vmatmul.mubr.bf16.gmra.mxu1 %v13686_v57 }
 0x1c3   :  { %v3714_v20 = vsel %vm14436_vm6, %v3709_v11, %v3713_v44  ;;  %v15501_v46 = vmax.bf16 %v3694_v63, %v3358_v18  ;;  %v4073_v25 = vrot.slane %v15493_v32, 6  ;;  %3011 = vmatprep.mubr.bf16.mxu1 %v13687_v23  ;;  %v3524_v21 = vsel %vm14436_vm6, %v15476_v9, %v3523_v8 }
 0x1c4   :  { %v3719_v27 = vrot.slane %v3718_v45, 4  ;;  %v15507_v39 = vmax.bf16 %v3714_v20, %v3360_v14  ;;  %v4081_v4 = vrot.slane %v4079_v7, 4  ;;  %v3527_v33 = vrot.slane %v3525_v48, 4  ;;  %v3356_v48 = vld [vmem:[#allocation2 + $0x13c] sm:$0xf] }
 0x1c5   :  { %v3531_v2 = vshll.u32 %v3343_v51, 16  ;;  %v3535_v18 = vshrl.u32 %v3343_v51, 16  ;;  %v3541_v5 = vshll.u32 %v3344_v3, 16  ;;  %v3545_v0 = vshrl.u32 %v3344_v3, 16 }
 0x1c6   :  { %v3724_v14 = vsel %vm14436_vm6, %v3719_v27, %v15491_v53  ;;  %v4082_v60 = vrot.slane %v15507_v39, 6  ;;  %v3528_v22 = vor.u32 %v3527_v33, %v3523_v8  ;;  %v3551_v12 = vshll.u32 %v3345_v15, 16  ;;  %v13692_v33 = vld [vmem:[%s20587_s7 + $0xc0] ss:$12 sps:$4 sm:$0xff]  }
 0x1c7   :  { %v15521_v36 = vmax.bf16 %v3724_v14, %v3361_v29  ;;  %v3533_v59 = vrot.slane %v3531_v2, 5  ;;  %v3537_v28 = vrot.slane %v3535_v18, 4  ;;  %v3543_v1 = vrot.slane %v3541_v5, 5  ;;  %v13693_v14 = vld [vmem:[%s20587_s7 + $0xdc] ss:$12 sps:$4 sm:$0xff]  }
 0x1c8   :  { %v4083_v61 = vsel %vm14617_vm9, %v4081_v4, %v4082_v60  ;;  %v4084_v19 = vrot.slane %v4082_v60, 4  ;;  %v3529_v55 = vrot.slane %v3528_v22, 4  ;;  %v3547_v38 = vrot.slane %v3545_v0, 4 }
 0x1c9   :  { %v4085_v42 = vrot.slane %v15521_v36, 6  ;;  %v4193_v29 = vmax.bf16 %v4083_v61, %v15493_v32  ;;  %v3538_v50 = vor.u32 %v3537_v28, %v3533_v59  ;;  %v3555_v9 = vshrl.u32 %v3345_v15, 16  ;;  %v13376_v61 = vpop.f32.mrf.mxu0 }
 0x1ca   :  { %v3534_v35 = vsel %vm14436_vm6, %v3529_v55, %v3533_v59  ;;  %v3548_v56 = vor.u32 %v3547_v38, %v3543_v1  ;;  %v3561_v57 = vshll.u32 %v15523_v17, 16  ;;  %3012 = vmatmul.mubr.bf16.gmra.mxu1 %v13689_v37  ;;  %v4076_v16 = vrot.slane %v15501_v46, 6 }
 0x1cb   :  { %v4086_v44 = vsel %vm14617_vm9, %v4084_v19, %v4085_v42  ;;  %v3539_v49 = vrot.slane %v3538_v50, 4  ;;  %v3553_v23 = vrot.slane %v3551_v12, 5  ;;  %3019 = vmatprep.mubr.bf16.mxu1 %v13690_v62  ;;  %v3557_v30 = vrot.slane %v3555_v9, 4  ;;  %v3339_v50 = vld [vmem:[#allocation2 + $0xf8] sm:$0xf] }
 0x1cc   :  { %v4194_v26 = vmax.bf16 %v4086_v44, %v15501_v46  ;;  %v3549_v43 = vrot.slane %v3548_v56, 4  ;;  %v15543_v11 = vrot.slane %v3561_v57, 5  ;;  %v15548_v63 = vmax.bf16 %v3524_v21, %v15440_v58 }
 0x1cd   :  { %v3544_v8 = vsel %vm14436_vm6, %v3539_v49, %v3543_v1  ;;  %v15551_v45 = vmax.bf16 %v3534_v35, %v15466_v31  ;;  %v3651_v54 = vshll.u32 %v15535_v10, 16  ;;  %v3558_v27 = vor.u32 %v3557_v30, %v3553_v23 }
 0x1ce   :  { %v12212_v20 = vcombine.low %v4193_v29, %v4194_v26  ;;  %v3554_v46 = vsel %vm14436_vm6, %v3549_v43, %v3553_v23  ;;  %v15556_v4 = vmax.bf16 %v3544_v8, %v3343_v51  ;;  %v4025_v58 = vrot.slane %v15548_v63, 6 }
 0x1cf   :  { %v15561_v2 = vmax.bf16 %v3554_v46, %v3344_v3  ;;  %v4028_v31 = vrot.slane %v15551_v45, 6  ;;  %v15565_v21 = vrot.slane %v3651_v54, 5  ;;  %v3559_v18 = vrot.slane %v3558_v27, 4 }
 0x1d0   :  { %13134 = vmatprep.subr.bf16.mxu0 %v12212_v20  ;;  %v4031_v5 = vrot.slane %v15556_v4, 6  ;;  %v3655_v37 = vshrl.u32 %v15535_v10, 16  ;;  %v3661_v51 = vshll.u32 %v3356_v48, 16  ;;  %v3665_v60 = vshrl.u32 %v3356_v48, 16  ;;  %v13695_v20 = vld [vmem:[%s20587_s7 + $0xd8] ss:$12 sps:$4 sm:$0xff]  }
 0x1d1   :  { %v4034_v3 = vrot.slane %v15561_v2, 6  ;;  %v4075_v22 = vrot.slane %v4073_v25, 4  ;;  %v4078_v0 = vrot.slane %v4076_v16, 4  ;;  %v3564_v59 = vsel %vm14436_vm6, %v3559_v18, %v15543_v11 }
 0x1d2   :  { %v4033_v28 = vrot.slane %v4031_v5, 4  ;;  %v3657_v1 = vrot.slane %v3655_v37, 4  ;;  %v3663_v62 = vrot.slane %v3661_v51, 5  ;;  %3020 = vmatmul.mubr.bf16.gmra.mxu1 %v13692_v33  ;;  %v15580_v19 = vmax.bf16 %v3564_v59, %v3345_v15  ;;  %v15592_v15 = vld [vmem:[#allocation2 + $0xfc] sm:$0xf] }
 0x1d3   :  { %v4036_v55 = vrot.slane %v4034_v3, 4  ;;  %v3667_v38 = vrot.slane %v3665_v60, 4  ;;  %v4077_v29 = vsel %vm14617_vm9, %v4075_v22, %v4076_v16  ;;  %v4080_v56 = vsel %vm14617_vm9, %v4078_v0, %v4079_v7  ;;  %3027 = vmatprep.mubr.bf16.mxu1 %v13693_v14  ;;  %v13696_v37 = vld [vmem:[%s20587_s7 + $0xf4] ss:$12 sps:$4 sm:$0xff]  }
 0x1d4   :  { %v4035_v12 = vsel %vm14617_vm9, %v4033_v28, %v4034_v3  ;;  %v3658_v35 = vor.u32 %v3657_v1, %v15565_v21  ;;  %v1109_v9 = vmax.f32 %v15505_v47, 0.0  ;;  %v4037_v57 = vrot.slane %v15580_v19, 6  ;;  %v3353_v1 = vld [vmem:[#allocation2 + $0x130] sm:$0xf] }
 0x1d5   :  { %v4177_v16 = vmax.bf16 %v4035_v12, %v15548_v63  ;;  %v3668_v44 = vor.u32 %v3667_v38, %v3663_v62  ;;  %v998_v49 = vadd.f32 %v15294_v24, %v13376_v61  ;;  %v3491_v43 = vshll.u32 %v3339_v50, 16 }
 0x1d6   :  { %v3659_v23 = vrot.slane %v3658_v35, 4  ;;  %v12815_v26 = vpack.c.bf16 %v1109_v9, %v1109_v9  ;;  %v3495_v30 = vshrl.u32 %v3339_v50, 16  ;;  %v4038_v7 = vsel %vm14617_vm9, %v4036_v55, %v4037_v57  ;;  %v3354_v55 = vld [vmem:[#allocation2 + $0x134] sm:$0xf] }
 0x1d7   :  { %v3669_v47 = vrot.slane %v3668_v44, 4  ;;  %v1112_v8 = vmax.f32 %v998_v49, 0.0  ;;  %v3501_v54 = vshll.u32 %v15592_v15, 16  ;;  %v4178_v46 = vmax.bf16 %v4038_v7, %v15551_v45 }
 0x1d8   :  { %v3664_v27 = vsel %vm14436_vm6, %v3659_v23, %v3663_v62  ;;  %1610 = vst.msk [vmem:[#allocation2 + $0x170] sm:$0xf] %vm1517_vm3, %v12815_v26  ;;  %v15609_v33 = vrot.slane %v3491_v43, 5  ;;  %v3497_v18 = vrot.slane %v3495_v30, 4  ;;  %v3505_v28 = vshrl.u32 %v15592_v15, 16 }
 0x1d9   :  { %v3674_v51 = vsel %vm14436_vm6, %v3669_v47, %v15470_v52  ;;  %v15618_v14 = vmax.bf16 %v3664_v27, %v15535_v10  ;;  %v12818_v3 = vpack.c.bf16 %v1112_v8, %v1112_v8  ;;  %v3503_v60 = vrot.slane %v3501_v54, 5  ;;  %v15639_v43 = vld [vmem:[#allocation2 + $0xf0] sm:$0xf]  ;;  %v989_v47 = vpop.f32.mrf.mxu0 }
 0x1da   :  { %v12204_v22 = vcombine.low %v4177_v16, %v4178_v46  ;;  %v3877_v0 = vmax.bf16 %v3674_v51, %v3356_v48  ;;  %v3498_v59 = vor.u32 %v3497_v18, %v15609_v33  ;;  %v4027_v52 = vrot.slane %v4025_v58, 4  ;;  %3028 = vmatmul.mubr.bf16.gmra.mxu1 %v13695_v20 }
 0x1db   :  { %v4067_v62 = vrot.slane %v15618_v14, 6  ;;  %v4191_v61 = vmax.bf16 %v4077_v29, %v15618_v14  ;;  %1613 = vst.msk [vmem:[#allocation2 + $0x17c] sm:$0xf] %vm1517_vm3, %v12818_v3  ;;  %v4030_v10 = vrot.slane %v4028_v31, 4  ;;  %v3507_v35 = vrot.slane %v3505_v28, 4  ;;  %3035 = vmatprep.mubr.bf16.mxu1 %v13696_v37 }
 0x1dc   :  { %13135 = vmatpush3.bf16.msra.mxu0 %v12204_v22  ;;  %v4070_v48 = vrot.slane %v3877_v0, 6  ;;  %v4192_v38 = vmax.bf16 %v4080_v56, %v3877_v0  ;;  %v3499_v12 = vrot.slane %v3498_v59, 4  ;;  %v4029_v29 = vsel %vm14617_vm9, %v4027_v52, %v4028_v31  ;;  %v3338_v3 = vld [vmem:[#allocation2 + $0xf4] sm:$0xf] }
 0x1dd   :  { %v4032_v9 = vsel %vm14617_vm9, %v4030_v10, %v4031_v5  ;;  %v3631_v16 = vshll.u32 %v3353_v1, 16  ;;  %v3635_v44 = vshrl.u32 %v3353_v1, 16  ;;  %v3508_v56 = vor.u32 %v3507_v35, %v3503_v60  ;;  %v13698_v5 = vld [vmem:[%s20587_s7 + $0xf0] ss:$12 sps:$4 sm:$0xff]  }
 0x1de   :  { %v12211_v49 = vcombine.low %v4191_v61, %v4192_v38  ;;  %v3504_v23 = vsel %vm14436_vm6, %v3499_v12, %v3503_v60  ;;  %v3641_v26 = vshll.u32 %v3354_v55, 16  ;;  %v3645_v7 = vshrl.u32 %v3354_v55, 16 }
 0x1df   :  { %v15641_v30 = vmax.bf16 %v3504_v23, %v3339_v50  ;;  %v15643_v45 = vrot.slane %v3631_v16, 5  ;;  %v3637_v31 = vrot.slane %v3635_v44, 4  ;;  %v3509_v8 = vrot.slane %v3508_v56, 4  ;;  %v13699_v50 = vld [vmem:[%s20587_s7 + $0x10c] ss:$12 sps:$4 sm:$0xff]  }
 0x1e0   :  { %13136 = vmatprep.subr.bf16.mxu0 %v12211_v49  ;;  %v3643_v54 = vrot.slane %v3641_v26, 5  ;;  %v4069_v20 = vrot.slane %v4067_v62, 4  ;;  %v4072_v46 = vrot.slane %v4070_v48, 4  ;;  %v3647_v51 = vrot.slane %v3645_v7, 4  ;;  %v3351_v49 = vld [vmem:[#allocation2 + $0x128] sm:$0xf] }
 0x1e1   :  { %v4019_v27 = vrot.slane %v15641_v30, 6  ;;  %v4175_v18 = vmax.bf16 %v4029_v29, %v15641_v30  ;;  %v3638_v37 = vor.u32 %v3637_v31, %v15643_v45  ;;  %v3514_v60 = vsel %vm14436_vm6, %v3509_v8, %v15461_v40  ;;  %v13702_v8 = vld [vmem:[%s20587_s7 + $0x124] ss:$12 sps:$4 sm:$0xff]   ;;  %v15744_v30 = vld [vmem:[#allocation2 + $0xe0] sm:$0xf] }
 0x1e2   :  { %v4071_v22 = vsel %vm14617_vm9, %v4069_v20, %v4070_v48  ;;  %v4074_v0 = vsel %vm14617_vm9, %v4072_v46, %v4073_v25  ;;  %v990_v59 = vadd.f32 %v15294_v24, %v989_v47  ;;  %v3861_v28 = vmax.bf16 %v3514_v60, %v15592_v15  ;;  %3036 = vmatmul.mubr.bf16.gmra.mxu1 %v13698_v5  ;;  %v3352_v46 = vld [vmem:[#allocation2 + $0x12c] sm:$0xf] }
 0x1e3   :  { %v3639_v61 = vrot.slane %v3638_v37, 4  ;;  %v3648_v52 = vor.u32 %v3647_v51, %v3643_v54  ;;  %v3471_v10 = vshll.u32 %v15639_v43, 16  ;;  %v3475_v40 = vshrl.u32 %v15639_v43, 16  ;;  %3043 = vmatprep.mubr.bf16.mxu1 %v13699_v50 }
 0x1e4   :  { %v1110_v38 = vmax.f32 %v990_v59, 0.0  ;;  %v3481_v12 = vshll.u32 %v3338_v3, 16  ;;  %v3485_v35 = vshrl.u32 %v3338_v3, 16  ;;  %v4022_v48 = vrot.slane %v3861_v28, 6 }
 0x1e5   :  { %v4176_v32 = vmax.bf16 %v4032_v9, %v3861_v28  ;;  %v3644_v25 = vsel %vm14436_vm6, %v3639_v61, %v3643_v54  ;;  %v3649_v29 = vrot.slane %v3648_v52, 4  ;;  %v15673_v16 = vrot.slane %v3471_v10, 5  ;;  %v13701_v9 = vld [vmem:[%s20587_s7 + $0x108] ss:$12 sps:$4 sm:$0xff]  }
 0x1e6   :  { %v15671_v24 = vmax.bf16 %v3644_v25, %v3353_v1  ;;  %v12816_v15 = vpack.c.bf16 %v1110_v38, %v1110_v38  ;;  %v3477_v44 = vrot.slane %v3475_v40, 4  ;;  %v3483_v26 = vrot.slane %v3481_v12, 5  ;;  %v3335_v25 = vld [vmem:[#allocation2 + $0xe8] sm:$0xf] }
 0x1e7   :  { %v12203_v23 = vcombine.low %v4175_v18, %v4176_v32  ;;  %v3654_v56 = vsel %vm14436_vm6, %v3649_v29, %v15565_v21  ;;  %v3487_v31 = vrot.slane %v3485_v35, 4  ;;  %v4021_v54 = vrot.slane %v4019_v27, 4  ;;  %v3336_v29 = vld [vmem:[#allocation2 + $0xec] sm:$0xf] }
 0x1e8   :  { %v3875_v7 = vmax.bf16 %v3654_v56, %v3354_v55  ;;  %v4061_v1 = vrot.slane %v15671_v24, 6  ;;  %v4189_v47 = vmax.bf16 %v4071_v22, %v15671_v24  ;;  %1611 = vst.msk [vmem:[#allocation2 + $0x174] sm:$0xf] %vm1517_vm3, %v12816_v15  ;;  %v3478_v5 = vor.u32 %v3477_v44, %v15673_v16 }
 0x1e9   :  { %13137 = vmatpush3.bf16.msra.mxu0 %v12203_v23  ;;  %v3488_v21 = vor.u32 %v3487_v31, %v3483_v26  ;;  %v4024_v20 = vrot.slane %v4022_v48, 4  ;;  %v3611_v55 = vshll.u32 %v3351_v49, 16  ;;  %v3615_v51 = vshrl.u32 %v3351_v49, 16  ;;  %v13704_v23 = vld [vmem:[%s20587_s7 + $0x120] ss:$12 sps:$4 sm:$0xff]  }
 0x1ea   :  { %v4064_v50 = vrot.slane %v3875_v7, 6  ;;  %v4190_v18 = vmax.bf16 %v4074_v0, %v3875_v7  ;;  %v3479_v37 = vrot.slane %v3478_v5, 4  ;;  %v4023_v22 = vsel %vm14617_vm9, %v4021_v54, %v4022_v48  ;;  %3044 = vmatmul.mubr.bf16.gmra.mxu1 %v13701_v9 }
 0x1eb   :  { %v3489_v60 = vrot.slane %v3488_v21, 4  ;;  %v4026_v59 = vsel %vm14617_vm9, %v4024_v20, %v4025_v58  ;;  %v15696_v28 = vrot.slane %v3611_v55, 5  ;;  %v3617_v10 = vrot.slane %v3615_v51, 4  ;;  %3051 = vmatprep.mubr.bf16.mxu1 %v13702_v8 }
 0x1ec   :  { %v12210_v61 = vcombine.low %v4189_v47, %v4190_v18  ;;  %v3484_v52 = vsel %vm14436_vm6, %v3479_v37, %v3483_v26  ;;  %v3621_v0 = vshll.u32 %v3352_v46, 16  ;;  %v3625_v63 = vshrl.u32 %v3352_v46, 16  ;;  %v3349_v37 = vld [vmem:[#allocation2 + $0x120] sm:$0xf] }
 0x1ed   :  { %v3494_v38 = vsel %vm14436_vm6, %v3489_v60, %v15609_v33  ;;  %v15704_v40 = vmax.bf16 %v3484_v52, %v15639_v43  ;;  %v4063_v58 = vrot.slane %v4061_v1, 4  ;;  %v3618_v35 = vor.u32 %v3617_v10, %v15696_v28 }
 0x1ee   :  { %13138 = vmatprep.subr.bf16.mxu0 %v12210_v61  ;;  %v3859_v12 = vmax.bf16 %v3494_v38, %v3338_v3  ;;  %v3623_v48 = vrot.slane %v3621_v0, 5  ;;  %v4066_v32 = vrot.slane %v4064_v50, 4  ;;  %v3627_v33 = vrot.slane %v3625_v63, 4 }
 0x1ef   :  { %v4013_v15 = vrot.slane %v15704_v40, 6  ;;  %v4173_v44 = vmax.bf16 %v4023_v22, %v15704_v40  ;;  %v4065_v43 = vsel %vm14617_vm9, %v4063_v58, %v4064_v50  ;;  %v3619_v26 = vrot.slane %v3618_v35, 4 }
 0x1f0   :  { %v4016_v56 = vrot.slane %v3859_v12, 6  ;;  %v4174_v3 = vmax.bf16 %v4026_v59, %v3859_v12  ;;  %v4068_v31 = vsel %vm14617_vm9, %v4066_v32, %v4067_v62  ;;  %v3628_v9 = vor.u32 %v3627_v33, %v3623_v48  ;;  %v3350_v59 = vld [vmem:[#allocation2 + $0x124] sm:$0xf] }
 0x1f1   :  { %v3451_v7 = vshll.u32 %v3335_v25, 16  ;;  %v3455_v47 = vshrl.u32 %v3335_v25, 16  ;;  %v3461_v5 = vshll.u32 %v3336_v29, 16  ;;  %v3624_v21 = vsel %vm14436_vm6, %v3619_v26, %v3623_v48 }
 0x1f2   :  { %v12202_v8 = vcombine.low %v4173_v44, %v4174_v3  ;;  %v3465_v54 = vshrl.u32 %v3336_v29, 16  ;;  %v4015_v20 = vrot.slane %v4013_v15, 4  ;;  %v3629_v55 = vrot.slane %v3628_v9, 4  ;;  %3052 = vmatmul.mubr.bf16.gmra.mxu1 %v13704_v23 }
 0x1f3   :  { %v15724_v50 = vmax.bf16 %v3624_v21, %v3351_v49  ;;  %v15726_v18 = vrot.slane %v3451_v7, 5  ;;  %v3457_v14 = vrot.slane %v3455_v47, 4  ;;  %v3463_v62 = vrot.slane %v3461_v5, 5  ;;  %v15754_v21 = vld [vmem:[#allocation2 + $0xe4] sm:$0xf]  ;;  %13393 = vmatprep.mubr.msk.bf16.mxu1 %vm20628_vm12, %v20614_v34 }
 0x1f4   :  { %13139 = vmatpush3.bf16.msra.mxu0 %v12202_v8  ;;  %v3467_v51 = vrot.slane %v3465_v54, 4  ;;  %v4017_v60 = vsel %vm14617_vm9, %v4015_v20, %v4016_v56  ;;  %v4018_v22 = vrot.slane %v4016_v56, 4  ;;  %v3634_v61 = vsel %vm14436_vm6, %v3629_v55, %v15643_v45 }
 0x1f5   :  { %v4055_v49 = vrot.slane %v15724_v50, 6  ;;  %v4187_v52 = vmax.bf16 %v4065_v43, %v15724_v50  ;;  %v3458_v10 = vor.u32 %v3457_v14, %v15726_v18  ;;  %v3873_v0 = vmax.bf16 %v3634_v61, %v3352_v46 }
 0x1f6   :  { %v3468_v38 = vor.u32 %v3467_v51, %v3463_v62  ;;  %v4020_v63 = vsel %vm14617_vm9, %v4018_v22, %v4019_v27  ;;  %v3591_v58 = vshll.u32 %v3349_v37, 16  ;;  %v3595_v35 = vshrl.u32 %v3349_v37, 16 }
 0x1f7   :  { %v3459_v12 = vrot.slane %v3458_v10, 4  ;;  %v3601_v48 = vshll.u32 %v3350_v59, 16  ;;  %v3605_v32 = vshrl.u32 %v3350_v59, 16  ;;  %v4058_v44 = vrot.slane %v3873_v0, 6 }
 0x1f8   :  { %v4188_v45 = vmax.bf16 %v4068_v31, %v3873_v0  ;;  %v3469_v33 = vrot.slane %v3468_v38, 4  ;;  %v15740_v23 = vrot.slane %v3591_v58, 5  ;;  %v3597_v46 = vrot.slane %v3595_v35, 4 }
 0x1f9   :  { %v3464_v43 = vsel %vm14436_vm6, %v3459_v12, %v3463_v62  ;;  %v3603_v56 = vrot.slane %v3601_v48, 5  ;;  %v3607_v3 = vrot.slane %v3605_v32, 4  ;;  %v4057_v31 = vrot.slane %v4055_v49, 4 }
 0x1fa   :  { %v12209_v26 = vcombine.low %v4187_v52, %v4188_v45  ;;  %v3474_v27 = vsel %vm14436_vm6, %v3469_v33, %v15673_v16  ;;  %v15749_v9 = vmax.bf16 %v3464_v43, %v3335_v25  ;;  %v3598_v47 = vor.u32 %v3597_v46, %v15740_v23  ;;  %v15769_v52 = vld [vmem:[#allocation2 + $0x118] sm:$0xf] }
 0x1fb   :  { %v3857_v7 = vmax.bf16 %v3474_v27, %v3336_v29  ;;  %v3608_v5 = vor.u32 %v3607_v3, %v3603_v56  ;;  %v4060_v8 = vrot.slane %v4058_v44, 4  ;;  %v4059_v16 = vsel %vm14617_vm9, %v4057_v31, %v4058_v44  ;;  %v3348_v44 = vld [vmem:[#allocation2 + $0x11c] sm:$0xf]  ;;  %v13718_v27 = vld [vmem:[%s20585_s0 + $0x180] sm:$0xff]   ;;  %v13719_v31 = vld [vmem:[%s20585_s0 + $0x188] sm:$0xff]  }
 0x1fc   :  { %13140 = vmatprep.subr.bf16.mxu0 %v12209_v26  ;;  %v4007_v54 = vrot.slane %v15749_v9, 6  ;;  %v4171_v20 = vmax.bf16 %v4017_v60, %v15749_v9  ;;  %v3431_v25 = vshll.u32 %v15744_v30, 16  ;;  %v3599_v62 = vrot.slane %v3598_v47, 4  ;;  %v15791_v26 = vld [vmem:[#allocation2 + $0xd8] sm:$0xf]  ;;  %13377 = vmatprep.mubr.msk.bf16.mxu0 %vm426_vm2, %v13718_v27 }
 0x1fd   :  { %v4010_v55 = vrot.slane %v3857_v7, 6  ;;  %v4172_v14 = vmax.bf16 %v4020_v63, %v3857_v7  ;;  %v3609_v29 = vrot.slane %v3608_v5, 4  ;;  %v4062_v51 = vsel %vm14617_vm9, %v4060_v8, %v4061_v1  ;;  %13378 = vmatmul.mubr.msk.bf16.gmra.mxu0 %vm426_vm2, %v13719_v31  ;;  %v15837_v31 = vld [vmem:[#allocation2 + $0xd0] sm:$0xf] }
 0x1fe   :  { %v15765_v22 = vrot.slane %v3431_v25, 5  ;;  %v3435_v61 = vshrl.u32 %v15744_v30, 16  ;;  %v3441_v60 = vshll.u32 %v15754_v21, 16  ;;  %v3604_v0 = vsel %vm14436_vm6, %v3599_v62, %v3603_v56  ;;  %v15805_v62 = vld [vmem:[#allocation2 + $0xdc] sm:$0xf] }
 0x1ff   :  { %v12201_v10 = vcombine.low %v4171_v20, %v4172_v14  ;;  %v3614_v38 = vsel %vm14436_vm6, %v3609_v29, %v15696_v28  ;;  %v3445_v24 = vshrl.u32 %v15754_v21, 16  ;;  %v15777_v63 = vmax.bf16 %v3604_v0, %v3349_v37  ;;  %v14076_v0 = vld [vmem:[%s20587_s7 + $0x4] ss:$12 sps:$4 sm:$0xff]  }
 0x200   :  { %v3871_v1 = vmax.bf16 %v3614_v38, %v3350_v59  ;;  %v3437_v58 = vrot.slane %v3435_v61, 4  ;;  %v3443_v12 = vrot.slane %v3441_v60, 5  ;;  %v4009_v48 = vrot.slane %v4007_v54, 4  ;;  %4370 = vmatprep.mubr.bf16.mxu0 %v14076_v0 }
 0x201   :  { %13141 = vmatpush3.bf16.msra.mxu0 %v12201_v10  ;;  %v3447_v35 = vrot.slane %v3445_v24, 4  ;;  %v4012_v32 = vrot.slane %v4010_v55, 4  ;;  %v3571_v45 = vshll.u32 %v15769_v52, 16  ;;  %v4049_v33 = vrot.slane %v15777_v63, 6 }
 0x202   :  { %v4052_v43 = vrot.slane %v3871_v1, 6  ;;  %v4185_v28 = vmax.bf16 %v4059_v16, %v15777_v63  ;;  %v4186_v46 = vmax.bf16 %v4062_v51, %v3871_v1  ;;  %v3438_v37 = vor.u32 %v3437_v58, %v15765_v22 }
 0x203   :  { %v3448_v59 = vor.u32 %v3447_v35, %v3443_v12  ;;  %v4011_v56 = vsel %vm14617_vm9, %v4009_v48, %v4010_v55  ;;  %v4014_v3 = vsel %vm14617_vm9, %v4012_v32, %v4013_v15  ;;  %v15799_v47 = vrot.slane %v3571_v45, 5 }
 0x204   :  { %v12208_v7 = vcombine.low %v4185_v28, %v4186_v46  ;;  %v3575_v5 = vshrl.u32 %v15769_v52, 16  ;;  %v3581_v8 = vshll.u32 %v3348_v44, 16  ;;  %v3439_v40 = vrot.slane %v3438_v37, 4 }
 0x205   :  { %v3449_v20 = vrot.slane %v3448_v59, 4  ;;  %v3585_v16 = vshrl.u32 %v3348_v44, 16  ;;  %v4051_v15 = vrot.slane %v4049_v33, 4  ;;  %v4054_v14 = vrot.slane %v4052_v43, 4 }
 0x206   :  { %13142 = vmatprep.subr.bf16.mxu0 %v12208_v7  ;;  %v3577_v25 = vrot.slane %v3575_v5, 4  ;;  %v3583_v55 = vrot.slane %v3581_v8, 5  ;;  %v3411_v29 = vshll.u32 %v15791_v26, 16  ;;  %v3444_v51 = vsel %vm14436_vm6, %v3439_v40, %v3443_v12 }
 0x207   :  { %v3454_v61 = vsel %vm14436_vm6, %v3449_v20, %v15726_v18  ;;  %v3587_v60 = vrot.slane %v3585_v16, 4  ;;  %v4053_v10 = vsel %vm14617_vm9, %v4051_v15, %v4052_v43  ;;  %v15820_v38 = vmax.bf16 %v3444_v51, %v15744_v30 }
 0x208   :  { %v3855_v24 = vmax.bf16 %v3454_v61, %v15754_v21  ;;  %v3578_v1 = vor.u32 %v3577_v25, %v15799_v47  ;;  %v4056_v18 = vsel %vm14617_vm9, %v4054_v14, %v4055_v49  ;;  %v15828_v12 = vrot.slane %v3411_v29, 5 }
 0x209   :  { %v3588_v58 = vor.u32 %v3587_v60, %v3583_v55  ;;  %v3415_v35 = vshrl.u32 %v15791_v26, 16  ;;  %v3421_v48 = vshll.u32 %v15805_v62, 16  ;;  %v4001_v32 = vrot.slane %v15820_v38, 6 }
 0x20a   :  { %v4004_v30 = vrot.slane %v3855_v24, 6  ;;  %v4169_v45 = vmax.bf16 %v4011_v56, %v15820_v38  ;;  %v4170_v21 = vmax.bf16 %v4014_v3, %v3855_v24  ;;  %v3579_v43 = vrot.slane %v3578_v1, 4  ;;  %v15922_v38 = vld [vmem:[%s20587_s7 + $0x8] ss:$12 sps:$4 sm:$0xff]  }
 0x20b   :  { %v3589_v28 = vrot.slane %v3588_v58, 4  ;;  %v3417_v46 = vrot.slane %v3415_v35, 4  ;;  %v3423_v50 = vrot.slane %v3421_v48, 5  ;;  %v3425_v49 = vshrl.u32 %v15805_v62, 16  ;;  %13394 = vmatmul.mubr.msk.bf16.vlgmr.msra.gmra.mxu1 %vm2879_vm11, %v15922_v38 }
 0x20c   :  { %v12200_v37 = vcombine.low %v4169_v45, %v4170_v21  ;;  %v4003_v59 = vrot.slane %v4001_v32, 4  ;;  %v4006_v27 = vrot.slane %v4004_v30, 4  ;;  %v3584_v7 = vsel %vm14436_vm6, %v3579_v43, %v3583_v55  ;;  %v15878_v21 = vld [vmem:[#allocation2 + $0xc8] sm:$0xf]  ;;  %13397 = vmatprep.mubr.msk.bf16.mxu1 %vm20628_vm12, %v20614_v34 }
 0x20d   :  { %v3594_v56 = vsel %vm14436_vm6, %v3589_v28, %v15740_v23  ;;  %v3418_v3 = vor.u32 %v3417_v46, %v15828_v12  ;;  %v3565_v5 = vshrl.u32 %v15523_v17, 16  ;;  %v15847_v8 = vmax.bf16 %v3584_v7, %v15769_v52 }
 0x20e   :  { %13143 = vmatpush3.bf16.msra.mxu0 %v12200_v37  ;;  %v3869_v40 = vmax.bf16 %v3594_v56, %v3348_v44  ;;  %v3427_v20 = vrot.slane %v3425_v49, 4  ;;  %v4005_v16 = vsel %vm14617_vm9, %v4003_v59, %v4004_v30  ;;  %v4008_v25 = vsel %vm14617_vm9, %v4006_v27, %v4007_v54  ;;  %v15858_v44 = vld [vmem:[#allocation2 + $0xd4] sm:$0xf] }
 0x20f   :  { %v3419_v15 = vrot.slane %v3418_v3, 4  ;;  %v3567_v23 = vrot.slane %v3565_v5, 4  ;;  %v3391_v55 = vshll.u32 %v15837_v31, 16  ;;  %v4043_v14 = vrot.slane %v15847_v8, 6 }
 0x210   :  { %v4046_v29 = vrot.slane %v3869_v40, 6  ;;  %v4183_v52 = vmax.bf16 %v4053_v10, %v15847_v8  ;;  %v4184_v51 = vmax.bf16 %v4056_v18, %v3869_v40  ;;  %v3428_v60 = vor.u32 %v3427_v20, %v3423_v50 }
 0x211   :  { %v3424_v61 = vsel %vm14436_vm6, %v3419_v15, %v3423_v50  ;;  %v3568_v9 = vor.u32 %v3567_v23, %v15543_v11  ;;  %v15863_v0 = vrot.slane %v3391_v55, 5  ;;  %v4045_v1 = vrot.slane %v4043_v14, 4  ;;  %v3328_v55 = vld [vmem:[#allocation2 + $0xcc] sm:$0xf] }
 0x212   :  { %v12207_v54 = vcombine.low %v4183_v52, %v4184_v51  ;;  %v15866_v24 = vmax.bf16 %v3424_v61, %v15791_v26  ;;  %v4048_v58 = vrot.slane %v4046_v29, 4  ;;  %v3429_v35 = vrot.slane %v3428_v60, 4  ;;  %v15907_v52 = vld [vmem:[#allocation2 + $0xd0] sm:$0xc] }
 0x213   :  { %v3569_v48 = vrot.slane %v3568_v9, 4  ;;  %v3395_v10 = vshrl.u32 %v15837_v31, 16  ;;  %v3401_v18 = vshll.u32 %v15858_v44, 16  ;;  %v4047_v11 = vsel %vm14617_vm9, %v4045_v1, %v4046_v29 }
 0x214   :  { %13144 = vmatprep.subr.bf16.mxu0 %v12207_v54  ;;  %v3995_v30 = vrot.slane %v15866_v24, 6  ;;  %v4167_v45 = vmax.bf16 %v4005_v16, %v15866_v24  ;;  %v4050_v26 = vsel %vm14617_vm9, %v4048_v58, %v4049_v33  ;;  %v3434_v43 = vsel %vm14436_vm6, %v3429_v35, %v15765_v22  ;;  %v15971_v24 = vld [vmem:[%s20587_s7 + $0x20] ss:$12 sps:$4 sm:$0xff]  }
 0x215   :  { %v3574_v28 = vsel %vm14436_vm6, %v3569_v48, %v15799_v47  ;;  %v4181_v46 = vmax.bf16 %v4047_v11, %v15580_v19  ;;  %v3397_v50 = vrot.slane %v3395_v10, 4  ;;  %v3853_v37 = vmax.bf16 %v3434_v43, %v15805_v62  ;;  %v15928_v11 = vld [vmem:[#allocation2 + $0x170] sm:$0xf]  ;;  %13398 = vmatmul.mubr.msk.bf16.gmra.mxu1 %vm2879_vm11, %v15971_v24 }
 0x216   :  { %v3867_v63 = vmax.bf16 %v3574_v28, %v15523_v17  ;;  %v15889_v49 = vrot.slane %v3401_v18, 5  ;;  %v3405_v33 = vshrl.u32 %v15858_v44, 16  ;;  %v3997_v22 = vrot.slane %v3995_v30, 4  ;;  %13401 = vmatprep.mubr.msk.bf16.mxu1 %vm20628_vm12, %v20614_v34 }
 0x217   :  { %v3398_v59 = vor.u32 %v3397_v50, %v15863_v0  ;;  %v4039_v27 = vrot.slane %v4037_v57, 4  ;;  %v3372_v47 = vshrl.u32 %v15878_v21, 16  ;;  %v3998_v7 = vrot.slane %v3853_v37, 6 }
 0x218   :  { %v4168_v56 = vmax.bf16 %v4008_v25, %v3853_v37  ;;  %v4040_v3 = vrot.slane %v3867_v63, 6  ;;  %v4182_v62 = vmax.bf16 %v4050_v26, %v3867_v63  ;;  %v3407_v17 = vrot.slane %v3405_v33, 4  ;;  %v3370_v37 = vld [vmem:[#allocation2 + $0x174] sm:$0x1] }
 0x219   :  { %v3399_v5 = vrot.slane %v3398_v59, 4  ;;  %v3374_v8 = vrot.slane %v3372_v47, 4  ;;  %v3375_v40 = vshll.u32 %v15878_v21, 16  ;;  %v3999_v15 = vsel %vm14617_vm9, %v3997_v22, %v3998_v7  ;;  %v15940_v59 = vld [vmem:[#allocation2 + $0x174] sm:$0xf] }
 0x21a   :  { %v12199_v20 = vcombine.low %v4167_v45, %v4168_v56  ;;  %v12206_v16 = vcombine.low %v4181_v46, %v4182_v62  ;;  %v4000_v23 = vrot.slane %v3998_v7, 4  ;;  %v3408_v57 = vor.u32 %v3407_v17, %v15889_v49  ;;  %v3893_v56 = vld [vmem:[#allocation2 + $0x178] sm:$0xf] }
 0x21b   :  { %v3404_v19 = vsel %vm14436_vm6, %v3399_v5, %v15889_v49  ;;  %v4041_v25 = vsel %vm14617_vm9, %v4039_v27, %v4040_v3  ;;  %v4042_v29 = vrot.slane %v4040_v3, 4  ;;  %v3377_v9 = vrot.slane %v3375_v40, 5 }
 0x21c   :  { %13145 = vmatpush3.bf16.msra.mxu0 %v12199_v20  ;;  %v3850_v51 = vmax.bf16 %v3404_v19, %v15837_v31  ;;  %v4002_v61 = vsel %vm14617_vm9, %v4000_v23, %v4001_v32  ;;  %v4179_v60 = vmax.bf16 %v4041_v25, %v15556_v4  ;;  %v3409_v54 = vrot.slane %v3408_v57, 4  ;;  %v3895_v20 = vld [vmem:[#allocation2 + $0x17c] sm:$0x7]  ;;  %v15958_v25 = vld [vmem:[#allocation2 + $0x168] sm:$0xf] }
 0x21d   :  { %13146 = vmatprep.subr.bf16.mxu0 %v12206_v16  ;;  %v4044_v1 = vsel %vm14617_vm9, %v4042_v29, %v4043_v14  ;;  %v3381_v58 = vshll.u32 %v3328_v55, 16  ;;  %v3385_v35 = vshrl.u32 %v3328_v55, 16  ;;  %v3378_v18 = vor.u32 %v3377_v9, %v3374_v8 }
 0x21e   :  { %v4165_v48 = vmax.bf16 %v3999_v15, %v3850_v51  ;;  %v4180_v10 = vmax.bf16 %v4044_v1, %v15561_v2  ;;  %v3897_v31 = vshrl.u32 %v15907_v52, 16  ;;  %v3414_v4 = vsel %vm14436_vm6, %v3409_v54, %v15828_v12 }
 0x21f   :  { %v3383_v32 = vrot.slane %v3381_v58, 5  ;;  %v3387_v45 = vrot.slane %v3385_v35, 4  ;;  %v3900_v14 = vshll.u32 %v15907_v52, 16  ;;  %v15931_v2 = vmax.bf16 %v3414_v4, %v15858_v44 }
 0x220   :  { %v12205_v26 = vcombine.low %v4179_v60, %v4180_v10  ;;  %v3379_v43 = vrot.slane %v3378_v18, 4  ;;  %v3899_v28 = vrot.slane %v3897_v31, 4  ;;  %v3791_v44 = vshll.u32 %v15928_v11, 16 }
 0x221   :  { %v3388_v46 = vor.u32 %v3387_v45, %v3383_v32  ;;  %v3902_v50 = vrot.slane %v3900_v14, 5  ;;  %v3992_v63 = vrot.slane %v15931_v2, 6  ;;  %v4166_v12 = vmax.bf16 %v4002_v61, %v15931_v2 }
 0x222   :  { %v3384_v33 = vsel %vm14436_vm6, %v3379_v43, %v3383_v32  ;;  %v3795_v7 = vshrl.u32 %v15928_v11, 16  ;;  %v15946_v5 = vrot.slane %v3791_v44, 5  ;;  %v3801_v17 = vshll.u32 %v3370_v37, 16 }
 0x223   :  { %v3389_v22 = vrot.slane %v3388_v46, 4  ;;  %v3848_v27 = vmax.bf16 %v3384_v33, %v15878_v21  ;;  %v3903_v47 = vor.u32 %v3902_v50, %v3899_v28  ;;  %v12198_v3 = vcombine.low %v4165_v48, %v4166_v12  ;;  %v15997_v12 = vld [vmem:[#allocation2 + $0x160] sm:$0xf]  ;;  %v3894_v33 = vld [vmem:[#allocation2 + $0x17c] sm:$0x3] }
 0x224   :  { %v3994_v62 = vrot.slane %v3992_v63, 4  ;;  %v3797_v40 = vrot.slane %v3795_v7, 4  ;;  %v3907_v16 = vshll.u32 %v15940_v59, 16  ;;  %v3803_v19 = vrot.slane %v3801_v17, 5  ;;  %v16010_v17 = vld [vmem:[%s20587_s7 + $0x38] ss:$12 sps:$4 sm:$0xff]  }
 0x225   :  { %v3394_v8 = vsel %vm14436_vm6, %v3389_v22, %v15863_v0  ;;  %v3904_v21 = vrot.slane %v3903_v47, 4  ;;  %13147 = vmatpush3.bf16.msra.mxu0 %v12198_v3  ;;  %v3917_v57 = vshll.u32 %v3893_v56, 16  ;;  %v3921_v61 = vshrl.u32 %v3893_v56, 16  ;;  %13402 = vmatmul.mubr.msk.bf16.gmra.mxu1 %vm2879_vm11, %v16010_v17 }
 0x226   :  { %v3849_v15 = vmax.bf16 %v3394_v8, %v3328_v55  ;;  %v3996_v23 = vsel %vm14617_vm9, %v3994_v62, %v3995_v30  ;;  %13148 = vmatprep.subr.bf16.mxu0 %v12205_v26  ;;  %v3798_v29 = vor.u32 %v3797_v40, %v15946_v5  ;;  %v15964_v51 = vrot.slane %v3907_v16, 5  ;;  %v15966_v55 = vld [vmem:[#allocation2 + $0x16c] sm:$0xf]  ;;  %v16005_v62 = vld [vmem:[#allocation2 + $0x164] sm:$0xf]  ;;  %13405 = vmatprep.mubr.msk.bf16.mxu1 %vm20628_vm12, %v20614_v34 }
 0x227   :  { %v3905_v0 = vsel %vm14436_vm6, %v3904_v21, %v15889_v49  ;;  %v15974_v9 = vrot.slane %v3917_v57, 5  ;;  %v3927_v54 = vshll.u32 %v3895_v20, 16  ;;  %v3923_v49 = vrot.slane %v3921_v61, 4  ;;  %v16021_v61 = vld [vmem:[#allocation2 + $0x158] sm:$0xf] }
 0x228   :  { %v3941_v30 = vmax.bf16 %v3905_v0, %v15907_v52  ;;  %v4164_v60 = vmax.bf16 %v3996_v23, %v3849_v15  ;;  %v3799_v1 = vrot.slane %v3798_v29, 4  ;;  %v3931_v58 = vshrl.u32 %v3895_v20, 16 }
 0x229   :  { %v3771_v35 = vshll.u32 %v15958_v25, 16  ;;  %v3929_v10 = vrot.slane %v3927_v54, 5  ;;  %v3775_v18 = vshrl.u32 %v15958_v25, 16  ;;  %v3781_v31 = vshll.u32 %v15966_v55, 16 }
 0x22a   :  { %v12196_v48 = vrot.slane %v3941_v30, 10  ;;  %v3804_v4 = vsel %vm14436_vm6, %v3799_v1, %v3803_v19  ;;  %v3910_v52 = vsel %vm14436_vm6, %v3799_v1, %v15964_v51  ;;  %v3924_v32 = vor.u32 %v3923_v49, %v15974_v9 }
 0x22b   :  { %v3933_v45 = vrot.slane %v3931_v58, 4  ;;  %v3890_v2 = vmax.bf16 %v3804_v4, %v15928_v11  ;;  %v15991_v26 = vmax.bf16 %v3910_v52, %v15928_v11  ;;  %v15993_v43 = vrot.slane %v3771_v35, 5 }
 0x22c   :  { %v3993_v14 = vsel %vm14617_vm9, %v12196_v48, %v3992_v63  ;;  %v3925_v46 = vrot.slane %v3924_v32, 4  ;;  %v3777_v37 = vrot.slane %v3775_v18, 4  ;;  %v3783_v63 = vrot.slane %v3781_v31, 5  ;;  %v14077_v48 = vld [vmem:[%s20587_s7] ss:$12 sps:$4 sm:$0xff]  }
 0x22d   :  { %v4163_v28 = vmax.bf16 %v3993_v14, %v3848_v27  ;;  %v3934_v50 = vor.u32 %v3933_v45, %v3929_v10  ;;  %v4109_v44 = vrot.slane %v15991_v26, 6  ;;  %v3785_v22 = vshrl.u32 %v15966_v55, 16  ;;  %v16106_v26 = vld [vmem:[%s20587_s7 + $0x68] ss:$12 sps:$4 sm:$0xff]  }
 0x22e   :  { %v3911_v11 = vshrl.u32 %v15940_v59, 16  ;;  %v3930_v7 = vsel %vm14436_vm6, %v3925_v46, %v3929_v10  ;;  %v3778_v27 = vor.u32 %v3777_v37, %v15993_v43  ;;  %v3751_v23 = vshll.u32 %v15997_v12, 16 }
 0x22f   :  { %v12197_v47 = vcombine.low %v4163_v28, %v4164_v60  ;;  %v3935_v3 = vrot.slane %v3934_v50, 4  ;;  %v16012_v8 = vmax.bf16 %v3930_v7, %v3893_v56  ;;  %v3787_v21 = vrot.slane %v3785_v22, 4 }
 0x230   :  { %v3913_v40 = vrot.slane %v3911_v11, 4  ;;  %v4111_v20 = vrot.slane %v4109_v44, 4  ;;  %v3779_v15 = vrot.slane %v3778_v27, 4  ;;  %v3755_v19 = vshrl.u32 %v15997_v12, 16 }
 0x231   :  { %13149 = vmatpush3.bf16.msra.mxu0 %v12197_v47  ;;  %v3945_v16 = vmax.bf16 %v3935_v3, %v3894_v33  ;;  %v4115_v57 = vrot.slane %v16012_v8, 6  ;;  %v3788_v0 = vor.u32 %v3787_v21, %v3783_v63  ;;  %v3761_v56 = vshll.u32 %v16005_v62, 16  ;;  %v16054_v33 = vld [vmem:[#allocation2 + $0x15c] sm:$0xf] }
 0x232   :  { %v3914_v29 = vor.u32 %v3913_v40, %v15964_v51  ;;  %v3784_v60 = vsel %vm14436_vm6, %v3779_v15, %v3783_v63  ;;  %v16025_v54 = vrot.slane %v3751_v23, 5  ;;  %v3757_v1 = vrot.slane %v3755_v19, 4  ;;  %v16059_v63 = vld [vmem:[%s20587_s7 + $0x50] ss:$12 sps:$4 sm:$0xff]  }
 0x233   :  { %v4118_v30 = vrot.slane %v3945_v16, 6  ;;  %v4117_v49 = vrot.slane %v4115_v57, 4  ;;  %v3789_v58 = vrot.slane %v3788_v0, 4  ;;  %v16030_v35 = vmax.bf16 %v3784_v60, %v15958_v25  ;;  %v14078_v25 = vld [vmem:[%s20587_s7 + $0x1c] ss:$12 sps:$4 sm:$0xff]   ;;  %13406 = vmatmul.mubr.msk.bf16.gmra.mxu1 %vm2879_vm11, %v16059_v63 }
 0x234   :  { %v3915_v51 = vrot.slane %v3914_v29, 4  ;;  %4371 = vmatmul.mubr.bf16.vlgmr.msra.gmra.mxu0 %v14077_v48  ;;  %v3758_v10 = vor.u32 %v3757_v1, %v16025_v54  ;;  %v3763_v18 = vrot.slane %v3761_v56, 5  ;;  %v3765_v31 = vshrl.u32 %v16005_v62, 16  ;;  %13409 = vmatprep.mubr.msk.bf16.mxu1 %vm20628_vm12, %v20614_v34 }
 0x235   :  { %v3731_v4 = vshll.u32 %v16021_v61, 16  ;;  %4378 = vmatprep.mubr.bf16.mxu0 %v14078_v25  ;;  %v4119_v52 = vsel %vm14617_vm9, %v4117_v49, %v4118_v30  ;;  %v3794_v32 = vsel %vm14436_vm6, %v3789_v58, %v15946_v5  ;;  %v4103_v14 = vrot.slane %v16030_v35, 6  ;;  %v14079_v30 = vld [vmem:[%s20587_s7 + $0x18] ss:$12 sps:$4 sm:$0xff]   ;;  %v14080_v58 = vld [vmem:[%s20587_s7 + $0x34] ss:$12 sps:$4 sm:$0xff]  }
 0x236   :  { %v3920_v45 = vsel %vm14436_vm6, %v3915_v51, %v15974_v9  ;;  %v4205_v28 = vmax.bf16 %v4119_v52, %v3890_v2  ;;  %v3889_v46 = vmax.bf16 %v3794_v32, %v15966_v55  ;;  %v3759_v37 = vrot.slane %v3758_v10, 4 }
 0x237   :  { %v3943_v50 = vmax.bf16 %v3920_v45, %v15940_v59  ;;  %v3767_v5 = vrot.slane %v3765_v31, 4  ;;  %v4105_v22 = vrot.slane %v4103_v14, 4  ;;  %v16063_v9 = vrot.slane %v3731_v4, 5 }
 0x238   :  { %v3735_v2 = vshrl.u32 %v16021_v61, 16  ;;  %v12218_v11 = vcombine.low %v4205_v28, %v4205_v28  ;;  %v4106_v55 = vrot.slane %v3889_v46, 6  ;;  %v3764_v59 = vsel %vm14436_vm6, %v3759_v37, %v3763_v18 }
 0x239   :  { %v4112_v47 = vrot.slane %v3943_v50, 6  ;;  %v3768_v7 = vor.u32 %v3767_v5, %v3763_v18  ;;  %v16069_v3 = vmax.bf16 %v3764_v59, %v15997_v12  ;;  %v3741_v8 = vshll.u32 %v16054_v33, 16  ;;  %v14081_v18 = vld [vmem:[#allocation2 + $0x154] sm:$0xf] }
 0x23a   :  { %v3737_v27 = vrot.slane %v3735_v2, 4  ;;  %v4336_v21 = vsel %vm20631_vm10, %v12218_v11, 0  ;;  %v4107_v15 = vsel %vm14617_vm9, %v4105_v22, %v4106_v55  ;;  %v4108_v0 = vrot.slane %v4106_v55, 4 }
 0x23b   :  { %v4113_v40 = vsel %vm14617_vm9, %v4111_v20, %v4112_v47  ;;  %v4114_v16 = vrot.slane %v4112_v47, 4  ;;  %13446 = vmatpush3.bf16.msra.mxu1 %v4336_v21  ;;  %v3769_v12 = vrot.slane %v3768_v7, 4  ;;  %v4097_v19 = vrot.slane %v16069_v3, 6  ;;  %v14083_v47 = vld [vmem:[%s20587_s7 + $0x4c] ss:$12 sps:$4 sm:$0xff]  }
 0x23c   :  { %v4203_v23 = vmax.bf16 %v4113_v40, %v16030_v35  ;;  %13447 = vmatprep.subr.bf16.mxu1 %v20614_v34  ;;  %v3738_v29 = vor.u32 %v3737_v27, %v16063_v9  ;;  %v3743_v56 = vrot.slane %v3741_v8, 5  ;;  %4379 = vmatmul.mubr.bf16.gmra.mxu0 %v14079_v30  ;;  %v4110_v49 = vsel %vm14617_vm9, %v4108_v0, %v4109_v44  ;;  %v16142_v35 = vld [vmem:[%s20587_s7 + $0x80] ss:$12 sps:$4 sm:$0xff]   ;;  %v16173_v30 = vld [vmem:[%s20587_s7 + $0x98] ss:$12 sps:$4 sm:$0xff]  }
 0x23d   :  { %v4116_v20 = vsel %vm14617_vm9, %v4114_v16, %v4115_v57  ;;  %v3774_v1 = vsel %vm14436_vm6, %v3769_v12, %v15993_v43  ;;  %v3745_v57 = vshrl.u32 %v16054_v33, 16  ;;  %4386 = vmatprep.mubr.bf16.mxu0 %v14080_v58  ;;  %v4201_v48 = vmax.bf16 %v4107_v15, %v16069_v3  ;;  %13410 = vmatmul.mubr.msk.bf16.gmra.mxu1 %vm2879_vm11, %v16106_v26  ;;  %v14085_v3 = vld [vmem:[%s20587_s7 + $0x64] ss:$12 sps:$4 sm:$0xff]   ;;  %v14087_v58 = vld [vmem:[%s20587_s7 + $0x7c] ss:$12 sps:$4 sm:$0xff]  }
 0x23e   :  { %v4204_v60 = vmax.bf16 %v4116_v20, %v3889_v46  ;;  %v3887_v51 = vmax.bf16 %v3774_v1, %v16005_v62  ;;  %v3739_v10 = vrot.slane %v3738_v29, 4  ;;  %v3725_v31 = vshrl.u32 %v14081_v18, 16  ;;  %13413 = vmatprep.mubr.msk.bf16.mxu1 %vm20628_vm12, %v20614_v34  ;;  %v14084_v20 = vld [vmem:[%s20587_s7 + $0x48] ss:$12 sps:$4 sm:$0xff]  }
 0x23f   :  { %v3747_v44 = vrot.slane %v3745_v57, 4  ;;  %v4099_v4 = vrot.slane %v4097_v19, 4  ;;  %v14086_v57 = vld [vmem:[%s20587_s7 + $0x60] ss:$12 sps:$4 sm:$0xff]   ;;  %vm5198_vm2 = vsmask.f32 4352 }
 0x240   :  { %v12217_v43 = vcombine.low %v4203_v23, %v4204_v60  ;;  %v4100_v25 = vrot.slane %v3887_v51, 6  ;;  %v4202_v52 = vmax.bf16 %v4110_v49, %v3887_v51  ;;  %v3744_v62 = vsel %vm14436_vm6, %v3739_v10, %v3743_v56  ;;  %v16193_v51 = vld [vmem:[%s20587_s7 + $0xb0] ss:$12 sps:$4 sm:$0xff]  }
 0x241   :  { %v3727_v32 = vrot.slane %v3725_v31, 4  ;;  %v3748_v45 = vor.u32 %v3747_v44, %v3743_v56  ;;  %v3884_v28 = vmax.bf16 %v3744_v62, %v16021_v61  ;;  %v14082_v61 = vld [vmem:[%s20587_s7 + $0x30] ss:$12 sps:$4 sm:$0xff]   ;;  %vm5585_vm10 = vcmask 916480  }
 0x242   :  { %13448 = vmatpush3.bf16.msra.mxu1 %v12217_v43  ;;  %v12216_v46 = vcombine.low %v4201_v48, %v4202_v52  ;;  %v4102_v50 = vrot.slane %v4100_v25, 4  ;;  %v4101_v2 = vsel %vm14617_vm9, %v4099_v4, %v4100_v25  ;;  %v14088_v43 = vld [vmem:[%s20587_s7 + $0x78] ss:$12 sps:$4 sm:$0xff]   ;;  %v14089_v4 = vld [vmem:[%s20587_s7 + $0x94] ss:$12 sps:$4 sm:$0xff]  }
 0x243   :  { %13449 = vmatprep.subr.bf16.mxu1 %v20614_v34  ;;  %v3728_v37 = vor.u32 %v3727_v32, %v15491_v53  ;;  %v3749_v5 = vrot.slane %v3748_v45, 4  ;;  %v4091_v22 = vrot.slane %v3884_v28, 6  ;;  %v4199_v7 = vmax.bf16 %v4101_v2, %v3884_v28  ;;  %v16215_v25 = vld [vmem:[%s20587_s7 + $0xc8] ss:$12 sps:$4 sm:$0xff]   ;;  %v14090_v45 = vld [vmem:[%s20587_s7 + $0x90] ss:$12 sps:$4 sm:$0xff]  }
 0x244   :  { %4387 = vmatmul.mubr.bf16.gmra.mxu0 %v14082_v61  ;;  %v4104_v55 = vsel %vm14617_vm9, %v4102_v50, %v4103_v14  ;;  %v4087_v14 = vrot.slane %v4085_v42, 4  ;;  %v16234_v50 = vld [vmem:[%s20587_s7 + $0xe0] ss:$12 sps:$4 sm:$0xff]  }
 0x245   :  { %v3729_v11 = vrot.slane %v3728_v37, 4  ;;  %v3754_v53 = vsel %vm14436_vm6, %v3749_v5, %v16025_v54  ;;  %4394 = vmatprep.mubr.bf16.mxu0 %v14083_v47  ;;  %v4093_v54 = vrot.slane %v4091_v22, 4  ;;  %13414 = vmatmul.mubr.msk.bf16.gmra.mxu1 %vm2879_vm11, %v16142_v35 }
 0x246   :  { %13450 = vmatpush3.bf16.msra.mxu1 %v12216_v46  ;;  %v3885_v59 = vmax.bf16 %v3754_v53, %v16054_v33  ;;  %13417 = vmatprep.mubr.msk.bf16.mxu1 %vm20628_vm12, %v20614_v34  ;;  %v14091_v46 = vld [vmem:[%s20587_s7 + $0xac] ss:$12 sps:$4 sm:$0xff]   ;;  %v14093_v53 = vld [vmem:[%s20587_s7 + $0xc4] ss:$12 sps:$4 sm:$0xff]  }
 0x247   :  { %13451 = vmatprep.subr.bf16.mxu1 %v20614_v34  ;;  %v3734_v27 = vsel %vm14436_vm6, %v3729_v11, %v16063_v9  ;;  %v14092_v11 = vld [vmem:[%s20587_s7 + $0xa8] ss:$12 sps:$4 sm:$0xff]  }
 0x248   :  { %v3883_v8 = vmax.bf16 %v14081_v18, %v3734_v27  ;;  %v4094_v21 = vrot.slane %v3885_v59, 6  ;;  %v4200_v40 = vmax.bf16 %v4104_v55, %v3885_v59  ;;  %v16255_v55 = vld [vmem:[%s20587_s7 + $0xf8] ss:$12 sps:$4 sm:$0xff]  }
 0x24a   :  { %v4088_v16 = vrot.slane %v3883_v8, 6  ;;  %v12215_v15 = vcombine.low %v4199_v7, %v4200_v40  ;;  %v4095_v33 = vsel %vm14617_vm9, %v4093_v54, %v4094_v21  ;;  %v4096_v23 = vrot.slane %v4094_v21, 4  ;;  %v14094_v54 = vld [vmem:[%s20587_s7 + $0xc0] ss:$12 sps:$4 sm:$0xff]   ;;  %v16276_v21 = vld [vmem:[%s20587_s7 + $0x110] ss:$12 sps:$4 sm:$0xff]  }
 0x24b   :  { %v4197_v9 = vmax.bf16 %v4095_v33, %v15521_v36 }
 0x24c   :  { %v4089_v12 = vsel %vm14617_vm9, %v4087_v14, %v4088_v16  ;;  %v4090_v0 = vrot.slane %v4088_v16, 4  ;;  %13452 = vmatpush3.bf16.msra.mxu1 %v12215_v15  ;;  %v4098_v42 = vsel %vm14617_vm9, %v4096_v23, %v4097_v19  ;;  %4395 = vmatmul.mubr.bf16.gmra.mxu0 %v14084_v20  ;;  %v14096_v23 = vld [vmem:[%s20587_s7 + $0xd8] ss:$12 sps:$4 sm:$0xff]  }
 0x24d   :  { %13453 = vmatprep.subr.bf16.mxu1 %v20614_v34  ;;  %v4198_v36 = vmax.bf16 %v4098_v42, %v3883_v8  ;;  %v4195_v56 = vmax.bf16 %v4089_v12, %v15489_v13  ;;  %4402 = vmatprep.mubr.bf16.mxu0 %v14085_v3  ;;  %v14095_v8 = vld [vmem:[%s20587_s7 + $0xdc] ss:$12 sps:$4 sm:$0xff]   ;;  %v14097_v12 = vld [vmem:[%s20587_s7 + $0xf4] ss:$12 sps:$4 sm:$0xff]  }
 0x24e   :  { %v4092_v29 = vsel %vm14617_vm9, %v4090_v0, %v4091_v22  ;;  %13418 = vmatmul.mubr.msk.bf16.gmra.mxu1 %vm2879_vm11, %v16173_v30  ;;  %v16297_v0 = vld [vmem:[%s20587_s7 + $0x128] ss:$12 sps:$4 sm:$0xff]   ;;  %vm5516_vm9 = vcmask 523264  }
 0x24f   :  { %v4196_v19 = vmax.bf16 %v4092_v29, %v15507_v39  ;;  %v12214_v60 = vcombine.low %v4197_v9, %v4198_v36  ;;  %13421 = vmatprep.mubr.msk.bf16.mxu1 %vm20628_vm12, %v20614_v34 }
 0x250   :  { %v13037_v1 = vpop.f32.mrf.mxu1 }
 0x251   :  { %13454 = vmatpush3.bf16.msra.mxu1 %v12214_v60  ;;  %v12213_v49 = vcombine.low %v4195_v56, %v4196_v19  ;;  %v14098_v56 = vld [vmem:[%s20587_s7 + $0xf0] ss:$12 sps:$4 sm:$0xff]   ;;  %v14099_v19 = vld [vmem:[%s20587_s7 + $0x10c] ss:$12 sps:$4 sm:$0xff]  }
 0x252   :  { %13455 = vmatprep.subr.bf16.mxu1 %v20614_v34  ;;  %v13038_v6 = vpop.f32.mrf.mxu1 }
 0x253   :  { %v16180_v13 = vadd.f32 %v13038_v6, %v13037_v1 }
 0x254   :  { %v16182_v39 = vpop.f32.mrf.mxu1  ;;  %4403 = vmatmul.mubr.bf16.gmra.mxu0 %v14086_v57  ;;  %v14100_v57 = vld [vmem:[%s20587_s7 + $0x108] ss:$12 sps:$4 sm:$0xff]  }
 0x255   :  { %13456 = vmatpush3.bf16.msra.mxu1 %v12213_v49  ;;  %4410 = vmatprep.mubr.bf16.mxu0 %v14087_v58 }
 0x256   :  { %v16195_v48 = vpop.f32.mrf.mxu1  ;;  %13509 = vmatprep.subr.bf16.mxu1 %v20614_v34  ;;  %13422 = vmatmul.mubr.msk.bf16.gmra.mxu1 %vm2879_vm11, %v16193_v51 }
 0x257   :  { %13425 = vmatprep.mubr.msk.bf16.mxu1 %vm20628_vm12, %v20614_v34 }
 0x259   :  { %v13043_v10 = vpop.f32.mrf.mxu1 }
 0x25b   :  { %v13044_v18 = vpop.f32.mrf.mxu1 }
 0x25c   :  { %v16202_v31 = vadd.f32 %v13044_v18, %v13043_v10  ;;  %4411 = vmatmul.mubr.bf16.gmra.mxu0 %v14088_v43  ;;  %v14101_v10 = vld [vmem:[%s20587_s7 + $0x124] ss:$12 sps:$4 sm:$0xff]  }
 0x25d   :  { %v16207_v44 = vpop.f32.mrf.mxu1  ;;  %4418 = vmatprep.mubr.bf16.mxu0 %v14089_v4 }
 0x25e   :  { %13426 = vmatmul.mubr.msk.bf16.gmra.mxu1 %vm2879_vm11, %v16215_v25 }
 0x25f   :  { %v16217_v52 = vpop.f32.mrf.mxu1  ;;  %13429 = vmatprep.mubr.msk.bf16.mxu1 %vm20628_vm12, %v20614_v34 }
 0x262   :  { %v13049_v62 = vpop.f32.mrf.mxu1 }
 0x264   :  { %v13050_v32 = vpop.f32.mrf.mxu1  ;;  %4419 = vmatmul.mubr.bf16.gmra.mxu0 %v14090_v45 }
 0x265   :  { %v16226_v28 = vadd.f32 %v13050_v32, %v13049_v62  ;;  %4426 = vmatprep.mubr.bf16.mxu0 %v14091_v46  ;;  %v14102_v62 = vld [vmem:[%s20587_s7 + $0x120] ss:$12 sps:$4 sm:$0xff]   ;;  %s14117_s7 = smov 16  }
 0x266   :  { %v16236_v37 = vpop.f32.mrf.mxu1  ;;  %13430 = vmatmul.mubr.msk.bf16.gmra.mxu1 %vm2879_vm11, %v16234_v50 }
 0x267   :  { %13433 = vmatprep.mubr.msk.bf16.mxu1 %vm20628_vm12, %v20614_v34 }
 0x268   :  { %v16238_v5 = vpop.f32.mrf.mxu1 }
 0x26a   :  { %v13055_v22 = vpop.f32.mrf.mxu1 }
 0x26c   :  { %v13056_v2 = vpop.f32.mrf.mxu1  ;;  %4427 = vmatmul.mubr.bf16.gmra.mxu0 %v14092_v11 }
 0x26d   :  { %v16247_v61 = vadd.f32 %v13056_v2, %v13055_v22  ;;  %4434 = vmatprep.mubr.bf16.mxu0 %v14093_v53 }
 0x26e   :  { %v16257_v47 = vpop.f32.mrf.mxu1  ;;  %13434 = vmatmul.mubr.msk.bf16.gmra.mxu1 %vm2879_vm11, %v16255_v55 }
 0x26f   :  { %13437 = vmatprep.mubr.msk.bf16.mxu1 %vm20628_vm12, %v20614_v34 }
 0x270   :  { %v16259_v59 = vpop.f32.mrf.mxu1 }
 0x272   :  { %v13061_v7 = vpop.f32.mrf.mxu1 }
 0x274   :  { %v13062_v27 = vpop.f32.mrf.mxu1  ;;  %4435 = vmatmul.mubr.bf16.gmra.mxu0 %v14094_v54 }
 0x275   :  { %v16268_v14 = vadd.f32 %v13062_v27, %v13061_v7  ;;  %4442 = vmatprep.mubr.bf16.mxu0 %v14095_v8 }
 0x276   :  { %v16278_v40 = vpop.f32.mrf.mxu1  ;;  %13438 = vmatmul.mubr.msk.bf16.gmra.mxu1 %vm2879_vm11, %v16276_v21 }
 0x277   :  { %13441 = vmatprep.mubr.msk.bf16.mxu1 %vm20628_vm12, %v20614_v34 }
 0x278   :  { %v16280_v16 = vpop.f32.mrf.mxu1 }
 0x27a   :  { %v13067_v15 = vpop.f32.mrf.mxu1 }
 0x27c   :  { %v13068_v33 = vpop.f32.mrf.mxu1  ;;  %4443 = vmatmul.mubr.bf16.gmra.mxu0 %v14096_v23 }
 0x27d   :  { %v16289_v9 = vadd.f32 %v13068_v33, %v13067_v15  ;;  %4450 = vmatprep.mubr.bf16.mxu0 %v14097_v12 }
 0x27e   :  { %v16299_v42 = vpop.f32.mrf.mxu1  ;;  %13442 = vmatmul.mubr.msk.bf16.gmra.mxu1 %vm2879_vm11, %v16297_v0 }
 0x27f   :  { %13457 = vmatprep.mubr.msk.bf16.mxu1 %vm20628_vm12, %v20614_v34 }
 0x280   :  { %v16301_v20 = vpop.f32.mrf.mxu1 }
 0x282   :  { %v13073_v36 = vpop.f32.mrf.mxu1 }
 0x284   :  { %v13074_v29 = vpop.f32.mrf.mxu1  ;;  %4451 = vmatmul.mubr.bf16.gmra.mxu0 %v14098_v56 }
 0x285   :  { %v16310_v3 = vadd.f32 %v13074_v29, %v13073_v36  ;;  %4458 = vmatprep.mubr.bf16.mxu0 %v14099_v19 }
 0x286   :  { %v16315_v60 = vpop.f32.mrf.mxu1  ;;  %13458 = vmatmul.mubr.msk.bf16.vlgmr.msra.gmra.mxu1 %vm2879_vm11, %v15922_v38 }
 0x287   :  { %13461 = vmatprep.mubr.msk.bf16.mxu1 %vm20628_vm12, %v20614_v34 }
 0x288   :  { %v16317_v1 = vpop.f32.mrf.mxu1 }
 0x28a   :  { %v13079_v49 = vpop.f32.mrf.mxu1 }
 0x28c   :  { %v13080_v6 = vpop.f32.mrf.mxu1  ;;  %4459 = vmatmul.mubr.bf16.gmra.mxu0 %v14100_v57  ;;  %v13042_v57 = vadd.f32 %v16195_v48, %v16182_v39 }
 0x28d   :  { %v16326_v58 = vadd.f32 %v13080_v6, %v13079_v49  ;;  %4466 = vmatprep.mubr.bf16.mxu0 %v14101_v10 }
 0x28e   :  { %v16331_v18 = vpop.f32.mrf.mxu1  ;;  %13462 = vmatmul.mubr.msk.bf16.gmra.mxu1 %vm2879_vm11, %v15971_v24 }
 0x28f   :  { %13465 = vmatprep.mubr.msk.bf16.mxu1 %vm20628_vm12, %v20614_v34 }
 0x290   :  { %v16333_v38 = vpop.f32.mrf.mxu1 }
 0x292   :  { %v13085_v43 = vpop.f32.mrf.mxu1 }
 0x294   :  { %v13086_v4 = vpop.f32.mrf.mxu1  ;;  %4467 = vmatmul.mubr.bf16.gmra.mxu0 %v14102_v62 }
 0x295   :  { %v16342_v32 = vadd.f32 %v13086_v4, %v13085_v43  ;;  %v13730_v4 = vld [vmem:[%s20588_s3 + $0x38] sm:$0xff]  }
 0x296   :  { %v16344_v45 = vpop.f32.mrf.mxu1  ;;  %13466 = vmatmul.mubr.msk.bf16.gmra.mxu1 %vm2879_vm11, %v16010_v17 }
 0x297   :  { %13469 = vmatprep.mubr.msk.bf16.mxu1 %vm20628_vm12, %v20614_v34 }
 0x298   :  { %v16346_v46 = vpop.f32.mrf.mxu1 }
 0x29a   :  { %v13091_v24 = vpop.f32.mrf.mxu1 }
 0x29c   :  { %v13092_v22 = vpop.f32.mrf.mxu1 }
 0x29d   :  { %v16352_v2 = vadd.f32 %v13092_v22, %v13091_v24 }
 0x29e   :  { %v16354_v11 = vpop.f32.mrf.mxu1  ;;  %13470 = vmatmul.mubr.msk.bf16.gmra.mxu1 %vm2879_vm11, %v16059_v63 }
 0x29f   :  { %13473 = vmatprep.mubr.msk.bf16.mxu1 %vm20628_vm12, %v20614_v34 }
 0x2a0   :  { %v16356_v53 = vpop.f32.mrf.mxu1 }
 0x2a2   :  { %v13097_v7 = vpop.f32.mrf.mxu1 }
 0x2a4   :  { %v13098_v27 = vpop.f32.mrf.mxu1 }
 0x2a5   :  { %v16362_v17 = vadd.f32 %v13098_v27, %v13097_v7  ;;  %v13048_v7 = vadd.f32 %v16217_v52, %v16207_v44  ;;  %v13734_v44 = vld [vmem:[%s20588_s3 + $0x20] sm:$0xff]  }
 0x2a6   :  { %v16364_v54 = vpop.f32.mrf.mxu1  ;;  %13474 = vmatmul.mubr.msk.bf16.gmra.mxu1 %vm2879_vm11, %v16106_v26 }
 0x2a7   :  { %13477 = vmatprep.mubr.msk.bf16.mxu1 %vm20628_vm12, %v20614_v34 }
 0x2a8   :  { %v16366_v8 = vpop.f32.mrf.mxu1 }
 0x2aa   :  { %v13103_v15 = vpop.f32.mrf.mxu1 }
 0x2ac   :  { %v13104_v33 = vpop.f32.mrf.mxu1 }
 0x2ad   :  { %v16372_v63 = vadd.f32 %v13104_v33, %v13103_v15  ;;  %v13733_v15 = vld [vmem:[%s20588_s3 + $0x28] sm:$0xff]  }
 0x2ae   :  { %v16374_v23 = vpop.f32.mrf.mxu1  ;;  %13478 = vmatmul.mubr.msk.bf16.gmra.mxu1 %vm2879_vm11, %v16142_v35 }
 0x2af   :  { %13481 = vmatprep.mubr.msk.bf16.mxu1 %vm20628_vm12, %v20614_v34 }
 0x2b0   :  { %v16376_v12 = vpop.f32.mrf.mxu1 }
 0x2b2   :  { %v13109_v36 = vpop.f32.mrf.mxu1 }
 0x2b4   :  { %v13110_v29 = vpop.f32.mrf.mxu1 }
 0x2b5   :  { %v16382_v26 = vadd.f32 %v13110_v29, %v13109_v36 }
 0x2b6   :  { %13482 = vmatmul.mubr.msk.bf16.gmra.mxu1 %vm2879_vm11, %v16173_v30  ;;  %v16400_v30 = vpop.f32.mrf.mxu1 }
 0x2b7   :  { %13485 = vmatprep.mubr.msk.bf16.mxu1 %vm20628_vm12, %v20614_v34 }
 0x2bd   :  { %v13379_v35 = vpop.f32.mrf.mxu0 }
 0x2be   :  { %13486 = vmatmul.mubr.msk.bf16.gmra.mxu1 %vm2879_vm11, %v16193_v51 }
 0x2bf   :  { %13489 = vmatprep.mubr.msk.bf16.mxu1 %vm20628_vm12, %v20614_v34  ;;  %v1002_v51 = vpop.f32.mrf.mxu0 }
 0x2c1   :  { %v13380_v56 = vpop.f32.mrf.mxu0 }
 0x2c3   :  { %v1005_v19 = vpop.f32.mrf.mxu0 }
 0x2c6   :  { %13490 = vmatmul.mubr.msk.bf16.gmra.mxu1 %vm2879_vm11, %v16215_v25  ;;  %v16406_v25 = vpop.f32.mrf.mxu1 }
 0x2c7   :  { %13493 = vmatprep.mubr.msk.bf16.mxu1 %vm20628_vm12, %v20614_v34 }
 0x2cb   :  { %v3094_v49 = vpop.f32.mrf.mxu1 }
 0x2cc   :  { %v3095_v6 = vadd.f32 %v16180_v13, %v3094_v49  ;;  %v13731_v13 = vld [vmem:[%s20588_s3 + $0x30] sm:$0xff]  }
 0x2ce   :  { %13494 = vmatmul.mubr.msk.bf16.gmra.mxu1 %vm2879_vm11, %v16234_v50  ;;  %v20617_v50 = vmov 0   ;;  %v12823_v10 = vpack.c.bf16 %v3095_v6, %v3095_v6  ;;  %v13054_v6 = vadd.f32 %v16238_v5, %v16236_v37 }
 0x2cf   :  { %13497 = vmatprep.mubr.msk.bf16.mxu1 %vm20628_vm12, %v20614_v34  ;;  %6627 = vmatprep.subr.bf16.mxu0 %v20617_v50 }
 0x2d0   :  { %3301 = vst.msk [vmem:[#allocation3] sm:$0xf] %vm1517_vm3, %v12823_v10  ;;  %6628 = vmatpush1.bf16.msra.mxu0 %v13730_v4  ;;  %v13735_v10 = vld [vmem:[%s20588_s3 + $0x18] sm:$0xff]  }
 0x2d1   :  { %6629 = vmatprep.subr.bf16.mxu0 %v20617_v50 }
 0x2d4   :  { %6630 = vmatpush1.bf16.msra.mxu0 %v13731_v13 }
 0x2d5   :  { %6631 = vmatprep.subr.bf16.mxu0 %v20617_v50 }
 0x2d6   :  { %13498 = vmatmul.mubr.msk.bf16.gmra.mxu1 %vm2879_vm11, %v16255_v55  ;;  %v13395_v55 = vpop.f32.mrf.mxu1 }
 0x2d7   :  { %13501 = vmatprep.mubr.msk.bf16.mxu1 %vm20628_vm12, %v20614_v34  ;;  %v4742_v51 = vld [vmem:[#allocation3] sm:$0xf] }
 0x2d8   :  { %v3097_v43 = vpop.f32.mrf.mxu1  ;;  %6632 = vmatpush1.bf16.msra.mxu0 %v13733_v15  ;;  %v4765_v4 = vld [vmem:[#allocation3] sm:$0xe]  ;;  %v13060_v15 = vadd.f32 %v16259_v59, %v16257_v47 }
 0x2d9   :  { %6633 = vmatprep.subr.bf16.mxu0 %v20617_v50 }
 0x2da   :  { %v13396_v62 = vpop.f32.mrf.mxu1 }
 0x2dc   :  { %v3102_v22 = vpop.f32.mrf.mxu1  ;;  %6634 = vmatpush1.bf16.msra.mxu0 %v13734_v44 }
 0x2dd   :  { %v3103_v39 = vadd.f32 %v16202_v31, %v3102_v22  ;;  %6635 = vmatprep.subr.bf16.mxu0 %v20617_v50 }
 0x2de   :  { %13502 = vmatmul.mubr.msk.bf16.gmra.mxu1 %vm2879_vm11, %v16276_v21  ;;  %v3098_v21 = vadd.f32 %v13042_v57, %v3097_v43  ;;  %v13399_v48 = vpop.f32.mrf.mxu1 }
 0x2df   :  { %13505 = vmatprep.mubr.msk.bf16.mxu1 %vm20628_vm12, %v20614_v34  ;;  %v12825_v27 = vpack.c.bf16 %v3103_v39, %v3103_v39 }
 0x2e0   :  { %v12824_v24 = vpack.c.bf16 %v3098_v21, %v3098_v21  ;;  %6636 = vmatpush1.bf16.msra.mxu0 %v13735_v10  ;;  %v16480_v10 = vadd.f32 %v16280_v16, %v16278_v40 }
 0x2e1   :  { %3303 = vst.msk [vmem:[#allocation3 + $0x8] sm:$0xf] %vm1517_vm3, %v12825_v27  ;;  %6637 = vmatprep.subr.bf16.mxu0 %v20617_v50  ;;  %v13736_v27 = vld [vmem:[%s20588_s3 + $0x10] sm:$0xff]  }
 0x2e2   :  { %3302 = vst.msk [vmem:[#allocation3 + $0x4] sm:$0xf] %vm1517_vm3, %v12824_v24 }
 0x2e4   :  { %6638 = vmatpush1.bf16.msra.mxu0 %v13736_v27 }
 0x2e5   :  { %6639 = vmatprep.subr.bf16.mxu0 %v20617_v50 }
 0x2e6   :  { %13506 = vmatmul.mubr.msk.bf16.gmra.mxu1 %vm2879_vm11, %v16297_v0  ;;  %v3105_v0 = vpop.f32.mrf.mxu1  ;;  %vm5539_vm11 = vcmask 654336  }
 0x2e7   :  { %13525 = vmatprep.mubr.msk.bf16.mxu1 %vm20628_vm12, %v20614_v34  ;;  %v3106_v33 = vadd.f32 %v13048_v7, %v3105_v0  ;;  %vm5562_vm12 = vcmask 785408  }
 0x2e8   :  { %v13400_v31 = vpop.f32.mrf.mxu1  ;;  %v4744_v43 = vld [vmem:[#allocation3 + $0x8] sm:$0xf] }
 0x2e9   :  { %v12826_v36 = vpack.c.bf16 %v3106_v33, %v3106_v33  ;;  %v4743_v29 = vld [vmem:[#allocation3 + $0x4] sm:$0xf] }
 0x2ea   :  { %v3110_v52 = vpop.f32.mrf.mxu1  ;;  %v16445_v49 = vcombine.low %v4742_v51, %v4743_v29  ;;  %v12270_v62 = vcombine.low %v4765_v4, %v4743_v29  ;;  %v4769_v24 = vld [vmem:[#allocation3 + $0x4] sm:$0x8] }
 0x2eb   :  { %3304 = vst.msk [vmem:[#allocation3 + $0xc] sm:$0xf] %vm1517_vm3, %v12826_v36  ;;  %v3111_v35 = vadd.f32 %v16226_v28, %v3110_v52  ;;  %v4766_v13 = vld [vmem:[#allocation3 + $0x4] sm:$0xc]  ;;  %v16458_v5 = vcombine.low %v4769_v24, %v4744_v43 }
 0x2ec   :  { %v13403_v19 = vpop.f32.mrf.mxu1  ;;  %v4838_v39 = vshll.u32 %v16445_v49, 16  ;;  %v12271_v48 = vcombine.low %v4766_v13, %v4744_v43  ;;  %v4953_v44 = vrot.slane %v12270_v62, 1  ;;  %v13738_v62 = vld [vmem:[%s20588_s3 + $0x8] sm:$0xff]  }
 0x2ed   :  { %v12827_v55 = vpack.c.bf16 %v3111_v35, %v3111_v35  ;;  %v5150_v4 = vrot.slane %v16458_v5, 3  ;;  %6640 = vmatpush1.bf16.msra.mxu0 %v13738_v62 }
 0x2ee   :  { %v3113_v28 = vpop.f32.mrf.mxu1  ;;  %v4840_v35 = vrot.slane %v4838_v39, 1  ;;  %v5018_v51 = vshrl.u32 %v12271_v48, 16  ;;  %v5021_v19 = vshll.u32 %v12271_v48, 16  ;;  %6641 = vmatprep.subr.bf16.mxu0 %v20617_v50 }
 0x2ef   :  { %3305 = vst.msk [vmem:[#allocation3 + $0x10] sm:$0xf] %vm1517_vm3, %v12827_v55  ;;  %v3114_v21 = vadd.f32 %v13054_v6, %v3113_v28  ;;  %v5200_v6 = vshrl.u32 %v16458_v5, 16 }
 0x2f0   :  { %v13404_v37 = vpop.f32.mrf.mxu1  ;;  %v5020_v48 = vrot.slane %v5018_v51, 2 }
 0x2f1   :  { %v12828_v7 = vpack.c.bf16 %v3114_v21, %v3114_v21  ;;  %v4836_v21 = vshrl.u32 %v16445_v49, 16  ;;  %v5202_v27 = vrot.slane %v5200_v6, 3 }
 0x2f2   :  { %v4745_v33 = vld [vmem:[#allocation3 + $0xc] sm:$0xf] }
 0x2f3   :  { %v3118_v0 = vpop.f32.mrf.mxu1  ;;  %3306 = vst.msk [vmem:[#allocation3 + $0x14] sm:$0xf] %vm1517_vm3, %v12828_v7  ;;  %v16469_v36 = vcombine.low %v4744_v43, %v4745_v33  ;;  %v4841_v39 = vor.u32 %v4840_v35, %v4836_v21  ;;  %v5023_v7 = vrot.slane %v5021_v19, 3  ;;  %v4771_v62 = vld [vmem:[#allocation3 + $0xc] sm:$0xe] }
 0x2f4   :  { %v16443_v56 = vpop.f32.mrf.mxu0  ;;  %v3119_v31 = vadd.f32 %v16247_v61, %v3118_v0  ;;  %v5203_v61 = vshll.u32 %v16458_v5, 16 }
 0x2f5   :  { %20696 = vst [vmem:[#allocation16_spill] sm:$0xff] %v16469_v36  ;;  %v13407_v29 = vpop.f32.mrf.mxu1  ;;  %v4954_v59 = vrot.slane %v16469_v36, 1  ;;  %v4843_v55 = vshll.u32 %v16469_v36, 16 }
 0x2f6   :  { %v16449_v57 = vpop.f32.mrf.mxu0  ;;  %v12829_v47 = vpack.c.bf16 %v3119_v31, %v3119_v31  ;;  %v16482_v43 = vld [vmem:[#allocation3 + $0x10] sm:$0xf] }
 0x2f7   :  { %v3121_v28 = vpop.f32.mrf.mxu1  ;;  %v4955_v13 = vsel %vm4952_vm13, %v4953_v44, %v4954_v59  ;;  %v16494_v40 = vcombine.low %v4745_v33, %v16482_v43  ;;  %v4845_v16 = vrot.slane %v4843_v55, 1  ;;  %v5205_v44 = vrot.slane %v5203_v61, 4  ;;  %v4775_v33 = vld [vmem:[#allocation3 + $0xc] sm:$0xc]  ;;  %v13739_v29 = vld [vmem:[%s20588_s3] sm:$0xff]  }
 0x2f8   :  { %v16456_v22 = vpop.f32.mrf.mxu0  ;;  %3307 = vst.msk [vmem:[#allocation3 + $0x18] sm:$0xf] %vm1517_vm3, %v12829_v47  ;;  %v3122_v24 = vadd.f32 %v13060_v15, %v3121_v28  ;;  %4976 = vrot.lane.b32.xlu0 %v4955_v13, %s14115_s20  ;;  %v12289_v6 = vcombine.low %v4775_v33, %v16482_v43  ;;  %v5024_v33 = vor.u32 %v5023_v7, %v5020_v48 }
 0x2f9   :  { %v13408_v5 = vpop.f32.mrf.mxu1  ;;  %v20616_v0 = vrot.slane %v16494_v40, 3  ;;  %v5026_v31 = vshrl.u32 %v16494_v40, 16  ;;  %v4846_v35 = vsel %vm4834_vm14, %v4841_v39, %v4845_v16  ;;  %v5029_v51 = vshll.u32 %v16494_v40, 16  ;;  %6642 = vmatpush1.bf16.msra.mxu0 %v13739_v29 }
 0x2fa   :  { %v16471_v52 = vpop.f32.mrf.mxu0  ;;  %v12830_v15 = vpack.c.bf16 %v3122_v24, %v3122_v24  ;;  %v4747_v19 = vld [vmem:[#allocation3 + $0x14] sm:$0xf]  ;;  %6657 = vmatprep.subr.bf16.mxu0 %v20617_v50 }
 0x2fb   :  { %v5152_v61 = vsel %vm577_vm0, %v5150_v4, %v20616_v0  ;;  %v5028_v28 = vrot.slane %v5026_v31, 2  ;;  %v5207_v21 = vrot.slane %v5026_v31, 3  ;;  %v5031_v5 = vrot.slane %v5029_v51, 3 }
 0x2fc   :  { %v16496_v37 = vpop.f32.mrf.mxu0  ;;  %3308 = vst.msk [vmem:[#allocation3 + $0x1c] sm:$0xf] %vm1517_vm3, %v12830_v15  ;;  %5173 = vrot.lane.b32.xlu1 %v5152_v61, %s14116_s23  ;;  %4927 = vrot.lane.b32.xlu0 %v4846_v35, %s14117_s7  ;;  %v5208_v39 = vrot.slane %v5029_v51, 4  ;;  %v12285_v15 = vcombine.low %v4771_v62, %v16482_v43  ;;  %v5206_v31 = vor.u32 %v5205_v44, %v5202_v27  ;;  %v5424_v27 = vrot.slane %v12289_v6, 2 }
 0x2fd   :  { %v3126_v47 = vpop.f32.mrf.mxu1  ;;  %v16522_v34 = vor.u32 %v5031_v5, %v5028_v28 }
 0x2fe   :  { %v3127_v55 = vadd.f32 %v16268_v14, %v3126_v47  ;;  %v16513_v24 = vpop.f32.mrf.mxu0  ;;  %v16518_v14 = vcombine.low %v16482_v43, %v4747_v19  ;;  %v4847_v47 = vshrl.u32 %v16469_v36, 16  ;;  %v16524_v61 = vor.u32 %v5208_v39, %v5207_v21  ;;  %v13741_v43 = vld [vmem:[%s20588_s3 + $0x40] sm:$0xff]   ;;  %s14118_s3 = smov 48  }
 0x2ff   :  { %v13411_v13 = vpop.f32.mrf.mxu1  ;;  %v4748_v0 = vld [vmem:[#allocation3 + $0x18] sm:$0xf]  ;;  %v5033_v28 = vsel %vm5016_vm15, %v5024_v33, %v16522_v34  ;;  %v5287_v5 = vrot.slane %v12285_v15, 1  ;;  %6658 = vmatpush2.bf16.msra.mxu0 %v13741_v43 }
 0x300   :  { %v12831_v4 = vpack.c.bf16 %v3127_v55, %v3127_v55  ;;  %v4851_v35 = vshll.u32 %v16518_v14, 16  ;;  %v20620_v51 = vrot.slane %v16518_v14, 1  ;;  %v16534_v7 = vcombine.low %v4747_v19, %v4748_v0  ;;  %v16536_v29 = vpop.f32.mrf.mxu0  ;;  %5124 = vrot.lane.b32.xlu1 %v5033_v28, %s14118_s3 }
 0x301   :  { %v3129_v13 = vpop.f32.mrf.mxu1  ;;  %v4849_v44 = vor.u32 %v4847_v47, %v4845_v16  ;;  %v5210_v21 = vsel %vm5198_vm2, %v5206_v31, %v16524_v61  ;;  %v5337_v16 = vshrl.u32 %v12285_v15, 16  ;;  %v5340_v19 = vshll.u32 %v12285_v15, 16 }
 0x302   :  { %3309 = vst.msk [vmem:[#allocation3 + $0x20] sm:$0xf] %vm1517_vm3, %v12831_v4  ;;  %v3130_v48 = vadd.f32 %v16480_v10, %v3129_v13  ;;  %v16542_v62 = vrot.slane %v4851_v35, 1  ;;  %5256 = vrot.lane.b32.xlu0 %v5210_v21, %s14119_s26  ;;  %v20619_v10 = vrot.slane %v16534_v7, 2  ;;  %v4957_v4 = vsel %vm4952_vm13, %v4954_v59, %v20620_v51 }
 0x303   :  { %v13412_v55 = vpop.f32.mrf.mxu1  ;;  %v5288_v33 = vrot.slane %v16534_v7, 1  ;;  %v5035_v31 = vshrl.u32 %v16534_v7, 16  ;;  %v5038_v47 = vshll.u32 %v16534_v7, 16  ;;  %v4749_v13 = vld [vmem:[#allocation3 + $0x1c] sm:$0xf] }
 0x304   :  { %v12832_v39 = vpack.c.bf16 %v3130_v48, %v3130_v48  ;;  %v5426_v15 = vsel %vm578_vm1, %v5424_v27, %v20619_v10  ;;  %v4854_v48 = vsel %vm4834_vm14, %v4849_v44, %v16542_v62  ;;  %v16563_v55 = vpop.f32.mrf.mxu0  ;;  %v16570_v27 = vcombine.low %v4748_v0, %v4749_v13 }
 0x305   :  { %v3134_v6 = vpop.f32.mrf.mxu1  ;;  %12332 = vmatprep.mubr.msk.bf16.mxu0 %vm5447_vm4, %v5426_v15  ;;  %v5037_v21 = vrot.slane %v5035_v31, 2  ;;  %v5040_v43 = vrot.slane %v5038_v47, 3  ;;  %v5344_v50 = vrot.slane %v5035_v31, 1  ;;  %4929 = vrot.lane.b32.xlu1 %v4854_v48, %s14117_s7  ;;  %v5339_v15 = vrot.slane %v5337_v16, 1 }
 0x306   :  { %3310 = vst.msk [vmem:[#allocation3 + $0x24] sm:$0xf] %vm1517_vm3, %v12832_v39  ;;  %v3135_v35 = vadd.f32 %v16289_v9, %v3134_v6  ;;  %v5345_v39 = vrot.slane %v5038_v47, 2  ;;  %v13072_v9 = vadd.f32 %v16301_v20, %v16299_v42  ;;  %4978 = vrot.lane.b32.xlu0 %v4957_v4, %s14115_s20  ;;  %v5342_v10 = vrot.slane %v5340_v19, 2 }
 0x307   :  { %v13415_v28 = vpop.f32.mrf.mxu1  ;;  %v16576_v41 = vor.u32 %v5040_v43, %v5037_v21  ;;  %v5211_v42 = vrot.slane %v5035_v31, 3  ;;  %v5212_v20 = vrot.slane %v5038_v47, 4  ;;  %v20697_v0 = vrot.slane %v16534_v7, 3 }
 0x308   :  { %v12833_v6 = vpack.c.bf16 %v3135_v35, %v3135_v35  ;;  %v5289_v28 = vsel %vm4952_vm13, %v5287_v5, %v5288_v33  ;;  %v16578_v35 = vpop.f32.mrf.mxu0  ;;  %v20698_v48 = vrot.slane %v16494_v40, 3  ;;  %v16585_v5 = vor.u32 %v5345_v39, %v5344_v50 }
 0x309   :  { %v3137_v44 = vpop.f32.mrf.mxu1  ;;  %v4750_v51 = vld [vmem:[#allocation3 + $0x20] sm:$0xf]  ;;  %v4859_v16 = vshll.u32 %v16570_v27, 16  ;;  %5310 = vrot.lane.b32.xlu1 %v5289_v28, %s14120_s27  ;;  %v5343_v47 = vor.u32 %v5342_v10, %v5339_v15  ;;  %v5042_v50 = vsel %vm5016_vm15, %v16522_v34, %v16576_v41  ;;  %v16597_v21 = vor.u32 %v5212_v20, %v5211_v42 }
 0x30a   :  { %3311 = vst.msk [vmem:[#allocation3 + $0x28] sm:$0xf] %vm1517_vm3, %v12833_v6  ;;  %v3138_v59 = vadd.f32 %v13072_v9, %v3137_v44  ;;  %v5154_v36 = vsel %vm577_vm0, %v20698_v48, %v20697_v0  ;;  %v16588_v19 = vcombine.low %v4749_v13, %v4750_v51  ;;  %v4855_v13 = vshrl.u32 %v16518_v14, 16 }
 0x30b   :  { %v13416_v4 = vpop.f32.mrf.mxu1  ;;  %5175 = vrot.lane.b32.xlu0 %v5154_v36, %s14116_s23  ;;  %v5347_v36 = vsel %vm5335_vm5, %v5343_v47, %v16585_v5  ;;  %v16604_v39 = vrot.slane %v4859_v16, 1  ;;  %v13078_v6 = vadd.f32 %v16317_v1, %v16315_v60  ;;  %v4958_v15 = vrot.slane %v16570_v27, 1 }
 0x30c   :  { %v12834_v9 = vpack.c.bf16 %v3138_v59, %v3138_v59  ;;  %v16600_v59 = vpop.f32.mrf.mxu0  ;;  %v5044_v10 = vshrl.u32 %v16588_v19, 16  ;;  %v4857_v28 = vor.u32 %v4855_v13, %v16542_v62  ;;  %v5290_v20 = vrot.slane %v16588_v19, 1 }
 0x30d   :  { %5126 = vrot.lane.b32.xlu1 %v5042_v50, %s14118_s3  ;;  %v5214_v60 = vsel %vm5198_vm2, %v16524_v61, %v16597_v21  ;;  %v4751_v62 = vld [vmem:[#allocation3 + $0x24] sm:$0xf]  ;;  %v20699_v47 = vrot.slane %v16518_v14, 1  ;;  %v5155_v61 = vrot.slane %v16588_v19, 3 }
 0x30e   :  { %v3142_v31 = vpop.f32.mrf.mxu1  ;;  %3312 = vst.msk [vmem:[#allocation3 + $0x2c] sm:$0xf] %vm1517_vm3, %v12834_v9  ;;  %v16616_v4 = vpop.f32.mrf.mxu0  ;;  %v4862_v1 = vsel %vm4834_vm14, %v4857_v28, %v16604_v39  ;;  %v5046_v48 = vrot.slane %v5044_v10, 2  ;;  %v5291_v13 = vsel %vm4952_vm13, %v5288_v33, %v5290_v20 }
 0x30f   :  { %v3143_v40 = vadd.f32 %v16310_v3, %v3142_v31  ;;  %v5047_v3 = vshll.u32 %v16588_v19, 16  ;;  %5398 = vrot.lane.b32.xlu0 %v5347_v36, %s14121_s28  ;;  %v16638_v36 = vcombine.low %v4750_v51, %v4751_v62 }
 0x310   :  { %v13419_v43 = vpop.f32.mrf.mxu1 }
 0x311   :  { %v12835_v34 = vpack.c.bf16 %v3143_v40, %v3143_v40  ;;  %v5049_v16 = vrot.slane %v5047_v3, 3  ;;  %5258 = vrot.lane.b32.xlu1 %v5214_v60, %s14119_s26  ;;  %v4959_v40 = vsel %vm4952_vm13, %v20699_v47, %v4958_v15  ;;  %v5348_v43 = vrot.slane %v5044_v10, 1  ;;  %v4752_v60 = vld [vmem:[#allocation3 + $0x28] sm:$0xf] }
 0x312   :  { %v3145_v44 = vpop.f32.mrf.mxu1  ;;  %v5349_v28 = vrot.slane %v5047_v3, 2 }
 0x313   :  { %3313 = vst.msk [vmem:[#allocation3 + $0x30] sm:$0xf] %vm1517_vm3, %v12835_v34  ;;  %v3146_v42 = vadd.f32 %v13078_v6, %v3145_v44  ;;  %4931 = vrot.lane.b32.xlu0 %v4862_v1, %s14117_s7  ;;  %v16640_v6 = vpop.f32.mrf.mxu0  ;;  %v16642_v44 = vor.u32 %v5049_v16, %v5046_v48  ;;  %v16650_v48 = vcombine.low %v4751_v62, %v4752_v60 }
 0x314   :  { %v13420_v0 = vpop.f32.mrf.mxu1 }
 0x315   :  { %v12836_v9 = vpack.c.bf16 %v3146_v42, %v3146_v42  ;;  %v5215_v42 = vrot.slane %v5044_v10, 3  ;;  %v5216_v0 = vrot.slane %v5047_v3, 4  ;;  %4980 = vrot.lane.b32.xlu1 %v4959_v40, %s14115_s20  ;;  %v16652_v16 = vpop.f32.mrf.mxu0  ;;  %v5051_v3 = vsel %vm5016_vm15, %v16576_v41, %v16642_v44 }
 0x316   :  { %v3150_v31 = vpop.f32.mrf.mxu1  ;;  %v5053_v41 = vshrl.u32 %v16650_v48, 16 }
 0x317   :  { %3314 = vst.msk [vmem:[#allocation3 + $0x34] sm:$0xf] %vm1517_vm3, %v12836_v9  ;;  %v3151_v50 = vadd.f32 %v16326_v58, %v3150_v31  ;;  %v13084_v58 = vadd.f32 %v16333_v38, %v16331_v18  ;;  %5312 = vrot.lane.b32.xlu0 %v5291_v13, %s14120_s27  ;;  %v4867_v9 = vshll.u32 %v16638_v36, 16  ;;  %v20700_v18 = vrot.slane %v16534_v7, 3 }
 0x318   :  { %v13423_v34 = vpop.f32.mrf.mxu1  ;;  %v16662_v31 = vor.u32 %v5349_v28, %v5348_v43  ;;  %v16664_v47 = vor.u32 %v5216_v0, %v5215_v42  ;;  %v4960_v13 = vrot.slane %v16638_v36, 1  ;;  %v5056_v43 = vshll.u32 %v16650_v48, 16  ;;  %v16676_v28 = vpop.f32.mrf.mxu0 }
 0x319   :  { %v12837_v1 = vpack.c.bf16 %v3151_v50, %v3151_v50  ;;  %v5156_v38 = vsel %vm577_vm0, %v20700_v18, %v5155_v61  ;;  %v4863_v50 = vshrl.u32 %v16570_v27, 16  ;;  %v5055_v18 = vrot.slane %v5053_v41, 2 }
 0x31a   :  { %v3153_v33 = vpop.f32.mrf.mxu1  ;;  %5177 = vrot.lane.b32.xlu1 %v5156_v38, %s14116_s23  ;;  %v5351_v0 = vsel %vm5335_vm5, %v16585_v5, %v16662_v31  ;;  %v4961_v5 = vsel %vm4952_vm13, %v4958_v15, %v4960_v13  ;;  %v5058_v38 = vrot.slane %v5056_v43, 3 }
 0x31b   :  { %3315 = vst.msk [vmem:[#allocation3 + $0x38] sm:$0xf] %vm1517_vm3, %v12837_v1  ;;  %v3154_v51 = vadd.f32 %v13084_v58, %v3153_v33  ;;  %5128 = vrot.lane.b32.xlu0 %v5051_v3, %s14118_s3  ;;  %v16672_v58 = vrot.slane %v4867_v9, 1  ;;  %v5218_v1 = vsel %vm5198_vm2, %v16597_v21, %v16664_v47  ;;  %v4753_v9 = vld [vmem:[#allocation3 + $0x2c] sm:$0xf]  ;;  %v5292_v21 = vrot.slane %v16650_v48, 1  ;;  %v16698_v3 = vpop.f32.mrf.mxu0 }
 0x31c   :  { %v13424_v10 = vpop.f32.mrf.mxu1 }
 0x31d   :  { %v12838_v40 = vpack.c.bf16 %v3154_v51, %v3154_v51  ;;  %v4865_v51 = vor.u32 %v4863_v50, %v16604_v39  ;;  %v5353_v50 = vrot.slane %v5056_v43, 2 }
 0x31e   :  { %v3158_v62 = vpop.f32.mrf.mxu1  ;;  %5400 = vrot.lane.b32.xlu1 %v5351_v0, %s14121_s28 }
 0x31f   :  { %3316 = vst.msk [vmem:[#allocation3 + $0x3c] sm:$0xf] %vm1517_vm3, %v12838_v40  ;;  %v3159_v34 = vadd.f32 %v16342_v32, %v3158_v62  ;;  %v13090_v32 = vadd.f32 %v16346_v46, %v16344_v45  ;;  %5260 = vrot.lane.b32.xlu0 %v5218_v1, %s14119_s26  ;;  %v4870_v46 = vsel %vm4834_vm14, %v4865_v51, %v16672_v58  ;;  %v5157_v40 = vrot.slane %v16650_v48, 3 }
 0x320   :  { %v13427_v42 = vpop.f32.mrf.mxu1  ;;  %v5352_v62 = vrot.slane %v5053_v41, 1  ;;  %v5293_v1 = vsel %vm4952_vm13, %v5290_v20, %v5292_v21  ;;  %v5220_v51 = vrot.slane %v5056_v43, 4 }
 0x321   :  { %v12839_v33 = vpack.c.bf16 %v3159_v34, %v3159_v34  ;;  %v16701_v34 = vcombine.low %v4752_v60, %v4753_v9  ;;  %v4754_v42 = vld [vmem:[#allocation3 + $0x30] sm:$0xf]  ;;  %v5219_v60 = vrot.slane %v5053_v41, 3 }
 0x322   :  { %v3161_v10 = vpop.f32.mrf.mxu1  ;;  %4933 = vrot.lane.b32.xlu1 %v4870_v46, %s14117_s7  ;;  %v16721_v46 = vor.u32 %v5353_v50, %v5352_v62 }
 0x323   :  { %3317 = vst.msk [vmem:[#allocation3 + $0x40] sm:$0xf] %vm1517_vm3, %v12839_v33  ;;  %v3162_v45 = vadd.f32 %v13090_v32, %v3161_v10  ;;  %4982 = vrot.lane.b32.xlu0 %v4961_v5, %s14115_s20  ;;  %v16712_v33 = vor.u32 %v5058_v38, %v5055_v18  ;;  %v16714_v10 = vpop.f32.mrf.mxu0  ;;  %v5158_v5 = vsel %vm577_vm0, %v5155_v61, %v5157_v40  ;;  %v4875_v20 = vshll.u32 %v16701_v34, 16 }
 0x324   :  { %v13428_v39 = vpop.f32.mrf.mxu1  ;;  %v16734_v38 = vor.u32 %v5220_v51, %v5219_v60  ;;  %v4962_v60 = vrot.slane %v16701_v34, 1 }
 0x325   :  { %v12840_v15 = vpack.c.bf16 %v3162_v45, %v3162_v45  ;;  %v16724_v39 = vcombine.low %v4753_v9, %v4754_v42  ;;  %v5060_v61 = vsel %vm5016_vm15, %v16642_v44, %v16712_v33  ;;  %v4871_v9 = vshrl.u32 %v16638_v36, 16  ;;  %v16737_v62 = vpop.f32.mrf.mxu0 }
 0x326   :  { %v3166_v0 = vpop.f32.mrf.mxu1  ;;  %5314 = vrot.lane.b32.xlu1 %v5293_v1, %s14120_s27  ;;  %v16742_v50 = vrot.slane %v4875_v20, 1  ;;  %v5222_v20 = vsel %vm5198_vm2, %v16664_v47, %v16734_v38  ;;  %v4963_v47 = vsel %vm4952_vm13, %v4960_v13, %v4962_v60 }
 0x327   :  { %3318 = vst.msk [vmem:[#allocation3 + $0x44] sm:$0xf] %vm1517_vm3, %v12840_v15  ;;  %v3167_v32 = vadd.f32 %v16352_v2, %v3166_v0  ;;  %v13096_v2 = vadd.f32 %v16356_v53, %v16354_v11  ;;  %5179 = vrot.lane.b32.xlu0 %v5158_v5, %s14116_s23  ;;  %v5355_v53 = vsel %vm5335_vm5, %v16662_v31, %v16721_v46  ;;  %v5062_v15 = vshrl.u32 %v16724_v39, 16 }
 0x328   :  { %v13431_v45 = vpop.f32.mrf.mxu1  ;;  %v5065_v0 = vshll.u32 %v16724_v39, 16  ;;  %v5294_v51 = vrot.slane %v16724_v39, 1 }
 0x329   :  { %v12841_v41 = vpack.c.bf16 %v3167_v32, %v3167_v32  ;;  %v4873_v32 = vor.u32 %v4871_v9, %v16672_v58  ;;  %v16753_v45 = vpop.f32.mrf.mxu0 }
 0x32a   :  { %v3169_v43 = vpop.f32.mrf.mxu1  ;;  %5130 = vrot.lane.b32.xlu1 %v5060_v61, %s14118_s3  ;;  %v5067_v58 = vrot.slane %v5065_v0, 3  ;;  %v5224_v13 = vrot.slane %v5065_v0, 4 }
 0x32b   :  { %3319 = vst.msk [vmem:[#allocation3 + $0x48] sm:$0xf] %vm1517_vm3, %v12841_v41  ;;  %v3170_v18 = vadd.f32 %v13096_v2, %v3169_v43  ;;  %5402 = vrot.lane.b32.xlu0 %v5355_v53, %s14121_s28  ;;  %v4878_v2 = vsel %vm4834_vm14, %v4873_v32, %v16742_v50  ;;  %v5064_v41 = vrot.slane %v5062_v15, 2  ;;  %v4755_v43 = vld [vmem:[#allocation3 + $0x34] sm:$0xf] }
 0x32c   :  { %v13432_v11 = vpop.f32.mrf.mxu1 }
 0x32d   :  { %v12842_v1 = vpack.c.bf16 %v3170_v18, %v3170_v18  ;;  %v13102_v18 = vadd.f32 %v16366_v8, %v16364_v54  ;;  %v5159_v11 = vrot.slane %v16724_v39, 3  ;;  %v5295_v54 = vsel %vm4952_vm13, %v5292_v21, %v5294_v51 }
 0x32e   :  { %v3174_v44 = vpop.f32.mrf.mxu1  ;;  %5262 = vrot.lane.b32.xlu1 %v5222_v20, %s14119_s26  ;;  %v5356_v8 = vrot.slane %v5062_v15, 1  ;;  %v16780_v32 = vor.u32 %v5067_v58, %v5064_v41  ;;  %v4756_v20 = vld [vmem:[#allocation3 + $0x38] sm:$0xf] }
 0x32f   :  { %3320 = vst.msk [vmem:[#allocation3 + $0x4c] sm:$0xf] %vm1517_vm3, %v12842_v1  ;;  %v3175_v31 = vadd.f32 %v16362_v17, %v3174_v44  ;;  %4935 = vrot.lane.b32.xlu0 %v4878_v2, %s14117_s7  ;;  %v16764_v17 = vpop.f32.mrf.mxu0  ;;  %v16778_v1 = vcombine.low %v4754_v42, %v4755_v43  ;;  %v16789_v41 = vcombine.low %v4755_v43, %v4756_v20 }
 0x330   :  { %v13435_v5 = vpop.f32.mrf.mxu1 }
 0x331   :  { %v12843_v61 = vpack.c.bf16 %v3175_v31, %v3175_v31  ;;  %v5357_v31 = vrot.slane %v5065_v0, 2  ;;  %v5223_v5 = vrot.slane %v5062_v15, 3  ;;  %v4883_v42 = vshll.u32 %v16778_v1, 16 }
 0x332   :  { %v3177_v9 = vpop.f32.mrf.mxu1  ;;  %4984 = vrot.lane.b32.xlu1 %v4963_v47, %s14115_s20  ;;  %v5160_v15 = vsel %vm577_vm0, %v5157_v40, %v5159_v11  ;;  %v5069_v0 = vsel %vm5016_vm15, %v16712_v33, %v16780_v32  ;;  %v4879_v40 = vshrl.u32 %v16701_v34, 16 }
 0x333   :  { %3321 = vst.msk [vmem:[#allocation3 + $0x50] sm:$0xf] %vm1517_vm3, %v12843_v61  ;;  %v3178_v53 = vadd.f32 %v13102_v18, %v3177_v9  ;;  %5316 = vrot.lane.b32.xlu0 %v5295_v54, %s14120_s27  ;;  %v16784_v18 = vpop.f32.mrf.mxu0  ;;  %v16799_v9 = vor.u32 %v5357_v31, %v5356_v8  ;;  %v16801_v47 = vor.u32 %v5224_v13, %v5223_v5  ;;  %v16812_v8 = vrot.slane %v4883_v42, 1 }
 0x334   :  { %v13436_v44 = vpop.f32.mrf.mxu1  ;;  %v5071_v31 = vshrl.u32 %v16789_v41, 16 }
 0x335   :  { %v12844_v2 = vpack.c.bf16 %v3178_v53, %v3178_v53  ;;  %v16807_v53 = vpop.f32.mrf.mxu0  ;;  %v4964_v44 = vrot.slane %v16778_v1, 1  ;;  %v5359_v5 = vsel %vm5335_vm5, %v16721_v46, %v16799_v9  ;;  %v5226_v13 = vsel %vm5198_vm2, %v16734_v38, %v16801_v47 }
 0x336   :  { %v3182_v61 = vpop.f32.mrf.mxu1  ;;  %5181 = vrot.lane.b32.xlu1 %v5160_v15, %s14116_s23  ;;  %v5296_v15 = vrot.slane %v16789_v41, 1 }
 0x337   :  { %3322 = vst.msk [vmem:[#allocation3 + $0x54] sm:$0xf] %vm1517_vm3, %v12844_v2  ;;  %v3183_v21 = vadd.f32 %v16372_v63, %v3182_v61  ;;  %v13108_v63 = vadd.f32 %v16376_v12, %v16374_v23  ;;  %5132 = vrot.lane.b32.xlu0 %v5069_v0, %s14118_s3  ;;  %v5074_v23 = vshll.u32 %v16789_v41, 16  ;;  %v4881_v61 = vor.u32 %v4879_v40, %v16742_v50  ;;  %v16825_v42 = vpop.f32.mrf.mxu0 }
 0x338   :  { %v13439_v58 = vpop.f32.mrf.mxu1  ;;  %v4965_v46 = vsel %vm4952_vm13, %v4962_v60, %v4964_v44  ;;  %v5073_v50 = vrot.slane %v5071_v31, 2  ;;  %v5161_v40 = vrot.slane %v16789_v41, 3  ;;  %v13114_v60 = vadd.f32 %v16406_v25, %v16400_v30 }
 0x339   :  { %v12845_v43 = vpack.c.bf16 %v3183_v21, %v3183_v21  ;;  %v4757_v21 = vld [vmem:[#allocation3 + $0x3c] sm:$0xf]  ;;  %v4886_v0 = vsel %vm4834_vm14, %v4881_v61, %v16812_v8  ;;  %v5297_v61 = vsel %vm4952_vm13, %v5294_v51, %v5296_v15  ;;  %v5227_v25 = vrot.slane %v5071_v31, 3 }
 0x33a   :  { %v3185_v54 = vpop.f32.mrf.mxu1  ;;  %5404 = vrot.lane.b32.xlu1 %v5359_v5, %s14121_s28  ;;  %v16840_v5 = vcombine.low %v4756_v20, %v4757_v21  ;;  %v13152_v20 = vadd.f32 %v16449_v57, %v16443_v56 }
 0x33b   :  { %3323 = vst.msk [vmem:[#allocation3 + $0x58] sm:$0xf] %vm1517_vm3, %v12845_v43  ;;  %v3186_v33 = vadd.f32 %v13108_v63, %v3185_v54  ;;  %5264 = vrot.lane.b32.xlu0 %v5226_v13, %s14119_s26  ;;  %v5076_v63 = vrot.slane %v5074_v23, 3  ;;  %v16837_v43 = vpop.f32.mrf.mxu0 }
 0x33c   :  { %v13440_v12 = vpop.f32.mrf.mxu1  ;;  %20701 = vst [vmem:[#allocation14_spill] sm:$0xff] %v16840_v5  ;;  %v4891_v51 = vshll.u32 %v16840_v5, 16 }
 0x33d   :  { %v12846_v2 = vpack.c.bf16 %v3186_v33, %v3186_v33  ;;  %v5360_v33 = vrot.slane %v5071_v31, 1  ;;  %v5361_v12 = vrot.slane %v5074_v23, 2  ;;  %v16854_v30 = vor.u32 %v5076_v63, %v5073_v50 }
 0x33e   :  { %v3190_v58 = vpop.f32.mrf.mxu1  ;;  %4937 = vrot.lane.b32.xlu1 %v4886_v0, %s14117_s7  ;;  %v16856_v0 = vpop.f32.mrf.mxu0 }
 0x33f   :  { %3324 = vst.msk [vmem:[#allocation3 + $0x5c] sm:$0xf] %vm1517_vm3, %v12846_v2  ;;  %v3191_v38 = vadd.f32 %v16382_v26, %v3190_v58  ;;  %4986 = vrot.lane.b32.xlu0 %v4965_v46, %s14115_s20  ;;  %v4758_v26 = vld [vmem:[#allocation3 + $0x40] sm:$0xf]  ;;  %v5162_v46 = vsel %vm577_vm0, %v5159_v11, %v5161_v40  ;;  %v5078_v11 = vsel %vm5016_vm15, %v16780_v32, %v16854_v30 }
 0x340   :  { %v13443_v54 = vpop.f32.mrf.mxu1  ;;  %v16866_v56 = vcombine.low %v4757_v21, %v4758_v26  ;;  %v4887_v21 = vshrl.u32 %v16778_v1, 16 }
 0x341   :  { %v12847_v13 = vpack.c.bf16 %v3191_v38, %v3191_v38  ;;  %v5228_v38 = vrot.slane %v5074_v23, 4  ;;  %v16863_v54 = vor.u32 %v5361_v12, %v5360_v33  ;;  %v13155_v23 = vadd.f32 %v16471_v52, %v16456_v22  ;;  %v16879_v33 = vpop.f32.mrf.mxu0 }
 0x342   :  { %v3193_v2 = vpop.f32.mrf.mxu1  ;;  %5318 = vrot.lane.b32.xlu1 %v5297_v61, %s14120_s27  ;;  %v5080_v22 = vshrl.u32 %v16866_v56, 16  ;;  %v5083_v52 = vshll.u32 %v16866_v56, 16  ;;  %v4889_v61 = vor.u32 %v4887_v21, %v16812_v8 }
 0x343   :  { %3325 = vst.msk [vmem:[#allocation3 + $0x60] sm:$0xf] %vm1517_vm3, %v12847_v13  ;;  %v3194_v58 = vadd.f32 %v13114_v60, %v3193_v2  ;;  %5183 = vrot.lane.b32.xlu0 %v5162_v46, %s14116_s23  ;;  %v16876_v50 = vor.u32 %v5228_v38, %v5227_v25  ;;  %v5363_v12 = vsel %vm5335_vm5, %v16799_v9, %v16863_v54  ;;  %v16884_v13 = vrot.slane %v4891_v51, 1  ;;  %v4759_v9 = vld [vmem:[#allocation3 + $0x44] sm:$0xf]  ;;  %v16896_v51 = vpop.f32.mrf.mxu0 }
 0x344   :  { %v13444_v57 = vpop.f32.mrf.mxu1  ;;  %v20624_v25 = vrot.slane %v16866_v56, 1  ;;  %v13158_v46 = vadd.f32 %v16513_v24, %v16496_v37  ;;  %v16912_v24 = vcombine.low %v4758_v26, %v4759_v9  ;;  %v5231_v26 = vrot.slane %v5080_v22, 3 }
 0x345   :  { %v12848_v60 = vpack.c.bf16 %v3194_v58, %v3194_v58  ;;  %v5230_v57 = vsel %vm5198_vm2, %v16801_v47, %v16876_v50  ;;  %v4894_v8 = vsel %vm4834_vm14, %v4889_v61, %v16884_v13  ;;  %v16905_v21 = vpop.f32.mrf.mxu0 }
 0x346   :  { %v4509_v31 = vpop.f32.mrf.mxu1  ;;  %5134 = vrot.lane.b32.xlu1 %v5078_v11, %s14118_s3  ;;  %20702 = vst [vmem:[#allocation15_spill] sm:$0xff] %v16912_v24 }
 0x347   :  { %3326 = vst.msk [vmem:[#allocation3 + $0x64] sm:$0xf] %vm1517_vm3, %v12848_v60  ;;  %v4510_v63 = vadd.f32 %v13152_v20, %v4509_v31  ;;  %5406 = vrot.lane.b32.xlu0 %v5363_v12, %s14121_s28  ;;  %v4966_v20 = vrot.slane %v16840_v5, 1  ;;  %v5082_v60 = vrot.slane %v5080_v22, 2  ;;  %v5085_v31 = vrot.slane %v5083_v52, 3 }
 0x348   :  { %v13459_v2 = vpop.f32.mrf.mxu1  ;;  %v5299_v12 = vsel %vm4952_vm13, %v5296_v15, %v20624_v25  ;;  %v4899_v15 = vshll.u32 %v16912_v24, 16 }
 0x349   :  { %v12849_v32 = vpack.c.bf16 %v4510_v63, %v4510_v63  ;;  %v4967_v37 = vsel %vm4952_vm13, %v4964_v44, %v4966_v20  ;;  %v13161_v63 = vadd.f32 %v16563_v55, %v16536_v29  ;;  %v5163_v2 = vrot.slane %v16866_v56, 3  ;;  %v16927_v55 = vpop.f32.mrf.mxu0 }
 0x34a   :  { %v4512_v58 = vpop.f32.mrf.mxu1  ;;  %5266 = vrot.lane.b32.xlu1 %v5230_v57, %s14119_s26  ;;  %v5365_v44 = vrot.slane %v5083_v52, 2  ;;  %v4760_v57 = vld [vmem:[#allocation3 + $0x48] sm:$0xf] }
 0x34b   :  { %4716 = vst.msk [vmem:[#allocation3 + $0x68] sm:$0xf] %vm1517_vm3, %v12849_v32  ;;  %v4513_v38 = vadd.f32 %v13155_v23, %v4512_v58  ;;  %4939 = vrot.lane.b32.xlu0 %v4894_v8, %s14117_s7  ;;  %v5364_v32 = vrot.slane %v5080_v22, 1  ;;  %v16923_v58 = vor.u32 %v5085_v31, %v5082_v60  ;;  %v16930_v25 = vcombine.low %v4759_v9, %v4760_v57 }
 0x34c   :  { %v13460_v11 = vpop.f32.mrf.mxu1  ;;  %v13164_v22 = vadd.f32 %v16600_v59, %v16578_v35  ;;  %v4968_v35 = vrot.slane %v16912_v24, 1 }
 0x34d   :  { %v12850_v23 = vpack.c.bf16 %v4513_v38, %v4513_v38  ;;  %v5232_v38 = vrot.slane %v5083_v52, 4  ;;  %v5164_v52 = vsel %vm577_vm0, %v5161_v40, %v5163_v2  ;;  %v5087_v60 = vsel %vm5016_vm15, %v16854_v30, %v16923_v58 }
 0x34e   :  { %v4517_v47 = vpop.f32.mrf.mxu1  ;;  %4988 = vrot.lane.b32.xlu1 %v4967_v37, %s14115_s20  ;;  %v16943_v31 = vor.u32 %v5365_v44, %v5364_v32  ;;  %v20626_v37 = vrot.slane %v16588_v19, 2  ;;  %v5429_v40 = vrot.slane %v16650_v48, 2  ;;  %v4895_v30 = vshrl.u32 %v16840_v5, 16 }
 0x34f   :  { %4717 = vst.msk [vmem:[#allocation3 + $0x6c] sm:$0xf] %vm1517_vm3, %v12850_v23  ;;  %v4518_v61 = vadd.f32 %v13158_v46, %v4517_v47  ;;  %5320 = vrot.lane.b32.xlu0 %v5299_v12, %s14120_s27  ;;  %v16945_v9 = vor.u32 %v5232_v38, %v5231_v26  ;;  %v16952_v47 = vpop.f32.mrf.mxu0  ;;  %v13167_v32 = vadd.f32 %v16640_v6, %v16616_v4  ;;  %v5092_v44 = vshll.u32 %v16930_v25, 16 }
 0x350   :  { %v13463_v8 = vpop.f32.mrf.mxu1  ;;  %v16965_v48 = vsel %vm578_vm1, %v20626_v37, %v5429_v40  ;;  %v5367_v38 = vsel %vm5335_vm5, %v16863_v54, %v16943_v31  ;;  %v4897_v6 = vor.u32 %v4895_v30, %v16884_v13  ;;  %v4969_v54 = vsel %vm4952_vm13, %v4966_v20, %v4968_v35 }
 0x351   :  { %v12851_v29 = vpack.c.bf16 %v4518_v61, %v4518_v61  ;;  %v5089_v61 = vshrl.u32 %v16930_v25, 16  ;;  %v5234_v4 = vsel %vm5198_vm2, %v16876_v50, %v16945_v9  ;;  %v4761_v8 = vld [vmem:[#allocation3 + $0x4c] sm:$0xf]  ;;  %v13170_v50 = vadd.f32 %v16676_v28, %v16652_v16  ;;  %v16985_v13 = vpop.f32.mrf.mxu0 }
 0x352   :  { %v4520_v11 = vpop.f32.mrf.mxu1  ;;  %5185 = vrot.lane.b32.xlu1 %v5164_v52, %s14116_s23  ;;  %v16994_v30 = vcombine.low %v4760_v57, %v4761_v8 }
 0x353   :  { %4718 = vst.msk [vmem:[#allocation3 + $0x70] sm:$0xf] %vm1517_vm3, %v12851_v29  ;;  %v4521_v46 = vadd.f32 %v13161_v63, %v4520_v11  ;;  %5136 = vrot.lane.b32.xlu0 %v5087_v60, %s14118_s3  ;;  %v16955_v63 = vrot.slane %v4899_v15, 1  ;;  %v5431_v15 = vrot.slane %v16724_v39, 2  ;;  %v5300_v11 = vrot.slane %v16930_v25, 1  ;;  %v16997_v28 = vpop.f32.mrf.mxu0 }
 0x354   :  { %v13464_v23 = vpop.f32.mrf.mxu1  ;;  %v5091_v20 = vrot.slane %v5089_v61, 2  ;;  %20703 = vst [vmem:[#allocation12_spill] sm:$0xff] %v16994_v30 }
 0x355   :  { %v12852_v59 = vpack.c.bf16 %v4521_v46, %v4521_v46  ;;  %v4902_v39 = vsel %vm4834_vm14, %v4897_v6, %v16955_v63  ;;  %v16991_v60 = vsel %vm578_vm1, %v5429_v40, %v5431_v15  ;;  %v5433_v23 = vrot.slane %v16789_v41, 2  ;;  %v17005_v41 = vld [vmem:[#allocation3 + $0x50] sm:$0xf] }
 0x356   :  { %v4525_v12 = vpop.f32.mrf.mxu1  ;;  %5408 = vrot.lane.b32.xlu1 %v5367_v38, %s14121_s28  ;;  %v5435_v40 = vrot.slane %v16866_v56, 2  ;;  %v5235_v6 = vrot.slane %v5089_v61, 3 }
 0x357   :  { %4719 = vst.msk [vmem:[#allocation3 + $0x74] sm:$0xf] %vm1517_vm3, %v12852_v59  ;;  %v4526_v26 = vadd.f32 %v13164_v22, %v4525_v12  ;;  %5268 = vrot.lane.b32.xlu0 %v5234_v4, %s14119_s26  ;;  %v5165_v22 = vrot.slane %v16930_v25, 3  ;;  %v5094_v59 = vrot.slane %v5092_v44, 3  ;;  %v5368_v12 = vrot.slane %v5089_v61, 1 }
 0x358   :  { %v13467_v29 = vpop.f32.mrf.mxu1  ;;  %v17000_v4 = vsel %vm578_vm1, %v5431_v15, %v5433_v23  ;;  %v4907_v15 = vshll.u32 %v16994_v30, 16  ;;  %v20704_v61 = vrot.slane %v16866_v56, 1  ;;  %v5437_v56 = vrot.slane %v16930_v25, 2 }
 0x359   :  { %v12853_v46 = vpack.c.bf16 %v4526_v26, %v4526_v26  ;;  %v5369_v26 = vrot.slane %v5092_v44, 2  ;;  %v5236_v29 = vrot.slane %v5092_v44, 4  ;;  %v13185_v25 = vadd.f32 %v16856_v0, %v16837_v43 }
 0x35a   :  { %v4528_v52 = vpop.f32.mrf.mxu1  ;;  %4941 = vrot.lane.b32.xlu1 %v4902_v39, %s14117_s7  ;;  %v13173_v39 = vadd.f32 %v16714_v10, %v16698_v3  ;;  %v5301_v44 = vsel %vm4952_vm13, %v20704_v61, %v5300_v11 }
 0x35b   :  { %4720 = vst.msk [vmem:[#allocation3 + $0x78] sm:$0xf] %vm1517_vm3, %v12853_v46  ;;  %v4529_v16 = vadd.f32 %v13167_v32, %v4528_v52  ;;  %4990 = vrot.lane.b32.xlu0 %v4969_v54, %s14115_s20  ;;  %v17008_v46 = vsel %vm578_vm1, %v5433_v23, %v5435_v40  ;;  %v17010_v52 = vor.u32 %v5094_v59, %v5091_v20  ;;  %v17016_v54 = vpop.f32.mrf.mxu0 }
 0x35c   :  { %v13468_v38 = vpop.f32.mrf.mxu1  ;;  %v5166_v23 = vsel %vm577_vm0, %v5163_v2, %v5165_v22  ;;  %v17028_v20 = vor.u32 %v5369_v26, %v5368_v12  ;;  %v17035_v59 = vor.u32 %v5236_v29, %v5235_v6  ;;  %v17042_v12 = vrot.slane %v4907_v15, 1 }
 0x35d   :  { %v12854_v57 = vpack.c.bf16 %v4529_v16, %v4529_v16  ;;  %v4903_v16 = vshrl.u32 %v16912_v24, 16  ;;  %v5096_v2 = vsel %vm5016_vm15, %v16923_v58, %v17010_v52  ;;  %v13176_v26 = vadd.f32 %v16753_v45, %v16737_v62 }
 0x35e   :  { %v4533_v32 = vpop.f32.mrf.mxu1  ;;  %5322 = vrot.lane.b32.xlu1 %v5301_v44, %s14120_s27  ;;  %v5371_v6 = vsel %vm5335_vm5, %v16943_v31, %v17028_v20  ;;  %v17055_v58 = vsel %vm578_vm1, %v5435_v40, %v5437_v56  ;;  %v13179_v40 = vadd.f32 %v16784_v18, %v16764_v17 }
 0x35f   :  { %4721 = vst.msk [vmem:[#allocation3 + $0x7c] sm:$0xf] %vm1517_vm3, %v12854_v57  ;;  %v4534_v38 = vadd.f32 %v13170_v50, %v4533_v32  ;;  %v17031_v50 = vcombine.low %v4761_v8, %v17005_v41  ;;  %5187 = vrot.lane.b32.xlu0 %v5166_v23, %s14116_s23  ;;  %v17047_v32 = vpop.f32.mrf.mxu0  ;;  %v4905_v45 = vor.u32 %v4903_v16, %v16955_v63 }
 0x360   :  { %v13471_v3 = vpop.f32.mrf.mxu1 }
 0x361   :  { %v12855_v10 = vpack.c.bf16 %v4534_v38, %v4534_v38  ;;  %v5098_v29 = vshrl.u32 %v17031_v50, 16  ;;  %v5101_v38 = vshll.u32 %v17031_v50, 16  ;;  %v20625_v62 = vrot.slane %v17031_v50, 2  ;;  %v17066_v3 = vpop.f32.mrf.mxu0 }
 0x362   :  { %v4536_v57 = vpop.f32.mrf.mxu1  ;;  %5138 = vrot.lane.b32.xlu1 %v5096_v2, %s14118_s3  ;;  %v20627_v31 = vrot.slane %v17031_v50, 1  ;;  %v4910_v63 = vsel %vm4834_vm14, %v4905_v45, %v17042_v12  ;;  %v4763_v2 = vld [vmem:[#allocation3 + $0x54] sm:$0xf] }
 0x363   :  { %4722 = vst.msk [vmem:[#allocation3 + $0x80] sm:$0xf] %vm1517_vm3, %v12855_v10  ;;  %v4537_v8 = vadd.f32 %v13173_v39, %v4536_v57  ;;  %5410 = vrot.lane.b32.xlu0 %v5371_v6, %s14121_s28  ;;  %v4970_v39 = vrot.slane %v16994_v30, 1  ;;  %v5238_v10 = vsel %vm5198_vm2, %v16945_v9, %v17035_v59  ;;  %v5100_v16 = vrot.slane %v5098_v29, 2  ;;  %v17075_v6 = vpop.f32.mrf.mxu0 }
 0x364   :  { %v13472_v61 = vpop.f32.mrf.mxu1  ;;  %v5103_v57 = vrot.slane %v5101_v38, 3  ;;  %v17080_v17 = vsel %vm578_vm1, %v5437_v56, %v20625_v62  ;;  %v5303_v9 = vsel %vm4952_vm13, %v5300_v11, %v20627_v31  ;;  %v5372_v45 = vrot.slane %v5098_v29, 1  ;;  %v4767_v62 = vld [vmem:[#allocation3 + $0x58] sm:$0xf] }
 0x365   :  { %v12856_v15 = vpack.c.bf16 %v4537_v8, %v4537_v8  ;;  %20705 = vst [vmem:[#allocation17_spill] sm:$0xff] %v17080_v17  ;;  %v4971_v18 = vsel %vm4952_vm13, %v4968_v35, %v4970_v39  ;;  %v20630_v61 = vrot.slane %v17031_v50, 3 }
 0x366   :  { %v4541_v44 = vpop.f32.mrf.mxu1  ;;  %5270 = vrot.lane.b32.xlu1 %v5238_v10, %s14119_s26  ;;  %v17099_v35 = vor.u32 %v5103_v57, %v5100_v16  ;;  %v5373_v10 = vrot.slane %v5101_v38, 2 }
 0x367   :  { %4723 = vst.msk [vmem:[#allocation3 + $0x84] sm:$0xf] %vm1517_vm3, %v12856_v15  ;;  %v4542_v23 = vadd.f32 %v13176_v26, %v4541_v44  ;;  %4943 = vrot.lane.b32.xlu0 %v4910_v63, %s14117_s7  ;;  %v17094_v44 = vcombine.low %v17005_v41, %v4763_v2  ;;  %v5239_v63 = vrot.slane %v5098_v29, 3  ;;  %v17103_v41 = vpop.f32.mrf.mxu0  ;;  %v17113_v29 = vcombine.low %v4763_v2, %v4767_v62 }
 0x368   :  { %v13475_v8 = vpop.f32.mrf.mxu1  ;;  %v5105_v16 = vsel %vm5016_vm15, %v17010_v52, %v17099_v35  ;;  %v17119_v57 = vor.u32 %v5373_v10, %v5372_v45 }
 0x369   :  { %v12857_v26 = vpack.c.bf16 %v4542_v23, %v4542_v23  ;;  %20706 = vst [vmem:[#allocation11_spill] sm:$0xff] %v17094_v44  ;;  %v13182_v23 = vadd.f32 %v16825_v42, %v16807_v53  ;;  %v5240_v8 = vrot.slane %v5101_v38, 4  ;;  %v5168_v53 = vsel %vm577_vm0, %v5165_v22, %v20630_v61  ;;  %v17127_v62 = vpop.f32.mrf.mxu0 }
 0x36a   :  { %v4544_v15 = vpop.f32.mrf.mxu1  ;;  %4992 = vrot.lane.b32.xlu1 %v4971_v18, %s14115_s20  ;;  %v17105_v31 = vpop.permute.xlu0 %4976  ;;  %v4915_v42 = vshll.u32 %v17094_v44, 16  ;;  %v4972_v52 = vrot.slane %v17094_v44, 1  ;;  %v17134_v43 = vshrl.u32 %v17113_v29, 16  ;;  %v17144_v10 = vshll.u32 %v17113_v29, 16 }
 0x36b   :  { %4724 = vst.msk [vmem:[#allocation3 + $0x88] sm:$0xf] %vm1517_vm3, %v12857_v26  ;;  %v4545_v56 = vadd.f32 %v13179_v40, %v4544_v15  ;;  %5324 = vrot.lane.b32.xlu0 %v5303_v9, %s14120_s27  ;;  %v17121_v26 = vor.u32 %v5240_v8, %v5239_v63  ;;  %v13740_v9 = vld [vmem:[#allocation3 + $0x58] ss:$0 sps:$4 sm:$0x11]   ;;  %v4911_v15 = vshrl.u32 %v16994_v30, 16 }
 0x36c   :  { %v13476_v11 = vpop.f32.mrf.mxu1  ;;  %v4917_v45 = vrot.slane %v4915_v42, 1 }
 0x36d   :  { %v12858_v37 = vpack.c.bf16 %v4545_v56, %v4545_v56  ;;  %v5375_v56 = vsel %vm5335_vm5, %v17028_v20, %v17119_v57  ;;  %v4913_v8 = vor.u32 %v4911_v15, %v17042_v12  ;;  %v20635_v11 = vrot.slane %v17113_v29, 1 }
 0x36e   :  { %v4549_v40 = vpop.f32.mrf.mxu1  ;;  %5189 = vrot.lane.b32.xlu1 %v5168_v53, %s14116_s23  ;;  %v4928_v2 = vpop.permute.xlu0 %4927  ;;  %v13188_v20 = vadd.f32 %v16896_v51, %v16879_v33  ;;  %v4974_v33 = vrot.slane %v13740_v9, 1 }
 0x36f   :  { %4725 = vst.msk [vmem:[#allocation3 + $0x8c] sm:$0xf] %vm1517_vm3, %v12858_v37  ;;  %v4550_v38 = vadd.f32 %v13182_v23, %v4549_v40  ;;  %5140 = vrot.lane.b32.xlu0 %v5105_v16, %s14118_s3  ;;  %v17129_v37 = vpop.permute.xlu1 %5173  ;;  %v5242_v23 = vsel %vm5198_vm2, %v17035_v59, %v17121_v26  ;;  %v4919_v40 = vshrl.u32 %v17094_v44, 16  ;;  %v4973_v59 = vsel %vm4952_vm13, %v4970_v39, %v4972_v52  ;;  %v17157_v16 = vld [vmem:[#allocation3 + $0x5c] ss:$0 sps:$4 sm:$0x77]  }
 0x370   :  { %v13479_v18 = vpop.f32.mrf.mxu1  ;;  %v4918_v15 = vsel %vm4834_vm14, %v4913_v8, %v4917_v45  ;;  %v5449_v39 = vsel %vm5447_vm4, %v16445_v49, %v4928_v2  ;;  %v20707_v49 = vrot.slane %v17031_v50, 1  ;;  %v13191_v8 = vadd.f32 %v16927_v55, %v16905_v21 }
 0x371   :  { %v12859_v22 = vpack.c.bf16 %v4550_v38, %v4550_v38  ;;  %v4923_v38 = vshll.u32 %v13740_v9, 16  ;;  %v17159_v18 = vpop.f32.mrf.mxu0  ;;  %v4921_v51 = vor.u32 %v4919_v40, %v4917_v45  ;;  %v4770_v9 = vld [vmem:[#allocation3 + $0x5c] sm:$0xf]  ;;  %v20708_v40 = vrot.slane %v17113_v29, 3 }
 0x372   :  { %v4552_v0 = vpop.f32.mrf.mxu1  ;;  %5412 = vrot.lane.b32.xlu1 %v5375_v56, %s14121_s28  ;;  %v5112_v56 = vrot.slane %v17144_v10, 3  ;;  %v5305_v2 = vsel %vm4952_vm13, %v20707_v49, %v20635_v11  ;;  %v5119_v30 = vshll.u32 %v17157_v16, 16  ;;  %v5472_v49 = vsel %vm5470_vm7, %v5449_v39, %v17105_v31 }
 0x373   :  { %4726 = vst.msk [vmem:[#allocation3 + $0x90] sm:$0xf] %vm1517_vm3, %v12859_v22  ;;  %v4553_v63 = vadd.f32 %v13185_v25, %v4552_v0  ;;  %5272 = vrot.lane.b32.xlu0 %v5242_v23, %s14119_s26  ;;  %v5125_v12 = vpop.permute.xlu1 %5124  ;;  %v5109_v0 = vrot.slane %v17134_v43, 2  ;;  %v5376_v23 = vrot.slane %v17134_v43, 1  ;;  %v17171_v42 = vpop.f32.mrf.mxu0  ;;  %v4925_v44 = vrot.slane %v4923_v38, 1 }
 0x374   :  { %v13480_v53 = vpop.f32.mrf.mxu1  ;;  %v17161_v22 = vpop.permute.xlu0 %5256  ;;  %v4975_v21 = vsel %vm4952_vm13, %v4972_v52, %v4974_v33  ;;  %v12284_v5 = vcombine.low %v4770_v9, %v4770_v9  ;;  %v5243_v31 = vrot.slane %v17134_v43, 3  ;;  %v5244_v52 = vrot.slane %v17144_v10, 4 }
 0x375   :  { %v12860_v25 = vpack.c.bf16 %v4553_v63, %v4553_v63  ;;  %v5377_v63 = vrot.slane %v17144_v10, 2  ;;  %v4772_v53 = vld [vmem:[#allocation3 + $0x60] sm:$0xf]  ;;  %v17199_v38 = vor.u32 %v5112_v56, %v5109_v0  ;;  %v17203_v17 = vpop.f32.mrf.mxu0  ;;  %v4926_v0 = vsel %vm4834_vm14, %v4921_v51, %v4925_v44 }
 0x376   :  { %v4557_v61 = vpop.f32.mrf.mxu1  ;;  %4945 = vrot.lane.b32.xlu1 %v4918_v15, %s14117_s7  ;;  %v17196_v55 = vcombine.low %v4770_v9, %v4772_v53  ;;  %v5171_v39 = vrot.slane %v17157_v16, 3  ;;  %v5251_v51 = vshll.u32 %v12284_v5, 16 }
 0x377   :  { %4727 = vst.msk [vmem:[#allocation3 + $0x94] sm:$0xf] %vm1517_vm3, %v12860_v25  ;;  %4994 = vrot.lane.b32.xlu0 %v4973_v59, %s14115_s20  ;;  %v4558_v45 = vadd.f32 %v13188_v20, %v4557_v61  ;;  %v20709_v25 = vrot.slane %v17031_v50, 3  ;;  %v5116_v59 = vshrl.u32 %v17157_v16, 16  ;;  %v17191_v11 = vpop.permute.xlu1 %4929  ;;  %v5114_v44 = vsel %vm5016_vm15, %v17099_v35, %v17199_v38  ;;  %v5619_v35 = vld [vmem:[#allocation3 + $0x68] sm:$0xf] }
 0x378   :  { %v13483_v24 = vpop.f32.mrf.mxu1  ;;  %v17193_v61 = vpop.permute.xlu0 %4978  ;;  %v5381_v9 = vshrl.u32 %v17196_v55, 16  ;;  %v5248_v16 = vshrl.u32 %v12284_v5, 16  ;;  %v13197_v5 = vadd.f32 %v17016_v54, %v16997_v28  ;;  %v5253_v54 = vrot.slane %v5251_v51, 4 }
 0x379   :  { %v5170_v15 = vsel %vm577_vm0, %v20709_v25, %v20708_v40  ;;  %v12861_v20 = vpack.c.bf16 %v4558_v45, %v4558_v45  ;;  %v5495_v40 = vsel %vm5493_vm8, %v5472_v49, %v5125_v12  ;;  %v17201_v25 = vor.u32 %v5377_v63, %v5376_v23  ;;  %v13745_v63 = vld [vmem:[#allocation3 + $0x64] ss:$0 sps:$4 sm:$0x33]   ;;  %v17239_v49 = vld [vmem:[#allocation3 + $0x6c] sm:$0xf] }
 0x37a   :  { %v4560_v24 = vpop.f32.mrf.mxu1  ;;  %5326 = vrot.lane.b32.xlu1 %v5305_v2, %s14120_s27  ;;  %v13194_v12 = vadd.f32 %v16985_v13, %v16952_v47  ;;  %v17214_v56 = vrot.slane %v5116_v59, 2  ;;  %v17216_v23 = vrot.slane %v5119_v30, 3  ;;  %v5518_v43 = vsel %vm5516_vm9, %v5495_v40, %v17129_v37  ;;  %v17230_v45 = vld [vmem:[#allocation3 + $0x64] ss:$0 sps:$4 sm:$0x11]  }
 0x37b   :  { %5191 = vrot.lane.b32.xlu0 %v5170_v15, %s14116_s23  ;;  %4728 = vst.msk [vmem:[#allocation3 + $0x98] sm:$0xf] %vm1517_vm3, %v12861_v20  ;;  %v4561_v33 = vadd.f32 %v13191_v8, %v4560_v24  ;;  %v5311_v10 = vpop.permute.xlu1 %5310  ;;  %v5384_v47 = vshll.u32 %v17196_v55, 16  ;;  %v5379_v30 = vsel %vm5335_vm5, %v17119_v57, %v17201_v25  ;;  %v17232_v8 = vpop.f32.mrf.mxu0  ;;  %v17236_v15 = vor.u32 %v5244_v52, %v5243_v31 }
 0x37c   :  { %v13484_v53 = vpop.f32.mrf.mxu1  ;;  %v5306_v59 = vrot.slane %v17196_v55, 1  ;;  %v5541_v20 = vsel %vm5539_vm11, %v5518_v43, %v17161_v22  ;;  %v5390_v40 = vshrl.u32 %v13745_v63, 16  ;;  %v5393_v24 = vshll.u32 %v13745_v63, 16  ;;  %v5621_v63 = vld [vmem:[#allocation3 + $0x70] sm:$0xf] }
 0x37d   :  { %v17220_v2 = vpop.permute.xlu0 %5175  ;;  %v12862_v13 = vpack.c.bf16 %v4561_v33, %v4561_v33  ;;  %v5564_v52 = vsel %vm5562_vm12, %v5541_v20, %v5311_v10  ;;  %v5383_v53 = vrot.slane %v5381_v9, 1  ;;  %v5250_v28 = vrot.slane %v5248_v16, 3  ;;  %v5643_v10 = vld [vmem:[#allocation3 + $0x6c] sm:$0xc] }
 0x37e   :  { %v4565_v37 = vpop.f32.mrf.mxu1  ;;  %4996 = vrot.lane.b32.xlu1 %v4975_v21, %s14115_s20  ;;  %v5122_v21 = vor.u32 %v17216_v23, %v17214_v56  ;;  %v17253_v22 = vcombine.low %v5619_v35, %v17239_v49  ;;  %v17255_v56 = vpop.f32.mrf.mxu0  ;;  %v5308_v23 = vrot.slane %v17230_v45, 1  ;;  %v20710_v16 = vrot.slane %v16588_v19, 2 }
 0x37f   :  { %4947 = vrot.lane.b32.xlu0 %v4926_v0, %s14117_s7  ;;  %4729 = vst.msk [vmem:[#allocation3 + $0x9c] sm:$0xf] %vm1517_vm3, %v12862_v13  ;;  %v4566_v57 = vadd.f32 %v13194_v12, %v4565_v37  ;;  %v17249_v33 = vpop.permute.xlu1 %5126  ;;  %v5386_v13 = vrot.slane %v5384_v47, 2  ;;  %v13200_v47 = vadd.f32 %v17066_v3, %v17047_v32  ;;  %v20711_v51 = vrot.slane %v16534_v7, 2 }
 0x380   :  { %v13487_v31 = vpop.f32.mrf.mxu1  ;;  %v5392_v45 = vrot.slane %v5390_v40, 1  ;;  %v5246_v7 = vsel %vm5198_vm2, %v17121_v26, %v17236_v15  ;;  %v20713_v19 = vrot.slane %v17113_v29, 1  ;;  %v5622_v40 = vld [vmem:[#allocation3 + $0x74] sm:$0xf]  ;;  %v17292_v26 = vsel %vm4952_vm13, %v5306_v59, %v5308_v23 }
 0x381   :  { %v5399_v0 = vpop.permute.xlu0 %5398  ;;  %v12863_v12 = vpack.c.bf16 %v4566_v57, %v4566_v57  ;;  %v5428_v35 = vsel %vm578_vm1, %v20711_v51, %v20710_v16  ;;  %v5395_v57 = vrot.slane %v5393_v24, 2  ;;  %v17271_v31 = vpop.f32.mrf.mxu0  ;;  %v5646_v24 = vld [vmem:[#allocation3 + $0x6c] sm:$0x8]  ;;  %v17287_v16 = vld [vmem:[#allocation3 + $0x78] sm:$0xf]  ;;  %v12303_v51 = vcombine.low %v5643_v10, %v5621_v63 }
 0x382   :  { %v5587_v37 = vsel %vm5585_vm10, %v5564_v52, %v5399_v0  ;;  %v4568_v43 = vpop.f32.mrf.mxu1  ;;  %5142 = vrot.lane.b32.xlu1 %v5114_v44, %s14118_s3  ;;  %v20712_v44 = vrot.slane %v17113_v29, 3  ;;  %v5307_v3 = vsel %vm4952_vm13, %v20713_v19, %v5306_v59  ;;  %v5123_v0 = vsel %vm5016_vm15, %v17199_v38, %v5122_v21  ;;  %v20714_v21 = vld [vmem:[#allocation16_spill] sm:$0xff] }
 0x383   :  { %5414 = vrot.lane.b32.xlu0 %v5379_v30, %s14121_s28  ;;  %4730 = vst.msk [vmem:[#allocation3 + $0xa0] sm:$0xf] %vm1517_vm3, %v12863_v12  ;;  %v4569_v9 = vadd.f32 %v13197_v5, %v4568_v43  ;;  %6660 = vmatmul.mubr.bf16.vlgmr.msra.gmra.mxu0 %v5587_v37  ;;  %v17274_v5 = vpop.permute.xlu1 %5258  ;;  %v5254_v12 = vor.u32 %v5253_v54, %v5250_v28  ;;  %v5714_v37 = vshll.u32 %v17253_v22, 16  ;;  %v5642_v43 = vld [vmem:[#allocation3 + $0x68] sm:$0xe] }
 0x384   :  { %v5172_v30 = vsel %vm577_vm0, %v20712_v44, %v5171_v39  ;;  %v13488_v20 = vpop.f32.mrf.mxu1  ;;  %12333 = vmatprep.mubr.msk.bf16.mxu0 %vm5447_vm4, %v5428_v35  ;;  %v5387_v39 = vor.u32 %v5386_v13, %v5383_v53  ;;  %v13203_v38 = vadd.f32 %v17103_v41, %v17075_v6  ;;  %v5451_v13 = vsel %vm5447_vm4, %v20714_v21, %v17191_v11  ;;  %v17304_v44 = vpop.f32.mrf.mxu0 }
 0x385   :  { %v17276_v32 = vpop.permute.xlu0 %4931  ;;  %v12864_v52 = vpack.c.bf16 %v4569_v9, %v4569_v9  ;;  %v5396_v28 = vor.u32 %v5395_v57, %v5392_v45  ;;  %v17300_v54 = vcombine.low %v5621_v63, %v5622_v40  ;;  %v17302_v10 = vcombine.low %v5646_v24, %v5621_v63 }
 0x386   :  { %v4573_v35 = vpop.f32.mrf.mxu1  ;;  %5274 = vrot.lane.b32.xlu1 %v5246_v7, %s14119_s26  ;;  %v12302_v6 = vcombine.low %v5642_v43, %v17239_v49  ;;  %v17312_v41 = vcombine.low %v5622_v40, %v17287_v16  ;;  %v5255_v45 = vsel %vm5198_vm2, %v17236_v15, %v5254_v12  ;;  %v5712_v63 = vshrl.u32 %v17253_v22, 16 }
 0x387   :  { %5328 = vrot.lane.b32.xlu0 %v5307_v3, %s14120_s27  ;;  %4731 = vst.msk [vmem:[#allocation3 + $0xa4] sm:$0xf] %vm1517_vm3, %v12864_v52  ;;  %v4574_v53 = vadd.f32 %v13200_v47, %v4573_v35  ;;  %v17306_v59 = vpop.permute.xlu1 %4980  ;;  %v5388_v47 = vsel %vm5335_vm5, %v17201_v25, %v5387_v39  ;;  %v5716_v57 = vrot.slane %v5714_v37, 1  ;;  %v5892_v20 = vshrl.u32 %v12303_v51, 16 }
 0x388   :  { %v13491_v9 = vpop.f32.mrf.mxu1  ;;  %v5474_v19 = vsel %vm5470_vm7, %v5451_v13, %v17193_v61  ;;  %v5895_v25 = vshll.u32 %v12303_v51, 16  ;;  %v13206_v3 = vadd.f32 %v17159_v18, %v17127_v62  ;;  %v5397_v40 = vsel %vm5335_vm5, %v5387_v39, %v5396_v28  ;;  %v5624_v13 = vld [vmem:[#allocation3 + $0x7c] sm:$0xf] }
 0x389   :  { %v5313_v23 = vpop.permute.xlu0 %5312  ;;  %v12865_v11 = vpack.c.bf16 %v4574_v53, %v4574_v53  ;;  %v5497_v15 = vsel %vm5493_vm8, %v5474_v19, %v17249_v33  ;;  %v5719_v24 = vshll.u32 %v17300_v54, 16  ;;  %v6072_v61 = vshrl.u32 %v17302_v10, 16 }
 0x38a   :  { %v4576_v7 = vpop.f32.mrf.mxu1  ;;  %5193 = vrot.lane.b32.xlu1 %v5172_v30, %s14116_s23  ;;  %v17329_v30 = vpop.f32.mrf.mxu0  ;;  %v5828_v37 = vrot.slane %v12302_v6, 1  ;;  %v5900_v43 = vshrl.u32 %v17312_v41, 16  ;;  %v5903_v62 = vshll.u32 %v17312_v41, 16  ;;  %v5717_v33 = vor.u32 %v5716_v57, %v5712_v63 }
 0x38b   :  { %5144 = vrot.lane.b32.xlu0 %v5123_v0, %s14118_s3  ;;  %4732 = vst.msk [vmem:[#allocation3 + $0xa8] sm:$0xf] %vm1517_vm3, %v12865_v11  ;;  %v4577_v49 = vadd.f32 %v13203_v38, %v4576_v7  ;;  %v17337_v51 = vrot.slane %v5892_v20, 2  ;;  %v6023_v39 = vrot.slane %v17302_v10, 3  ;;  %v6075_v35 = vshll.u32 %v17302_v10, 16 }
 0x38c   :  { %v13492_v52 = vpop.f32.mrf.mxu1  ;;  %v17331_v0 = vpop.permute.xlu1 %5177  ;;  %v5520_v38 = vsel %vm5516_vm9, %v5497_v15, %v17220_v2  ;;  %v17345_v21 = vrot.slane %v5895_v25, 3  ;;  %v13209_v9 = vadd.f32 %v17203_v17, %v17171_v42  ;;  %v5721_v11 = vrot.slane %v5719_v24, 1 }
 0x38d   :  { %v17333_v12 = vpop.permute.xlu0 %5128  ;;  %v12866_v18 = vpack.c.bf16 %v4577_v49, %v4577_v49  ;;  %v5543_v6 = vsel %vm5539_vm11, %v5520_v38, %v17274_v5  ;;  %v5829_v63 = vrot.slane %v17300_v54, 1  ;;  %v17353_v2 = vrot.slane %v6072_v61, 3  ;;  %v17355_v57 = vpop.f32.mrf.mxu0  ;;  %v5648_v49 = vld [vmem:[#allocation3 + $0x74] sm:$0xe]  ;;  %v17374_v52 = vld [vmem:[#allocation3 + $0x80] sm:$0xf] }
 0x38e   :  { %v4581_v53 = vpop.f32.mrf.mxu1  ;;  %5416 = vrot.lane.b32.xlu1 %v5388_v47, %s14121_s28  ;;  %v5902_v19 = vrot.slane %v5900_v43, 2  ;;  %v5905_v25 = vrot.slane %v5903_v62, 3  ;;  %v17361_v5 = vrot.slane %v6075_v35, 4  ;;  %v20638_v24 = vrot.slane %v17113_v29, 2 }
 0x38f   :  { %5276 = vrot.lane.b32.xlu0 %v5255_v45, %s14119_s26  ;;  %4733 = vst.msk [vmem:[#allocation3 + $0xac] sm:$0xf] %vm1517_vm3, %v12866_v18  ;;  %v4582_v28 = vadd.f32 %v13206_v3, %v4581_v53  ;;  %v5566_v45 = vsel %vm5562_vm12, %v5543_v6, %v5313_v23  ;;  %v17364_v3 = vcombine.low %v17287_v16, %v5624_v13  ;;  %v17367_v61 = vpop.f32.mrf.mxu0  ;;  %v5723_v18 = vshrl.u32 %v17300_v54, 16 }
 0x390   :  { %v13495_v47 = vpop.f32.mrf.mxu1  ;;  %v5401_v20 = vpop.permute.xlu1 %5400  ;;  %v5898_v23 = vor.u32 %v17345_v21, %v17337_v51  ;;  %v13212_v53 = vadd.f32 %v17255_v56, %v17232_v8  ;;  %v5722_v38 = vsel %vm4834_vm14, %v5717_v33, %v5721_v11  ;;  %v17386_v51 = vcombine.low %v5648_v49, %v17287_v16 }
 0x391   :  { %v17358_v7 = vpop.permute.xlu0 %5260  ;;  %v12867_v17 = vpack.c.bf16 %v4582_v28, %v4582_v28  ;;  %v5590_v42 = vsel %vm5585_vm10, %v5566_v45, %v5401_v20  ;;  %v17394_v8 = vor.u32 %v5905_v25, %v5902_v19  ;;  %v6079_v56 = vrot.slane %v5900_v43, 3  ;;  %v13220_v43 = vpop.f32.mrf.mxu0 }
 0x392   :  { %v4584_v15 = vpop.f32.mrf.mxu1  ;;  %5330 = vrot.lane.b32.xlu1 %v17292_v26, %s14120_s27  ;;  %6668 = vmatmul.mubr.bf16.gmra.mxu0 %v5590_v42  ;;  %v5830_v26 = vsel %vm4952_vm13, %v5828_v37, %v5829_v63  ;;  %v6080_v33 = vrot.slane %v5903_v62, 4  ;;  %v5453_v37 = vsel %vm5447_vm4, %v16518_v14, %v17276_v32  ;;  %v5727_v16 = vshll.u32 %v17364_v3, 16 }
 0x393   :  { %5418 = vrot.lane.b32.xlu0 %v5397_v40, %s14121_s28  ;;  %4734 = vst.msk [vmem:[#allocation3 + $0xb0] sm:$0xf] %vm1517_vm3, %v12867_v17  ;;  %v4585_v35 = vadd.f32 %v13209_v9, %v4584_v15  ;;  %v6024_v40 = vrot.slane %v17312_v41, 3  ;;  %12334 = vmatprep.mubr.msk.bf16.mxu0 %vm5447_vm4, %v16965_v48  ;;  %v17401_v47 = vcombine.low %v5624_v13, %v17374_v52  ;;  %v20715_v48 = vrot.slane %v17031_v50, 2 }
 0x394   :  { %v13496_v21 = vpop.f32.mrf.mxu1  ;;  %v17390_v28 = vpop.permute.xlu1 %4933  ;;  %v5476_v62 = vsel %vm5470_vm7, %v5453_v37, %v17306_v59  ;;  %v13215_v32 = vadd.f32 %v17304_v44, %v17271_v31  ;;  %v6078_v13 = vor.u32 %v17361_v5, %v17353_v2  ;;  %v17428_v17 = vor.u32 %v6080_v33, %v6079_v56 }
 0x395   :  { %v17392_v9 = vpop.permute.xlu0 %4982  ;;  %v12868_v6 = vpack.c.bf16 %v4585_v35, %v4585_v35  ;;  %v17408_v20 = vsel %vm578_vm1, %v20715_v48, %v20638_v24  ;;  %v5499_v50 = vsel %vm5493_vm8, %v5476_v62, %v17333_v12  ;;  %v6025_v59 = vsel %vm577_vm0, %v6023_v39, %v6024_v40  ;;  %v13222_v35 = vpop.f32.mrf.mxu0 }
 0x396   :  { %v4589_v45 = vpop.f32.mrf.mxu1  ;;  %5803 = vrot.lane.b32.xlu1 %v5722_v38, %s14117_s7  ;;  %v5725_v42 = vor.u32 %v5723_v18, %v5721_v11  ;;  %v5907_v44 = vsel %vm5016_vm15, %v5898_v23, %v17394_v8  ;;  %v17432_v12 = vrot.slane %v5727_v16, 1  ;;  %v17435_v2 = vshrl.u32 %v17401_v47, 16 }
 0x397   :  { %5851 = vrot.lane.b32.xlu0 %v5830_v26, %s14115_s20  ;;  %4735 = vst.msk [vmem:[#allocation3 + $0xb4] sm:$0xf] %vm1517_vm3, %v12868_v6  ;;  %v4590_v14 = vadd.f32 %v13212_v53, %v4589_v45  ;;  %v17438_v5 = vshll.u32 %v17401_v47, 16  ;;  %v5522_v10 = vsel %vm5516_vm9, %v5499_v50, %v17331_v0  ;;  %v6159_v39 = vrot.slane %v17386_v51, 1  ;;  %v13223_v62 = vpop.f32.mrf.mxu0 }
 0x398   :  { %v13499_v19 = vpop.f32.mrf.mxu1  ;;  %v5315_v25 = vpop.permute.xlu1 %5314  ;;  %v13218_v23 = vadd.f32 %v17355_v57, %v17329_v30  ;;  %v5545_v18 = vsel %vm5539_vm11, %v5522_v10, %v17358_v7  ;;  %v5831_v53 = vrot.slane %v17364_v3, 1  ;;  %v6208_v38 = vshrl.u32 %v17386_v51, 16  ;;  %v5626_v57 = vld [vmem:[#allocation3 + $0x84] sm:$0xf] }
 0x399   :  { %v17421_v49 = vpop.permute.xlu0 %5179  ;;  %v12869_v31 = vpack.c.bf16 %v4590_v14, %v4590_v14  ;;  %v6211_v0 = vshll.u32 %v17386_v51, 16  ;;  %v5568_v21 = vsel %vm5562_vm12, %v5545_v18, %v5315_v25  ;;  %v6082_v6 = vsel %vm5198_vm2, %v6078_v13, %v17428_v17 }
 0x39a   :  { %v4592_v15 = vpop.f32.mrf.mxu1  ;;  %5998 = vrot.lane.b32.xlu1 %v5907_v44, %s14118_s3  ;;  %v6160_v30 = vrot.slane %v17401_v47, 1  ;;  %v5730_v16 = vsel %vm4834_vm14, %v5725_v42, %v17432_v12  ;;  %v5911_v51 = vrot.slane %v17435_v2, 2  ;;  %v5914_v45 = vrot.slane %v17438_v5, 3  ;;  %v13225_v42 = vpop.f32.mrf.mxu0 }
 0x39b   :  { %6046 = vrot.lane.b32.xlu0 %v6025_v59, %s14116_s23  ;;  %4736 = vst.msk [vmem:[#allocation3 + $0xb8] sm:$0xf] %vm1517_vm3, %v12869_v31  ;;  %v4593_v11 = vadd.f32 %v13215_v32, %v4592_v15  ;;  %v13221_v32 = vadd.f32 %v13220_v43, %v17367_v61  ;;  %v5832_v50 = vsel %vm4952_vm13, %v5829_v63, %v5831_v53  ;;  %v6210_v13 = vrot.slane %v6208_v38, 1 }
 0x39c   :  { %v13500_v26 = vpop.f32.mrf.mxu1  ;;  %v17454_v56 = vpop.permute.xlu1 %5130  ;;  %v6213_v19 = vrot.slane %v6211_v0, 2  ;;  %v17474_v25 = vcombine.low %v17374_v52, %v5626_v57  ;;  %v6161_v61 = vsel %vm4952_vm13, %v6159_v39, %v6160_v30  ;;  %v6026_v43 = vrot.slane %v17401_v47, 3 }
 0x39d   :  { %v5403_v33 = vpop.permute.xlu0 %5402  ;;  %v12870_v37 = vpack.c.bf16 %v4593_v11, %v4593_v11  ;;  %v6215_v63 = vrot.slane %v17435_v2, 1  ;;  %v17485_v10 = vor.u32 %v5914_v45, %v5911_v51  ;;  %v6216_v52 = vrot.slane %v17438_v5, 2 }
 0x39e   :  { %v5593_v7 = vsel %vm5585_vm10, %v5568_v21, %v5403_v33  ;;  %v4597_v48 = vpop.f32.mrf.mxu1  ;;  %6128 = vrot.lane.b32.xlu1 %v6082_v6, %s14119_s26  ;;  %v6083_v11 = vrot.slane %v17435_v2, 3  ;;  %v13224_v38 = vadd.f32 %v13223_v62, %v13222_v35  ;;  %v5455_v0 = vsel %vm5447_vm4, %v16570_v27, %v17390_v28 }
 0x39f   :  { %5805 = vrot.lane.b32.xlu0 %v5730_v16, %s14117_s7  ;;  %4737 = vst.msk [vmem:[#allocation3 + $0xbc] sm:$0xf] %vm1517_vm3, %v12870_v37  ;;  %v4598_v14 = vadd.f32 %v13218_v23, %v4597_v48  ;;  %6676 = vmatmul.mubr.bf16.gmra.mxu0 %v5593_v7  ;;  %v5627_v23 = vld [vmem:[#allocation3 + $0x88] sm:$0xf]  ;;  %v5731_v26 = vshrl.u32 %v17364_v3, 16  ;;  %v5735_v2 = vshll.u32 %v17474_v25, 16  ;;  %v6214_v37 = vor.u32 %v6213_v19, %v6210_v13 }
 0x3a0   :  { %v13503_v59 = vpop.f32.mrf.mxu1  ;;  %12335 = vmatprep.mubr.msk.bf16.mxu0 %vm5447_vm4, %v16991_v60  ;;  %v5263_v31 = vpop.permute.xlu1 %5262  ;;  %v6084_v60 = vrot.slane %v17438_v5, 4  ;;  %v17500_v7 = vcombine.low %v5626_v57, %v5627_v23  ;;  %v6027_v35 = vsel %vm577_vm0, %v6024_v40, %v6026_v43  ;;  %v5916_v27 = vsel %vm5016_vm15, %v17394_v8, %v17485_v10 }
 0x3a1   :  { %v17478_v44 = vpop.permute.xlu0 %4935  ;;  %v12871_v15 = vpack.c.bf16 %v4598_v14, %v4598_v14  ;;  %v13226_v5 = vpop.f32.mrf.mxu0  ;;  %v17510_v28 = vor.u32 %v6216_v52, %v6215_v63  ;;  %v5478_v57 = vsel %vm5470_vm7, %v5455_v0, %v17392_v9  ;;  %v5733_v8 = vor.u32 %v5731_v26, %v17432_v12 }
 0x3a2   :  { %v4600_v18 = vpop.f32.mrf.mxu1  ;;  %5853 = vrot.lane.b32.xlu1 %v5832_v50, %s14115_s20  ;;  %v17512_v51 = vor.u32 %v6084_v60, %v6083_v11  ;;  %v13227_v40 = vadd.f32 %v13226_v5, %v13225_v42  ;;  %v5501_v48 = vsel %vm5493_vm8, %v5478_v57, %v17454_v56  ;;  %v5737_v62 = vrot.slane %v5735_v2, 1 }
 0x3a3   :  { %6182 = vrot.lane.b32.xlu0 %v6161_v61, %s14120_s27  ;;  %4738 = vst.msk [vmem:[#allocation3 + $0xc0] sm:$0xf] %vm1517_vm3, %v12871_v15  ;;  %v4601_v39 = vadd.f32 %v13221_v32, %v4600_v18  ;;  %v5833_v14 = vrot.slane %v17474_v25, 1  ;;  %v5918_v9 = vshrl.u32 %v17500_v7, 16  ;;  %v6218_v59 = vsel %vm5335_vm5, %v6214_v37, %v17510_v28  ;;  %v5628_v61 = vld [vmem:[#allocation3 + $0x8c] sm:$0xf] }
 0x3a4   :  { %v13504_v21 = vpop.f32.mrf.mxu1  ;;  %v17498_v33 = vpop.permute.xlu1 %4984  ;;  %v6086_v42 = vsel %vm5198_vm2, %v17428_v17, %v17512_v51  ;;  %v5921_v56 = vshll.u32 %v17500_v7, 16  ;;  %v5524_v63 = vsel %vm5516_vm9, %v5501_v48, %v17421_v49  ;;  %v6162_v15 = vrot.slane %v17500_v7, 1 }
 0x3a5   :  { %v5317_v6 = vpop.permute.xlu0 %5316  ;;  %v12872_v16 = vpack.c.bf16 %v4601_v39, %v4601_v39  ;;  %v5547_v11 = vsel %vm5539_vm11, %v5524_v63, %v5263_v31  ;;  %v5738_v17 = vsel %vm4834_vm14, %v5733_v8, %v5737_v62  ;;  %v5834_v60 = vsel %vm4952_vm13, %v5831_v53, %v5833_v14  ;;  %v5629_v53 = vld [vmem:[#allocation3 + $0x90] sm:$0xf] }
 0x3a6   :  { %v4605_v45 = vpop.f32.mrf.mxu1  ;;  %6048 = vrot.lane.b32.xlu1 %v6027_v35, %s14116_s23  ;;  %v6028_v49 = vrot.slane %v17500_v7, 3  ;;  %v5570_v39 = vsel %vm5562_vm12, %v5547_v11, %v5317_v6  ;;  %v5920_v26 = vrot.slane %v5918_v9, 2  ;;  %v17545_v2 = vcombine.low %v5627_v23, %v5628_v61 }
 0x3a7   :  { %6000 = vrot.lane.b32.xlu0 %v5916_v27, %s14118_s3  ;;  %4739 = vst.msk [vmem:[#allocation3 + $0xc4] sm:$0xf] %vm1517_vm3, %v12872_v16  ;;  %v4606_v41 = vadd.f32 %v13224_v38, %v4605_v45  ;;  %v5923_v5 = vrot.slane %v5921_v56, 3  ;;  %v6219_v37 = vrot.slane %v5918_v9, 1  ;;  %v6220_v16 = vrot.slane %v5921_v56, 2 }
 0x3a8   :  { %v13507_v32 = vpop.f32.mrf.mxu1  ;;  %v5182_v50 = vpop.permute.xlu1 %5181  ;;  %v6087_v6 = vrot.slane %v5918_v9, 3  ;;  %v6088_v35 = vrot.slane %v5921_v56, 4  ;;  %v6163_v45 = vsel %vm4952_vm13, %v6160_v30, %v6162_v15  ;;  %v6029_v57 = vsel %vm577_vm0, %v6026_v43, %v6028_v49 }
 0x3a9   :  { %v5133_v13 = vpop.permute.xlu0 %5132  ;;  %v12873_v19 = vpack.c.bf16 %v4606_v41, %v4606_v41  ;;  %v5739_v41 = vshrl.u32 %v17474_v25, 16  ;;  %v17570_v48 = vor.u32 %v5923_v5, %v5920_v26  ;;  %v17572_v8 = vor.u32 %v6220_v16, %v6219_v37  ;;  %v5631_v26 = vld [vmem:[#allocation3 + $0x98] sm:$0xf] }
 0x3aa   :  { %v4608_v12 = vpop.f32.mrf.mxu1  ;;  %6269 = vrot.lane.b32.xlu1 %v6218_v59, %s14121_s28  ;;  %v17574_v32 = vcombine.low %v5628_v61, %v5629_v53  ;;  %v17581_v9 = vor.u32 %v6088_v35, %v6087_v6 }
 0x3ab   :  { %6130 = vrot.lane.b32.xlu0 %v6086_v42, %s14119_s26  ;;  %4740 = vst.msk [vmem:[#allocation3 + $0xc8] sm:$0xf] %vm1517_vm3, %v12873_v19  ;;  %v4609_v52 = vadd.f32 %v13227_v40, %v4608_v12  ;;  %v5743_v40 = vshll.u32 %v17545_v2, 16  ;;  %v5925_v42 = vsel %vm5016_vm15, %v17485_v10, %v17570_v48 }
 0x3ac   :  { %v13508_v18 = vpop.f32.mrf.mxu1  ;;  %v5405_v38 = vpop.permute.xlu1 %5404  ;;  %v5927_v56 = vshrl.u32 %v17574_v32, 16  ;;  %v5930_v61 = vshll.u32 %v17574_v32, 16  ;;  %v6090_v10 = vsel %vm5198_vm2, %v17512_v51, %v17581_v9  ;;  %v6030_v37 = vrot.slane %v17574_v32, 3 }
 0x3ad   :  { %v5265_v0 = vpop.permute.xlu0 %5264  ;;  %v12874_v21 = vpack.c.bf16 %v4609_v52, %v4609_v52  ;;  %v5596_v31 = vsel %vm5585_vm10, %v5570_v39, %v5405_v38 }
 0x3ae   :  { %5807 = vrot.lane.b32.xlu1 %v5738_v17, %s14117_s7  ;;  %6684 = vmatmul.mubr.bf16.gmra.mxu0 %v5596_v31  ;;  %v5835_v17 = vrot.slane %v17545_v2, 1  ;;  %v5929_v18 = vrot.slane %v5927_v56, 2  ;;  %v5932_v39 = vrot.slane %v5930_v61, 3  ;;  %v6223_v51 = vrot.slane %v5927_v56, 1 }
 0x3af   :  { %5855 = vrot.lane.b32.xlu0 %v5834_v60, %s14115_s20  ;;  %4741 = vst.msk [vmem:[#allocation3 + $0xcc] sm:$0xf] %vm1517_vm3, %v12874_v21  ;;  %12336 = vmatprep.mubr.msk.bf16.mxu0 %vm5447_vm4, %v17000_v4  ;;  %v5457_v4 = vsel %vm5447_vm4, %v16638_v36, %v17478_v44  ;;  %v5741_v36 = vor.u32 %v5739_v41, %v5737_v62  ;;  %v5745_v44 = vrot.slane %v5743_v40, 1  ;;  %v5630_v62 = vld [vmem:[#allocation3 + $0x94] sm:$0xf]  ;;  %v6091_v16 = vrot.slane %v5927_v56, 3 }
 0x3b0   :  { %v4938_v23 = vpop.permute.xlu1 %4937  ;;  %v5480_v30 = vsel %vm5470_vm7, %v5457_v4, %v17498_v33  ;;  %v6222_v33 = vsel %vm5335_vm5, %v17510_v28, %v17572_v8  ;;  %v17605_v38 = vcombine.low %v5629_v53, %v5630_v62  ;;  %v5836_v5 = vsel %vm4952_vm13, %v5833_v14, %v5835_v17  ;;  %v17626_v41 = vld [vmem:[#allocation3 + $0xa0] sm:$0xf]  ;;  %v17656_v56 = vld [vmem:[#allocation3 + $0xb4] sm:$0xf] }
 0x3b1   :  { %v17553_v27 = vpop.permute.xlu0 %4986  ;;  %v5503_v43 = vsel %vm5493_vm8, %v5480_v30, %v5133_v13  ;;  %v5746_v11 = vsel %vm4834_vm14, %v5741_v36, %v5745_v44  ;;  %v6092_v53 = vrot.slane %v5930_v61, 4  ;;  %v17622_v35 = vor.u32 %v5932_v39, %v5929_v18  ;;  %v17638_v30 = vld [vmem:[#allocation3 + $0xa8] sm:$0xf] }
 0x3b2   :  { %6184 = vrot.lane.b32.xlu1 %v6163_v45, %s14120_s27  ;;  %v5526_v13 = vsel %vm5516_vm9, %v5503_v43, %v5182_v50  ;;  %v6164_v50 = vrot.slane %v17574_v32, 1  ;;  %v5751_v45 = vshll.u32 %v17605_v38, 16  ;;  %v17630_v14 = vcombine.low %v5630_v62, %v5631_v26  ;;  %v17640_v43 = vld [vmem:[#allocation3 + $0xac] sm:$0xf] }
 0x3b3   :  { %6050 = vrot.lane.b32.xlu0 %v6029_v57, %s14116_s23  ;;  %v5549_v12 = vsel %vm5539_vm11, %v5526_v13, %v5265_v0  ;;  %v6224_v0 = vrot.slane %v5930_v61, 2  ;;  %v5632_v57 = vld [vmem:[#allocation3 + $0x9c] sm:$0xf]  ;;  %v5459_v40 = vsel %vm5447_vm4, %v16701_v34, %v4938_v23  ;;  %v17654_v23 = vld [vmem:[#allocation3 + $0xb0] sm:$0xf]  ;;  %v5934_v13 = vsel %vm5016_vm15, %v17570_v48, %v17622_v35 }
 0x3b4   :  { %v5319_v19 = vpop.permute.xlu1 %5318  ;;  %v6165_v6 = vsel %vm4952_vm13, %v6162_v15, %v6164_v50  ;;  %v17636_v15 = vld [vmem:[#allocation3 + $0xa4] sm:$0xf]  ;;  %v17652_v34 = vcombine.low %v5632_v57, %v17626_v41  ;;  %v17658_v61 = vld [vmem:[#allocation3 + $0xb8] sm:$0xf]  ;;  %vm7357_vm3 = vsmask.f32 1280 }
 0x3b5   :  { %v17583_v59 = vpop.permute.xlu0 %5183  ;;  %v5572_v63 = vsel %vm5562_vm12, %v5549_v12, %v5319_v19  ;;  %v17634_v4 = vor.u32 %v6224_v0, %v6223_v51  ;;  %v17663_v12 = vrot.slane %v5751_v45, 1  ;;  %v5939_v51 = vshll.u32 %v17630_v14, 16 }
 0x3b6   :  { %6002 = vrot.lane.b32.xlu1 %v5925_v42, %s14118_s3  ;;  %v6031_v42 = vsel %vm577_vm0, %v6028_v49, %v6030_v37  ;;  %v5837_v49 = vrot.slane %v17605_v38, 1 }
 0x3b7   :  { %6271 = vrot.lane.b32.xlu0 %v6222_v33, %s14121_s28  ;;  %v17649_v33 = vor.u32 %v6092_v53, %v6091_v16  ;;  %v6032_v16 = vrot.slane %v17630_v14, 3  ;;  %v20637_v53 = vrot.slane %v17630_v14, 2 }
 0x3b8   :  { %v5135_v28 = vpop.permute.xlu1 %5134 }
 0x3b9   :  { %v5407_v52 = vpop.permute.xlu0 %5406  ;;  %v6094_v39 = vsel %vm5198_vm2, %v17581_v9, %v17649_v33 }
 0x3ba   :  { %v5599_v60 = vsel %vm5585_vm10, %v5572_v63, %v5407_v52  ;;  %6132 = vrot.lane.b32.xlu1 %v6090_v10, %s14119_s26  ;;  %v5482_v10 = vsel %vm5470_vm7, %v5459_v40, %v17553_v27  ;;  %v17671_v63 = vshrl.u32 %v17630_v14, 16  ;;  %v17675_v52 = vcombine.low %v17636_v15, %v17638_v30 }
 0x3bb   :  { %5809 = vrot.lane.b32.xlu0 %v5746_v11, %s14117_s7  ;;  %6692 = vmatmul.mubr.bf16.gmra.mxu0 %v5599_v60  ;;  %v5505_v48 = vsel %vm5493_vm8, %v5482_v10, %v5135_v28  ;;  %v17683_v27 = vcombine.low %v17640_v43, %v17654_v23  ;;  %v17687_v11 = vcombine.low %v17656_v56, %v17658_v61  ;;  %v6166_v28 = vrot.slane %v17630_v14, 1 }
 0x3bc   :  { %12337 = vmatprep.mubr.msk.bf16.mxu0 %vm5447_vm4, %v17008_v46  ;;  %v5267_v21 = vpop.permute.xlu1 %5266  ;;  %v5747_v46 = vshrl.u32 %v17545_v2, 16  ;;  %v5528_v9 = vsel %vm5516_vm9, %v5505_v48, %v17583_v59  ;;  %v6305_v45 = vrot.slane %v17675_v52, 2  ;;  %v5941_v48 = vrot.slane %v5939_v51, 3 }
 0x3bd   :  { %v17611_v31 = vpop.permute.xlu0 %4939  ;;  %v5551_v40 = vsel %vm5539_vm11, %v5528_v9, %v5267_v21  ;;  %v6309_v59 = vrot.slane %v17687_v11, 2  ;;  %v6228_v9 = vrot.slane %v5939_v51, 2 }
 0x3be   :  { %5857 = vrot.lane.b32.xlu1 %v5836_v5, %s14115_s20  ;;  %v5749_v62 = vor.u32 %v5747_v46, %v5745_v44  ;;  %v6226_v44 = vsel %vm5335_vm5, %v17572_v8, %v17634_v4  ;;  %v6303_v8 = vrot.slane %v17652_v34, 2  ;;  %v5838_v5 = vsel %vm4952_vm13, %v5835_v17, %v5837_v49 }
 0x3bf   :  { %6186 = vrot.lane.b32.xlu0 %v6165_v6, %s14120_s27  ;;  %v5938_v6 = vrot.slane %v17671_v63, 2  ;;  %v17709_v46 = vcombine.low %v5631_v26, %v5632_v57  ;;  %v6227_v26 = vrot.slane %v17671_v63, 1  ;;  %v17722_v57 = vld [vmem:[#allocation3 + $0xbc] sm:$0xf] }
 0x3c0   :  { %v17642_v19 = vpop.permute.xlu1 %4988  ;;  %v5754_v0 = vsel %vm4834_vm14, %v5749_v62, %v17663_v12  ;;  %v17716_v17 = vsel %vm578_vm1, %v20637_v53, %v6303_v8  ;;  %v17725_v21 = vsel %vm578_vm1, %v6303_v8, %v6305_v45 }
 0x3c1   :  { %v5321_v36 = vpop.permute.xlu0 %5320 }
 0x3c2   :  { %6052 = vrot.lane.b32.xlu1 %v6031_v42, %s14116_s23  ;;  %v6307_v42 = vrot.slane %v17683_v27, 2 }
 0x3c3   :  { %6004 = vrot.lane.b32.xlu0 %v5934_v13, %s14118_s3  ;;  %v5574_v13 = vsel %vm5562_vm12, %v5551_v40, %v5321_v36  ;;  %v5755_v36 = vshrl.u32 %v17605_v38, 16 }
 0x3c4   :  { %v17689_v60 = vpop.permute.xlu1 %5185  ;;  %v17729_v53 = vsel %vm578_vm1, %v6305_v45, %v6307_v42  ;;  %v17732_v24 = vsel %vm578_vm1, %v6307_v42, %v6309_v59  ;;  %v17744_v45 = vor.u32 %v5941_v48, %v5938_v6  ;;  %v6095_v42 = vrot.slane %v17671_v63, 3 }
 0x3c5   :  { %v5137_v18 = vpop.permute.xlu0 %5136  ;;  %v6033_v6 = vsel %vm577_vm0, %v6030_v37, %v6032_v16  ;;  %v17761_v63 = vor.u32 %v6228_v9, %v6227_v26  ;;  %v5948_v9 = vshll.u32 %v17652_v34, 16 }
 0x3c6   :  { %6273 = vrot.lane.b32.xlu1 %v6226_v44, %s14121_s28  ;;  %v5644_v44 = vld [vmem:[#allocation3 + $0xc0] sm:$0xf]  ;;  %v5943_v37 = vsel %vm5016_vm15, %v17622_v35, %v17744_v45 }
 0x3c7   :  { %6134 = vrot.lane.b32.xlu0 %v6094_v39, %s14119_s26  ;;  %v17738_v40 = vcombine.low %v17722_v57, %v5644_v44  ;;  %v5757_v44 = vor.u32 %v5755_v36, %v17663_v12 }
 0x3c8   :  { %v5409_v62 = vpop.permute.xlu1 %5408 }
 0x3c9   :  { %v5269_v10 = vpop.permute.xlu0 %5268  ;;  %v5602_v39 = vsel %vm5585_vm10, %v5574_v13, %v5409_v62  ;;  %v6096_v62 = vrot.slane %v5939_v51, 4 }
 0x3ca   :  { %5811 = vrot.lane.b32.xlu1 %v5754_v0, %s14117_s7  ;;  %6700 = vmatmul.mubr.bf16.gmra.mxu0 %v5602_v39  ;;  %v5759_v0 = vshll.u32 %v17709_v46, 16  ;;  %v6230_v39 = vsel %vm5335_vm5, %v17634_v4, %v17761_v63 }
 0x3cb   :  { %5859 = vrot.lane.b32.xlu0 %v5838_v5, %s14115_s20  ;;  %12338 = vmatprep.mubr.msk.bf16.mxu0 %vm5447_vm4, %v17055_v58  ;;  %v5461_v5 = vsel %vm5447_vm4, %v16778_v1, %v17611_v31  ;;  %v6167_v58 = vsel %vm4952_vm13, %v6164_v50, %v6166_v28  ;;  %v6311_v31 = vrot.slane %v17738_v40, 2  ;;  %v17774_v26 = vor.u32 %v6096_v62, %v6095_v42 }
 0x3cc   :  { %v4942_v8 = vpop.permute.xlu1 %4941  ;;  %v5484_v51 = vsel %vm5470_vm7, %v5461_v5, %v17642_v19  ;;  %v5761_v19 = vrot.slane %v5759_v0, 1  ;;  %v20639_v62 = vrot.slane %v17652_v34, 1  ;;  %v17796_v0 = vld [vmem:[#allocation3 + $0xc4] sm:$0xf] }
 0x3cd   :  { %v17742_v13 = vpop.permute.xlu0 %4990  ;;  %v5507_v1 = vsel %vm5493_vm8, %v5484_v51, %v5137_v18  ;;  %v5945_v18 = vshrl.u32 %v17652_v34, 16  ;;  %v17783_v5 = vsel %vm578_vm1, %v6309_v59, %v6311_v31  ;;  %v6098_v42 = vsel %vm5198_vm2, %v17649_v33, %v17774_v26 }
 0x3ce   :  { %6188 = vrot.lane.b32.xlu1 %v6167_v58, %s14120_s27  ;;  %20716 = vst [vmem:[#allocation9_spill] sm:$0xff] %v17783_v5  ;;  %v5530_v58 = vsel %vm5516_vm9, %v5507_v1, %v17689_v60  ;;  %v5839_v59 = vrot.slane %v17709_v46, 1  ;;  %v5649_v60 = vld [vmem:[#allocation3 + $0xc8] sm:$0xf]  ;;  %v5762_v51 = vsel %vm4834_vm14, %v5757_v44, %v5761_v19  ;;  %v5950_v1 = vrot.slane %v5948_v9, 3 }
 0x3cf   :  { %6054 = vrot.lane.b32.xlu0 %v6033_v6, %s14116_s23  ;;  %v5553_v35 = vsel %vm5539_vm11, %v5530_v58, %v5269_v10  ;;  %v5947_v10 = vrot.slane %v5945_v18, 2  ;;  %v17804_v33 = vcombine.low %v17626_v41, %v17636_v15  ;;  %v6169_v41 = vsel %vm4952_vm13, %v6166_v28, %v20639_v62 }
 0x3d0   :  { %v5323_v50 = vpop.permute.xlu1 %5322  ;;  %v5840_v44 = vsel %vm4952_vm13, %v5837_v49, %v5839_v59  ;;  %v20640_v15 = vrot.slane %v17652_v34, 3 }
 0x3d1   :  { %v17769_v48 = vpop.permute.xlu0 %5187  ;;  %v5576_v12 = vsel %vm5562_vm12, %v5553_v35, %v5323_v50  ;;  %v17807_v50 = vcombine.low %v17796_v0, %v5649_v60  ;;  %v6231_v35 = vrot.slane %v5945_v18, 1  ;;  %v6100_v60 = vrot.slane %v5948_v9, 4 }
 0x3d2   :  { %6006 = vrot.lane.b32.xlu1 %v5943_v37, %s14118_s3  ;;  %v20717_v37 = vld [vmem:[#allocation17_spill] sm:$0xff]  ;;  %v20641_v5 = vrot.slane %v17804_v33, 1 }
 0x3d3   :  { %6275 = vrot.lane.b32.xlu0 %v6230_v39, %s14121_s28  ;;  %v6313_v28 = vrot.slane %v17807_v50, 2 }
 0x3d4   :  { %v5139_v36 = vpop.permute.xlu1 %5138 }
 0x3d5   :  { %v5411_v4 = vpop.permute.xlu0 %5410 }
 0x3d6   :  { %v5605_v6 = vsel %vm5585_vm10, %v5576_v12, %v5411_v4  ;;  %6136 = vrot.lane.b32.xlu1 %v6098_v42, %s14119_s26  ;;  %v17822_v12 = vor.u32 %v5950_v1, %v5947_v10  ;;  %v6232_v4 = vrot.slane %v5948_v9, 2  ;;  %v6099_v42 = vrot.slane %v5945_v18, 3 }
 0x3d7   :  { %5813 = vrot.lane.b32.xlu0 %v5762_v51, %s14117_s7  ;;  %6708 = vmatmul.mubr.bf16.gmra.mxu0 %v5605_v6  ;;  %v20718_v6 = vld [vmem:[#allocation14_spill] sm:$0xff]  ;;  %v5763_v51 = vshrl.u32 %v17709_v46, 16  ;;  %v6035_v18 = vsel %vm577_vm0, %v6032_v16, %v20640_v15 }
 0x3d8   :  { %12339 = vmatprep.mubr.msk.bf16.mxu0 %vm5447_vm4, %v20717_v37  ;;  %v5271_v39 = vpop.permute.xlu1 %5270  ;;  %v5463_v49 = vsel %vm5447_vm4, %v20718_v6, %v4942_v8  ;;  %v5767_v37 = vshll.u32 %v17804_v33, 16  ;;  %v5952_v9 = vsel %vm5016_vm15, %v17744_v45, %v17822_v12  ;;  %v6233_v8 = vor.u32 %v6232_v4, %v6231_v35 }
 0x3d9   :  { %v17811_v58 = vpop.permute.xlu0 %4943  ;;  %v17841_v1 = vor.u32 %v6100_v60, %v6099_v42  ;;  %v5765_v16 = vor.u32 %v5763_v51, %v5761_v19  ;;  %v5954_v4 = vshrl.u32 %v17675_v52, 16  ;;  %v6170_v60 = vrot.slane %v17675_v52, 1 }
 0x3da   :  { %5861 = vrot.lane.b32.xlu1 %v5840_v44, %s14115_s20  ;;  %v17844_v44 = vsel %vm578_vm1, %v6311_v31, %v6313_v28  ;;  %v5769_v15 = vrot.slane %v5767_v37, 1  ;;  %v17855_v31 = vld [vmem:[#allocation3 + $0xcc] ss:$0 sps:$4 sm:$0x33]  }
 0x3db   :  { %6190 = vrot.lane.b32.xlu0 %v6169_v41, %s14120_s27  ;;  %v5486_v41 = vsel %vm5470_vm7, %v5463_v49, %v17742_v13  ;;  %v6234_v13 = vsel %vm5335_vm5, %v17761_v63, %v6233_v8  ;;  %v6102_v42 = vsel %vm5198_vm2, %v17774_v26, %v17841_v1  ;;  %v5842_v63 = vsel %vm4952_vm13, %v5839_v59, %v20641_v5 }
 0x3dc   :  { %v17831_v62 = vpop.permute.xlu1 %4992  ;;  %v5509_v6 = vsel %vm5493_vm8, %v5486_v41, %v5139_v36  ;;  %v5957_v36 = vshll.u32 %v17675_v52, 16  ;;  %v5770_v51 = vsel %vm4834_vm14, %v5765_v16, %v5769_v15  ;;  %v6036_v26 = vrot.slane %v17675_v52, 3 }
 0x3dd   :  { %v5325_v10 = vpop.permute.xlu0 %5324  ;;  %v5532_v19 = vsel %vm5516_vm9, %v5509_v6, %v17769_v48  ;;  %v17877_v41 = vcombine.low %v17638_v30, %v17640_v43  ;;  %v6315_v6 = vrot.slane %v17855_v31, 2  ;;  %v5963_v5 = vshrl.u32 %v17683_v27, 16 }
 0x3de   :  { %6056 = vrot.lane.b32.xlu1 %v6035_v18, %s14116_s23  ;;  %v5555_v49 = vsel %vm5539_vm11, %v5532_v19, %v5271_v39  ;;  %v5959_v16 = vrot.slane %v5957_v36, 3  ;;  %v17973_v52 = vshrl.u32 %v17687_v11, 16 }
 0x3df   :  { %6008 = vrot.lane.b32.xlu0 %v5952_v9, %s14118_s3  ;;  %v5578_v37 = vsel %vm5562_vm12, %v5555_v49, %v5325_v10  ;;  %v5956_v9 = vrot.slane %v5954_v4, 2  ;;  %v17884_v59 = vsel %vm578_vm1, %v6313_v28, %v6315_v6  ;;  %v20719_v10 = vrot.slane %v17652_v34, 1 }
 0x3e0   :  { %v17852_v45 = vpop.permute.xlu1 %5189  ;;  %v6103_v49 = vrot.slane %v5954_v4, 3 }
 0x3e1   :  { %v5141_v35 = vpop.permute.xlu0 %5140  ;;  %v6171_v19 = vsel %vm4952_vm13, %v20719_v10, %v6170_v60 }
 0x3e2   :  { %6277 = vrot.lane.b32.xlu1 %v6234_v13, %s14121_s28  ;;  %v6235_v13 = vrot.slane %v5954_v4, 1 }
 0x3e3   :  { %6138 = vrot.lane.b32.xlu0 %v6102_v42, %s14119_s26  ;;  %v6236_v42 = vrot.slane %v5957_v36, 2 }
 0x3e4   :  { %v5413_v18 = vpop.permute.xlu1 %5412 }
 0x3e5   :  { %v5273_v48 = vpop.permute.xlu0 %5272  ;;  %v5608_v39 = vsel %vm5585_vm10, %v5578_v37, %v5413_v18  ;;  %v6104_v37 = vrot.slane %v5957_v36, 4  ;;  %v5775_v18 = vshll.u32 %v17877_v41, 16  ;;  %v17897_v6 = vor.u32 %v6236_v42, %v6235_v13 }
 0x3e6   :  { %5815 = vrot.lane.b32.xlu1 %v5770_v51, %s14117_s7  ;;  %6716 = vmatmul.mubr.bf16.gmra.mxu0 %v5608_v39  ;;  %v20720_v51 = vrot.slane %v17652_v34, 3  ;;  %v5966_v34 = vshll.u32 %v17683_v27, 16 }
 0x3e7   :  { %5863 = vrot.lane.b32.xlu0 %v5842_v63, %s14115_s20  ;;  %12340 = vmatprep.mubr.msk.bf16.mxu0 %vm5447_vm4, %v17408_v20  ;;  %v5960_v63 = vor.u32 %v5959_v16, %v5956_v9  ;;  %v5771_v20 = vshrl.u32 %v17804_v33, 16  ;;  %v17902_v36 = vor.u32 %v6104_v37, %v6103_v49  ;;  %v5777_v10 = vrot.slane %v5775_v18, 1 }
 0x3e8   :  { %v4946_v30 = vpop.permute.xlu1 %4945  ;;  %v6037_v28 = vsel %vm577_vm0, %v20720_v51, %v6036_v26  ;;  %v20721_v51 = vld [vmem:[#allocation15_spill] sm:$0xff]  ;;  %v6238_v13 = vsel %vm5335_vm5, %v6233_v8, %v17897_v6  ;;  %v20642_v49 = vrot.slane %v17877_v41, 1 }
 0x3e9   :  { %v4995_v43 = vpop.permute.xlu0 %4994  ;;  %v5465_v9 = vsel %vm5447_vm4, %v20721_v51, %v17811_v58  ;;  %v5961_v16 = vsel %vm5016_vm15, %v17822_v12, %v5960_v63  ;;  %v5773_v42 = vor.u32 %v5771_v20, %v5769_v15  ;;  %v20643_v58 = vrot.slane %v17683_v27, 1 }
 0x3ea   :  { %6192 = vrot.lane.b32.xlu1 %v6171_v19, %s14120_s27  ;;  %v5488_v19 = vsel %vm5470_vm7, %v5465_v9, %v17831_v62  ;;  %v5968_v51 = vrot.slane %v5966_v34, 3  ;;  %v6106_v15 = vsel %vm5198_vm2, %v17841_v1, %v17902_v36  ;;  %v5443_v9 = vrot.slane %v17196_v55, 2 }
 0x3eb   :  { %6058 = vrot.lane.b32.xlu0 %v6037_v28, %s14116_s23  ;;  %v5511_v37 = vsel %vm5493_vm8, %v5488_v19, %v5141_v35  ;;  %v5965_v28 = vrot.slane %v5963_v5, 2  ;;  %v5778_v62 = vsel %vm4834_vm14, %v5773_v42, %v5777_v10  ;;  %v20722_v35 = vrot.slane %v17804_v33, 1 }
 0x3ec   :  { %v5327_v39 = vpop.permute.xlu1 %5326  ;;  %v5534_v8 = vsel %vm5516_vm9, %v5511_v37, %v17852_v45  ;;  %v6173_v1 = vsel %vm4952_vm13, %v6170_v60, %v20643_v58  ;;  %v6038_v45 = vrot.slane %v17683_v27, 3  ;;  %v6107_v60 = vrot.slane %v5963_v5, 3 }
 0x3ed   :  { %v5192_v4 = vpop.permute.xlu0 %5191  ;;  %v5844_v20 = vsel %vm4952_vm13, %v20722_v35, %v20642_v49  ;;  %v6240_v35 = vrot.slane %v5966_v34, 2  ;;  %v20723_v49 = vld [vmem:[#allocation12_spill] sm:$0xff]  ;;  %v6108_v58 = vrot.slane %v5966_v34, 4 }
 0x3ee   :  { %6010 = vrot.lane.b32.xlu1 %v5961_v16, %s14118_s3  ;;  %v5557_v16 = vsel %vm5539_vm11, %v5534_v8, %v5273_v48  ;;  %v5467_v48 = vsel %vm5447_vm4, %v20723_v49, %v4946_v30  ;;  %v6039_v30 = vsel %vm577_vm0, %v6036_v26, %v6038_v45  ;;  %v17976_v26 = vshll.u32 %v17687_v11, 16 }
 0x3ef   :  { %6279 = vrot.lane.b32.xlu0 %v6238_v13, %s14121_s28  ;;  %v17943_v13 = vcombine.low %v17654_v23, %v17656_v56  ;;  %v5580_v42 = vsel %vm5562_vm12, %v5557_v16, %v5327_v39  ;;  %v20724_v23 = vrot.slane %v17113_v29, 2  ;;  %v5490_v39 = vsel %vm5470_vm7, %v5467_v48, %v4995_v43 }
 0x3f0   :  { %v17920_v18 = vpop.permute.xlu1 %4996  ;;  %v17970_v16 = vor.u32 %v6108_v58, %v6107_v60  ;;  %v6243_v48 = vrot.slane %v17973_v52, 1  ;;  %v6112_v55 = vrot.slane %v17976_v26, 4 }
 0x3f1   :  { %v4948_v12 = vpop.permute.xlu0 %4947  ;;  %v5444_v56 = vsel %vm578_vm1, %v20724_v23, %v5443_v9  ;;  %v6174_v23 = vrot.slane %v17687_v11, 1 }
 0x3f2   :  { %6140 = vrot.lane.b32.xlu1 %v6106_v15, %s14119_s26  ;;  %v17946_v15 = vor.u32 %v5968_v51, %v5965_v28  ;;  %v5783_v51 = vshll.u32 %v17943_v13, 16 }
 0x3f3   :  { %5817 = vrot.lane.b32.xlu0 %v5778_v62, %s14117_s7  ;;  %v6239_v62 = vrot.slane %v5963_v5, 1  ;;  %v5779_v5 = vshrl.u32 %v17877_v41, 16 }
 0x3f4   :  { %v5143_v19 = vpop.permute.xlu1 %5142  ;;  %v5970_v28 = vsel %vm5016_vm15, %v5960_v63, %v17946_v15  ;;  %v17983_v58 = vrot.slane %v5783_v51, 1 }
 0x3f5   :  { %v5415_v37 = vpop.permute.xlu0 %5414  ;;  %v6241_v29 = vor.u32 %v6240_v35, %v6239_v62  ;;  %v5781_v43 = vor.u32 %v5779_v5, %v5777_v10  ;;  %v6110_v35 = vsel %vm5198_vm2, %v17902_v36, %v17970_v16  ;;  %v6244_v10 = vrot.slane %v17976_v26, 2 }
 0x3f6   :  { %v5611_v8 = vsel %vm5585_vm10, %v5580_v42, %v5415_v37  ;;  %5865 = vrot.lane.b32.xlu1 %v5844_v20, %s14115_s20  ;;  %v5513_v20 = vsel %vm5493_vm8, %v5490_v39, %v5143_v19  ;;  %v5845_v37 = vrot.slane %v17943_v13, 1  ;;  %v5974_v39 = vrot.slane %v17973_v52, 2 }
 0x3f7   :  { %6194 = vrot.lane.b32.xlu0 %v6173_v1, %s14120_s27  ;;  %6724 = vmatmul.mubr.bf16.gmra.mxu0 %v5611_v8  ;;  %v5536_v63 = vsel %vm5516_vm9, %v5513_v20, %v5192_v4  ;;  %v6242_v19 = vsel %vm5335_vm5, %v17897_v6, %v6241_v29  ;;  %v20725_v4 = vld [vmem:[#allocation11_spill] sm:$0xff]  ;;  %v5786_v36 = vsel %vm4834_vm14, %v5781_v43, %v17983_v58  ;;  %v20726_v20 = vrot.slane %v17877_v41, 1 }
 0x3f8   :  { %12341 = vmatprep.mubr.msk.bf16.mxu0 %vm5447_vm4, %v5444_v56  ;;  %v5275_v34 = vpop.permute.xlu1 %5274  ;;  %v5469_v8 = vsel %vm5447_vm4, %v20725_v4, %v4948_v12  ;;  %v14104_v6 = vld [vmem:[#allocation3 + $0x64] ss:$0 sps:$4 sm:$0x33]   ;;  %v5652_v12 = vld [vmem:[#allocation3 + $0x74] sm:$0xc]  ;;  %v20727_v43 = vrot.slane %v17683_v27, 1 }
 0x3f9   :  { %v5329_v49 = vpop.permute.xlu0 %5328  ;;  %v5559_v62 = vsel %vm5539_vm11, %v5536_v63, %v5275_v34  ;;  %v5445_v60 = vrot.slane %v14104_v6, 2  ;;  %v5977_v34 = vrot.slane %v17976_v26, 3  ;;  %v6245_v63 = vor.u32 %v6244_v10, %v6243_v48  ;;  %v14105_v4 = vld [vmem:[#allocation3 + $0x78] sm:$0xf] }
 0x3fa   :  { %6060 = vrot.lane.b32.xlu1 %v6039_v30, %s14116_s23  ;;  %v5582_v56 = vsel %vm5562_vm12, %v5559_v62, %v5329_v49  ;;  %v5846_v49 = vsel %vm4952_vm13, %v20726_v20, %v5845_v37  ;;  %v6175_v62 = vsel %vm4952_vm13, %v20727_v43, %v6174_v23  ;;  %v6111_v6 = vrot.slane %v17973_v52, 3  ;;  %v13759_v43 = vld [vmem:[#allocation3 + $0xc0] ss:$0 sps:$4 sm:$0x11]  }
 0x3fb   :  { %6012 = vrot.lane.b32.xlu0 %v5970_v28, %s14118_s3  ;;  %v5492_v28 = vsel %vm5470_vm7, %v5469_v8, %v17920_v18  ;;  %v5446_v18 = vsel %vm578_vm1, %v5443_v9, %v5445_v60  ;;  %v12321_v8 = vcombine.low %v5652_v12, %v14105_v4  ;;  %v18021_v10 = vor.u32 %v5977_v34, %v5974_v39 }
 0x3fc   :  { %v5194_v1 = vpop.permute.xlu1 %5193  ;;  %v18027_v9 = vcombine.low %v17658_v61, %v17722_v57  ;;  %v6295_v57 = vrot.slane %v17401_v47, 2  ;;  %v6176_v34 = vrot.slane %v17738_v40, 1  ;;  %v5787_v12 = vshrl.u32 %v17943_v13, 16 }
 0x3fd   :  { %v5145_v42 = vpop.permute.xlu0 %5144  ;;  %v6294_v61 = vrot.slane %v12321_v8, 2 }
 0x3fe   :  { %6281 = vrot.lane.b32.xlu1 %v6242_v19, %s14121_s28  ;;  %v5515_v19 = vsel %vm5493_vm8, %v5492_v28, %v5145_v42  ;;  %v18052_v28 = vor.u32 %v6112_v55, %v6111_v6  ;;  %v6177_v4 = vsel %vm4952_vm13, %v6174_v23, %v6176_v34  ;;  %v5849_v55 = vrot.slane %v13759_v43, 1 }
 0x3ff   :  { %6142 = vrot.lane.b32.xlu0 %v6110_v35, %s14119_s26  ;;  %v6040_v35 = vrot.slane %v17687_v11, 3  ;;  %v5538_v60 = vsel %vm5516_vm9, %v5515_v19, %v5194_v1  ;;  %v6296_v27 = vsel %vm578_vm1, %v6294_v61, %v6295_v57 }
 0x400   :  { %v5417_v30 = vpop.permute.xlu1 %5416 }
 0x401   :  { %v5277_v5 = vpop.permute.xlu0 %5276  ;;  %v5614_v51 = vsel %vm5585_vm10, %v5582_v56, %v5417_v30  ;;  %v6246_v56 = vsel %vm5335_vm5, %v6241_v29, %v6245_v63  ;;  %v18032_v30 = vshrl.u32 %v17738_v40, 16  ;;  %v5979_v29 = vsel %vm5016_vm15, %v17946_v15, %v18021_v10 }
 0x402   :  { %5819 = vrot.lane.b32.xlu1 %v5786_v36, %s14117_s7  ;;  %6732 = vmatmul.mubr.bf16.gmra.mxu0 %v5614_v51  ;;  %v18035_v36 = vshll.u32 %v17738_v40, 16  ;;  %v5561_v39 = vsel %vm5539_vm11, %v5538_v60, %v5277_v5  ;;  %v6041_v5 = vsel %vm577_vm0, %v6038_v45, %v6040_v35 }
 0x403   :  { %5867 = vrot.lane.b32.xlu0 %v5846_v49, %s14115_s20  ;;  %12342 = vmatprep.mubr.msk.bf16.mxu0 %vm5447_vm4, %v5446_v18  ;;  %v6247_v51 = vrot.slane %v18032_v30, 1  ;;  %v5791_v49 = vshll.u32 %v18027_v9, 16  ;;  %v5789_v18 = vor.u32 %v5787_v12, %v17983_v58  ;;  %v5847_v58 = vrot.slane %v18027_v9, 1 }
 0x404   :  { %v5331_v42 = vpop.permute.xlu1 %5330  ;;  %v6248_v20 = vrot.slane %v18035_v36, 2  ;;  %v5983_v23 = vrot.slane %v18032_v30, 2 }
 0x405   :  { %v5419_v48 = vpop.permute.xlu0 %5418  ;;  %v5584_v52 = vsel %vm5562_vm12, %v5561_v39, %v5331_v42  ;;  %v5793_v42 = vrot.slane %v5791_v49, 1  ;;  %v5795_v39 = vshrl.u32 %v18027_v9, 16  ;;  %v5848_v49 = vsel %vm4952_vm13, %v5845_v37, %v5847_v58 }
 0x406   :  { %6196 = vrot.lane.b32.xlu1 %v6175_v62, %s14120_s27  ;;  %v5617_v15 = vsel %vm5585_vm10, %v5584_v52, %v5419_v48  ;;  %v6114_v62 = vsel %vm5198_vm2, %v17970_v16, %v18052_v28  ;;  %v18071_v8 = vor.u32 %v6248_v20, %v6247_v51  ;;  %v5799_v52 = vshll.u32 %v13759_v43, 16 }
 0x407   :  { %6283 = vrot.lane.b32.xlu0 %v6246_v56, %s14121_s28  ;;  %v5794_v60 = vsel %vm4834_vm14, %v5789_v18, %v5793_v42  ;;  %v5986_v56 = vrot.slane %v18035_v36, 3  ;;  %v12316_v20 = vcombine.low %v17796_v0, %v17796_v0 }
 0x408   :  { %v5804_v26 = vpop.permute.xlu1 %5803  ;;  %v6250_v16 = vsel %vm5335_vm5, %v6245_v63, %v18071_v8  ;;  %v6116_v63 = vrot.slane %v18035_v36, 4  ;;  %v5801_v36 = vrot.slane %v5799_v52, 1 }
 0x409   :  { %v5852_v1 = vpop.permute.xlu0 %5851  ;;  %v6318_v61 = vsel %vm5447_vm4, %v17253_v22, %v5804_v26  ;;  %v5987_v18 = vor.u32 %v5986_v56, %v5983_v23  ;;  %v6120_v37 = vshrl.u32 %v12316_v20, 16  ;;  %v6178_v23 = vrot.slane %v17807_v50, 1 }
 0x40a   :  { %6014 = vrot.lane.b32.xlu1 %v5979_v29, %s14118_s3  ;;  %6740 = vmatmul.mubr.bf16.gmra.mxu0 %v5617_v15  ;;  %v6115_v29 = vrot.slane %v18032_v30, 3  ;;  %v5850_v15 = vsel %vm4952_vm13, %v5847_v58, %v5849_v55  ;;  %v6340_v22 = vsel %vm5470_vm7, %v6318_v61, %v5852_v1  ;;  %v5797_v30 = vor.u32 %v5795_v39, %v5793_v42 }
 0x40b   :  { %6062 = vrot.lane.b32.xlu0 %v6041_v5, %s14116_s23  ;;  %12343 = vmatprep.mubr.msk.bf16.mxu0 %vm5447_vm4, %v6296_v27  ;;  %v13761_v5 = vld [vmem:[#allocation3 + $0xc4] ss:$0 sps:$4 sm:$0x77]   ;;  %v6042_v27 = vrot.slane %v17738_v40, 3  ;;  %v5988_v1 = vsel %vm5016_vm15, %v18021_v10, %v5987_v18  ;;  %v6297_v55 = vrot.slane %v17500_v7, 2  ;;  %v6252_v39 = vshrl.u32 %v17807_v50, 16 }
 0x40c   :  { %v5999_v45 = vpop.permute.xlu1 %5998  ;;  %v6117_v0 = vor.u32 %v6116_v63, %v6115_v29  ;;  %v5990_v43 = vshrl.u32 %v13761_v5, 16  ;;  %v6044_v56 = vrot.slane %v13761_v5, 3  ;;  %v6122_v29 = vrot.slane %v6120_v37, 3 }
 0x40d   :  { %v6047_v19 = vpop.permute.xlu0 %6046  ;;  %v6362_v26 = vsel %vm5493_vm8, %v6340_v22, %v5999_v45  ;;  %v6043_v58 = vsel %vm577_vm0, %v6040_v35, %v6042_v27  ;;  %v5802_v45 = vsel %vm4834_vm14, %v5797_v30, %v5801_v36 }
 0x40e   :  { %6144 = vrot.lane.b32.xlu1 %v6114_v62, %s14119_s26  ;;  %v6384_v42 = vsel %vm5516_vm9, %v6362_v26, %v6047_v19  ;;  %v6118_v35 = vsel %vm5198_vm2, %v18052_v28, %v6117_v0  ;;  %v5992_v10 = vrot.slane %v5990_v43, 2  ;;  %v6298_v28 = vsel %vm578_vm1, %v6295_v57, %v6297_v55 }
 0x40f   :  { %6198 = vrot.lane.b32.xlu0 %v6177_v4, %s14120_s27  ;;  %v6254_v26 = vrot.slane %v6252_v39, 1 }
 0x410   :  { %v6129_v48 = vpop.permute.xlu1 %6128 }
 0x411   :  { %v18075_v6 = vpop.permute.xlu0 %5805  ;;  %v6406_v11 = vsel %vm5539_vm11, %v6384_v42, %v6129_v48  ;;  %v6264_v48 = vshll.u32 %v17855_v31, 16 }
 0x412   :  { %6285 = vrot.lane.b32.xlu1 %v6250_v16, %s14121_s28  ;;  %v6123_v16 = vshll.u32 %v12316_v20, 16  ;;  %v6255_v20 = vshll.u32 %v17807_v50, 16  ;;  %v6320_v47 = vsel %vm5447_vm4, %v17300_v54, %v18075_v6  ;;  %v13764_v54 = vld [vmem:[#allocation3 + $0xcc] ss:$0 sps:$4 sm:$0x11]  }
 0x413   :  { %5821 = vrot.lane.b32.xlu0 %v5794_v60, %s14117_s7  ;;  %v5993_v60 = vshll.u32 %v13761_v5, 16  ;;  %v6261_v5 = vshrl.u32 %v17855_v31, 16  ;;  %v6179_v31 = vsel %vm4952_vm13, %v6176_v34, %v6178_v23 }
 0x414   :  { %v5854_v12 = vpop.permute.xlu1 %5853  ;;  %v6125_v63 = vrot.slane %v6123_v16, 4  ;;  %v6257_v43 = vrot.slane %v6255_v20, 2 }
 0x415   :  { %v6183_v51 = vpop.permute.xlu0 %6182  ;;  %v6263_v37 = vrot.slane %v6261_v5, 1  ;;  %v6342_v16 = vsel %vm5470_vm7, %v6320_v47, %v5854_v12  ;;  %v18183_v47 = vld [vmem:[%s20589_s4] ss:$0 sm:$0xff] }
 0x416   :  { %5869 = vrot.lane.b32.xlu1 %v5848_v49, %s14115_s20  ;;  %v6428_v52 = vsel %vm5562_vm12, %v6406_v11, %v6183_v51  ;;  %v6045_v51 = vsel %vm577_vm0, %v6042_v27, %v6044_v56  ;;  %v6126_v36 = vor.u32 %v6125_v63, %v6122_v29  ;;  %v6266_v27 = vrot.slane %v6264_v48, 2 }
 0x417   :  { %5871 = vrot.lane.b32.xlu0 %v5850_v15, %s14115_s20  ;;  %v5995_v15 = vrot.slane %v5993_v60, 3  ;;  %v6258_v42 = vor.u32 %v6257_v43, %v6254_v26  ;;  %v6299_v56 = vrot.slane %v17574_v32, 2  ;;  %vm7056_vm0 = vcmask 519168  }
 0x418   :  { %v6049_v62 = vpop.permute.xlu1 %6048 }
 0x419   :  { %v6001_v4 = vpop.permute.xlu0 %6000  ;;  %v5996_v57 = vor.u32 %v5995_v15, %v5992_v10  ;;  %v6259_v10 = vsel %vm5335_vm5, %v18071_v8, %v6258_v42  ;;  %v6300_v32 = vsel %vm578_vm1, %v6297_v55, %v6299_v56 }
 0x41a   :  { %6064 = vrot.lane.b32.xlu1 %v6043_v58, %s14116_s23  ;;  %v6364_v40 = vsel %vm5493_vm8, %v6342_v16, %v6001_v4 }
 0x41b   :  { %6016 = vrot.lane.b32.xlu0 %v5988_v1, %s14118_s3  ;;  %v6127_v1 = vsel %vm5198_vm2, %v6117_v0, %v6126_v36  ;;  %v5997_v60 = vsel %vm5016_vm15, %v5987_v18, %v5996_v57  ;;  %v6386_v6 = vsel %vm5516_vm9, %v6364_v40, %v6049_v62  ;;  %v6180_v62 = vrot.slane %v13764_v54, 1 }
 0x41c   :  { %v6270_v19 = vpop.permute.xlu1 %6269  ;;  %vm20733_vm15 = vcmask 1043456   ;;  %vm7628_vm2 = vcmask 982016  }
 0x41d   :  { %v6131_v61 = vpop.permute.xlu0 %6130  ;;  %v6450_v49 = vsel %vm5585_vm10, %v6428_v52, %v6270_v19  ;;  %v6181_v19 = vsel %vm4952_vm13, %v6178_v23, %v6180_v62 }
 0x41e   :  { %5823 = vrot.lane.b32.xlu1 %v5802_v45, %s14117_s7  ;;  %6748 = vmatmul.mubr.bf16.gmra.mxu0 %v6450_v49  ;;  %v6267_v45 = vor.u32 %v6266_v27, %v6263_v37  ;;  %v6408_v12 = vsel %vm5539_vm11, %v6386_v6, %v6131_v61 }
 0x41f   :  { %6146 = vrot.lane.b32.xlu0 %v6118_v35, %s14119_s26  ;;  %12344 = vmatprep.mubr.msk.bf16.mxu0 %vm5447_vm4, %v6298_v28 }
 0x420   :  { %v5808_v22 = vpop.permute.xlu1 %5807  ;;  %v6268_v18 = vsel %vm5335_vm5, %v6258_v42, %v6267_v45 }
 0x421   :  { %v5856_v30 = vpop.permute.xlu0 %5855  ;;  %v6322_v8 = vsel %vm5447_vm4, %v17364_v3, %v5808_v22  ;;  %v20728_v3 = vrot.slane %v17630_v14, 2 }
 0x422   :  { %6200 = vrot.lane.b32.xlu1 %v6179_v31, %s14120_s27  ;;  %v6344_v63 = vsel %vm5470_vm7, %v6322_v8, %v5856_v30 }
 0x423   :  { %6066 = vrot.lane.b32.xlu0 %v6045_v51, %s14116_s23  ;;  %v6302_v28 = vsel %vm578_vm1, %v6299_v56, %v20728_v3 }
 0x424   :  { %v6185_v58 = vpop.permute.xlu1 %6184 }
 0x425   :  { %v6051_v34 = vpop.permute.xlu0 %6050  ;;  %v6430_v4 = vsel %vm5562_vm12, %v6408_v12, %v6185_v58 }
 0x426   :  { %6148 = vrot.lane.b32.xlu1 %v6127_v1, %s14119_s26 }
 0x427   :  { %6018 = vrot.lane.b32.xlu0 %v5997_v60, %s14118_s3 }
 0x428   :  { %v6003_v11 = vpop.permute.xlu1 %6002 }
 0x429   :  { %v6272_v35 = vpop.permute.xlu0 %6271  ;;  %v6366_v7 = vsel %vm5493_vm8, %v6344_v63, %v6003_v11 }
 0x42a   :  { %v6453_v0 = vsel %vm5585_vm10, %v6430_v4, %v6272_v35  ;;  %6289 = vrot.lane.b32.xlu1 %v6268_v18, %s14121_s28  ;;  %v6388_v49 = vsel %vm5516_vm9, %v6366_v7, %v6051_v34 }
 0x42b   :  { %6287 = vrot.lane.b32.xlu0 %v6259_v10, %s14121_s28  ;;  %6756 = vmatmul.mubr.bf16.gmra.mxu0 %v6453_v0 }
 0x42c   :  { %12345 = vmatprep.mubr.msk.bf16.mxu0 %vm5447_vm4, %v6300_v32  ;;  %v6133_v39 = vpop.permute.xlu1 %6132 }
 0x42d   :  { %v5810_v52 = vpop.permute.xlu0 %5809  ;;  %v6410_v15 = vsel %vm5539_vm11, %v6388_v49, %v6133_v39 }
 0x42e   :  { %v6324_v30 = vsel %vm5447_vm4, %v17474_v25, %v5810_v52 }
 0x42f   :  { %6202 = vrot.lane.b32.xlu0 %v6181_v19, %s14120_s27 }
 0x430   :  { %v5858_v61 = vpop.permute.xlu1 %5857 }
 0x431   :  { %v6187_v29 = vpop.permute.xlu0 %6186  ;;  %v6346_v31 = vsel %vm5470_vm7, %v6324_v30, %v5858_v61 }
 0x432   :  { %v6432_v50 = vsel %vm5562_vm12, %v6410_v15, %v6187_v29 }
 0x434   :  { %v6053_v55 = vpop.permute.xlu1 %6052 }
 0x435   :  { %v6005_v20 = vpop.permute.xlu0 %6004 }
 0x436   :  { %v6368_v36 = vsel %vm5493_vm8, %v6346_v31, %v6005_v20 }
 0x437   :  { %v6390_v14 = vsel %vm5516_vm9, %v6368_v36, %v6053_v55 }
 0x438   :  { %v6274_v23 = vpop.permute.xlu1 %6273 }
 0x439   :  { %v6135_v5 = vpop.permute.xlu0 %6134  ;;  %v6456_v48 = vsel %vm5585_vm10, %v6432_v50, %v6274_v23 }
 0x43a   :  { %6764 = vmatmul.mubr.bf16.gmra.mxu0 %v6456_v48  ;;  %v6412_v57 = vsel %vm5539_vm11, %v6390_v14, %v6135_v5 }
 0x43b   :  { %12346 = vmatprep.mubr.msk.bf16.mxu0 %vm5447_vm4, %v6302_v28 }
 0x43c   :  { %v5812_v51 = vpop.permute.xlu1 %5811 }
 0x43d   :  { %v5860_v22 = vpop.permute.xlu0 %5859  ;;  %v6326_v4 = vsel %vm5447_vm4, %v17545_v2, %v5812_v51 }
 0x43e   :  { %v6348_v18 = vsel %vm5470_vm7, %v6326_v4, %v5860_v22 }
 0x440   :  { %v6189_v26 = vpop.permute.xlu1 %6188 }
 0x441   :  { %v6055_v43 = vpop.permute.xlu0 %6054  ;;  %v6434_v27 = vsel %vm5562_vm12, %v6412_v57, %v6189_v26 }
 0x443   :  { %v6661_v37 = vpop.f32.mrf.mxu0 }
 0x444   :  { %v6662_v25 = vadd.f32 %v18183_v47, %v6661_v37  ;;  %v6007_v16 = vpop.permute.xlu1 %6006 }
 0x445   :  { %v6276_v40 = vpop.permute.xlu0 %6275  ;;  %v6663_v58 = vpop.f32.mrf.mxu0 }
 0x446   :  { %v6459_v34 = vsel %vm5585_vm10, %v6434_v27, %v6276_v40  ;;  %v6836_v1 = vmax.f32 %v6662_v25, 0.0 }
 0x447   :  { %6772 = vmatmul.mubr.bf16.gmra.mxu0 %v6459_v34  ;;  %v6664_v60 = vpop.f32.mrf.mxu0 }
 0x448   :  { %12347 = vmatprep.mubr.msk.bf16.mxu0 %vm5447_vm4, %v17716_v17  ;;  %v12875_v42 = vpack.c.bf16 %v6836_v1, %v6836_v1  ;;  %v6665_v45 = vadd.f32 %v18183_v47, %v6664_v60  ;;  %v6137_v54 = vpop.permute.xlu1 %6136  ;;  %v6370_v17 = vsel %vm5493_vm8, %v6348_v18, %v6007_v16 }
 0x449   :  { %v5814_v6 = vpop.permute.xlu0 %5813  ;;  %v6666_v12 = vpop.f32.mrf.mxu0  ;;  %v6392_v32 = vsel %vm5516_vm9, %v6370_v17, %v6055_v43 }
 0x44a   :  { %7057 = vst.msk [vmem:[#allocation4] sm:$0xf] %vm7056_vm0, %v12875_v42  ;;  %v6837_v56 = vmax.f32 %v6665_v45, 0.0  ;;  %v6414_v39 = vsel %vm5539_vm11, %v6392_v32, %v6137_v54  ;;  %v6328_v23 = vsel %vm5447_vm4, %v17605_v38, %v5814_v6 }
 0x44c   :  { %v12876_v11 = vpack.c.bf16 %v6837_v56, %v6837_v56  ;;  %v5862_v35 = vpop.permute.xlu1 %5861 }
 0x44d   :  { %v6191_v0 = vpop.permute.xlu0 %6190  ;;  %v6350_v48 = vsel %vm5470_vm7, %v6328_v23, %v5862_v35 }
 0x44e   :  { %7058 = vst.msk [vmem:[#allocation4 + $0x4] sm:$0xf] %vm7056_vm0, %v12876_v11  ;;  %v6436_v19 = vsel %vm5562_vm12, %v6414_v39, %v6191_v0 }
 0x450   :  { %v6057_v10 = vpop.permute.xlu1 %6056 }
 0x451   :  { %v6009_v62 = vpop.permute.xlu0 %6008 }
 0x452   :  { %v6669_v52 = vpop.f32.mrf.mxu0  ;;  %v6372_v28 = vsel %vm5493_vm8, %v6350_v48, %v6009_v62 }
 0x453   :  { %v6670_v2 = vadd.f32 %v18183_v47, %v6669_v52 }
 0x454   :  { %v6278_v8 = vpop.permute.xlu1 %6277  ;;  %v6671_v63 = vpop.f32.mrf.mxu0 }
 0x455   :  { %v6139_v61 = vpop.permute.xlu0 %6138  ;;  %v6462_v29 = vsel %vm5585_vm10, %v6436_v19, %v6278_v8  ;;  %v6838_v7 = vmax.f32 %v6670_v2, 0.0 }
 0x456   :  { %6780 = vmatmul.mubr.bf16.gmra.mxu0 %v6462_v29  ;;  %v6672_v55 = vpop.f32.mrf.mxu0 }
 0x457   :  { %12348 = vmatprep.mubr.msk.bf16.mxu0 %vm5447_vm4, %v17725_v21  ;;  %v12877_v20 = vpack.c.bf16 %v6838_v7, %v6838_v7  ;;  %v6673_v49 = vadd.f32 %v18183_v47, %v6672_v55  ;;  %v6394_v21 = vsel %vm5516_vm9, %v6372_v28, %v6057_v10 }
 0x458   :  { %v5816_v15 = vpop.permute.xlu1 %5815  ;;  %v6674_v5 = vpop.f32.mrf.mxu0  ;;  %v6416_v31 = vsel %vm5539_vm11, %v6394_v21, %v6139_v61 }
 0x459   :  { %v5864_v50 = vpop.permute.xlu0 %5863  ;;  %7059 = vst.msk [vmem:[#allocation4 + $0x8] sm:$0xf] %vm7056_vm0, %v12877_v20  ;;  %v6839_v3 = vmax.f32 %v6673_v49, 0.0  ;;  %v6330_v42 = vsel %vm5447_vm4, %v17709_v46, %v5816_v15 }
 0x45a   :  { %v6352_v12 = vsel %vm5470_vm7, %v6330_v42, %v5864_v50 }
 0x45b   :  { %v12878_v51 = vpack.c.bf16 %v6839_v3, %v6839_v3 }
 0x45c   :  { %v6193_v22 = vpop.permute.xlu1 %6192 }
 0x45d   :  { %v6059_v30 = vpop.permute.xlu0 %6058  ;;  %7060 = vst.msk [vmem:[#allocation4 + $0xc] sm:$0xf] %vm7056_vm0, %v12878_v51  ;;  %v6438_v38 = vsel %vm5562_vm12, %v6416_v31, %v6193_v22 }
 0x45f   :  { %v6677_v36 = vpop.f32.mrf.mxu0 }
 0x460   :  { %v6678_v26 = vadd.f32 %v18183_v47, %v6677_v36  ;;  %v6011_v43 = vpop.permute.xlu1 %6010 }
 0x461   :  { %v6280_v14 = vpop.permute.xlu0 %6279  ;;  %v6679_v57 = vpop.f32.mrf.mxu0 }
 0x462   :  { %v6465_v37 = vsel %vm5585_vm10, %v6438_v38, %v6280_v14  ;;  %v6840_v27 = vmax.f32 %v6678_v26, 0.0 }
 0x463   :  { %6788 = vmatmul.mubr.bf16.gmra.mxu0 %v6465_v37  ;;  %v6680_v25 = vpop.f32.mrf.mxu0 }
 0x464   :  { %12349 = vmatprep.mubr.msk.bf16.mxu0 %vm5447_vm4, %v17729_v53  ;;  %v12879_v16 = vpack.c.bf16 %v6840_v27, %v6840_v27  ;;  %v6681_v40 = vadd.f32 %v18183_v47, %v6680_v25  ;;  %v6141_v58 = vpop.permute.xlu1 %6140  ;;  %v6374_v53 = vsel %vm5493_vm8, %v6352_v12, %v6011_v43 }
 0x465   :  { %v5818_v34 = vpop.permute.xlu0 %5817  ;;  %v6682_v1 = vpop.f32.mrf.mxu0  ;;  %v6396_v11 = vsel %vm5516_vm9, %v6374_v53, %v6059_v30  ;;  %v20729_v30 = vld [vmem:[#allocation9_spill] sm:$0xff] }
 0x466   :  { %7061 = vst.msk [vmem:[#allocation4 + $0x10] sm:$0xf] %vm7056_vm0, %v12879_v16  ;;  %v6841_v60 = vmax.f32 %v6681_v40, 0.0  ;;  %v6418_v35 = vsel %vm5539_vm11, %v6396_v11, %v6141_v58  ;;  %v6332_v39 = vsel %vm5447_vm4, %v17804_v33, %v5818_v34 }
 0x468   :  { %v12880_v45 = vpack.c.bf16 %v6841_v60, %v6841_v60  ;;  %v5866_v54 = vpop.permute.xlu1 %5865 }
 0x469   :  { %v6195_v6 = vpop.permute.xlu0 %6194  ;;  %v6354_v19 = vsel %vm5470_vm7, %v6332_v39, %v5866_v54  ;;  %v18264_v39 = vld [vmem:[#allocation4 + $0x8] sm:$0xf] }
 0x46a   :  { %7062 = vst.msk [vmem:[#allocation4 + $0x14] sm:$0xf] %vm7056_vm0, %v12880_v45  ;;  %v6440_v18 = vsel %vm5562_vm12, %v6418_v35, %v6195_v6 }
 0x46c   :  { %v6061_v56 = vpop.permute.xlu1 %6060 }
 0x46d   :  { %v6013_v4 = vpop.permute.xlu0 %6012 }
 0x46e   :  { %v6685_v0 = vpop.f32.mrf.mxu0  ;;  %v6376_v8 = vsel %vm5493_vm8, %v6354_v19, %v6013_v4 }
 0x46f   :  { %v6686_v46 = vadd.f32 %v18183_v47, %v6685_v0  ;;  %v6398_v33 = vsel %vm5516_vm9, %v6376_v8, %v6061_v56 }
 0x470   :  { %v6282_v17 = vpop.permute.xlu1 %6281  ;;  %v6687_v32 = vpop.f32.mrf.mxu0 }
 0x471   :  { %v6143_v10 = vpop.permute.xlu0 %6142  ;;  %v6468_v62 = vsel %vm5585_vm10, %v6440_v18, %v6282_v17  ;;  %v6842_v52 = vmax.f32 %v6686_v46, 0.0 }
 0x472   :  { %6796 = vmatmul.mubr.bf16.gmra.mxu0 %v6468_v62  ;;  %v6688_v2 = vpop.f32.mrf.mxu0  ;;  %v6420_v49 = vsel %vm5539_vm11, %v6398_v33, %v6143_v10 }
 0x473   :  { %12350 = vmatprep.mubr.msk.bf16.mxu0 %vm5447_vm4, %v17732_v24  ;;  %v12881_v61 = vpack.c.bf16 %v6842_v52, %v6842_v52  ;;  %v6689_v29 = vadd.f32 %v18183_v47, %v6688_v2 }
 0x474   :  { %v5820_v63 = vpop.permute.xlu1 %5819  ;;  %v6690_v55 = vpop.f32.mrf.mxu0 }
 0x475   :  { %v5868_v7 = vpop.permute.xlu0 %5867  ;;  %7063 = vst.msk [vmem:[#allocation4 + $0x18] sm:$0xf] %vm7056_vm0, %v12881_v61  ;;  %v6843_v20 = vmax.f32 %v6689_v29, 0.0  ;;  %v6334_v24 = vsel %vm5447_vm4, %v17877_v41, %v5820_v63  ;;  %v7151_v63 = vshll.u32 %v18264_v39, 16 }
 0x476   :  { %v6356_v28 = vsel %vm5470_vm7, %v6334_v24, %v5868_v7 }
 0x477   :  { %v12882_v15 = vpack.c.bf16 %v6843_v20, %v6843_v20 }
 0x478   :  { %v6197_v50 = vpop.permute.xlu1 %6196 }
 0x479   :  { %v6284_v23 = vpop.permute.xlu0 %6283  ;;  %v6442_v5 = vsel %vm5562_vm12, %v6420_v49, %v6197_v50  ;;  %7064 = vst.msk [vmem:[#allocation4 + $0x1c] sm:$0xf] %vm7056_vm0, %v12882_v15 }
 0x47a   :  { %v6471_v48 = vsel %vm5585_vm10, %v6442_v5, %v6284_v23 }
 0x47b   :  { %v6693_v3 = vpop.f32.mrf.mxu0  ;;  %6804 = vmatmul.mubr.bf16.gmra.mxu0 %v6471_v48 }
 0x47c   :  { %v6694_v51 = vadd.f32 %v18183_v47, %v6693_v3  ;;  %v6015_v22 = vpop.permute.xlu1 %6014  ;;  %12351 = vmatprep.mubr.msk.bf16.mxu0 %vm5447_vm4, %v20729_v30  ;;  %v18280_v3 = vrot.slane %v7151_v63, 5 }
 0x47d   :  { %v6063_v21 = vpop.permute.xlu0 %6062  ;;  %v6378_v31 = vsel %vm5493_vm8, %v6356_v28, %v6015_v22  ;;  %v6695_v41 = vpop.f32.mrf.mxu0 }
 0x47e   :  { %v6844_v36 = vmax.f32 %v6694_v51, 0.0  ;;  %v6400_v43 = vsel %vm5516_vm9, %v6378_v31, %v6063_v21 }
 0x47f   :  { %v6696_v38 = vpop.f32.mrf.mxu0 }
 0x480   :  { %v12883_v26 = vpack.c.bf16 %v6844_v36, %v6844_v36  ;;  %v6697_v14 = vadd.f32 %v18183_v47, %v6696_v38  ;;  %v6145_v57 = vpop.permute.xlu1 %6144  ;;  %v18285_v38 = vld [vmem:[#allocation4 + $0xc] sm:$0xf] }
 0x481   :  { %v6199_v37 = vpop.permute.xlu0 %6198  ;;  %v6422_v27 = vsel %vm5539_vm11, %v6400_v43, %v6145_v57  ;;  %v6698_v25 = vpop.f32.mrf.mxu0  ;;  %v18289_v57 = vld [vmem:[#allocation4] sm:$0xf] }
 0x482   :  { %7065 = vst.msk [vmem:[#allocation4 + $0x20] sm:$0xf] %vm7056_vm0, %v12883_v26  ;;  %v6845_v16 = vmax.f32 %v6697_v14, 0.0  ;;  %v6444_v58 = vsel %vm5562_vm12, %v6422_v27, %v6199_v37  ;;  %v18293_v37 = vld [vmem:[#allocation4 + $0x4] sm:$0xf] }
 0x484   :  { %v12884_v40 = vpack.c.bf16 %v6845_v16, %v6845_v16  ;;  %v6286_v34 = vpop.permute.xlu1 %6285  ;;  %v18295_v16 = vld [vmem:[#allocation4 + $0x14] sm:$0xf] }
 0x485   :  { %v5822_v1 = vpop.permute.xlu0 %5821  ;;  %v6474_v60 = vsel %vm5585_vm10, %v6444_v58, %v6286_v34  ;;  %v7161_v58 = vshll.u32 %v18285_v38, 16 }
 0x486   :  { %7066 = vst.msk [vmem:[#allocation4 + $0x24] sm:$0xf] %vm7056_vm0, %v12884_v40  ;;  %6812 = vmatmul.mubr.bf16.gmra.mxu0 %v6474_v60  ;;  %v6336_v52 = vsel %vm5447_vm4, %v17943_v13, %v5822_v1  ;;  %v7155_v13 = vshrl.u32 %v18264_v39, 16  ;;  %v7132_v60 = vshrl.u32 %v18289_v57, 16 }
 0x487   :  { %12352 = vmatprep.mubr.msk.bf16.mxu0 %vm5447_vm4, %v17844_v44  ;;  %v7318_v44 = vld [vmem:[#allocation4 + $0x4] sm:$0x8] }
 0x488   :  { %v5870_v42 = vpop.permute.xlu1 %5869  ;;  %v7320_v2 = vshrl.u32 %v7318_v44, 16  ;;  %v7323_v7 = vshll.u32 %v7318_v44, 16  ;;  %v7157_v31 = vrot.slane %v7155_v13, 4  ;;  %v7315_v13 = vld [vmem:[#allocation4 + $0x4] sm:$0xc] }
 0x489   :  { %v5872_v45 = vpop.permute.xlu0 %5871  ;;  %v6358_v19 = vsel %vm5470_vm7, %v6336_v52, %v5870_v42  ;;  %v7135_v42 = vshll.u32 %v18289_v57, 16 }
 0x48a   :  { %v6701_v54 = vpop.f32.mrf.mxu0  ;;  %v7322_v24 = vrot.slane %v7320_v2, 4  ;;  %v7325_v28 = vrot.slane %v7323_v7, 5  ;;  %v7158_v40 = vor.u32 %v7157_v31, %v18280_v3 }
 0x48b   :  { %v6702_v6 = vadd.f32 %v18183_v47, %v6701_v54  ;;  %v7141_v54 = vshll.u32 %v18293_v37, 16 }
 0x48c   :  { %v6065_v12 = vpop.permute.xlu1 %6064  ;;  %v6703_v56 = vpop.f32.mrf.mxu0  ;;  %v7326_v34 = vor.u32 %v7325_v28, %v7322_v24 }
 0x48d   :  { %v6017_v53 = vpop.permute.xlu0 %6016  ;;  %v6846_v4 = vmax.f32 %v6702_v6, 0.0  ;;  %v7145_v6 = vshrl.u32 %v18293_v37, 16  ;;  %v18316_v44 = vrot.slane %v7141_v54, 5  ;;  %v18344_v28 = vld [vmem:[#allocation4 + $0x24] sm:$0xf] }
 0x48e   :  { %v6704_v11 = vpop.f32.mrf.mxu0  ;;  %v6380_v8 = vsel %vm5493_vm8, %v6358_v19, %v6017_v53  ;;  %v7185_v53 = vshrl.u32 %v18295_v16, 16 }
 0x48f   :  { %v12885_v35 = vpack.c.bf16 %v6846_v4, %v6846_v4  ;;  %v6705_v0 = vadd.f32 %v18183_v47, %v6704_v11  ;;  %v6402_v15 = vsel %vm5516_vm9, %v6380_v8, %v6065_v12  ;;  %v7181_v12 = vshll.u32 %v18295_v16, 16  ;;  %v18309_v4 = vld [vmem:[#allocation4 + $0x10] sm:$0xf] }
 0x490   :  { %v6706_v46 = vpop.f32.mrf.mxu0  ;;  %v5824_v10 = vpop.permute.xlu1 %5823  ;;  %v7159_v11 = vrot.slane %v7158_v40, 4  ;;  %v7171_v2 = vshll.u32 %v18309_v4, 16  ;;  %v7175_v8 = vshrl.u32 %v18309_v4, 16 }
 0x491   :  { %v6147_v18 = vpop.permute.xlu0 %6146  ;;  %7067 = vst.msk [vmem:[#allocation4 + $0x28] sm:$0xf] %vm7056_vm0, %v12885_v35  ;;  %v6847_v17 = vmax.f32 %v6705_v0, 0.0  ;;  %v6338_v61 = vsel %vm5447_vm4, %v18027_v9, %v5824_v10  ;;  %v7163_v35 = vrot.slane %v7161_v58, 5  ;;  %v7327_v0 = vrot.slane %v7326_v34, 4 }
 0x492   :  { %v6360_v23 = vsel %vm5470_vm7, %v6338_v61, %v5872_v45  ;;  %v6424_v5 = vsel %vm5539_vm11, %v6402_v15, %v6147_v18  ;;  %v7165_v45 = vshrl.u32 %v18285_v38, 16  ;;  %v18312_v46 = vrot.slane %v7132_v60, 4  ;;  %v18334_v15 = vld [vmem:[#allocation4 + $0x20] sm:$0xf]  ;;  %vm20740_vm7 = vmmov %vm20733_vm15 }
 0x493   :  { %v12886_v62 = vpack.c.bf16 %v6847_v17, %v6847_v17  ;;  %v18314_v17 = vrot.slane %v7135_v42, 5  ;;  %v7328_v52 = vsel %vm14436_vm6, %v7327_v0, %v18280_v3  ;;  %v18325_v61 = vrot.slane %v7181_v12, 5 }
 0x494   :  { %v6201_v55 = vpop.permute.xlu1 %6200  ;;  %v7167_v10 = vrot.slane %v7165_v45, 4  ;;  %v7164_v7 = vsel %vm14436_vm6, %v7159_v11, %v7163_v35  ;;  %v7221_v34 = vshll.u32 %v18344_v28, 16 }
 0x495   :  { %v6067_v32 = vpop.permute.xlu0 %6066  ;;  %7068 = vst.msk [vmem:[#allocation4 + $0x2c] sm:$0xf] %vm7056_vm0, %v12886_v62  ;;  %v6446_v51 = vsel %vm5562_vm12, %v6424_v5, %v6201_v55  ;;  %v18318_v62 = vrot.slane %v7145_v6, 4  ;;  %v18340_v5 = vmax.bf16 %v7328_v52, %v7315_v13 }
 0x497   :  { %v6709_v29 = vpop.f32.mrf.mxu0  ;;  %v7364_v45 = vshll.u32 %v18340_v5, 16 }
 0x498   :  { %v6710_v20 = vadd.f32 %v18183_v47, %v6709_v29  ;;  %v6149_v26 = vpop.permute.xlu1 %6148  ;;  %v7187_v29 = vrot.slane %v7185_v53, 4 }
 0x499   :  { %v6019_v33 = vpop.permute.xlu0 %6018  ;;  %v6711_v49 = vpop.f32.mrf.mxu0 }
 0x49a   :  { %v6848_v50 = vmax.f32 %v6710_v20, 0.0  ;;  %v6382_v9 = vsel %vm5493_vm8, %v6360_v23, %v6019_v33  ;;  %v18330_v20 = vld [vmem:[#allocation4 + $0x18] sm:$0xf]  ;;  %v7168_v23 = vor.u32 %v7167_v10, %v7163_v35 }
 0x49b   :  { %v6712_v48 = vpop.f32.mrf.mxu0  ;;  %v6404_v43 = vsel %vm5516_vm9, %v6382_v9, %v6067_v32  ;;  %v13948_v32 = vld [vmem:[%s20594_s10 + $0x80] ss:$8 sps:$4 sm:$0xff]  }
 0x49c   :  { %v12887_v22 = vpack.c.bf16 %v6848_v50, %v6848_v50  ;;  %v6713_v30 = vadd.f32 %v18183_v47, %v6712_v48  ;;  %v6426_v1 = vsel %vm5539_vm11, %v6404_v43, %v6149_v26  ;;  %v6290_v56 = vpop.permute.xlu1 %6289  ;;  %v18336_v50 = vld [vmem:[#allocation4 + $0x1c] sm:$0xf]  ;;  %v18342_v48 = vld [vmem:[#allocation4 + $0x28] sm:$0xf]  ;;  %v7195_v26 = vshrl.u32 %v18330_v20, 16  ;;  %vm20751_vm11 = vmmov %vm20740_vm7 }
 0x49d   :  { %v6288_v21 = vpop.permute.xlu0 %6287  ;;  %v6714_v41 = vpop.f32.mrf.mxu0  ;;  %v7205_v40 = vshrl.u32 %v18336_v50, 16  ;;  %v7231_v58 = vshll.u32 %v18342_v48, 16  ;;  %v7235_v60 = vshrl.u32 %v18342_v48, 16  ;;  %v18364_v42 = vrot.slane %v7168_v23, 4  ;;  %v18370_v12 = vld [vmem:[#allocation4 + $0x2c] sm:$0xf] }
 0x49e   :  { %v6477_v36 = vsel %vm5585_vm10, %v6446_v51, %v6288_v21  ;;  %7069 = vst.msk [vmem:[#allocation4 + $0x30] sm:$0xf] %vm7056_vm0, %v12887_v22  ;;  %v6849_v14 = vmax.f32 %v6713_v30, 0.0  ;;  %v18346_v51 = vrot.slane %v7171_v2, 5  ;;  %v7177_v22 = vrot.slane %v7175_v8, 4 }
 0x49f   :  { %6820 = vmatmul.mubr.bf16.gmra.mxu0 %v6477_v36  ;;  %v7188_v30 = vor.u32 %v7187_v29, %v18325_v61  ;;  %v18350_v21 = vmax.bf16 %v7164_v7, %v18264_v39  ;;  %v7191_v36 = vshll.u32 %v18330_v20, 16  ;;  %v7207_v10 = vrot.slane %v7205_v40, 4 }
 0x4a0   :  { %12353 = vmatprep.mubr.msk.bf16.mxu0 %vm5447_vm4, %v17884_v59  ;;  %v12888_v27 = vpack.c.bf16 %v6849_v14, %v6849_v14  ;;  %v7211_v14 = vshll.u32 %v18334_v15, 16  ;;  %v7178_v11 = vor.u32 %v7177_v22, %v18346_v51  ;;  %v18384_v2 = vrot.slane %v7221_v34, 5 }
 0x4a1   :  { %v6203_v25 = vpop.permute.xlu0 %6202  ;;  %v18372_v53 = vrot.slane %v7191_v36, 5  ;;  %v7189_v29 = vrot.slane %v7188_v30, 4  ;;  %v7237_v7 = vrot.slane %v7235_v60, 4  ;;  %v7245_v13 = vshrl.u32 %v18370_v12, 16 }
 0x4a2   :  { %7070 = vst.msk [vmem:[#allocation4 + $0x34] sm:$0xf] %vm7056_vm0, %v12888_v27  ;;  %v6448_v59 = vsel %vm5562_vm12, %v6426_v1, %v6203_v25  ;;  %v7215_v27 = vshrl.u32 %v18334_v15, 16  ;;  %v7201_v25 = vshll.u32 %v18336_v50, 16  ;;  %v7225_v1 = vshrl.u32 %v18344_v28, 16 }
 0x4a3   :  { %v6480_v18 = vsel %vm5585_vm10, %v6448_v59, %v6290_v56  ;;  %v7361_v59 = vshrl.u32 %v18340_v5, 16  ;;  %v7197_v56 = vrot.slane %v7195_v26, 4  ;;  %v18375_v35 = vrot.slane %v7211_v14, 5 }
 0x4a4   :  { %v7217_v0 = vrot.slane %v7215_v27, 4  ;;  %v7227_v8 = vrot.slane %v7225_v1, 4  ;;  %v7174_v22 = vsel %vm14436_vm6, %v18364_v42, %v18346_v51  ;;  %v7194_v26 = vsel %vm14436_vm6, %v7189_v29, %v18372_v53 }
 0x4a5   :  { %v18368_v6 = vld [vmem:[#allocation4 + $0x30] sm:$0xf]  ;;  %v7198_v23 = vor.u32 %v7197_v56, %v18372_v53  ;;  %v7247_v34 = vrot.slane %v7245_v13, 4  ;;  %vm7358_vm10 = vsmask.f32 5392  ;;  %v20735_v5 = vor.u32 %v18314_v17, %v18312_v46 }
 0x4a6   :  { %v6717_v19 = vpop.f32.mrf.mxu0  ;;  %v7228_v51 = vor.u32 %v7227_v8, %v18384_v2  ;;  %vm18505_vm12 = vmor %vm7357_vm3, %vm7358_vm10  ;;  %vm20737_vm4 = vmmov 0  }
 0x4a7   :  { %6828 = vmatmul.mubr.bf16.gmra.mxu0 %v6480_v18  ;;  %v6718_v63 = vadd.f32 %v18183_v47, %v6717_v19  ;;  %v18377_v18 = vrot.slane %v7201_v25, 5  ;;  %v18382_v19 = vrot.slane %v7231_v58, 5 }
 0x4a8   :  { %v6719_v55 = vpop.f32.mrf.mxu0 }
 0x4a9   :  { %v6850_v49 = vmax.f32 %v6718_v63, 0.0  ;;  %v18380_v52 = vld [vmem:[#allocation4 + $0x34] sm:$0xf]  ;;  %v7251_v63 = vshll.u32 %v18368_v6, 16  ;;  %v7241_v55 = vshll.u32 %v18370_v12, 16  ;;  %v7208_v36 = vor.u32 %v7207_v10, %v18377_v18 }
 0x4aa   :  { %v6720_v9 = vpop.f32.mrf.mxu0  ;;  %v7261_v30 = vshll.u32 %v18380_v52, 16  ;;  %v7265_v27 = vshrl.u32 %v18380_v52, 16  ;;  %v7199_v10 = vrot.slane %v7198_v23, 4 }
 0x4ab   :  { %v12889_v31 = vpack.c.bf16 %v6850_v49, %v6850_v49  ;;  %v6721_v41 = vadd.f32 %v18183_v47, %v6720_v9  ;;  %v7255_v49 = vshrl.u32 %v18368_v6, 16  ;;  %v7179_v9 = vrot.slane %v7178_v11, 4 }
 0x4ac   :  { %v6722_v43 = vpop.f32.mrf.mxu0  ;;  %v7253_v40 = vrot.slane %v7251_v63, 5  ;;  %v7243_v58 = vrot.slane %v7241_v55, 5  ;;  %v7263_v11 = vrot.slane %v7261_v30, 5  ;;  %v7209_v29 = vrot.slane %v7208_v36, 4 }
 0x4ad   :  { %7071 = vst.msk [vmem:[#allocation4 + $0x38] sm:$0xf] %vm7056_vm0, %v12889_v31  ;;  %v6851_v39 = vmax.f32 %v6721_v41, 0.0  ;;  %v7218_v41 = vor.u32 %v7217_v0, %v18375_v35  ;;  %v7267_v55 = vrot.slane %v7265_v27, 4 }
 0x4af   :  { %v12890_v54 = vpack.c.bf16 %v6851_v39, %v6851_v39  ;;  %v7238_v39 = vor.u32 %v7237_v7, %v18382_v19  ;;  %v7219_v0 = vrot.slane %v7218_v41, 4  ;;  %v7248_v41 = vor.u32 %v7247_v34, %v7243_v58 }
 0x4b1   :  { %7072 = vst.msk [vmem:[#allocation4 + $0x3c] sm:$0xf] %vm7056_vm0, %v12890_v54  ;;  %v7257_v54 = vrot.slane %v7255_v49, 4  ;;  %v7214_v49 = vsel %vm14436_vm6, %v7209_v29, %v18375_v35  ;;  %v7224_v36 = vsel %vm14436_vm6, %v7219_v0, %v18384_v2  ;;  %v7204_v2 = vsel %vm14436_vm6, %v7199_v10, %v18377_v18 }
 0x4b3   :  { %v7258_v30 = vor.u32 %v7257_v54, %v7253_v40  ;;  %v18441_v54 = vmax.bf16 %v7194_v26, %v18295_v16 }
 0x4b4   :  { %v18395_v31 = vld [vmem:[#allocation4 + $0x38] sm:$0xf] }
 0x4b5   :  { %v7271_v43 = vshll.u32 %v18395_v31, 16  ;;  %v7275_v14 = vshrl.u32 %v18395_v31, 16  ;;  %v7400_v29 = vshrl.u32 %v18441_v54, 16 }
 0x4b7   :  { %v6725_v25 = vpop.f32.mrf.mxu0  ;;  %v18409_v60 = vrot.slane %v7271_v43, 5  ;;  %v7277_v42 = vrot.slane %v7275_v14, 4  ;;  %v7239_v43 = vrot.slane %v7238_v39, 4  ;;  %v18429_v39 = vmax.bf16 %v7174_v22, %v18285_v38 }
 0x4b8   :  { %v6726_v1 = vadd.f32 %v18183_v47, %v6725_v25  ;;  %v18411_v56 = vld [vmem:[#allocation4 + $0x3c] sm:$0xf]  ;;  %v7229_v25 = vrot.slane %v7228_v51, 4  ;;  %v7184_v51 = vsel %vm14436_vm6, %v7179_v9, %v18325_v61  ;;  %v7259_v61 = vrot.slane %v7258_v30, 4 }
 0x4b9   :  { %v6727_v53 = vpop.f32.mrf.mxu0  ;;  %v7278_v63 = vor.u32 %v7277_v42, %v18409_v60  ;;  %v7330_v7 = vshll.u32 %v18411_v56, 16  ;;  %v7334_v47 = vshrl.u32 %v18411_v56, 16  ;;  %v7244_v38 = vsel %vm14436_vm6, %v7239_v43, %v7243_v58 }
 0x4ba   :  { %v6852_v8 = vmax.f32 %v6726_v1, 0.0  ;;  %v7234_v27 = vsel %vm14436_vm6, %v7229_v25, %v18382_v19  ;;  %v7268_v1 = vor.u32 %v7267_v55, %v7263_v11  ;;  %v18438_v19 = vmax.bf16 %v7214_v49, %v18336_v50 }
 0x4bb   :  { %v6728_v13 = vpop.f32.mrf.mxu0  ;;  %v18432_v35 = vrot.slane %v7278_v63, 4  ;;  %v7332_v34 = vrot.slane %v7330_v7, 5  ;;  %v7336_v42 = vrot.slane %v7334_v47, 4  ;;  %v7249_v9 = vrot.slane %v7248_v41, 4 }
 0x4bc   :  { %v12891_v14 = vpack.c.bf16 %v6852_v8, %v6852_v8  ;;  %v18446_v22 = vmax.bf16 %v7224_v36, %v18334_v15  ;;  %v18449_v53 = vmax.bf16 %v7234_v27, %v18344_v28  ;;  %v18452_v0 = vmax.bf16 %v7184_v51, %v18309_v4 }
 0x4bd   :  { %v6730_v23 = vpop.f32.mrf.mxu0  ;;  %v7370_v50 = vshrl.u32 %v18350_v21, 16  ;;  %v7333_v16 = vsel %vm14436_vm6, %v18432_v35, %v7332_v34  ;;  %v7269_v18 = vrot.slane %v7268_v1, 4  ;;  %v7254_v26 = vsel %vm14436_vm6, %v7249_v9, %v7253_v40 }
 0x4be   :  { %7073 = vst.msk [vmem:[#allocation4 + $0x40] sm:$0xf] %vm7056_vm0, %v12891_v14  ;;  %v7380_v58 = vshrl.u32 %v18429_v39, 16  ;;  %v7337_v10 = vor.u32 %v7336_v42, %v7332_v34  ;;  %v18462_v28 = vmax.bf16 %v7244_v38, %v18342_v48  ;;  %v18465_v4 = vmax.bf16 %v7204_v2, %v18330_v20  ;;  %v7130_v14 = vld [vmem:[#allocation4 + $0x3c] sm:$0x1] }
 0x4bf   :  { %v7264_v8 = vsel %vm14436_vm6, %v7259_v61, %v7263_v11  ;;  %v7274_v63 = vsel %vm14436_vm6, %v7269_v18, %v18409_v60  ;;  %v7420_v40 = vshrl.u32 %v18438_v19, 16  ;;  %v7354_v13 = vmax.bf16 %v7333_v16, %v18395_v31 }
 0x4c0   :  { %v18476_v48 = vmax.bf16 %v7254_v26, %v18370_v12  ;;  %v7440_v20 = vshrl.u32 %v18449_v53, 16  ;;  %v7430_v47 = vshrl.u32 %v18446_v22, 16  ;;  %v7443_v11 = vshll.u32 %v18449_v53, 16 }
 0x4c1   :  { %v7338_v60 = vrot.slane %v7337_v10, 4  ;;  %v18482_v30 = vmax.bf16 %v7264_v8, %v18368_v6  ;;  %v18485_v41 = vmax.bf16 %v7274_v63, %v18380_v52  ;;  %v7450_v12 = vshrl.u32 %v18462_v28, 16 }
 0x4c2   :  { %v6733_v15 = vpop.f32.mrf.mxu0  ;;  %v7490_v51 = vshrl.u32 %v7354_v13, 16  ;;  %v7493_v34 = vshll.u32 %v7354_v13, 16  ;;  %v7460_v1 = vshrl.u32 %v18476_v48, 16  ;;  %v7453_v42 = vshll.u32 %v18462_v28, 16 }
 0x4c3   :  { %v7281_v2 = vshll.u32 %v7130_v14, 16  ;;  %v7480_v9 = vshrl.u32 %v18485_v41, 16  ;;  %v7483_v16 = vshll.u32 %v18485_v41, 16  ;;  %v7470_v18 = vshrl.u32 %v18482_v30, 16 }
 0x4c4   :  { %v6735_v7 = vpop.f32.mrf.mxu0  ;;  %v7473_v15 = vshll.u32 %v18482_v30, 16  ;;  %v7495_v13 = vrot.slane %v7493_v34, 7 }
 0x4c5   :  { %v7317_v55 = vld [vmem:[#allocation4 + $0x40] sm:$0x7]  ;;  %v7492_v7 = vrot.slane %v7490_v51, 6  ;;  %v7472_v33 = vrot.slane %v7470_v18, 6  ;;  %v13784_v18 = vld [vmem:[%s20591_s5 + $0x74] ss:$8 sps:$4 sm:$0xff]  }
 0x4c6   :  { %v7340_v43 = vshll.u32 %v7317_v55, 16  ;;  %v7344_v25 = vshrl.u32 %v7317_v55, 16  ;;  %v6736_v49 = vpop.f32.mrf.mxu0 }
 0x4c7   :  { %v7463_v49 = vshll.u32 %v18476_v48, 16  ;;  %v7496_v24 = vor.u32 %v7495_v13, %v7492_v7  ;;  %v7455_v7 = vrot.slane %v7453_v42, 7 }
 0x4c8   :  { %v7342_v23 = vrot.slane %v7340_v43, 5  ;;  %v7346_v36 = vrot.slane %v7344_v25, 4  ;;  %v6738_v27 = vpop.f32.mrf.mxu0  ;;  %v7283_v43 = vrot.slane %v7281_v2, 5 }
 0x4ca   :  { %v7343_v61 = vsel %vm14436_vm6, %v7338_v60, %v7342_v23  ;;  %v7347_v6 = vor.u32 %v7346_v36, %v7342_v23  ;;  %v6741_v52 = vpop.f32.mrf.mxu0  ;;  %v7482_v23 = vrot.slane %v7480_v9, 6  ;;  %v7485_v36 = vrot.slane %v7483_v16, 7 }
 0x4cb   :  { %v7355_v38 = vmax.bf16 %v7343_v61, %v18411_v56  ;;  %v7284_v51 = vsel %vm14436_vm6, %v18432_v35, %v7283_v43  ;;  %v7452_v9 = vrot.slane %v7450_v12, 6  ;;  %v7433_v16 = vshll.u32 %v18446_v22, 16 }
 0x4cc   :  { %v7348_v26 = vrot.slane %v7347_v6, 4  ;;  %v6743_v10 = vpop.f32.mrf.mxu0  ;;  %v7445_v12 = vrot.slane %v7443_v11, 7 }
 0x4cd   :  { %v7500_v8 = vshrl.u32 %v7355_v38, 16  ;;  %v7503_v63 = vshll.u32 %v7355_v38, 16  ;;  %v7475_v10 = vrot.slane %v7473_v15, 7  ;;  %v7486_v38 = vor.u32 %v7485_v36, %v7482_v23 }
 0x4ce   :  { %v7356_v25 = vmax.bf16 %v7348_v26, %v7317_v55  ;;  %v6744_v14 = vpop.f32.mrf.mxu0  ;;  %v7462_v26 = vrot.slane %v7460_v1, 6  ;;  %v7498_v15 = vrot.slane %v7496_v24, 4  ;;  %v7442_v1 = vrot.slane %v7440_v20, 6 }
 0x4cf   :  { %v7502_v56 = vrot.slane %v7500_v8, 6  ;;  %v7505_v60 = vrot.slane %v7503_v63, 7  ;;  %v7465_v8 = vrot.slane %v7463_v49, 7  ;;  %v7476_v35 = vor.u32 %v7475_v10, %v7472_v33 }
 0x4d0   :  { %v7510_v27 = vshrl.u32 %v7356_v25, 16  ;;  %v7513_v61 = vshll.u32 %v7356_v25, 16  ;;  %v6746_v52 = vpop.f32.mrf.mxu0  ;;  %v7314_v25 = vmax.bf16 %v7284_v51, %v18395_v31  ;;  %v7423_v31 = vshll.u32 %v18438_v19, 16 }
 0x4d1   :  { %v7506_v6 = vor.u32 %v7505_v60, %v7502_v56  ;;  %v7488_v49 = vrot.slane %v7486_v38, 4  ;;  %v7466_v56 = vor.u32 %v7465_v8, %v7462_v26  ;;  %v7432_v33 = vrot.slane %v7430_v47, 6 }
 0x4d2   :  { %v7512_v34 = vrot.slane %v7510_v27, 6  ;;  %v7515_v55 = vrot.slane %v7513_v61, 7  ;;  %v7435_v42 = vrot.slane %v7433_v16, 7  ;;  %v7410_v60 = vshrl.u32 %v18465_v4, 16 }
 0x4d3   :  { %v7508_v2 = vrot.slane %v7506_v6, 4  ;;  %v7507_v14 = vsel %vm18505_vm12, %v7498_v15, %v7506_v6  ;;  %v7413_v23 = vshll.u32 %v18465_v4, 16  ;;  %v7497_v11 = vsel %vm18505_vm12, %v7488_v49, %v7496_v24 }
 0x4d4   :  { %v7516_v63 = vor.u32 %v7515_v55, %v7512_v34  ;;  %v7478_v36 = vrot.slane %v7476_v35, 4  ;;  %v7456_v27 = vor.u32 %v7455_v7, %v7452_v9  ;;  %v7546_v61 = vmax.bf16 %v7507_v14, %v18485_v41 }
 0x4d5   :  { %v7422_v52 = vrot.slane %v7420_v40, 6  ;;  %v7425_v6 = vrot.slane %v7423_v31, 7  ;;  %v7403_v10 = vshll.u32 %v18441_v54, 16  ;;  %v7468_v51 = vrot.slane %v7466_v56, 4 }
 0x4d6   :  { %v7517_v13 = vsel %vm18505_vm12, %v7508_v2, %v7516_v63  ;;  %v7487_v34 = vsel %vm18505_vm12, %v7478_v36, %v7486_v38  ;;  %v7446_v55 = vor.u32 %v7445_v12, %v7442_v1  ;;  %v7545_v24 = vmax.bf16 %v7497_v11, %v18482_v30 }
 0x4d7   :  { %v7547_v43 = vmax.bf16 %v7517_v13, %v7314_v25  ;;  %v7412_v2 = vrot.slane %v7410_v60, 6  ;;  %v7390_v26 = vshrl.u32 %v18452_v0, 16  ;;  %v7393_v41 = vshll.u32 %v18452_v0, 16 }
 0x4d8   :  { %v20734_v8 = vmov 0.0   ;;  %v7477_v40 = vsel %vm18505_vm12, %v7468_v51, %v7476_v35  ;;  %v7458_v63 = vrot.slane %v7456_v27, 4  ;;  %v7436_v9 = vor.u32 %v7435_v42, %v7432_v33  ;;  %v18546_v35 = vld [vmem:[%s20589_s4] ss:$0 sm:$0xff] }
 0x4d9   :  { %v12412_v20 = vcombine.low %v7547_v43, %v7547_v43  ;;  %v7415_v16 = vrot.slane %v7413_v23, 7  ;;  %v12411_v25 = vcombine.low %v7545_v24, %v7546_v61  ;;  %v7544_v38 = vmax.bf16 %v7487_v34, %v18476_v48 }
 0x4da   :  { %v7402_v15 = vrot.slane %v7400_v29, 6  ;;  %v7383_v30 = vshll.u32 %v18429_v39, 16  ;;  %v7448_v13 = vrot.slane %v7446_v55, 4  ;;  %v7467_v1 = vsel %vm18505_vm12, %v7458_v63, %v7466_v56 }
 0x4db   :  { %v7651_v47 = vsel %vm20733_vm15, %v12412_v20, 0  ;;  %v7426_v12 = vor.u32 %v7425_v6, %v7422_v52  ;;  %v7405_v31 = vrot.slane %v7403_v10, 7  ;;  %v7543_v48 = vmax.bf16 %v7477_v40, %v18462_v28 }
 0x4dc   :  { %13510 = vmatpush3.bf16.msra.mxu1 %v7651_v47  ;;  %v7392_v29 = vrot.slane %v7390_v26, 6  ;;  %v7373_v49 = vshll.u32 %v18350_v21, 16  ;;  %v7457_v56 = vsel %vm18505_vm12, %v7448_v13, %v7456_v27  ;;  %v7438_v33 = vrot.slane %v7436_v9, 4 }
 0x4dd   :  { %13511 = vmatprep.subr.bf16.mxu1 %v20734_v8  ;;  %v7416_v42 = vor.u32 %v7415_v16, %v7412_v2  ;;  %v7395_v60 = vrot.slane %v7393_v41, 7  ;;  %v12410_v20 = vcombine.low %v7543_v48, %v7544_v38  ;;  %v7542_v11 = vmax.bf16 %v7467_v1, %v18449_v53 }
 0x4de   :  { %v6749_v7 = vpop.f32.mrf.mxu0  ;;  %v7382_v36 = vrot.slane %v7380_v58, 6  ;;  %v7428_v61 = vrot.slane %v7426_v12, 4  ;;  %v7447_v52 = vsel %vm18505_vm12, %v7438_v33, %v7446_v55  ;;  %v7406_v6 = vor.u32 %v7405_v31, %v7402_v15 }
 0x4df   :  { %v6750_v43 = vadd.f32 %v18546_v35, %v6749_v7  ;;  %v7385_v10 = vrot.slane %v7383_v30, 7  ;;  %v7541_v51 = vmax.bf16 %v7457_v56, %v18446_v22  ;;  %v7372_v34 = vrot.slane %v7370_v50, 6 }
 0x4e0   :  { %13512 = vmatpush3.bf16.msra.mxu1 %v12411_v25  ;;  %v6751_v14 = vpop.f32.mrf.mxu0  ;;  %v7437_v58 = vsel %vm18505_vm12, %v7428_v61, %v7436_v9  ;;  %v7418_v24 = vrot.slane %v7416_v42, 4  ;;  %v7396_v2 = vor.u32 %v7395_v60, %v7392_v29  ;;  %v7375_v55 = vrot.slane %v7373_v49, 7 }
 0x4e1   :  { %13513 = vmatprep.subr.bf16.mxu1 %v20734_v8  ;;  %v6858_v23 = vmax.f32 %v6750_v43, 0.0  ;;  %v12409_v41 = vcombine.low %v7541_v51, %v7542_v11  ;;  %v7540_v40 = vmax.bf16 %v7447_v52, %v18438_v19  ;;  %v7363_v22 = vrot.slane %v7361_v59, 6 }
 0x4e2   :  { %v6752_v28 = vpop.f32.mrf.mxu0  ;;  %v7408_v63 = vrot.slane %v7406_v6, 4  ;;  %v7427_v50 = vsel %vm18505_vm12, %v7418_v24, %v7426_v12  ;;  %v7386_v16 = vor.u32 %v7385_v10, %v7382_v36  ;;  %v7366_v9 = vrot.slane %v7364_v45, 7  ;;  %v18627_v24 = vld [vmem:[%s20590_s8 + $0x8] sm:$0xff]  }
 0x4e3   :  { %v12897_v47 = vpack.c.bf16 %v6858_v23, %v6858_v23  ;;  %v6753_v27 = vadd.f32 %v18546_v35, %v6752_v28  ;;  %v7539_v38 = vmax.bf16 %v7437_v58, %v18465_v4  ;;  %v7398_v15 = vrot.slane %v7396_v2, 4 }
 0x4e4   :  { %13514 = vmatpush3.bf16.msra.mxu1 %v12410_v20  ;;  %v6754_v53 = vpop.f32.mrf.mxu0  ;;  %v7417_v19 = vsel %vm18505_vm12, %v7408_v63, %v7416_v42  ;;  %v7376_v30 = vor.u32 %v7375_v55, %v7372_v34  ;;  %v7538_v7 = vmax.bf16 %v7427_v50, %v18441_v54  ;;  %v7139_v45 = vrot.slane %v20735_v5, 4  ;;  %v13769_v5 = vld [vmem:[%s20590_s8 + $0x20] sm:$0xff]  }
 0x4e5   :  { %13515 = vmatprep.subr.bf16.mxu1 %v20734_v8  ;;  %7079 = vst.msk [vmem:[#allocation4 + $0x58] sm:$0xf] %vm7056_vm0, %v12897_v47  ;;  %v6859_v26 = vmax.f32 %v6753_v27, 0.0  ;;  %v12408_v59 = vcombine.low %v7539_v38, %v7540_v40  ;;  %v7388_v1 = vrot.slane %v7386_v16, 4  ;;  %v7407_v4 = vsel %vm18505_vm12, %v7398_v15, %v7406_v6 }
 0x4e6   :  { %v20736_v12 = vor.u32 %v18318_v62, %v18316_v44  ;;  %v7367_v43 = vor.u32 %v7366_v9, %v7363_v22  ;;  %v7537_v29 = vmax.bf16 %v7417_v19, %v18452_v0  ;;  %v7378_v49 = vrot.slane %v7376_v30, 4  ;;  %v18639_v22 = vld [vmem:[%s20590_s8 + $0x10] sm:$0xff]  }
 0x4e7   :  { %v12898_v25 = vpack.c.bf16 %v6859_v26, %v6859_v26  ;;  %v7397_v46 = vsel %vm18505_vm12, %v7388_v1, %v7396_v2  ;;  %v7536_v56 = vmax.bf16 %v7407_v4, %v18429_v39  ;;  %v7144_v0 = vsel %vm14436_vm6, %v7139_v45, %v18316_v44 }
 0x4e8   :  { %13516 = vmatpush3.bf16.msra.mxu1 %v12409_v41  ;;  %v7149_v31 = vrot.slane %v20736_v12, 4  ;;  %v12407_v62 = vcombine.low %v7537_v29, %v7538_v7  ;;  %v7368_v42 = vrot.slane %v7367_v43, 4  ;;  %v7387_v60 = vsel %vm18505_vm12, %v7378_v49, %v7386_v16  ;;  %v13770_v29 = vld [vmem:[%s20590_s8 + $0x28] sm:$0xff]  }
 0x4e9   :  { %13517 = vmatprep.subr.bf16.mxu1 %v20734_v8  ;;  %7080 = vst.msk [vmem:[#allocation4 + $0x5c] sm:$0xf] %vm7056_vm0, %v12898_v25  ;;  %v7300_v61 = vmax.bf16 %v7144_v0, %v18289_v57 }
 0x4ea   :  { %v7154_v17 = vsel %vm14436_vm6, %v7149_v31, %v18280_v3  ;;  %v7535_v3 = vmax.bf16 %v7397_v46, %v18350_v21  ;;  %v7377_v39 = vsel %vm18505_vm12, %v7368_v42, %v7376_v30  ;;  %v18615_v21 = vld [vmem:[%s20590_s8] sm:$0xff]   ;;  %v18650_v30 = vld [vmem:[%s20590_s8 + $0x18] sm:$0xff]  }
 0x4eb   :  { %v6757_v13 = vpop.f32.mrf.mxu0  ;;  %v7301_v11 = vmax.bf16 %v7154_v17, %v18293_v37  ;;  %v7533_v10 = vmax.bf16 %v7377_v39, %v7300_v61 }
 0x4ec   :  { %v6758_v48 = vadd.f32 %v18546_v35, %v6757_v13  ;;  %13518 = vmatpush3.bf16.msra.mxu1 %v12408_v59  ;;  %v12406_v28 = vcombine.low %v7535_v3, %v7536_v56 }
 0x4ed   :  { %v6759_v54 = vpop.f32.mrf.mxu0  ;;  %13519 = vmatprep.subr.bf16.mxu1 %v20734_v8  ;;  %v7534_v52 = vmax.bf16 %v7387_v60, %v7301_v11  ;;  %v13771_v60 = vld [vmem:[%s20590_s8 + $0x30] sm:$0xff]  }
 0x4ee   :  { %v6860_v14 = vmax.f32 %v6758_v48, 0.0 }
 0x4ef   :  { %v6760_v33 = vpop.f32.mrf.mxu0  ;;  %v12405_v37 = vcombine.low %v7533_v10, %v7534_v52 }
 0x4f0   :  { %v12899_v23 = vpack.c.bf16 %v6860_v14, %v6860_v14  ;;  %v6761_v20 = vadd.f32 %v18546_v35, %v6760_v33  ;;  %13520 = vmatpush3.bf16.msra.mxu1 %v12407_v62  ;;  %v8015_v17 = vld [vmem:[#allocation4 + $0x5c] sm:$0x8] }
 0x4f1   :  { %v6762_v36 = vpop.f32.mrf.mxu0  ;;  %13521 = vmatprep.subr.bf16.mxu1 %v20734_v8  ;;  %v8017_v33 = vshrl.u32 %v8015_v17, 16 }
 0x4f2   :  { %7081 = vst.msk [vmem:[#allocation4 + $0x60] sm:$0xf] %vm7056_vm0, %v12899_v23  ;;  %v6861_v44 = vmax.f32 %v6761_v20, 0.0  ;;  %v8020_v23 = vshll.u32 %v8015_v17, 16 }
 0x4f4   :  { %v12900_v6 = vpack.c.bf16 %v6861_v44, %v6861_v44  ;;  %13522 = vmatpush3.bf16.msra.mxu1 %v12406_v28  ;;  %v8019_v44 = vrot.slane %v8017_v33, 4  ;;  %v8022_v10 = vrot.slane %v8020_v23, 5 }
 0x4f5   :  { %13523 = vmatprep.subr.bf16.mxu1 %v20734_v8 }
 0x4f6   :  { %7082 = vst.msk [vmem:[#allocation4 + $0x64] sm:$0xf] %vm7056_vm0, %v12900_v6 }
 0x4f8   :  { %13524 = vmatpush3.bf16.msra.mxu1 %v12405_v37 }
 0x4f9   :  { %13553 = vmatprep.subr.bf16.mxu1 %v20734_v8  ;;  %v18674_v56 = vld [vmem:[#allocation4 + $0x60] sm:$0xf] }
 0x4fa   :  { %v6765_v47 = vpop.f32.mrf.mxu0  ;;  %v7848_v36 = vshll.u32 %v18674_v56, 16  ;;  %v7852_v39 = vshrl.u32 %v18674_v56, 16 }
 0x4fb   :  { %v6766_v57 = vadd.f32 %v18546_v35, %v6765_v47  ;;  %13526 = vmatmul.mubr.msk.bf16.vlgmr.msra.gmra.mxu1 %vm7628_vm2, %v18615_v21 }
 0x4fc   :  { %v6767_v27 = vpop.f32.mrf.mxu0  ;;  %13529 = vmatprep.mubr.msk.bf16.mxu1 %vm20737_vm4, %v20734_v8  ;;  %v18693_v37 = vrot.slane %v7848_v36, 5  ;;  %v7854_v47 = vrot.slane %v7852_v39, 4 }
 0x4fd   :  { %v6862_v51 = vmax.f32 %v6766_v57, 0.0  ;;  %v18680_v3 = vld [vmem:[#allocation4 + $0x64] sm:$0xf] }
 0x4fe   :  { %v6768_v34 = vpop.f32.mrf.mxu0  ;;  %v7858_v52 = vshll.u32 %v18680_v3, 16  ;;  %v7862_v6 = vshrl.u32 %v18680_v3, 16 }
 0x4ff   :  { %v12901_v53 = vpack.c.bf16 %v6862_v51, %v6862_v51  ;;  %v6769_v58 = vadd.f32 %v18546_v35, %v6768_v34 }
 0x500   :  { %v6770_v2 = vpop.f32.mrf.mxu0  ;;  %v7860_v51 = vrot.slane %v7858_v52, 5  ;;  %v7864_v34 = vrot.slane %v7862_v6, 4 }
 0x501   :  { %7083 = vst.msk [vmem:[#allocation4 + $0x68] sm:$0xf] %vm7056_vm0, %v12901_v53  ;;  %v6863_v55 = vmax.f32 %v6769_v58, 0.0  ;;  %v8023_v53 = vor.u32 %v8022_v10, %v8019_v44  ;;  %v7855_v58 = vor.u32 %v7854_v47, %v18693_v37  ;;  %v18698_v2 = vld [vmem:[#allocation4 + $0x58] sm:$0xf] }
 0x503   :  { %v12902_v26 = vpack.c.bf16 %v6863_v55, %v6863_v55  ;;  %13530 = vmatmul.mubr.msk.bf16.gmra.mxu1 %vm7628_vm2, %v18627_v24 }
 0x504   :  { %13533 = vmatprep.mubr.msk.bf16.mxu1 %vm20737_vm4, %v20734_v8 }
 0x505   :  { %7084 = vst.msk [vmem:[#allocation4 + $0x6c] sm:$0xf] %vm7056_vm0, %v12902_v26 }
 0x507   :  { %v6773_v41 = vpop.f32.mrf.mxu0 }
 0x508   :  { %v6774_v40 = vadd.f32 %v18546_v35, %v6773_v41  ;;  %v18686_v61 = vld [vmem:[#allocation4 + $0x68] sm:$0xf] }
 0x509   :  { %v6775_v63 = vpop.f32.mrf.mxu0  ;;  %v7868_v57 = vshll.u32 %v18686_v61, 16  ;;  %v7872_v27 = vshrl.u32 %v18686_v61, 16 }
 0x50a   :  { %v6864_v50 = vmax.f32 %v6774_v40, 0.0 }
 0x50b   :  { %v6776_v16 = vpop.f32.mrf.mxu0  ;;  %13534 = vmatmul.mubr.msk.bf16.gmra.mxu1 %vm7628_vm2, %v18639_v22  ;;  %v7870_v26 = vrot.slane %v7868_v57, 5  ;;  %v7874_v41 = vrot.slane %v7872_v27, 4 }
 0x50c   :  { %v12903_v9 = vpack.c.bf16 %v6864_v50, %v6864_v50  ;;  %v6777_v25 = vadd.f32 %v18546_v35, %v6776_v16  ;;  %13537 = vmatprep.mubr.msk.bf16.mxu1 %vm20737_vm4, %v20734_v8  ;;  %v18703_v50 = vld [vmem:[#allocation4 + $0x6c] sm:$0xf]  ;;  %v7865_v16 = vor.u32 %v7864_v34, %v7860_v51 }
 0x50d   :  { %v6778_v38 = vpop.f32.mrf.mxu0 }
 0x50e   :  { %7085 = vst.msk [vmem:[#allocation4 + $0x70] sm:$0xf] %vm7056_vm0, %v12903_v9  ;;  %v6865_v19 = vmax.f32 %v6777_v25, 0.0  ;;  %v8024_v9 = vrot.slane %v8023_v53, 4  ;;  %v7829_v38 = vshrl.u32 %v18698_v2, 16 }
 0x510   :  { %v12904_v15 = vpack.c.bf16 %v6865_v19, %v6865_v19  ;;  %v18737_v27 = vrot.slane %v7829_v38, 4 }
 0x512   :  { %7086 = vst.msk [vmem:[#allocation4 + $0x74] sm:$0xf] %vm7056_vm0, %v12904_v15  ;;  %v7856_v15 = vrot.slane %v7855_v58, 4 }
 0x513   :  { %13538 = vmatmul.mubr.msk.bf16.gmra.mxu1 %vm7628_vm2, %v18650_v30 }
 0x514   :  { %13541 = vmatprep.mubr.msk.bf16.mxu1 %vm20737_vm4, %v20734_v8 }
 0x515   :  { %v18701_v63 = vld [vmem:[#allocation4 + $0x70] sm:$0xf] }
 0x516   :  { %v6781_v59 = vpop.f32.mrf.mxu0 }
 0x517   :  { %v6782_v7 = vadd.f32 %v18546_v35, %v6781_v59  ;;  %v18706_v59 = vld [vmem:[#allocation4 + $0x5c] sm:$0xf] }
 0x518   :  { %v6783_v45 = vpop.f32.mrf.mxu0  ;;  %v7838_v17 = vshll.u32 %v18706_v59, 16 }
 0x519   :  { %v6866_v13 = vmax.f32 %v6782_v7, 0.0  ;;  %v7832_v7 = vshll.u32 %v18698_v2, 16 }
 0x51a   :  { %v6784_v1 = vpop.f32.mrf.mxu0  ;;  %v18745_v58 = vrot.slane %v7838_v17, 5 }
 0x51b   :  { %v12905_v4 = vpack.c.bf16 %v6866_v13, %v6866_v13  ;;  %v6785_v12 = vadd.f32 %v18546_v35, %v6784_v1  ;;  %13542 = vmatmul.mubr.msk.bf16.gmra.mxu1 %vm7628_vm2, %v13769_v5  ;;  %v8025_v5 = vsel %vm14436_vm6, %v8024_v9, %v18693_v37  ;;  %v7888_v13 = vshll.u32 %v18701_v63, 16 }
 0x51c   :  { %v6786_v31 = vpop.f32.mrf.mxu0  ;;  %13545 = vmatprep.mubr.msk.bf16.mxu1 %vm20737_vm4, %v20734_v8  ;;  %v7875_v1 = vor.u32 %v7874_v41, %v7870_v26  ;;  %v18743_v53 = vrot.slane %v7832_v7, 5 }
 0x51d   :  { %7087 = vst.msk [vmem:[#allocation4 + $0x78] sm:$0xf] %vm7056_vm0, %v12905_v4  ;;  %v6867_v43 = vmax.f32 %v6785_v12, 0.0  ;;  %v7878_v4 = vshll.u32 %v18703_v50, 16  ;;  %v7882_v12 = vshrl.u32 %v18703_v50, 16  ;;  %v18730_v23 = vrot.slane %v7888_v13, 5 }
 0x51f   :  { %v12906_v48 = vpack.c.bf16 %v6867_v43, %v6867_v43  ;;  %v7884_v36 = vrot.slane %v7882_v12, 4 }
 0x521   :  { %7088 = vst.msk [vmem:[#allocation4 + $0x7c] sm:$0xf] %vm7056_vm0, %v12906_v48  ;;  %v7892_v48 = vshrl.u32 %v18701_v63, 16 }
 0x523   :  { %v6789_v54 = vpop.f32.mrf.mxu0  ;;  %13546 = vmatmul.mubr.msk.bf16.gmra.mxu1 %vm7628_vm2, %v13770_v29  ;;  %v7866_v29 = vrot.slane %v7865_v16, 4 }
 0x524   :  { %v6790_v46 = vadd.f32 %v18546_v35, %v6789_v54  ;;  %13549 = vmatprep.mubr.msk.bf16.mxu1 %vm20737_vm4, %v20734_v8  ;;  %v18722_v33 = vld [vmem:[#allocation4 + $0x78] sm:$0xf] }
 0x525   :  { %v6791_v49 = vpop.f32.mrf.mxu0  ;;  %v7908_v47 = vshll.u32 %v18722_v33, 16  ;;  %v7912_v57 = vshrl.u32 %v18722_v33, 16 }
 0x526   :  { %v6868_v14 = vmax.f32 %v6790_v46, 0.0  ;;  %v18717_v46 = vld [vmem:[#allocation4 + $0x74] sm:$0xf]  ;;  %v7842_v49 = vshrl.u32 %v18706_v59, 16 }
 0x527   :  { %v6792_v62 = vpop.f32.mrf.mxu0  ;;  %v7898_v52 = vshll.u32 %v18717_v46, 16  ;;  %v7902_v6 = vshrl.u32 %v18717_v46, 16  ;;  %v18763_v13 = vrot.slane %v7908_v47, 5 }
 0x528   :  { %v12907_v0 = vpack.c.bf16 %v6868_v14, %v6868_v14  ;;  %v6793_v42 = vadd.f32 %v18546_v35, %v6792_v62  ;;  %v8012_v14 = vld [vmem:[#allocation4 + $0x5c] sm:$0xc] }
 0x529   :  { %v6794_v20 = vpop.f32.mrf.mxu0  ;;  %v18749_v41 = vld [vmem:[#allocation4 + $0x7c] sm:$0xf] }
 0x52a   :  { %7089 = vst.msk [vmem:[#allocation4 + $0x80] sm:$0xf] %vm7056_vm0, %v12907_v0  ;;  %v6869_v11 = vmax.f32 %v6793_v42, 0.0  ;;  %v7861_v0 = vsel %vm14436_vm6, %v7856_v15, %v7860_v51  ;;  %v7871_v42 = vsel %vm14436_vm6, %v7866_v29, %v7870_v26  ;;  %v7876_v20 = vrot.slane %v7875_v1, 4 }
 0x52b   :  { %13550 = vmatmul.mubr.msk.bf16.gmra.mxu1 %vm7628_vm2, %v13771_v60  ;;  %v18728_v60 = vmax.bf16 %v8025_v5, %v8012_v14  ;;  %v18741_v34 = vmax.bf16 %v7861_v0, %v18674_v56  ;;  %v18754_v16 = vmax.bf16 %v7871_v42, %v18680_v3  ;;  %v7904_v15 = vrot.slane %v7902_v6, 4 }
 0x52c   :  { %v12908_v28 = vpack.c.bf16 %v6869_v11, %v6869_v11  ;;  %13569 = vmatprep.mubr.msk.bf16.mxu1 %vm20737_vm4, %v20734_v8  ;;  %v7880_v11 = vrot.slane %v7878_v4, 5  ;;  %v7914_v1 = vrot.slane %v7912_v57, 4  ;;  %v7918_v12 = vshll.u32 %v18749_v41, 16 }
 0x52e   :  { %7090 = vst.msk [vmem:[#allocation4 + $0x84] sm:$0xf] %vm7056_vm0, %v12908_v28  ;;  %v7894_v28 = vrot.slane %v7892_v48, 4  ;;  %v7885_v7 = vor.u32 %v7884_v36, %v7880_v11  ;;  %v7920_v6 = vrot.slane %v7918_v12, 5 }
 0x530   :  { %v7895_v38 = vor.u32 %v7894_v28, %v18730_v23  ;;  %v7886_v42 = vrot.slane %v7885_v7, 4 }
 0x531   :  { %v18757_v56 = vld [vmem:[#allocation4 + $0x80] sm:$0xf] }
 0x532   :  { %v6797_v55 = vpop.f32.mrf.mxu0  ;;  %v7932_v17 = vshrl.u32 %v18757_v56, 16  ;;  %v7891_v12 = vsel %vm14436_vm6, %v7886_v42, %v18730_v23 }
 0x533   :  { %v6798_v40 = vadd.f32 %v18546_v35, %v6797_v55  ;;  %v18747_v55 = vrot.slane %v7842_v49, 4 }
 0x534   :  { %v6799_v25 = vpop.f32.mrf.mxu0 }
 0x535   :  { %v6870_v19 = vmax.f32 %v6798_v40, 0.0  ;;  %v7881_v40 = vsel %vm14436_vm6, %v7876_v20, %v7880_v11  ;;  %v18777_v14 = vld [vmem:[#allocation4 + $0x84] sm:$0xf] }
 0x536   :  { %v6800_v45 = vpop.f32.mrf.mxu0  ;;  %v7942_v7 = vshrl.u32 %v18777_v14, 16 }
 0x537   :  { %v12909_v31 = vpack.c.bf16 %v6870_v19, %v6870_v19  ;;  %v6801_v43 = vadd.f32 %v18546_v35, %v6800_v45  ;;  %v18760_v19 = vrot.slane %v7898_v52, 5 }
 0x538   :  { %v6802_v54 = vpop.f32.mrf.mxu0 }
 0x539   :  { %7091 = vst.msk [vmem:[#allocation4 + $0x88] sm:$0xf] %vm7056_vm0, %v12909_v31  ;;  %v6871_v62 = vmax.f32 %v6801_v43, 0.0  ;;  %v7922_v31 = vshrl.u32 %v18749_v41, 16  ;;  %v18770_v43 = vmax.bf16 %v7881_v40, %v18686_v61  ;;  %v7928_v54 = vshll.u32 %v18757_v56, 16 }
 0x53a   :  { %v7905_v0 = vor.u32 %v7904_v15, %v18760_v19 }
 0x53b   :  { %v12910_v39 = vpack.c.bf16 %v6871_v62, %v6871_v62  ;;  %v6805_v44 = vpop.f32.mrf.mxu0  ;;  %v7896_v62 = vrot.slane %v7895_v38, 4  ;;  %v18789_v57 = vrot.slane %v7928_v54, 5 }
 0x53c   :  { %v6806_v10 = vadd.f32 %v18546_v35, %v6805_v44  ;;  %v7915_v44 = vor.u32 %v7914_v1, %v18763_v13 }
 0x53d   :  { %7092 = vst.msk [vmem:[#allocation4 + $0x8c] sm:$0xf] %vm7056_vm0, %v12910_v39  ;;  %v6807_v51 = vpop.f32.mrf.mxu0 }
 0x53e   :  { %v6872_v26 = vmax.f32 %v6806_v10, 0.0  ;;  %v7924_v10 = vrot.slane %v7922_v31, 4  ;;  %v7934_v51 = vrot.slane %v7932_v17, 4  ;;  %v7906_v17 = vrot.slane %v7905_v0, 4 }
 0x53f   :  { %v6808_v25 = vpop.f32.mrf.mxu0 }
 0x540   :  { %v12911_v5 = vpack.c.bf16 %v6872_v26, %v6872_v26  ;;  %v6809_v45 = vadd.f32 %v18546_v35, %v6808_v25  ;;  %v18765_v3 = vld [vmem:[#allocation4 + $0x88] sm:$0xf]  ;;  %v7938_v26 = vshll.u32 %v18777_v14, 16  ;;  %v7925_v54 = vor.u32 %v7924_v10, %v7920_v6 }
 0x541   :  { %v6810_v4 = vpop.f32.mrf.mxu0  ;;  %v7948_v36 = vshll.u32 %v18765_v3, 16  ;;  %v7952_v39 = vshrl.u32 %v18765_v3, 16 }
 0x542   :  { %7093 = vst.msk [vmem:[#allocation4 + $0x90] sm:$0xf] %vm7056_vm0, %v12911_v5  ;;  %v6873_v29 = vmax.f32 %v6809_v45, 0.0  ;;  %v7901_v4 = vsel %vm14436_vm6, %v7896_v62, %v18760_v19  ;;  %v7944_v62 = vrot.slane %v7942_v7, 4 }
 0x543   :  { %v18797_v45 = vrot.slane %v7948_v36, 5  ;;  %v7954_v1 = vrot.slane %v7952_v39, 4  ;;  %v7935_v39 = vor.u32 %v7934_v51, %v18789_v57  ;;  %v7911_v51 = vsel %vm14436_vm6, %v7906_v17, %v18763_v13 }
 0x544   :  { %v12912_v20 = vpack.c.bf16 %v6873_v29, %v6873_v29  ;;  %v18781_v11 = vld [vmem:[#allocation4 + $0x8c] sm:$0xf]  ;;  %v18830_v13 = vmax.bf16 %v7911_v51, %v18717_v46 }
 0x545   :  { %v7958_v28 = vshll.u32 %v18781_v11, 16  ;;  %v7962_v52 = vshrl.u32 %v18781_v11, 16 }
 0x546   :  { %7094 = vst.msk [vmem:[#allocation4 + $0x94] sm:$0xf] %vm7056_vm0, %v12912_v20  ;;  %v6813_v47 = vpop.f32.mrf.mxu0 }
 0x547   :  { %v6814_v25 = vadd.f32 %v18546_v35, %v6813_v47  ;;  %v18794_v38 = vrot.slane %v7958_v28, 5  ;;  %v7964_v15 = vrot.slane %v7962_v52, 4  ;;  %v7916_v35 = vrot.slane %v7915_v44, 4 }
 0x548   :  { %v6815_v5 = vpop.f32.mrf.mxu0  ;;  %v7940_v52 = vrot.slane %v7938_v26, 5  ;;  %v18813_v44 = vmax.bf16 %v7891_v12, %v18703_v50  ;;  %v18822_v26 = vmax.bf16 %v7901_v4, %v18701_v63  ;;  %v7936_v50 = vrot.slane %v7935_v39, 4 }
 0x549   :  { %v6874_v31 = vmax.f32 %v6814_v25, 0.0  ;;  %v18805_v29 = vld [vmem:[#allocation4 + $0x90] sm:$0xf]  ;;  %v7965_v19 = vor.u32 %v7964_v15, %v18794_v38  ;;  %v7955_v25 = vor.u32 %v7954_v1, %v18797_v45  ;;  %v7921_v10 = vsel %vm14436_vm6, %v7916_v35, %v7920_v6 }
 0x54a   :  { %v6816_v20 = vpop.f32.mrf.mxu0  ;;  %v7968_v28 = vshll.u32 %v18805_v29, 16  ;;  %v7972_v36 = vshrl.u32 %v18805_v29, 16  ;;  %v7926_v1 = vrot.slane %v7925_v54, 4  ;;  %v7945_v12 = vor.u32 %v7944_v62, %v7940_v52 }
 0x54b   :  { %v12913_v47 = vpack.c.bf16 %v6874_v31, %v6874_v31  ;;  %v7966_v20 = vrot.slane %v7965_v19, 4  ;;  %v18838_v54 = vmax.bf16 %v7921_v10, %v18722_v33 }
 0x54c   :  { %v6818_v5 = vpop.f32.mrf.mxu0  ;;  %v7970_v23 = vrot.slane %v7968_v28, 5  ;;  %v7974_v42 = vrot.slane %v7972_v36, 4  ;;  %v7931_v6 = vsel %vm14436_vm6, %v7926_v1, %v18789_v57  ;;  %v7941_v57 = vsel %vm14436_vm6, %v7936_v50, %v7940_v52 }
 0x54d   :  { %7095 = vst.msk [vmem:[#allocation4 + $0x98] sm:$0xf] %vm7056_vm0, %v12913_v47  ;;  %v8013_v0 = vld [vmem:[#allocation4 + $0x94] sm:$0xf]  ;;  %v7956_v5 = vrot.slane %v7955_v25, 4  ;;  %v7946_v10 = vrot.slane %v7945_v12, 4  ;;  %v18852_v51 = vmax.bf16 %v7931_v6, %v18749_v41 }
 0x54e   :  { %v7975_v15 = vor.u32 %v7974_v42, %v7970_v23  ;;  %v8027_v7 = vshll.u32 %v8013_v0, 16  ;;  %v8031_v31 = vshrl.u32 %v8013_v0, 16  ;;  %v7971_v46 = vsel %vm14436_vm6, %v7966_v20, %v7970_v23  ;;  %v7827_v52 = vld [vmem:[#allocation4 + $0x94] sm:$0x1] }
 0x54f   :  { %v7961_v33 = vsel %vm14436_vm6, %v7956_v5, %v18794_v38  ;;  %v18857_v1 = vmax.bf16 %v7971_v46, %v18781_v11  ;;  %v7951_v20 = vsel %vm14436_vm6, %v7946_v10, %v18797_v45  ;;  %v18863_v38 = vmax.bf16 %v7941_v57, %v18757_v56 }
 0x550   :  { %v18824_v28 = vrot.slane %v7975_v15, 4  ;;  %v8029_v36 = vrot.slane %v8027_v7, 5  ;;  %v8033_v47 = vrot.slane %v8031_v31, 4  ;;  %v8124_v41 = vshrl.u32 %v18838_v54, 16 }
 0x551   :  { %v8134_v11 = vshrl.u32 %v18852_v51, 16  ;;  %v7978_v46 = vshll.u32 %v7827_v52, 16  ;;  %v18874_v57 = vmax.bf16 %v7951_v20, %v18777_v14  ;;  %v8174_v10 = vshrl.u32 %v18857_v1, 16 }
 0x552   :  { %v8030_v35 = vsel %vm14436_vm6, %v18824_v28, %v8029_v36  ;;  %v8034_v19 = vor.u32 %v8033_v47, %v8029_v36  ;;  %v18867_v47 = vmax.bf16 %v7961_v33, %v18765_v3  ;;  %v8177_v3 = vshll.u32 %v18857_v1, 16 }
 0x553   :  { %v8051_v25 = vmax.bf16 %v8030_v35, %v18805_v29  ;;  %v8127_v35 = vshll.u32 %v18838_v54, 16  ;;  %v8137_v33 = vshll.u32 %v18852_v51, 16  ;;  %v8144_v52 = vshrl.u32 %v18863_v38, 16 }
 0x554   :  { %v8014_v42 = vld [vmem:[#allocation4 + $0x98] sm:$0x7]  ;;  %v8035_v50 = vrot.slane %v8034_v19, 4  ;;  %v7980_v14 = vrot.slane %v7978_v46, 5  ;;  %v8179_v4 = vrot.slane %v8177_v3, 7  ;;  %v8147_v63 = vshll.u32 %v18863_v38, 16 }
 0x555   :  { %v8037_v15 = vshll.u32 %v8014_v42, 16  ;;  %v8041_v7 = vshrl.u32 %v8014_v42, 16  ;;  %v8184_v5 = vshrl.u32 %v8051_v25, 16  ;;  %v8187_v6 = vshll.u32 %v8051_v25, 16 }
 0x557   :  { %v8039_v12 = vrot.slane %v8037_v15, 5  ;;  %v8043_v36 = vrot.slane %v8041_v7, 4  ;;  %v8164_v15 = vshrl.u32 %v18867_v47, 16  ;;  %v8167_v7 = vshll.u32 %v18867_v47, 16 }
 0x559   :  { %v8040_v45 = vsel %vm14436_vm6, %v8035_v50, %v8039_v12  ;;  %v8044_v56 = vor.u32 %v8043_v36, %v8039_v12  ;;  %v8186_v12 = vrot.slane %v8184_v5, 6  ;;  %v8189_v36 = vrot.slane %v8187_v6, 7 }
 0x55a   :  { %v8052_v19 = vmax.bf16 %v8040_v45, %v8013_v0  ;;  %v8154_v0 = vshrl.u32 %v18874_v57, 16  ;;  %v8157_v45 = vshll.u32 %v18874_v57, 16  ;;  %v8166_v5 = vrot.slane %v8164_v15, 6 }
 0x55b   :  { %v8045_v25 = vrot.slane %v8044_v56, 4  ;;  %v8176_v56 = vrot.slane %v8174_v10, 6  ;;  %v8169_v6 = vrot.slane %v8167_v7, 7  ;;  %v8149_v15 = vrot.slane %v8147_v63, 7 }
 0x55c   :  { %v8194_v9 = vshrl.u32 %v8052_v19, 16  ;;  %v8197_v50 = vshll.u32 %v8052_v19, 16  ;;  %v8190_v19 = vor.u32 %v8189_v36, %v8186_v12  ;;  %v8156_v10 = vrot.slane %v8154_v0, 6 }
 0x55d   :  { %v8053_v20 = vmax.bf16 %v8045_v25, %v8014_v42  ;;  %v7981_v42 = vsel %vm14436_vm6, %v18824_v28, %v7980_v14  ;;  %v8159_v3 = vrot.slane %v8157_v45, 7  ;;  %v8136_v12 = vrot.slane %v8134_v11, 6 }
 0x55e   :  { %v8196_v61 = vrot.slane %v8194_v9, 6  ;;  %v8199_v49 = vrot.slane %v8197_v50, 7  ;;  %v8180_v50 = vor.u32 %v8179_v4, %v8176_v56  ;;  %v8139_v28 = vrot.slane %v8137_v33, 7 }
 0x55f   :  { %v6821_v48 = vpop.f32.mrf.mxu0  ;;  %v8204_v40 = vshrl.u32 %v8053_v20, 16  ;;  %v8207_v17 = vshll.u32 %v8053_v20, 16  ;;  %v8146_v20 = vrot.slane %v8144_v52, 6  ;;  %v8160_v14 = vor.u32 %v8159_v3, %v8156_v10 }
 0x560   :  { %v8200_v39 = vor.u32 %v8199_v49, %v8196_v61  ;;  %v8192_v49 = vrot.slane %v8190_v19, 4  ;;  %v8170_v61 = vor.u32 %v8169_v6, %v8166_v5  ;;  %v8182_v36 = vrot.slane %v8180_v50, 4 }
 0x561   :  { %v6823_v62 = vpop.f32.mrf.mxu0  ;;  %v8206_v46 = vrot.slane %v8204_v40, 6  ;;  %v8209_v25 = vrot.slane %v8207_v17, 7  ;;  %v8129_v52 = vrot.slane %v8127_v35, 7  ;;  %v20738_v33 = vshrl.u32 %v18830_v13, 16 }
 0x562   :  { %v8202_v9 = vrot.slane %v8200_v39, 4  ;;  %v8011_v62 = vmax.bf16 %v7981_v42, %v18805_v29  ;;  %v8201_v4 = vsel %vm18505_vm12, %v8192_v49, %v8200_v39  ;;  %v8191_v63 = vsel %vm18505_vm12, %v8182_v36, %v8190_v19 }
 0x563   :  { %v6824_v48 = vpop.f32.mrf.mxu0  ;;  %v8210_v31 = vor.u32 %v8209_v25, %v8206_v46  ;;  %v8172_v45 = vrot.slane %v8170_v61, 4  ;;  %v8240_v11 = vmax.bf16 %v8201_v4, %v18857_v1  ;;  %v8116_v56 = vrot.slane %v20738_v33, 6 }
 0x564   :  { %v20739_v5 = vshll.u32 %v18830_v13, 16  ;;  %v8140_v46 = vor.u32 %v8139_v28, %v8136_v12  ;;  %v8239_v19 = vmax.bf16 %v8191_v63, %v18867_v47  ;;  %v20741_v25 = vshrl.u32 %v18822_v26, 16 }
 0x565   :  { %v6826_v23 = vpop.f32.mrf.mxu0  ;;  %v8211_v7 = vsel %vm18505_vm12, %v8202_v9, %v8210_v31  ;;  %v8150_v31 = vor.u32 %v8149_v15, %v8146_v20  ;;  %v8181_v35 = vsel %vm18505_vm12, %v8172_v45, %v8180_v50  ;;  %v20742_v20 = vshll.u32 %v18822_v26, 16 }
 0x566   :  { %v8241_v17 = vmax.bf16 %v8211_v7, %v8011_v62  ;;  %v8126_v23 = vrot.slane %v8124_v41, 6  ;;  %v8119_v39 = vrot.slane %v20739_v5, 7  ;;  %v8162_v41 = vrot.slane %v8160_v14, 4 }
 0x567   :  { %v6829_v40 = vpop.f32.mrf.mxu0  ;;  %v8106_v1 = vrot.slane %v20741_v25, 6  ;;  %v8152_v10 = vrot.slane %v8150_v31, 4  ;;  %v8109_v62 = vrot.slane %v20742_v20, 7  ;;  %v12440_v49 = vcombine.low %v8239_v19, %v8240_v11 }
 0x568   :  { %v12441_v0 = vcombine.low %v8241_v17, %v8241_v17  ;;  %v8171_v9 = vsel %vm18505_vm12, %v8162_v41, %v8170_v61  ;;  %v8130_v3 = vor.u32 %v8129_v52, %v8126_v23  ;;  %v8238_v50 = vmax.bf16 %v8181_v35, %v18874_v57 }
 0x569   :  { %v6831_v29 = vpop.f32.mrf.mxu0  ;;  %v20743_v15 = vshrl.u32 %v18813_v44, 16  ;;  %v8142_v7 = vrot.slane %v8140_v46, 4  ;;  %v8161_v12 = vsel %vm18505_vm12, %v8152_v10, %v8160_v14  ;;  %v8120_v28 = vor.u32 %v8119_v39, %v8116_v56 }
 0x56a   :  { %v8288_v42 = vsel %vm20740_vm7, %v12441_v0, 0  ;;  %v20744_v40 = vshll.u32 %v18813_v44, 16  ;;  %v8237_v61 = vmax.bf16 %v8171_v9, %v18863_v38  ;;  %v20745_v36 = vshrl.u32 %v18770_v43, 16 }
 0x56b   :  { %v6832_v6 = vpop.f32.mrf.mxu0  ;;  %13554 = vmatpush3.bf16.msra.mxu1 %v8288_v42  ;;  %v8096_v47 = vrot.slane %v20743_v15, 6  ;;  %v8067_v23 = vshll.u32 %v18741_v34, 16  ;;  %v8151_v57 = vsel %vm18505_vm12, %v8142_v7, %v8150_v31  ;;  %v8132_v52 = vrot.slane %v8130_v3, 4 }
 0x56c   :  { %13555 = vmatprep.subr.bf16.mxu1 %v20734_v8  ;;  %v8099_v17 = vrot.slane %v20744_v40, 7  ;;  %v8086_v4 = vrot.slane %v20745_v36, 6  ;;  %v8110_v29 = vor.u32 %v8109_v62, %v8106_v1  ;;  %v20746_v14 = vshll.u32 %v18770_v43, 16 }
 0x56d   :  { %v6834_v48 = vpop.f32.mrf.mxu0  ;;  %v12439_v63 = vcombine.low %v8237_v61, %v8238_v50  ;;  %v8236_v45 = vmax.bf16 %v8161_v12, %v18852_v51  ;;  %v20747_v38 = vshrl.u32 %v18754_v16, 16  ;;  %v8058_v33 = vshll.u32 %v18728_v60, 16 }
 0x56e   :  { %v8089_v0 = vrot.slane %v20746_v14, 7  ;;  %v8122_v56 = vrot.slane %v8120_v28, 4  ;;  %v8141_v5 = vsel %vm18505_vm12, %v8132_v52, %v8140_v46  ;;  %v8100_v39 = vor.u32 %v8099_v17, %v8096_v47 }
 0x56f   :  { %13556 = vmatpush3.bf16.msra.mxu1 %v12440_v49  ;;  %v8076_v11 = vrot.slane %v20747_v38, 6  ;;  %v20748_v31 = vshll.u32 %v18754_v16, 16  ;;  %v8235_v42 = vmax.bf16 %v8151_v57, %v18838_v54  ;;  %v7835_v41 = vor.u32 %v18743_v53, %v18737_v27  ;;  %v13793_v38 = vld [vmem:[%s20591_s5 + $0x54] ss:$8 sps:$4 sm:$0xff]  }
 0x570   :  { %13557 = vmatprep.subr.bf16.mxu1 %v20734_v8  ;;  %v20749_v51 = vshrl.u32 %v18741_v34, 16  ;;  %v8131_v19 = vsel %vm18505_vm12, %v8122_v56, %v8130_v3  ;;  %v8112_v25 = vrot.slane %v8110_v29, 4  ;;  %v8090_v46 = vor.u32 %v8089_v0, %v8086_v4  ;;  %v13791_v56 = vld [vmem:[%s20591_s5 + $0x50] ss:$8 sps:$4 sm:$0xff]  }
 0x571   :  { %v8079_v6 = vrot.slane %v20748_v31, 7  ;;  %v8069_v1 = vrot.slane %v8067_v23, 7  ;;  %v12438_v48 = vcombine.low %v8235_v42, %v8236_v45  ;;  %v8234_v9 = vmax.bf16 %v8141_v5, %v18830_v13  ;;  %v13785_v45 = vld [vmem:[%s20591_s5 + $0x60] ss:$8 sps:$4 sm:$0xff]   ;;  %v13799_v5 = vld [vmem:[%s20591_s5 + $0x44] ss:$8 sps:$4 sm:$0xff]  }
 0x572   :  { %v8066_v35 = vrot.slane %v20749_v51, 6  ;;  %v7845_v54 = vor.u32 %v18747_v55, %v18745_v58  ;;  %v20750_v10 = vshrl.u32 %v18728_v60, 16  ;;  %v8102_v53 = vrot.slane %v8100_v39, 4  ;;  %v13800_v31 = vld [vmem:[%s20591_s5 + $0x150] ss:$8 sps:$4 sm:$0xff]  }
 0x573   :  { %13558 = vmatpush3.bf16.msra.mxu1 %v12439_v63  ;;  %v8121_v20 = vsel %vm18505_vm12, %v8112_v25, %v8120_v28  ;;  %v8080_v62 = vor.u32 %v8079_v6, %v8076_v11  ;;  %v8060_v49 = vrot.slane %v8058_v33, 7  ;;  %v8233_v3 = vmax.bf16 %v8131_v19, %v18822_v26  ;;  %v13794_v11 = vld [vmem:[%s20591_s5 + $0x160] ss:$8 sps:$4 sm:$0xff]   ;;  %v13796_v33 = vld [vmem:[%s20591_s5 + $0x164] ss:$8 sps:$4 sm:$0xff]  }
 0x574   :  { %13559 = vmatprep.subr.bf16.mxu1 %v20734_v8  ;;  %v8057_v27 = vrot.slane %v20750_v10, 6  ;;  %v8111_v13 = vsel %vm18505_vm12, %v8102_v53, %v8110_v29  ;;  %v8092_v50 = vrot.slane %v8090_v46, 4  ;;  %v8070_v15 = vor.u32 %v8069_v1, %v8066_v35  ;;  %v13808_v6 = vld [vmem:[%s20591_s5 + $0x144] ss:$8 sps:$4 sm:$0xff]   ;;  %v13805_v42 = vld [vmem:[%s20591_s5 + $0x34] ss:$8 sps:$4 sm:$0xff]  }
 0x575   :  { %v12437_v55 = vcombine.low %v8233_v3, %v8234_v9  ;;  %v8232_v60 = vmax.bf16 %v8121_v20, %v18813_v44  ;;  %v7836_v47 = vrot.slane %v7835_v41, 4  ;;  %v8082_v7 = vrot.slane %v8080_v62, 4  ;;  %v13806_v41 = vld [vmem:[%s20591_s5 + $0x140] ss:$8 sps:$4 sm:$0xff]   ;;  %v13814_v51 = vld [vmem:[%s20591_s5 + $0x134] ss:$8 sps:$4 sm:$0xff]  }
 0x576   :  { %v8101_v12 = vsel %vm18505_vm12, %v8092_v50, %v8100_v39  ;;  %v7846_v28 = vrot.slane %v7845_v54, 4  ;;  %v8061_v40 = vor.u32 %v8060_v49, %v8057_v27  ;;  %v8231_v26 = vmax.bf16 %v8111_v13, %v18770_v43  ;;  %v13802_v39 = vld [vmem:[%s20591_s5 + $0x154] ss:$8 sps:$4 sm:$0xff]   ;;  %v13803_v35 = vld [vmem:[%s20591_s5 + $0x30] ss:$8 sps:$4 sm:$0xff]   ;;  %v14107_v13 = vld [vmem:[%s20590_s8 + $0x20] sm:$0xff]  }
 0x577   :  { %13560 = vmatpush3.bf16.msra.mxu1 %v12438_v48  ;;  %v8091_v17 = vsel %vm18505_vm12, %v8082_v7, %v8090_v46  ;;  %v8072_v44 = vrot.slane %v8070_v15, 4  ;;  %v8230_v4 = vmax.bf16 %v8101_v12, %v18754_v16  ;;  %v7841_v23 = vsel %vm14436_vm6, %v7836_v47, %v18745_v58  ;;  %v13811_v19 = vld [vmem:[%s20591_s5 + $0x24] ss:$8 sps:$4 sm:$0xff]   ;;  %v13812_v25 = vld [vmem:[%s20591_s5 + $0x130] ss:$8 sps:$4 sm:$0xff]  }
 0x578   :  { %13561 = vmatprep.subr.bf16.mxu1 %v20734_v8  ;;  %v7851_v61 = vsel %vm14436_vm6, %v7846_v28, %v18693_v37  ;;  %v12436_v36 = vcombine.low %v8231_v26, %v8232_v60  ;;  %v8062_v57 = vrot.slane %v8061_v40, 4  ;;  %v8229_v52 = vmax.bf16 %v8091_v17, %v18741_v34  ;;  %v13782_v34 = vld [vmem:[%s20591_s5 + $0x70] ss:$8 sps:$4 sm:$0xff]   ;;  %v13820_v46 = vld [vmem:[%s20591_s5 + $0x124] ss:$8 sps:$4 sm:$0xff]  }
 0x579   :  { %v8081_v43 = vsel %vm18505_vm12, %v8072_v44, %v8080_v62  ;;  %v7998_v29 = vmax.bf16 %v7851_v61, %v18706_v59  ;;  %v7997_v16 = vmax.bf16 %v7841_v23, %v18698_v2  ;;  %v13787_v2 = vld [vmem:[%s20591_s5 + $0x64] ss:$8 sps:$4 sm:$0xff]   ;;  %v13788_v59 = vld [vmem:[%s20591_s5 + $0x170] ss:$8 sps:$4 sm:$0xff]   ;;  %v13817_v1 = vld [vmem:[%s20591_s5 + $0x14] ss:$8 sps:$4 sm:$0xff]  }
 0x57a   :  { %v8071_v37 = vsel %vm18505_vm12, %v8062_v57, %v8070_v15  ;;  %v12435_v14 = vcombine.low %v8229_v52, %v8230_v4  ;;  %v13818_v48 = vld [vmem:[%s20591_s5 + $0x120] ss:$8 sps:$4 sm:$0xff]   ;;  %v13826_v9 = vld [vmem:[%s20591_s5 + $0x114] ss:$8 sps:$4 sm:$0xff]   ;;  %v13815_v54 = vld [vmem:[%s20591_s5 + $0x10] ss:$8 sps:$4 sm:$0xff]  }
 0x57b   :  { %13562 = vmatpush3.bf16.msra.mxu1 %v12437_v55  ;;  %v8228_v0 = vmax.bf16 %v8081_v43, %v7998_v29  ;;  %v8227_v58 = vmax.bf16 %v8071_v37, %v7997_v16  ;;  %v13823_v10 = vld [vmem:[%s20591_s5 + $0x4] ss:$8 sps:$4 sm:$0xff]   ;;  %v13824_v27 = vld [vmem:[%s20591_s5 + $0x110] ss:$8 sps:$4 sm:$0xff]   ;;  %v13829_v20 = vld [vmem:[%s20591_s5 + $0xf4] ss:$8 sps:$4 sm:$0xff]  }
 0x57c   :  { %13563 = vmatprep.subr.bf16.mxu1 %v20734_v8  ;;  %v13832_v53 = vld [vmem:[%s20591_s5 + $0x104] ss:$8 sps:$4 sm:$0xff]   ;;  %v13830_v62 = vld [vmem:[%s20591_s5 + $0x100] ss:$8 sps:$4 sm:$0xff]   ;;  %v13838_v49 = vld [vmem:[%s20591_s5 + $0x1f4] ss:$8 sps:$4 sm:$0xff]  }
 0x57d   :  { %v12434_v63 = vcombine.low %v8227_v58, %v8228_v0  ;;  %v13827_v3 = vld [vmem:[%s20591_s5 + $0xf0] ss:$8 sps:$4 sm:$0xff]   ;;  %v13835_v50 = vld [vmem:[%s20591_s5 + $0xe4] ss:$8 sps:$4 sm:$0xff]   ;;  %v13833_v15 = vld [vmem:[%s20591_s5 + $0xe0] ss:$8 sps:$4 sm:$0xff]  }
 0x57e   :  { %v13836_v55 = vld [vmem:[%s20591_s5 + $0x1f0] ss:$8 sps:$4 sm:$0xff]   ;;  %v13841_v60 = vld [vmem:[%s20591_s5 + $0xd4] ss:$8 sps:$4 sm:$0xff]   ;;  %v13844_v47 = vld [vmem:[%s20591_s5 + $0x1e4] ss:$8 sps:$4 sm:$0xff]  }
 0x57f   :  { %13564 = vmatpush3.bf16.msra.mxu1 %v12436_v36  ;;  %v13842_v7 = vld [vmem:[%s20591_s5 + $0x1e0] ss:$8 sps:$4 sm:$0xff]   ;;  %v13850_v12 = vld [vmem:[%s20591_s5 + $0x1d4] ss:$8 sps:$4 sm:$0xff]   ;;  %v13839_v28 = vld [vmem:[%s20591_s5 + $0xd0] ss:$8 sps:$4 sm:$0xff]  }
 0x580   :  { %13565 = vmatprep.subr.bf16.mxu1 %v20734_v8  ;;  %v13847_v40 = vld [vmem:[%s20591_s5 + $0xc4] ss:$8 sps:$4 sm:$0xff]   ;;  %v13848_v17 = vld [vmem:[%s20591_s5 + $0x1d0] ss:$8 sps:$4 sm:$0xff]   ;;  %v13845_v44 = vld [vmem:[%s20591_s5 + $0xc0] ss:$8 sps:$4 sm:$0xff]  }
 0x581   :  { %v14108_v26 = vld [vmem:[%s20590_s8 + $0x28] sm:$0xff]   ;;  %v13862_v4 = vld [vmem:[%s20591_s5 + $0x1b4] ss:$8 sps:$4 sm:$0xff]   ;;  %v13851_v23 = vld [vmem:[%s20591_s5 + $0xb0] ss:$8 sps:$4 sm:$0xff]  }
 0x582   :  { %v13856_v61 = vld [vmem:[%s20591_s5 + $0x1c4] ss:$8 sps:$4 sm:$0xff]   ;;  %v13854_v36 = vld [vmem:[%s20591_s5 + $0x1c0] ss:$8 sps:$4 sm:$0xff]   ;;  %v14109_v57 = vld [vmem:[%s20590_s8 + $0x30] sm:$0xff]  }
 0x583   :  { %13566 = vmatpush3.bf16.msra.mxu1 %v12435_v14  ;;  %v13859_v43 = vld [vmem:[%s20591_s5 + $0xa4] ss:$8 sps:$4 sm:$0xff]   ;;  %v13860_v29 = vld [vmem:[%s20591_s5 + $0x1b0] ss:$8 sps:$4 sm:$0xff]   ;;  %v13857_v16 = vld [vmem:[%s20591_s5 + $0xa0] ss:$8 sps:$4 sm:$0xff]  }
 0x584   :  { %13567 = vmatprep.subr.bf16.mxu1 %v20734_v8  ;;  %v13865_v0 = vld [vmem:[%s20591_s5 + $0x94] ss:$8 sps:$4 sm:$0xff]  }
 0x587   :  { %13568 = vmatpush3.bf16.msra.mxu1 %v12434_v63 }
 0x588   :  { %9868 = vmatprep.subr.bf16.mxu1 %v13784_v18  ;;  %v13863_v18 = vld [vmem:[%s20591_s5 + $0x90] ss:$8 sps:$4 sm:$0xff]  }
 0x58a   :  { %13570 = vmatmul.mubr.msk.bf16.vlgmr.msra.gmra.mxu1 %vm7628_vm2, %v18615_v21  ;;  %v13790_v21 = vld [vmem:[%s20591_s5 + $0x174] ss:$8 sps:$4 sm:$0xff]  }
 0x58b   :  { %13573 = vmatprep.mubr.msk.bf16.mxu1 %vm20737_vm4, %v20734_v8  ;;  %9869 = vmatpush1.bf16.msra.mxu1 %v13782_v34 }
 0x58c   :  { %9870 = vmatprep.subr.bf16.mxu1 %v13787_v2  ;;  %10011 = vmatprep.subr.bf16.mxu0 %v13790_v21 }
 0x58d   :  { %10012 = vmatpush1.bf16.msra.mxu0 %v13788_v59 }
 0x58e   :  { %10013 = vmatprep.subr.bf16.mxu0 %v13796_v33 }
 0x58f   :  { %9871 = vmatpush1.bf16.msra.mxu1 %v13785_v45 }
 0x590   :  { %9872 = vmatprep.subr.bf16.mxu1 %v13793_v38 }
 0x591   :  { %10014 = vmatpush1.bf16.msra.mxu0 %v13794_v11 }
 0x592   :  { %13574 = vmatmul.mubr.msk.bf16.gmra.mxu1 %vm7628_vm2, %v18627_v24  ;;  %10015 = vmatprep.subr.bf16.mxu0 %v13802_v39  ;;  %v13797_v24 = vld [vmem:[%s20591_s5 + $0x40] ss:$8 sps:$4 sm:$0xff]  }
 0x593   :  { %13577 = vmatprep.mubr.msk.bf16.mxu1 %vm20737_vm4, %v20734_v8  ;;  %9873 = vmatpush1.bf16.msra.mxu1 %v13791_v56 }
 0x594   :  { %9874 = vmatprep.subr.bf16.mxu1 %v13799_v5 }
 0x595   :  { %10016 = vmatpush1.bf16.msra.mxu0 %v13800_v31 }
 0x596   :  { %10017 = vmatprep.subr.bf16.mxu0 %v13808_v6 }
 0x597   :  { %9875 = vmatpush1.bf16.msra.mxu1 %v13797_v24 }
 0x598   :  { %9876 = vmatprep.subr.bf16.mxu1 %v13805_v42 }
 0x599   :  { %10018 = vmatpush1.bf16.msra.mxu0 %v13806_v41 }
 0x59a   :  { %13578 = vmatmul.mubr.msk.bf16.gmra.mxu1 %vm7628_vm2, %v18639_v22  ;;  %10019 = vmatprep.subr.bf16.mxu0 %v13814_v51  ;;  %v13809_v22 = vld [vmem:[%s20591_s5 + $0x20] ss:$8 sps:$4 sm:$0xff]  }
 0x59b   :  { %13581 = vmatprep.mubr.msk.bf16.mxu1 %vm20737_vm4, %v20734_v8  ;;  %9877 = vmatpush1.bf16.msra.mxu1 %v13803_v35  ;;  %v13866_v51 = vld [vmem:[%s20591_s5 + $0x1a0] ss:$8 sps:$4 sm:$0xff]  }
 0x59c   :  { %9878 = vmatprep.subr.bf16.mxu1 %v13811_v19 }
 0x59d   :  { %10020 = vmatpush1.bf16.msra.mxu0 %v13812_v25  ;;  %v13868_v25 = vld [vmem:[%s20591_s5 + $0x1a4] ss:$8 sps:$4 sm:$0xff]  }
 0x59e   :  { %10021 = vmatprep.subr.bf16.mxu0 %v13820_v46  ;;  %v13869_v46 = vld [vmem:[%s20591_s5 + $0x80] ss:$8 sps:$4 sm:$0xff]  }
 0x59f   :  { %9879 = vmatpush1.bf16.msra.mxu1 %v13809_v22 }
 0x5a0   :  { %9880 = vmatprep.subr.bf16.mxu1 %v13817_v1  ;;  %v13871_v1 = vld [vmem:[%s20591_s5 + $0x84] ss:$8 sps:$4 sm:$0xff]  }
 0x5a1   :  { %10022 = vmatpush1.bf16.msra.mxu0 %v13818_v48 }
 0x5a2   :  { %13582 = vmatmul.mubr.msk.bf16.gmra.mxu1 %vm7628_vm2, %v18650_v30  ;;  %10023 = vmatprep.subr.bf16.mxu0 %v13826_v9  ;;  %v13821_v30 = vld [vmem:[%s20591_s5] ss:$8 sps:$4 sm:$0xff]  }
 0x5a3   :  { %13585 = vmatprep.mubr.msk.bf16.mxu1 %vm20737_vm4, %v20734_v8  ;;  %9881 = vmatpush1.bf16.msra.mxu1 %v13815_v54 }
 0x5a4   :  { %9882 = vmatprep.subr.bf16.mxu1 %v13823_v10 }
 0x5a5   :  { %10024 = vmatpush1.bf16.msra.mxu0 %v13824_v27 }
 0x5a6   :  { %10025 = vmatprep.subr.bf16.mxu0 %v13832_v53 }
 0x5a7   :  { %9883 = vmatpush1.bf16.msra.mxu1 %v13821_v30 }
 0x5a8   :  { %9884 = vmatprep.subr.bf16.mxu1 %v13829_v20 }
 0x5a9   :  { %10026 = vmatpush1.bf16.msra.mxu0 %v13830_v62 }
 0x5aa   :  { %13586 = vmatmul.mubr.msk.bf16.gmra.mxu1 %vm7628_vm2, %v14107_v13  ;;  %10027 = vmatprep.subr.bf16.mxu0 %v13838_v49  ;;  %v13872_v49 = vld [vmem:[%s20591_s5 + $0x190] ss:$8 sps:$4 sm:$0xff]   ;;  %v13874_v13 = vld [vmem:[%s20591_s5 + $0x194] ss:$8 sps:$4 sm:$0xff]  }
 0x5ab   :  { %13589 = vmatprep.mubr.msk.bf16.mxu1 %vm20737_vm4, %v20734_v8  ;;  %9885 = vmatpush2.bf16.msra.mxu1 %v13827_v3 }
 0x5ac   :  { %9886 = vmatprep.subr.bf16.mxu1 %v13835_v50 }
 0x5ad   :  { %10028 = vmatpush2.bf16.msra.mxu0 %v13836_v55 }
 0x5ae   :  { %10029 = vmatprep.subr.bf16.mxu0 %v13844_v47 }
 0x5af   :  { %9887 = vmatpush2.bf16.msra.mxu1 %v13833_v15 }
 0x5b0   :  { %9888 = vmatprep.subr.bf16.mxu1 %v13841_v60 }
 0x5b1   :  { %10030 = vmatpush2.bf16.msra.mxu0 %v13842_v7 }
 0x5b2   :  { %13590 = vmatmul.mubr.msk.bf16.gmra.mxu1 %vm7628_vm2, %v14108_v26  ;;  %10031 = vmatprep.subr.bf16.mxu0 %v13850_v12 }
 0x5b3   :  { %13593 = vmatprep.mubr.msk.bf16.mxu1 %vm20737_vm4, %v20734_v8  ;;  %9889 = vmatpush2.bf16.msra.mxu1 %v13839_v28  ;;  %v13853_v8 = vld [vmem:[%s20591_s5 + $0xb4] ss:$8 sps:$4 sm:$0xff]  }
 0x5b4   :  { %9890 = vmatprep.subr.bf16.mxu1 %v13847_v40 }
 0x5b5   :  { %10032 = vmatpush2.bf16.msra.mxu0 %v13848_v17 }
 0x5b6   :  { %10033 = vmatprep.subr.bf16.mxu0 %v13856_v61 }
 0x5b7   :  { %9891 = vmatpush2.bf16.msra.mxu1 %v13845_v44 }
 0x5b8   :  { %9892 = vmatprep.subr.bf16.mxu1 %v13853_v8  ;;  %v13875_v8 = vld [vmem:[%s20591_s5 + $0x180] ss:$8 sps:$4 sm:$0xff]  }
 0x5b9   :  { %10034 = vmatpush2.bf16.msra.mxu0 %v13854_v36 }
 0x5ba   :  { %13594 = vmatmul.mubr.msk.bf16.gmra.mxu1 %vm7628_vm2, %v14109_v57  ;;  %10035 = vmatprep.subr.bf16.mxu0 %v13862_v4 }
 0x5bb   :  { %v7687_v52 = vpop.f32.mrf.mxu1  ;;  %9893 = vmatpush2.bf16.msra.mxu1 %v13851_v23 }
 0x5bc   :  { %v12919_v37 = vpack.c.bf16 %v7687_v52, %v7687_v52  ;;  %9894 = vmatprep.subr.bf16.mxu1 %v13859_v43  ;;  %v13877_v52 = vld [vmem:[%s20591_s5 + $0x184] ss:$8 sps:$4 sm:$0xff]  }
 0x5bd   :  { %v13527_v14 = vpop.f32.mrf.mxu1  ;;  %10036 = vmatpush2.bf16.msra.mxu0 %v13860_v29 }
 0x5be   :  { %7798 = vst.msk [vmem:[#allocation5] sm:$0xf] %vm7056_vm0, %v12919_v37  ;;  %10037 = vmatprep.subr.bf16.mxu0 %v13868_v25 }
 0x5bf   :  { %v7690_v58 = vpop.f32.mrf.mxu1  ;;  %9895 = vmatpush2.bf16.msra.mxu1 %v13857_v16 }
 0x5c0   :  { %v12920_v63 = vpack.c.bf16 %v7690_v58, %v7690_v58  ;;  %9896 = vmatprep.subr.bf16.mxu1 %v13865_v0 }
 0x5c1   :  { %v13528_v34 = vpop.f32.mrf.mxu1  ;;  %10038 = vmatpush2.bf16.msra.mxu0 %v13866_v51 }
 0x5c2   :  { %7799 = vst.msk [vmem:[#allocation5 + $0x4] sm:$0xf] %vm7056_vm0, %v12920_v63  ;;  %10039 = vmatprep.subr.bf16.mxu0 %v13874_v13 }
 0x5c3   :  { %v7695_v2 = vpop.f32.mrf.mxu1  ;;  %9897 = vmatpush2.bf16.msra.mxu1 %v13863_v18 }
 0x5c4   :  { %v12921_v59 = vpack.c.bf16 %v7695_v2, %v7695_v2  ;;  %9898 = vmatprep.subr.bf16.mxu1 %v13871_v1 }
 0x5c5   :  { %v13531_v21 = vpop.f32.mrf.mxu1  ;;  %v8449_v38 = vld [vmem:[#allocation5] sm:$0xf]  ;;  %10040 = vmatpush2.bf16.msra.mxu0 %v13872_v49 }
 0x5c6   :  { %7800 = vst.msk [vmem:[#allocation5 + $0x8] sm:$0xf] %vm7056_vm0, %v12921_v59  ;;  %10041 = vmatprep.subr.bf16.mxu0 %v13877_v52 }
 0x5c7   :  { %v7698_v45 = vpop.f32.mrf.mxu1  ;;  %9899 = vmatpush2.bf16.msra.mxu1 %v13869_v46 }
 0x5c8   :  { %v12922_v11 = vpack.c.bf16 %v7698_v45, %v7698_v45 }
 0x5c9   :  { %v13532_v33 = vpop.f32.mrf.mxu1  ;;  %v19182_v56 = vld [vmem:[#allocation5 + $0x4] sm:$0xf]  ;;  %10042 = vmatpush2.bf16.msra.mxu0 %v13875_v8 }
 0x5ca   :  { %7801 = vst.msk [vmem:[#allocation5 + $0xc] sm:$0xf] %vm7056_vm0, %v12922_v11  ;;  %v19186_v5 = vcombine.low %v8449_v38, %v19182_v56  ;;  %v8464_v31 = vld [vmem:[#allocation5 + $0x4] sm:$0xe] }
 0x5cb   :  { %v7703_v39 = vpop.f32.mrf.mxu1 }
 0x5cc   :  { %v12923_v6 = vpack.c.bf16 %v7703_v39, %v7703_v39  ;;  %v8505_v24 = vshll.u32 %v19186_v5, 16  ;;  %v8503_v9 = vshrl.u32 %v19186_v5, 16 }
 0x5cd   :  { %v13535_v42 = vpop.f32.mrf.mxu1  ;;  %v8451_v41 = vld [vmem:[#allocation5 + $0x8] sm:$0xf] }
 0x5ce   :  { %7802 = vst.msk [vmem:[#allocation5 + $0x10] sm:$0xf] %vm7056_vm0, %v12923_v6  ;;  %v12471_v35 = vcombine.low %v19182_v56, %v8451_v41  ;;  %v19194_v19 = vcombine.low %v8464_v31, %v8451_v41  ;;  %v8507_v54 = vrot.slane %v8505_v24, 1  ;;  %v8466_v27 = vld [vmem:[#allocation5 + $0x8] sm:$0xe] }
 0x5cf   :  { %v7706_v22 = vpop.f32.mrf.mxu1 }
 0x5d0   :  { %v12924_v48 = vpack.c.bf16 %v7706_v22, %v7706_v22  ;;  %v8588_v10 = vshll.u32 %v12471_v35, 16  ;;  %v8662_v20 = vshrl.u32 %v19194_v19, 16  ;;  %v8665_v62 = vshll.u32 %v19194_v19, 16 }
 0x5d1   :  { %v13536_v53 = vpop.f32.mrf.mxu1  ;;  %v8452_v30 = vld [vmem:[#allocation5 + $0xc] sm:$0xf]  ;;  %v8586_v15 = vshrl.u32 %v12471_v35, 16  ;;  %v8508_v7 = vor.u32 %v8507_v54, %v8503_v9  ;;  %v8647_v43 = vrot.slane %v19194_v19, 1 }
 0x5d2   :  { %7803 = vst.msk [vmem:[#allocation5 + $0x14] sm:$0xf] %vm7056_vm0, %v12924_v48  ;;  %v19212_v3 = vcombine.low %v8451_v41, %v8452_v30  ;;  %v8590_v55 = vrot.slane %v8588_v10, 1  ;;  %v19217_v60 = vcombine.low %v8466_v27, %v8452_v30  ;;  %v8664_v26 = vrot.slane %v8662_v20, 1 }
 0x5d3   :  { %v7711_v50 = vpop.f32.mrf.mxu1  ;;  %v8667_v17 = vrot.slane %v8665_v62, 2 }
 0x5d4   :  { %v12925_v47 = vpack.c.bf16 %v7711_v50, %v7711_v50  ;;  %v8510_v12 = vshll.u32 %v19212_v3, 16  ;;  %v8591_v4 = vor.u32 %v8590_v55, %v8586_v15  ;;  %v8725_v23 = vshrl.u32 %v19217_v60, 16 }
 0x5d5   :  { %v13539_v28 = vpop.f32.mrf.mxu1  ;;  %v8453_v40 = vld [vmem:[#allocation5 + $0x10] sm:$0xf]  ;;  %v8728_v57 = vshll.u32 %v19217_v60, 16  ;;  %v8668_v63 = vor.u32 %v8667_v17, %v8664_v26  ;;  %v8514_v34 = vshrl.u32 %v19212_v3, 16 }
 0x5d6   :  { %7804 = vst.msk [vmem:[#allocation5 + $0x18] sm:$0xf] %vm7056_vm0, %v12925_v47  ;;  %v8512_v61 = vrot.slane %v8510_v12, 1  ;;  %v19221_v44 = vcombine.low %v8452_v30, %v8453_v40  ;;  %v8727_v11 = vrot.slane %v8725_v23, 1 }
 0x5d7   :  { %v7714_v36 = vpop.f32.mrf.mxu1  ;;  %v8730_v33 = vrot.slane %v8728_v57, 2 }
 0x5d8   :  { %v12926_v29 = vpack.c.bf16 %v7714_v36, %v7714_v36  ;;  %v8513_v37 = vsel %vm4834_vm14, %v8508_v7, %v8512_v61  ;;  %v8593_v14 = vshll.u32 %v19221_v44, 16  ;;  %v8597_v16 = vshrl.u32 %v19221_v44, 16 }
 0x5d9   :  { %8549 = vrot.lane.b32.xlu1 %v8513_v37, %s14116_s23  ;;  %v13540_v0 = vpop.f32.mrf.mxu1  ;;  %v8454_v58 = vld [vmem:[#allocation5 + $0x14] sm:$0xf]  ;;  %v8648_v18 = vrot.slane %v19221_v44, 1  ;;  %v8516_v35 = vor.u32 %v8514_v34, %v8512_v61  ;;  %v8731_v9 = vor.u32 %v8730_v33, %v8727_v11 }
 0x5da   :  { %7805 = vst.msk [vmem:[#allocation5 + $0x1c] sm:$0xf] %vm7056_vm0, %v12926_v29  ;;  %v8595_v2 = vrot.slane %v8593_v14, 1  ;;  %v19239_v59 = vcombine.low %v8453_v40, %v8454_v58  ;;  %v8669_v21 = vrot.slane %v8597_v16, 1  ;;  %v8670_v45 = vrot.slane %v8593_v14, 2 }
 0x5db   :  { %v7719_v38 = vpop.f32.mrf.mxu1  ;;  %v19242_v39 = vsel %vm4952_vm13, %v8647_v43, %v8648_v18 }
 0x5dc   :  { %v12927_v31 = vpack.c.bf16 %v7719_v38, %v7719_v38  ;;  %v8596_v6 = vsel %vm4834_vm14, %v8591_v4, %v8595_v2  ;;  %v8671_v24 = vor.u32 %v8670_v45, %v8669_v21  ;;  %v8518_v42 = vshll.u32 %v19239_v59, 16 }
 0x5dd   :  { %8632 = vrot.lane.b32.xlu1 %v8596_v6, %s14116_s23  ;;  %v13543_v41 = vpop.f32.mrf.mxu1  ;;  %v8522_v51 = vshrl.u32 %v19239_v59, 16  ;;  %v8455_v19 = vld [vmem:[#allocation5 + $0x18] sm:$0xf]  ;;  %v8599_v49 = vor.u32 %v8597_v16, %v8595_v2 }
 0x5de   :  { %7806 = vst.msk [vmem:[#allocation5 + $0x20] sm:$0xf] %vm7056_vm0, %v12927_v31  ;;  %v8672_v25 = vsel %vm5335_vm5, %v8668_v63, %v8671_v24  ;;  %v8733_v46 = vrot.slane %v8518_v42, 2  ;;  %v8520_v22 = vrot.slane %v8518_v42, 1  ;;  %v12473_v1 = vcombine.low %v8454_v58, %v8455_v19 }
 0x5df   :  { %v7722_v48 = vpop.f32.mrf.mxu1  ;;  %v8732_v54 = vrot.slane %v8522_v51, 1 }
 0x5e0   :  { %v12928_v10 = vpack.c.bf16 %v7722_v48, %v7722_v48  ;;  %v8601_v27 = vshll.u32 %v12473_v1, 16  ;;  %v8605_v53 = vshrl.u32 %v12473_v1, 16  ;;  %v8521_v62 = vsel %vm4834_vm14, %v8516_v35, %v8520_v22 }
 0x5e1   :  { %8694 = vrot.lane.b32.xlu1 %v8672_v25, %s14116_s23  ;;  %v13544_v30 = vpop.f32.mrf.mxu1  ;;  %v8734_v20 = vor.u32 %v8733_v46, %v8732_v54  ;;  %v8456_v13 = vld [vmem:[#allocation5 + $0x1c] sm:$0xf]  ;;  %v8650_v50 = vrot.slane %v12473_v1, 1  ;;  %v8524_v4 = vor.u32 %v8522_v51, %v8520_v22 }
 0x5e2   :  { %7807 = vst.msk [vmem:[#allocation5 + $0x24] sm:$0xf] %vm7056_vm0, %v12928_v10  ;;  %v8603_v15 = vrot.slane %v8601_v27, 1  ;;  %v19253_v55 = vcombine.low %v8455_v19, %v8456_v13  ;;  %v8673_v47 = vrot.slane %v8605_v53, 1  ;;  %v8674_v7 = vrot.slane %v8601_v27, 2 }
 0x5e3   :  { %v8735_v12 = vsel %vm5335_vm5, %v8731_v9, %v8734_v20  ;;  %v7727_v28 = vpop.f32.mrf.mxu1  ;;  %v19257_v40 = vsel %vm4952_vm13, %v8648_v18, %v8650_v50 }
 0x5e4   :  { %8762 = vrot.lane.b32.xlu0 %v8735_v12, %s14116_s23  ;;  %v12929_v26 = vpack.c.bf16 %v7727_v28, %v7727_v28  ;;  %v8675_v17 = vor.u32 %v8674_v7, %v8673_v47  ;;  %v8526_v61 = vshll.u32 %v19253_v55, 16  ;;  %v8604_v8 = vsel %vm4834_vm14, %v8599_v49, %v8603_v15 }
 0x5e5   :  { %8551 = vrot.lane.b32.xlu1 %v8521_v62, %s14116_s23  ;;  %v13547_v44 = vpop.f32.mrf.mxu1  ;;  %v8530_v36 = vshrl.u32 %v19253_v55, 16  ;;  %v8457_v23 = vld [vmem:[#allocation5 + $0x20] sm:$0xf]  ;;  %v8607_v2 = vor.u32 %v8605_v53, %v8603_v15 }
 0x5e6   :  { %7808 = vst.msk [vmem:[#allocation5 + $0x28] sm:$0xf] %vm7056_vm0, %v12929_v26  ;;  %v8676_v57 = vsel %vm5335_vm5, %v8671_v24, %v8675_v17  ;;  %v8737_v43 = vrot.slane %v8526_v61, 2  ;;  %v8528_v52 = vrot.slane %v8526_v61, 1  ;;  %v12474_v29 = vcombine.low %v8456_v13, %v8457_v23 }
 0x5e7   :  { %v7730_v37 = vpop.f32.mrf.mxu1  ;;  %v8736_v14 = vrot.slane %v8530_v36, 1 }
 0x5e8   :  { %8634 = vrot.lane.b32.xlu0 %v8604_v8, %s14116_s23  ;;  %v12930_v16 = vpack.c.bf16 %v7730_v37, %v7730_v37  ;;  %v8609_v0 = vshll.u32 %v12474_v29, 16  ;;  %v8613_v58 = vshrl.u32 %v12474_v29, 16  ;;  %v8529_v18 = vsel %vm4834_vm14, %v8524_v4, %v8528_v52 }
 0x5e9   :  { %8696 = vrot.lane.b32.xlu1 %v8676_v57, %s14116_s23  ;;  %v8738_v63 = vor.u32 %v8737_v43, %v8736_v14  ;;  %v13548_v34 = vpop.f32.mrf.mxu1  ;;  %v8458_v21 = vld [vmem:[#allocation5 + $0x24] sm:$0xf]  ;;  %v8652_v45 = vrot.slane %v12474_v29, 1  ;;  %v8532_v22 = vor.u32 %v8530_v36, %v8528_v52 }
 0x5ea   :  { %7809 = vst.msk [vmem:[#allocation5 + $0x2c] sm:$0xf] %vm7056_vm0, %v12930_v16  ;;  %v8611_v38 = vrot.slane %v8609_v0, 1  ;;  %v19270_v11 = vcombine.low %v8457_v23, %v8458_v21  ;;  %v8677_v33 = vrot.slane %v8613_v58, 1  ;;  %v8678_v31 = vrot.slane %v8609_v0, 2 }
 0x5eb   :  { %v8739_v6 = vsel %vm5335_vm5, %v8734_v20, %v8738_v63  ;;  %v7735_v24 = vpop.f32.mrf.mxu1  ;;  %v19274_v42 = vsel %vm4952_vm13, %v8650_v50, %v8652_v45 }
 0x5ec   :  { %8764 = vrot.lane.b32.xlu0 %v8739_v6, %s14116_s23  ;;  %v12931_v41 = vpack.c.bf16 %v7735_v24, %v7735_v24  ;;  %v8679_v51 = vor.u32 %v8678_v31, %v8677_v33  ;;  %v8534_v35 = vshll.u32 %v19270_v11, 16  ;;  %v8612_v19 = vsel %vm4834_vm14, %v8607_v2, %v8611_v38 }
 0x5ed   :  { %8553 = vrot.lane.b32.xlu1 %v8529_v18, %s14116_s23  ;;  %v13551_v25 = vpop.f32.mrf.mxu1  ;;  %v8538_v46 = vshrl.u32 %v19270_v11, 16  ;;  %v19281_v1 = vld [vmem:[#allocation5 + $0x28] sm:$0xf]  ;;  %v8615_v50 = vor.u32 %v8613_v58, %v8611_v38 }
 0x5ee   :  { %7810 = vst.msk [vmem:[#allocation5 + $0x30] sm:$0xf] %vm7056_vm0, %v12931_v41  ;;  %v8680_v48 = vsel %vm5335_vm5, %v8675_v17, %v8679_v51  ;;  %v8741_v9 = vrot.slane %v8534_v35, 2  ;;  %v8536_v54 = vrot.slane %v8534_v35, 1  ;;  %v19286_v10 = vcombine.low %v8458_v21, %v19281_v1 }
 0x5ef   :  { %v8740_v27 = vrot.slane %v8538_v46, 1  ;;  %v7738_v53 = vpop.f32.mrf.mxu1 }
 0x5f0   :  { %8636 = vrot.lane.b32.xlu0 %v8612_v19, %s14116_s23  ;;  %v12932_v30 = vpack.c.bf16 %v7738_v53, %v7738_v53  ;;  %v8617_v20 = vshll.u32 %v19286_v10, 16  ;;  %v8621_v62 = vshrl.u32 %v19286_v10, 16  ;;  %v8537_v13 = vsel %vm4834_vm14, %v8532_v22, %v8536_v54 }
 0x5f1   :  { %8698 = vrot.lane.b32.xlu1 %v8680_v48, %s14116_s23  ;;  %v8742_v49 = vor.u32 %v8741_v9, %v8740_v27  ;;  %v8462_v15 = vld [vmem:[#allocation5 + $0x2c] sm:$0xf]  ;;  %v13552_v7 = vpop.f32.mrf.mxu1  ;;  %v8654_v12 = vrot.slane %v19286_v10, 1  ;;  %v8540_v52 = vor.u32 %v8538_v46, %v8536_v54 }
 0x5f2   :  { %v8460_v47 = vld [vmem:[#allocation5 + $0x2c] sm:$0x1]  ;;  %7811 = vst.msk [vmem:[#allocation5 + $0x34] sm:$0xf] %vm7056_vm0, %v12932_v30  ;;  %v8619_v28 = vrot.slane %v8617_v20, 1  ;;  %v8681_v26 = vrot.slane %v8621_v62, 1  ;;  %v19296_v61 = vcombine.low %v19281_v1, %v8462_v15 }
 0x5f3   :  { %v8682_v17 = vrot.slane %v8617_v20, 2  ;;  %v8743_v44 = vsel %vm5335_vm5, %v8738_v63, %v8742_v49  ;;  %v19300_v8 = vcombine.low %v19281_v1, %v8460_v47  ;;  %v19305_v36 = vsel %vm4952_vm13, %v8652_v45, %v8654_v12 }
 0x5f4   :  { %8766 = vrot.lane.b32.xlu0 %v8743_v44, %s14116_s23  ;;  %v8745_v23 = vshrl.u32 %v19296_v61, 16  ;;  %v8748_v57 = vshll.u32 %v19296_v61, 16  ;;  %v8620_v43 = vsel %vm4834_vm14, %v8615_v50, %v8619_v28  ;;  %v8623_v38 = vor.u32 %v8621_v62, %v8619_v28 }
 0x5f5   :  { %v8683_v4 = vor.u32 %v8682_v17, %v8681_v26  ;;  %8555 = vrot.lane.b32.xlu1 %v8537_v13, %s14116_s23  ;;  %v8542_v29 = vshll.u32 %v19300_v8, 16  ;;  %v8463_v37 = vld [vmem:[#allocation5 + $0x30] sm:$0x1]  ;;  %v8546_v33 = vshrl.u32 %v19300_v8, 16  ;;  %v8784_v47 = vrot.slane %v19296_v61, 2 }
 0x5f6   :  { %v8465_v14 = vld [vmem:[#allocation5 + $0x30] sm:$0x3]  ;;  %v8747_v0 = vrot.slane %v8745_v23, 1  ;;  %v8750_v58 = vrot.slane %v8748_v57, 2  ;;  %v19314_v63 = vcombine.low %v8462_v15, %v8463_v37  ;;  %v8461_v26 = vld [vmem:[#allocation5] sm:$0xe] }
 0x5f7   :  { %v8684_v16 = vsel %vm5335_vm5, %v8679_v51, %v8683_v4  ;;  %v8544_v34 = vrot.slane %v8542_v29, 1  ;;  %v12478_v18 = vcombine.low %v8462_v15, %v8465_v14  ;;  %v19316_v2 = vld [vmem:[#allocation5 + $0x30] sm:$0xf]  ;;  %v13890_v15 = vld [vmem:[%s20591_s5 + $0x234] ss:$8 sps:$4 sm:$0xff]   ;;  %v12470_v17 = vcombine.low %v8461_v26, %v19182_v56 }
 0x5f8   :  { %8638 = vrot.lane.b32.xlu0 %v8620_v43, %s14116_s23  ;;  %v8751_v21 = vor.u32 %v8750_v58, %v8747_v0  ;;  %v8625_v45 = vshll.u32 %v19314_v63, 16  ;;  %v8629_v22 = vshrl.u32 %v19314_v63, 16  ;;  %13597 = vmatprep.subr.bf16.mxu1 %v13890_v15  ;;  %v8565_v43 = vrot.slane %v19212_v3, 1  ;;  %v13888_v0 = vld [vmem:[%s20591_s5 + $0x230] ss:$8 sps:$4 sm:$0xff]  }
 0x5f9   :  { %8700 = vrot.lane.b32.xlu1 %v8684_v16, %s14116_s23  ;;  %v8686_v31 = vshrl.u32 %v12478_v18, 16  ;;  %v8689_v6 = vshll.u32 %v12478_v18, 16  ;;  %v8469_v24 = vld [vmem:[#allocation5 + $0x34] sm:$0x3]  ;;  %v8545_v51 = vsel %vm4834_vm14, %v8540_v52, %v8544_v34  ;;  %v8548_v27 = vor.u32 %v8546_v33, %v8544_v34  ;;  %10162 = vmatprep.subr.bf16.mxu0 %v13890_v15 }
 0x5fa   :  { %v8752_v41 = vsel %vm5335_vm5, %v8742_v49, %v8751_v21  ;;  %v8627_v35 = vrot.slane %v8625_v45, 1  ;;  %v19325_v19 = vcombine.low %v19316_v2, %v8469_v24  ;;  %v8564_v57 = vrot.slane %v12470_v17, 1 }
 0x5fb   :  { %v8688_v25 = vrot.slane %v8686_v31, 1  ;;  %v8691_v46 = vrot.slane %v8689_v6, 2  ;;  %v8715_v45 = vrot.slane %v19217_v60, 1  ;;  %v19388_v15 = vrot.slane %v19270_v11, 1 }
 0x5fc   :  { %8768 = vrot.lane.b32.xlu0 %v8752_v41, %s14116_s23  ;;  %v8754_v48 = vshrl.u32 %v19325_v19, 16  ;;  %v8757_v9 = vshll.u32 %v19325_v19, 16  ;;  %v8628_v54 = vsel %vm4834_vm14, %v8623_v38, %v8627_v35  ;;  %v8631_v62 = vor.u32 %v8629_v22, %v8627_v35 }
 0x5fd   :  { %8557 = vrot.lane.b32.xlu1 %v8545_v51, %s14116_s23  ;;  %v19333_v53 = vor.u32 %v8691_v46, %v8688_v25  ;;  %v8786_v7 = vrot.slane %v19325_v19, 2  ;;  %v8566_v16 = vsel %vm4952_vm13, %v8564_v57, %v8565_v43 }
 0x5fe   :  { %v8756_v30 = vrot.slane %v8754_v48, 1  ;;  %v8759_v20 = vrot.slane %v8757_v9, 2 }
 0x5ff   :  { %v8693_v13 = vsel %vm5335_vm5, %v8683_v4, %v19333_v53  ;;  %v19356_v28 = vsel %vm578_vm1, %v8784_v47, %v8786_v7 }
 0x600   :  { %8640 = vrot.lane.b32.xlu0 %v8628_v54, %s14116_s23  ;;  %v19337_v49 = vor.u32 %v8759_v20, %v8756_v30  ;;  %v8569_v30 = vrot.slane %v19253_v55, 1 }
 0x601   :  { %8559 = vrot.lane.b32.xlu1 %v8548_v27, %s14116_s23 }
 0x602   :  { %v8761_v50 = vsel %vm5335_vm5, %v8751_v21, %v19337_v49  ;;  %v8567_v21 = vrot.slane %v19239_v59, 1 }
 0x604   :  { %8642 = vrot.lane.b32.xlu0 %v8631_v62, %s14116_s23  ;;  %v8716_v41 = vsel %vm4952_vm13, %v8715_v45, %v8567_v21  ;;  %v8568_v27 = vsel %vm4952_vm13, %v8565_v43, %v8567_v21  ;;  %v8570_v43 = vsel %vm4952_vm13, %v8567_v21, %v8569_v30 }
 0x605   :  { %8702 = vrot.lane.b32.xlu1 %v8693_v13, %s14116_s23 }
 0x608   :  { %8770 = vrot.lane.b32.xlu0 %v8761_v50, %s14116_s23 }
 0x64a   :  { %v8324_v44 = vpop.f32.mrf.mxu1 }
 0x64b   :  { %v8550_v4 = vpop.permute.xlu1 %8549  ;;  %v12933_v23 = vpack.c.bf16 %v8324_v44, %v8324_v44 }
 0x64c   :  { %v13571_v52 = vpop.f32.mrf.mxu1  ;;  %v8789_v34 = vsel %vm5516_vm9, %v19186_v5, %v8550_v4 }
 0x64d   :  { %8435 = vst.msk [vmem:[#allocation5 + $0x38] sm:$0xf] %vm7056_vm0, %v12933_v23 }
 0x64e   :  { %v8327_v29 = vpop.f32.mrf.mxu1 }
 0x64f   :  { %v8633_v37 = vpop.permute.xlu1 %8632  ;;  %v12934_v14 = vpack.c.bf16 %v8327_v29, %v8327_v29 }
 0x650   :  { %v13572_v58 = vpop.f32.mrf.mxu1  ;;  %v8808_v56 = vsel %vm5516_vm9, %v8566_v16, %v8633_v37 }
 0x651   :  { %8436 = vst.msk [vmem:[#allocation5 + $0x3c] sm:$0xf] %vm7056_vm0, %v12934_v14  ;;  %9900 = vmatprep.mubr.bf16.mxu1 %v8808_v56  ;;  %v8717_v56 = vrot.slane %v19296_v61, 1 }
 0x652   :  { %9901 = vmatmul.mubr.bf16.vlgmr.msra.gmra.mxu1 %v8789_v34  ;;  %v8332_v18 = vpop.f32.mrf.mxu1 }
 0x653   :  { %v8695_v38 = vpop.permute.xlu1 %8694  ;;  %v12935_v33 = vpack.c.bf16 %v8332_v18, %v8332_v18  ;;  %13601 = vmatpush1.bf16.msra.mxu1 %v13888_v0 }
 0x654   :  { %v13575_v31 = vpop.f32.mrf.mxu1  ;;  %v8831_v25 = vsel %vm5516_vm9, %v19242_v39, %v8695_v38  ;;  %v8873_v60 = vld [vmem:[#allocation5 + $0x38] sm:$0xf]  ;;  %v19415_v38 = vld [vmem:[#allocation5 + $0x34] sm:$0x1] }
 0x655   :  { %8437 = vst.msk [vmem:[#allocation5 + $0x40] sm:$0xf] %vm7056_vm0, %v12935_v33 }
 0x656   :  { %v8763_v6 = vpop.permute.xlu0 %8762  ;;  %v8335_v24 = vpop.f32.mrf.mxu1 }
 0x657   :  { %v8552_v5 = vpop.permute.xlu1 %8551  ;;  %v12936_v51 = vpack.c.bf16 %v8335_v24, %v8335_v24  ;;  %v8854_v35 = vsel %vm5516_vm9, %v8716_v41, %v8763_v6 }
 0x658   :  { %10043 = vmatprep.mubr.bf16.mxu0 %v8854_v35  ;;  %v13576_v46 = vpop.f32.mrf.mxu1  ;;  %v19376_v22 = vld [vmem:[#allocation5 + $0x3c] sm:$0xf]  ;;  %v8792_v13 = vsel %vm5516_vm9, %v19212_v3, %v8552_v5  ;;  %v8573_v5 = vrot.slane %v19300_v8, 1 }
 0x659   :  { %8438 = vst.msk [vmem:[#allocation5 + $0x44] sm:$0xf] %vm7056_vm0, %v12936_v51  ;;  %10044 = vmatmul.mubr.bf16.vlgmr.msra.gmra.mxu0 %v8831_v25  ;;  %v19380_v48 = vcombine.low %v8873_v60, %v19376_v22  ;;  %v8888_v4 = vld [vmem:[#allocation5 + $0x3c] sm:$0xe] }
 0x65a   :  { %v8635_v9 = vpop.permute.xlu0 %8634  ;;  %v8340_v54 = vpop.f32.mrf.mxu1  ;;  %10163 = vmatpush1.bf16.msra.mxu0 %v13888_v0  ;;  %v19403_v0 = vsel %vm4952_vm13, %v8569_v30, %v19388_v15  ;;  %v19432_v30 = vsel %vm4952_vm13, %v19388_v15, %v8717_v56 }
 0x65b   :  { %v8697_v20 = vpop.permute.xlu1 %8696  ;;  %v12937_v39 = vpack.c.bf16 %v8340_v54, %v8340_v54  ;;  %v8812_v62 = vsel %vm5516_vm9, %v8568_v27, %v8635_v9  ;;  %v8929_v17 = vshll.u32 %v19380_v48, 16  ;;  %v8927_v46 = vshrl.u32 %v19380_v48, 16 }
 0x65c   :  { %9910 = vmatprep.mubr.bf16.mxu1 %v8812_v62  ;;  %v13579_v50 = vpop.f32.mrf.mxu1  ;;  %v8875_v26 = vld [vmem:[#allocation5 + $0x40] sm:$0xf]  ;;  %v8835_v14 = vsel %vm5516_vm9, %v19257_v40, %v8697_v20  ;;  %v12468_v40 = vcombine.low %v19281_v1, %v19281_v1  ;;  %v8656_v20 = vrot.slane %v19314_v63, 1 }
 0x65d   :  { %8439 = vst.msk [vmem:[#allocation5 + $0x48] sm:$0xf] %vm7056_vm0, %v12937_v39  ;;  %9911 = vmatmul.mubr.bf16.gmra.mxu1 %v8792_v13  ;;  %v19393_v44 = vcombine.low %v19376_v22, %v8875_v26  ;;  %v19396_v3 = vcombine.low %v8888_v4, %v8875_v26  ;;  %v8931_v18 = vrot.slane %v8929_v17, 1  ;;  %v8890_v45 = vld [vmem:[#allocation5 + $0x40] sm:$0xe]  ;;  %v12481_v39 = vcombine.low %v19316_v2, %v19415_v38 }
 0x65e   :  { %v8765_v23 = vpop.permute.xlu0 %8764  ;;  %v8343_v57 = vpop.f32.mrf.mxu1 }
 0x65f   :  { %v8554_v52 = vpop.permute.xlu1 %8553  ;;  %v12938_v29 = vpack.c.bf16 %v8343_v57, %v8343_v57  ;;  %v8857_v37 = vsel %vm5516_vm9, %v8570_v43, %v8765_v23  ;;  %v9012_v21 = vshll.u32 %v19393_v44, 16  ;;  %v9086_v6 = vshrl.u32 %v19396_v3, 16 }
 0x660   :  { %10053 = vmatprep.mubr.bf16.mxu0 %v8857_v37  ;;  %v13580_v16 = vpop.f32.mrf.mxu1  ;;  %v19405_v58 = vld [vmem:[#allocation5 + $0x44] sm:$0xf]  ;;  %v9089_v24 = vshll.u32 %v19396_v3, 16  ;;  %v8795_v9 = vsel %vm5516_vm9, %v19239_v59, %v8554_v52  ;;  %v8932_v62 = vor.u32 %v8931_v18, %v8927_v46  ;;  %v9010_v23 = vshrl.u32 %v19393_v44, 16 }
 0x661   :  { %8440 = vst.msk [vmem:[#allocation5 + $0x4c] sm:$0xf] %vm7056_vm0, %v12938_v29  ;;  %10054 = vmatmul.mubr.bf16.gmra.mxu0 %v8835_v14  ;;  %v19410_v34 = vcombine.low %v8875_v26, %v19405_v58  ;;  %v19420_v41 = vcombine.low %v8890_v45, %v19405_v58  ;;  %v9014_v26 = vrot.slane %v9012_v21, 1  ;;  %v9088_v57 = vrot.slane %v9086_v6, 1 }
 0x662   :  { %v8637_v33 = vpop.permute.xlu0 %8636  ;;  %v8348_v31 = vpop.f32.mrf.mxu1  ;;  %v9071_v6 = vrot.slane %v19396_v3, 1 }
 0x663   :  { %v8699_v51 = vpop.permute.xlu1 %8698  ;;  %v12939_v35 = vpack.c.bf16 %v8348_v31, %v8348_v31  ;;  %v8816_v25 = vsel %vm5516_vm9, %v8570_v43, %v8637_v33  ;;  %v8934_v60 = vshll.u32 %v19410_v34, 16  ;;  %v9091_v43 = vrot.slane %v9089_v24, 2 }
 0x664   :  { %9920 = vmatprep.mubr.bf16.mxu1 %v8816_v25  ;;  %v13583_v54 = vpop.f32.mrf.mxu1  ;;  %v8877_v27 = vld [vmem:[#allocation5 + $0x48] sm:$0xf]  ;;  %v9149_v52 = vshrl.u32 %v19420_v41, 16  ;;  %v8839_v21 = vsel %vm5516_vm9, %v19274_v42, %v8699_v51  ;;  %v9152_v31 = vshll.u32 %v19420_v41, 16  ;;  %v9015_v24 = vor.u32 %v9014_v26, %v9010_v23  ;;  %v13891_v23 = vld [vmem:[%s20591_s5 + $0x220] ss:$8 sps:$4 sm:$0xff]  }
 0x665   :  { %8441 = vst.msk [vmem:[#allocation5 + $0x50] sm:$0xf] %vm7056_vm0, %v12939_v35  ;;  %9921 = vmatmul.mubr.bf16.gmra.mxu1 %v8795_v9  ;;  %v19438_v13 = vrot.slane %v8934_v60, 1  ;;  %v19441_v50 = vcombine.low %v19405_v58, %v8877_v27  ;;  %v9092_v60 = vor.u32 %v9091_v43, %v9088_v57  ;;  %v13893_v57 = vld [vmem:[%s20591_s5 + $0x224] ss:$8 sps:$4 sm:$0xff]  }
 0x666   :  { %v8767_v17 = vpop.permute.xlu0 %8766  ;;  %v8351_v4 = vpop.f32.mrf.mxu1  ;;  %v9151_v54 = vrot.slane %v9149_v52, 1  ;;  %13598 = vmatprep.subr.bf16.mxu1 %v13893_v57  ;;  %10164 = vmatprep.subr.bf16.mxu0 %v13893_v57 }
 0x667   :  { %v8556_v29 = vpop.permute.xlu1 %8555  ;;  %v12940_v37 = vpack.c.bf16 %v8351_v4, %v8351_v4  ;;  %v8860_v14 = vsel %vm5516_vm9, %v19403_v0, %v8767_v17  ;;  %v8937_v16 = vsel %vm4834_vm14, %v8932_v62, %v19438_v13  ;;  %v9017_v18 = vshll.u32 %v19441_v50, 16  ;;  %13602 = vmatpush1.bf16.msra.mxu1 %v13891_v23  ;;  %10165 = vmatpush1.bf16.msra.mxu0 %v13891_v23 }
 0x668   :  { %10063 = vmatprep.mubr.bf16.mxu0 %v8860_v14  ;;  %8973 = vrot.lane.b32.xlu1 %v8937_v16, %s14116_s23  ;;  %v13584_v44 = vpop.f32.mrf.mxu1  ;;  %v8878_v45 = vld [vmem:[#allocation5 + $0x4c] sm:$0xf]  ;;  %v9021_v33 = vshrl.u32 %v19441_v50, 16  ;;  %v9072_v62 = vrot.slane %v19441_v50, 1  ;;  %v8798_v43 = vsel %vm5516_vm9, %v19253_v55, %v8556_v29  ;;  %v9154_v14 = vrot.slane %v9152_v31, 2 }
 0x669   :  { %8442 = vst.msk [vmem:[#allocation5 + $0x54] sm:$0xf] %vm7056_vm0, %v12940_v37  ;;  %10064 = vmatmul.mubr.bf16.gmra.mxu0 %v8839_v21  ;;  %v19457_v35 = vrot.slane %v9017_v18, 1  ;;  %v19459_v25 = vcombine.low %v8877_v27, %v8878_v45  ;;  %v9094_v42 = vrot.slane %v9017_v18, 2  ;;  %v8894_v18 = vld [vmem:[#allocation5 + $0x40] sm:$0xc] }
 0x66a   :  { %v8639_v51 = vpop.permute.xlu0 %8638  ;;  %v8356_v46 = vpop.f32.mrf.mxu1  ;;  %v9093_v9 = vrot.slane %v9021_v33, 1  ;;  %v19487_v29 = vsel %vm4952_vm13, %v9071_v6, %v9072_v62  ;;  %v9155_v57 = vor.u32 %v9154_v14, %v9151_v54 }
 0x66b   :  { %v8701_v17 = vpop.permute.xlu1 %8700  ;;  %v12941_v3 = vpack.c.bf16 %v8356_v46, %v8356_v46  ;;  %v8820_v4 = vsel %vm5516_vm9, %v19403_v0, %v8639_v51  ;;  %v9020_v26 = vsel %vm4834_vm14, %v9015_v24, %v19457_v35  ;;  %v8942_v27 = vshll.u32 %v19459_v25, 16 }
 0x66c   :  { %9930 = vmatprep.mubr.bf16.mxu1 %v8820_v4  ;;  %9056 = vrot.lane.b32.xlu0 %v9020_v26, %s14116_s23  ;;  %v13587_v0 = vpop.f32.mrf.mxu1  ;;  %v19478_v52 = vor.u32 %v9094_v42, %v9093_v9  ;;  %v8946_v37 = vshrl.u32 %v19459_v25, 16  ;;  %v8879_v16 = vld [vmem:[#allocation5 + $0x50] sm:$0xf]  ;;  %v12504_v24 = vcombine.low %v8894_v18, %v19405_v58  ;;  %v8938_v9 = vshrl.u32 %v19410_v34, 16 }
 0x66d   :  { %8443 = vst.msk [vmem:[#allocation5 + $0x58] sm:$0xf] %vm7056_vm0, %v12941_v3  ;;  %9931 = vmatmul.mubr.bf16.gmra.mxu1 %v8798_v43  ;;  %v9157_v21 = vrot.slane %v8942_v27, 2  ;;  %v19482_v44 = vcombine.low %v8878_v45, %v8879_v16  ;;  %v8944_v45 = vrot.slane %v8942_v27, 1  ;;  %v8843_v26 = vsel %vm5516_vm9, %v19305_v36, %v8701_v17 }
 0x66e   :  { %v8769_v42 = vpop.permute.xlu0 %8768  ;;  %v9096_v31 = vsel %vm5335_vm5, %v9092_v60, %v19478_v52  ;;  %v8359_v51 = vpop.f32.mrf.mxu1  ;;  %v9156_v46 = vrot.slane %v8946_v37, 1  ;;  %v8574_v60 = vsel %vm4952_vm13, %v19388_v15, %v8573_v5  ;;  %v8940_v0 = vor.u32 %v8938_v9, %v19438_v13 }
 0x66f   :  { %v8558_v3 = vpop.permute.xlu1 %8557  ;;  %9118 = vrot.lane.b32.xlu1 %v9096_v31, %s14116_s23  ;;  %v12942_v6 = vpack.c.bf16 %v8359_v51, %v8359_v51  ;;  %v8864_v58 = vsel %vm5516_vm9, %v19432_v30, %v8769_v42  ;;  %v9025_v4 = vshll.u32 %v19482_v44, 16  ;;  %v19514_v15 = vrot.slane %v12481_v39, 1 }
 0x670   :  { %10073 = vmatprep.mubr.bf16.mxu0 %v8864_v58  ;;  %v13588_v27 = vpop.f32.mrf.mxu1  ;;  %v19505_v43 = vor.u32 %v9157_v21, %v9156_v46  ;;  %v8880_v18 = vld [vmem:[#allocation5 + $0x54] sm:$0xf]  ;;  %v9029_v36 = vshrl.u32 %v19482_v44, 16  ;;  %v9201_v17 = vrot.slane %v12504_v24, 2  ;;  %v8945_v13 = vsel %vm4834_vm14, %v8940_v0, %v8944_v45 }
 0x671   :  { %8444 = vst.msk [vmem:[#allocation5 + $0x5c] sm:$0xf] %vm7056_vm0, %v12942_v6  ;;  %10074 = vmatmul.mubr.bf16.gmra.mxu0 %v8843_v26  ;;  %v19509_v30 = vcombine.low %v8879_v16, %v8880_v18  ;;  %v9027_v21 = vrot.slane %v9025_v4, 1  ;;  %v9074_v42 = vrot.slane %v19482_v44, 1  ;;  %v9202_v24 = vrot.slane %v19459_v25, 2 }
 0x672   :  { %v8641_v23 = vpop.permute.xlu0 %8640  ;;  %v9159_v54 = vsel %vm5335_vm5, %v9155_v57, %v19505_v43  ;;  %v8364_v14 = vpop.f32.mrf.mxu1  ;;  %v8801_v31 = vsel %vm5516_vm9, %v19270_v11, %v8558_v3  ;;  %v9023_v46 = vor.u32 %v9021_v33, %v19457_v35  ;;  %v9097_v58 = vrot.slane %v9029_v36, 1 }
 0x673   :  { %v8560_v16 = vpop.permute.xlu1 %8559  ;;  %9186 = vrot.lane.b32.xlu0 %v9159_v54, %s14116_s23  ;;  %8975 = vrot.lane.b32.xlu1 %v8945_v13, %s14116_s23  ;;  %v12943_v2 = vpack.c.bf16 %v8364_v14, %v8364_v14  ;;  %v8824_v38 = vsel %vm5516_vm9, %v8574_v60, %v8641_v23  ;;  %v8950_v39 = vshll.u32 %v19509_v30, 16  ;;  %v8954_v6 = vshrl.u32 %v19509_v30, 16 }
 0x674   :  { %v19532_v44 = vsel %vm5516_vm9, %v12468_v40, %v8560_v16  ;;  %9940 = vmatprep.mubr.bf16.mxu1 %v8824_v38  ;;  %v13591_v51 = vpop.f32.mrf.mxu1  ;;  %v8881_v9 = vld [vmem:[#allocation5 + $0x58] sm:$0xf]  ;;  %v9098_v3 = vrot.slane %v9025_v4, 2  ;;  %v19544_v1 = vsel %vm4952_vm13, %v9072_v62, %v9074_v42  ;;  %v9028_v26 = vsel %vm4834_vm14, %v9023_v46, %v9027_v21 }
 0x675   :  { %8445 = vst.msk [vmem:[#allocation5 + $0x60] sm:$0xf] %vm7056_vm0, %v12943_v2  ;;  %9941 = vmatmul.mubr.bf16.gmra.mxu1 %v8801_v31  ;;  %v19539_v60 = vcombine.low %v8880_v18, %v8881_v9  ;;  %v8952_v35 = vrot.slane %v8950_v39, 1  ;;  %v8657_v27 = vsel %vm4952_vm13, %v8654_v12, %v8656_v20  ;;  %v19561_v4 = vsel %vm578_vm1, %v9201_v17, %v9202_v24 }
 0x676   :  { %v19546_v40 = vpop.permute.xlu0 %8642  ;;  %v8367_v33 = vpop.f32.mrf.mxu1  ;;  %v8948_v10 = vor.u32 %v8946_v37, %v8944_v45  ;;  %v9160_v12 = vrot.slane %v8954_v6, 1  ;;  %v9161_v23 = vrot.slane %v8950_v39, 2  ;;  %v8720_v54 = vsel %vm4952_vm13, %v8717_v56, %v19514_v15 }
 0x677   :  { %8704 = vrot.lane.b32.xlu1 %v19333_v53, %s14116_s23  ;;  %9058 = vrot.lane.b32.xlu0 %v9028_v26, %s14116_s23  ;;  %v12944_v50 = vpack.c.bf16 %v8367_v33, %v8367_v33  ;;  %v9033_v62 = vshll.u32 %v19539_v60, 16  ;;  %v8703_v57 = vpop.permute.xlu1 %8702  ;;  %v9037_v53 = vshrl.u32 %v19539_v60, 16  ;;  %v19571_v13 = vor.u32 %v9098_v3, %v9097_v58 }
 0x678   :  { %v13592_v0 = vpop.f32.mrf.mxu1  ;;  %v8882_v18 = vld [vmem:[#allocation5 + $0x5c] sm:$0xf]  ;;  %v9031_v17 = vor.u32 %v9029_v36, %v9027_v21  ;;  %v8953_v37 = vsel %vm4834_vm14, %v8948_v10, %v8952_v35  ;;  %v9076_v38 = vrot.slane %v19539_v60, 1  ;;  %v9306_v39 = vrot.slane %v19561_v4, 4 }
 0x679   :  { %8446 = vst.msk [vmem:[#allocation5 + $0x64] sm:$0xf] %vm7056_vm0, %v12944_v50  ;;  %v19573_v14 = vcombine.low %v8881_v9, %v8882_v18  ;;  %v9035_v2 = vrot.slane %v9033_v62, 1  ;;  %v8847_v31 = vsel %vm5516_vm9, %v8657_v27, %v8703_v57  ;;  %v19584_v46 = vor.u32 %v9161_v23, %v9160_v12 }
 0x67a   :  { %v8771_v16 = vpop.permute.xlu0 %8770  ;;  %v8372_v45 = vpop.f32.mrf.mxu1  ;;  %v9101_v9 = vrot.slane %v9037_v53, 1  ;;  %v9102_v58 = vrot.slane %v9033_v62, 2  ;;  %v19589_v60 = vsel %vm4952_vm13, %v9074_v42, %v9076_v38  ;;  %v9100_v33 = vsel %vm5335_vm5, %v19478_v52, %v19571_v13 }
 0x67b   :  { %8772 = vrot.lane.b32.xlu0 %v19337_v49, %s14116_s23  ;;  %8977 = vrot.lane.b32.xlu1 %v8953_v37, %s14116_s23  ;;  %v12945_v56 = vpack.c.bf16 %v8372_v45, %v8372_v45  ;;  %v8868_v36 = vsel %vm5516_vm9, %v8720_v54, %v8771_v16  ;;  %v8958_v21 = vshll.u32 %v19573_v14, 16  ;;  %v8962_v26 = vshrl.u32 %v19573_v14, 16 }
 0x67c   :  { %10083 = vmatprep.mubr.bf16.mxu0 %v8868_v36  ;;  %v13595_v51 = vpop.f32.mrf.mxu1  ;;  %v19586_v3 = vld [vmem:[#allocation5 + $0x60] sm:$0xf]  ;;  %v9036_v27 = vsel %vm4834_vm14, %v9031_v17, %v9035_v2  ;;  %v19605_v42 = vsel %vm20751_vm11, %v8786_v7, %v9306_v39  ;;  %v8956_v0 = vor.u32 %v8954_v6, %v8952_v35  ;;  %v9163_v52 = vsel %vm5335_vm5, %v19505_v43, %v19584_v46 }
 0x67d   :  { %8447 = vst.msk [vmem:[#allocation5 + $0x68] sm:$0xf] %vm7056_vm0, %v12945_v56  ;;  %10084 = vmatmul.mubr.bf16.gmra.mxu0 %v8847_v31  ;;  %v19593_v49 = vcombine.low %v8882_v18, %v19586_v3  ;;  %v8960_v62 = vrot.slane %v8958_v21, 1  ;;  %v9103_v18 = vor.u32 %v9102_v58, %v9101_v9  ;;  %v9164_v17 = vrot.slane %v8962_v26, 1  ;;  %v13896_v51 = vld [vmem:[%s20591_s5 + $0x214] ss:$8 sps:$4 sm:$0xff]  }
 0x67e   :  { %v8375_v50 = vpop.f32.mrf.mxu1  ;;  %v9165_v16 = vrot.slane %v8958_v21, 2  ;;  %v13894_v21 = vld [vmem:[%s20591_s5 + $0x210] ss:$8 sps:$4 sm:$0xff]   ;;  %v9039_v9 = vor.u32 %v9037_v53, %v9035_v2  ;;  %13599 = vmatprep.subr.bf16.mxu1 %v13896_v51  ;;  %10166 = vmatprep.subr.bf16.mxu0 %v13896_v51 }
 0x67f   :  { %9120 = vrot.lane.b32.xlu1 %v9100_v33, %s14116_s23  ;;  %9060 = vrot.lane.b32.xlu0 %v9036_v27, %s14116_s23  ;;  %v12946_v57 = vpack.c.bf16 %v8375_v50, %v8375_v50  ;;  %v9041_v10 = vshll.u32 %v19593_v49, 16  ;;  %v9045_v19 = vshrl.u32 %v19593_v49, 16  ;;  %v9078_v7 = vrot.slane %v19593_v49, 1 }
 0x680   :  { %v13596_v12 = vpop.f32.mrf.mxu1  ;;  %v8884_v23 = vld [vmem:[#allocation5 + $0x64] sm:$0x1]  ;;  %v8961_v43 = vsel %vm4834_vm14, %v8956_v0, %v8960_v62  ;;  %v9166_v27 = vor.u32 %v9165_v16, %v9164_v17  ;;  %v9104_v0 = vsel %vm5335_vm5, %v19571_v13, %v9103_v18  ;;  %13603 = vmatpush1.bf16.msra.mxu1 %v13894_v21  ;;  %10167 = vmatpush1.bf16.msra.mxu0 %v13894_v21 }
 0x681   :  { %v8886_v54 = vld [vmem:[#allocation5 + $0x64] sm:$0xf]  ;;  %8448 = vst.msk [vmem:[#allocation5 + $0x6c] sm:$0xf] %vm7056_vm0, %v12946_v57  ;;  %v19617_v6 = vcombine.low %v19586_v3, %v8884_v23  ;;  %v9043_v37 = vrot.slane %v9041_v10, 1  ;;  %v9106_v45 = vrot.slane %v9041_v10, 2  ;;  %v19624_v31 = vsel %vm4952_vm13, %v9076_v38, %v9078_v7  ;;  %vm20753_vm0 = vmmov %vm20740_vm7 }
 0x682   :  { %v19620_v35 = vcombine.low %v19586_v3, %v8886_v54  ;;  %v9105_v36 = vrot.slane %v9045_v19, 1  ;;  %v8964_v23 = vor.u32 %v8962_v26, %v8960_v62  ;;  %v9167_v13 = vsel %vm5335_vm5, %v19584_v46, %v9166_v27  ;;  %vm20755_vm3 = vmmov %vm20753_vm0 }
 0x683   :  { %9188 = vrot.lane.b32.xlu0 %v9163_v52, %s14116_s23  ;;  %8979 = vrot.lane.b32.xlu1 %v8961_v43, %s14116_s23  ;;  %v8966_v56 = vshll.u32 %v19617_v6, 16  ;;  %v9044_v10 = vsel %vm4834_vm14, %v9039_v9, %v9043_v37  ;;  %v9047_v62 = vor.u32 %v9045_v19, %v9043_v37  ;;  %vm20756_vm10 = vmmov %vm20753_vm0 }
 0x684   :  { %v8887_v58 = vld [vmem:[#allocation5 + $0x68] sm:$0x1]  ;;  %v9169_v38 = vshrl.u32 %v19620_v35, 16  ;;  %v9172_v49 = vshll.u32 %v19620_v35, 16  ;;  %v9107_v53 = vor.u32 %v9106_v45, %v9105_v36  ;;  %v9141_v36 = vrot.slane %v19620_v35, 1  ;;  %vm20757_vm12 = vmmov %vm20753_vm0 }
 0x685   :  { %v8889_v33 = vld [vmem:[#allocation5 + $0x68] sm:$0x3]  ;;  %v19637_v50 = vcombine.low %v8886_v54, %v8887_v58  ;;  %v8968_v52 = vrot.slane %v8966_v56, 1  ;;  %vm20758_vm15 = vmmov %vm20753_vm0 }
 0x686   :  { %v12499_v57 = vcombine.low %v8886_v54, %v8889_v33  ;;  %v9171_v12 = vrot.slane %v9169_v38, 1  ;;  %v9174_v54 = vrot.slane %v9172_v49, 2  ;;  %v8891_v9 = vld [vmem:[#allocation5 + $0x68] sm:$0xf]  ;;  %v9108_v26 = vsel %vm5335_vm5, %v9103_v18, %v9107_v53  ;;  %vm20759_vm2 = vmmov %vm20753_vm0 }
 0x687   :  { %9122 = vrot.lane.b32.xlu1 %v9104_v0, %s14116_s23  ;;  %9062 = vrot.lane.b32.xlu0 %v9044_v10, %s14116_s23  ;;  %v9049_v2 = vshll.u32 %v19637_v50, 16  ;;  %v8969_v21 = vsel %vm4834_vm14, %v8964_v23, %v8968_v52  ;;  %v9080_v33 = vrot.slane %v19637_v50, 1  ;;  %v9208_v23 = vrot.slane %v19620_v35, 2  ;;  %vm20760_vm4 = vmmov %vm20753_vm0 }
 0x688   :  { %v9110_v17 = vshrl.u32 %v12499_v57, 16  ;;  %v8893_v16 = vld [vmem:[#allocation5 + $0x6c] sm:$0x3]  ;;  %v9113_v56 = vshll.u32 %v12499_v57, 16  ;;  %v9175_v38 = vor.u32 %v9174_v54, %v9171_v12  ;;  %vm20762_vm11 = vmmov %vm20753_vm0 }
 0x689   :  { %v8892_v43 = vld [vmem:[#allocation5 + $0x6c] sm:$0x1]  ;;  %v9051_v51 = vrot.slane %v9049_v2, 1  ;;  %v12503_v58 = vcombine.low %v8891_v9, %v8893_v16  ;;  %v19656_v49 = vsel %vm4952_vm13, %v9078_v7, %v9080_v33  ;;  %v9206_v2 = vrot.slane %v19573_v14, 2 }
 0x68a   :  { %v12502_v45 = vcombine.low %v8891_v9, %v8892_v43  ;;  %v9112_v46 = vrot.slane %v9110_v17, 1  ;;  %v9115_v10 = vrot.slane %v9113_v56, 2  ;;  %v8970_v7 = vshrl.u32 %v19617_v6, 16 }
 0x68b   :  { %9190 = vrot.lane.b32.xlu0 %v9167_v13, %s14116_s23  ;;  %8981 = vrot.lane.b32.xlu1 %v8969_v21, %s14116_s23  ;;  %v9052_v0 = vsel %vm4834_vm14, %v9047_v62, %v9051_v51  ;;  %v9178_v18 = vshrl.u32 %v12503_v58, 16  ;;  %v9181_v19 = vshll.u32 %v12503_v58, 16  ;;  %v9210_v12 = vrot.slane %v12503_v58, 2  ;;  %v13899_v62 = vld [vmem:[%s20591_s5 + $0x200] ss:$8 sps:$4 sm:$0xff]   ;;  %vm20752_vm14 = vmmov %vm20740_vm7 }
 0x68c   :  { %v19658_v57 = vrot.slane %v12502_v45, 1  ;;  %v19675_v54 = vsel %vm578_vm1, %v9206_v2, %v9208_v23  ;;  %v8972_v43 = vor.u32 %v8970_v7, %v8968_v52  ;;  %v9176_v9 = vsel %vm5335_vm5, %v9166_v27, %v9175_v38  ;;  %v13901_v52 = vld [vmem:[%s20591_s5 + $0x204] ss:$8 sps:$4 sm:$0xff]   ;;  %vm20761_vm7 = vmmov %vm20753_vm0 }
 0x68d   :  { %v9211_v17 = vsel %vm578_vm1, %v9208_v23, %v9210_v12  ;;  %v9355_v16 = vrot.slane %v9210_v12, 4  ;;  %v9335_v13 = vrot.slane %v19675_v54, 4  ;;  %v9116_v21 = vor.u32 %v9115_v10, %v9112_v46  ;;  %13600 = vmatprep.subr.bf16.mxu1 %v13901_v52  ;;  %10168 = vmatprep.subr.bf16.mxu0 %v13901_v52 }
 0x68e   :  { %v19667_v37 = vsel %vm4952_vm13, %v9141_v36, %v19658_v57  ;;  %v9345_v56 = vrot.slane %v9211_v17, 4  ;;  %v9180_v58 = vrot.slane %v9178_v18, 1  ;;  %v9183_v45 = vrot.slane %v9181_v19, 2  ;;  %13604 = vmatpush1.bf16.msra.mxu1 %v13899_v62  ;;  %10169 = vmatpush1.bf16.msra.mxu0 %v13899_v62 }
 0x68f   :  { %9124 = vrot.lane.b32.xlu1 %v9108_v26, %s14116_s23  ;;  %9064 = vrot.lane.b32.xlu0 %v9052_v0, %s14116_s23  ;;  %v9053_v26 = vshrl.u32 %v19637_v50, 16  ;;  %v9117_v10 = vsel %vm5335_vm5, %v9107_v53, %v9116_v21  ;;  %v8989_v53 = vrot.slane %v19410_v34, 1  ;;  %v9464_v50 = vld [vmem:[%s20592_s6] sm:$0x3] }
 0x690   :  { %v19692_v27 = vsel %vm20752_vm14, %v9335_v13, %v9345_v56  ;;  %v19695_v46 = vsel %vm20753_vm0, %v9345_v56, %v9355_v16  ;;  %v9184_v23 = vor.u32 %v9183_v45, %v9180_v58  ;;  %vm20763_vm14 = vmmov %vm20753_vm0 }
 0x691   :  { %v9055_v0 = vor.u32 %v9053_v26, %v9051_v51  ;;  %v8885_v51 = vld [vmem:[#allocation5 + $0x38] sm:$0xe]  ;;  %v8991_v26 = vrot.slane %v19459_v25, 1 }
 0x692   :  { %v9185_v18 = vsel %vm5335_vm5, %v9175_v38, %v9184_v23  ;;  %v12491_v19 = vcombine.low %v8885_v51, %v19376_v22  ;;  %vm20754_vm5 = vmmov %vm20753_vm0 }
 0x693   :  { %8983 = vrot.lane.b32.xlu1 %v8972_v43, %s14116_s23  ;;  %9192 = vrot.lane.b32.xlu0 %v9176_v9, %s14116_s23 }
 0x694   :  { %v8988_v17 = vrot.slane %v12491_v19, 1 }
 0x696   :  { %v8990_v16 = vsel %vm4952_vm13, %v8988_v17, %v8989_v53 }
 0x697   :  { %9126 = vrot.lane.b32.xlu1 %v9117_v10, %s14116_s23  ;;  %9066 = vrot.lane.b32.xlu0 %v9055_v0, %s14116_s23  ;;  %v9139_v0 = vrot.slane %v19420_v41, 1 }
 0x699   :  { %v9140_v8 = vsel %vm4952_vm13, %v9139_v0, %v8991_v26 }
 0x69b   :  { %9128 = vrot.lane.b32.xlu1 %v9116_v21, %s14116_s23  ;;  %9194 = vrot.lane.b32.xlu0 %v9185_v18, %s14116_s23  ;;  %v8828_v21 = vsel %vm5516_vm9, %v8573_v5, %v19546_v40  ;;  %v8992_v40 = vsel %vm4952_vm13, %v8989_v53, %v8991_v26  ;;  %v8993_v53 = vrot.slane %v19509_v30, 1 }
 0x69f   :  { %9196 = vrot.lane.b32.xlu0 %v9184_v23, %s14116_s23 }
 0x6da   :  { %v8974_v12 = vpop.permute.xlu1 %8973 }
 0x6db   :  { %v9213_v7 = vsel %vm5516_vm9, %v19380_v48, %v8974_v12 }
 0x6dc   :  { %v9302_v38 = vrot.slane %v9213_v7, 4 }
 0x6de   :  { %v9057_v43 = vpop.permute.xlu0 %9056  ;;  %v9378_v48 = vsel %vm20755_vm3, %v19532_v44, %v9302_v38  ;;  %vm20765_vm3 = vmmov %vm20753_vm0 }
 0x6df   :  { %v9227_v56 = vsel %vm5516_vm9, %v8990_v16, %v9057_v43 }
 0x6e0   :  { %v9303_v9 = vrot.slane %v9227_v56, 4 }
 0x6e1   :  { %v9119_v22 = vpop.permute.xlu1 %9118 }
 0x6e2   :  { %v9381_v58 = vsel %vm20754_vm5, %v8828_v21, %v9303_v9  ;;  %v9245_v51 = vsel %vm5516_vm9, %v19487_v29, %v9119_v22  ;;  %vm20764_vm5 = vmmov %vm20753_vm0 }
 0x6e3   :  { %9950 = vmatprep.mubr.bf16.mxu1 %v9381_v58  ;;  %v9304_v16 = vrot.slane %v9245_v51, 4 }
 0x6e4   :  { %9951 = vmatmul.mubr.bf16.gmra.mxu1 %v9378_v48 }
 0x6e5   :  { %v8976_v45 = vpop.permute.xlu1 %8975  ;;  %v9187_v62 = vpop.permute.xlu0 %9186 }
 0x6e6   :  { %v9215_v52 = vsel %vm5516_vm9, %v19410_v34, %v8976_v45  ;;  %v9263_v18 = vsel %vm5516_vm9, %v9140_v8, %v9187_v62  ;;  %v8995_v8 = vrot.slane %v19573_v14, 1 }
 0x6e7   :  { %v9307_v23 = vrot.slane %v9215_v52, 4  ;;  %v9305_v12 = vrot.slane %v9263_v18, 4 }
 0x6e9   :  { %v8705_v5 = vpop.permute.xlu1 %8704  ;;  %v9059_v10 = vpop.permute.xlu0 %9058  ;;  %v9308_v56 = vsel %vm20757_vm12, %v9302_v38, %v9307_v23  ;;  %vm20767_vm12 = vmmov %vm20753_vm0 }
 0x6ea   :  { %v9230_v44 = vsel %vm5516_vm9, %v8992_v40, %v9059_v10  ;;  %v8851_v34 = vsel %vm5516_vm9, %v8656_v20, %v8705_v5 }
 0x6eb   :  { %v9309_v19 = vrot.slane %v9230_v44, 4  ;;  %v9384_v20 = vsel %vm20759_vm2, %v8851_v34, %v9304_v16  ;;  %v8996_v44 = vsel %vm4952_vm13, %v8993_v53, %v8995_v8  ;;  %vm20769_vm2 = vmmov %vm20753_vm0 }
 0x6ed   :  { %v8978_v41 = vpop.permute.xlu1 %8977  ;;  %v8773_v7 = vpop.permute.xlu0 %8772  ;;  %v9310_v17 = vsel %vm20756_vm10, %v9303_v9, %v9309_v19  ;;  %v8994_v9 = vsel %vm4952_vm13, %v8991_v26, %v8993_v53  ;;  %vm20766_vm10 = vmmov %vm20753_vm0 }
 0x6ee   :  { %v8872_v43 = vsel %vm5516_vm9, %v19514_v15, %v8773_v7  ;;  %9960 = vmatprep.mubr.bf16.mxu1 %v9310_v17  ;;  %v9217_v29 = vsel %vm5516_vm9, %v19459_v25, %v8978_v41 }
 0x6ef   :  { %9961 = vmatmul.mubr.bf16.gmra.mxu1 %v9308_v56  ;;  %v9387_v63 = vsel %vm20758_vm15, %v8872_v43, %v9305_v12  ;;  %v9317_v58 = vrot.slane %v9217_v29, 4  ;;  %v8997_v29 = vrot.slane %v19617_v6, 1  ;;  %vm20768_vm15 = vmmov %vm20753_vm0 }
 0x6f0   :  { %10093 = vmatprep.mubr.bf16.mxu0 %v9387_v63 }
 0x6f1   :  { %v9121_v21 = vpop.permute.xlu1 %9120  ;;  %10094 = vmatmul.mubr.bf16.gmra.mxu0 %v9384_v20  ;;  %v9061_v22 = vpop.permute.xlu0 %9060  ;;  %v9318_v26 = vsel %vm20762_vm11, %v9307_v23, %v9317_v58  ;;  %vm20773_vm11 = vmmov %vm20753_vm0 }
 0x6f2   :  { %v9248_v15 = vsel %vm5516_vm9, %v19544_v1, %v9121_v21  ;;  %v9233_v38 = vsel %vm5516_vm9, %v8994_v9, %v9061_v22 }
 0x6f3   :  { %v9311_v48 = vrot.slane %v9248_v15, 4  ;;  %v9319_v45 = vrot.slane %v9233_v38, 4 }
 0x6f5   :  { %v8980_v62 = vpop.permute.xlu1 %8979  ;;  %v9189_v52 = vpop.permute.xlu0 %9188  ;;  %v9320_v0 = vsel %vm20760_vm4, %v9309_v19, %v9319_v45  ;;  %v9312_v5 = vsel %vm20761_vm7, %v9304_v16, %v9311_v48  ;;  %vm20770_vm4 = vmmov %vm20753_vm0 }
 0x6f6   :  { %v9265_v40 = vsel %vm5516_vm9, %v8994_v9, %v9189_v52  ;;  %9970 = vmatprep.mubr.bf16.mxu1 %v9320_v0  ;;  %v9219_v1 = vsel %vm5516_vm9, %v19509_v30, %v8980_v62  ;;  %v8998_v9 = vsel %vm4952_vm13, %v8995_v8, %v8997_v29  ;;  %v12489_v62 = vcombine.low %v19586_v3, %v19586_v3  ;;  %vm20772_vm7 = vmmov %vm20753_vm0 }
 0x6f7   :  { %v9313_v10 = vrot.slane %v9265_v40, 4  ;;  %9971 = vmatmul.mubr.bf16.gmra.mxu1 %v9318_v26  ;;  %v9327_v34 = vrot.slane %v9219_v1, 4  ;;  %v9142_v0 = vsel %vm4952_vm13, %v8995_v8, %v9141_v36  ;;  %v9466_v3 = vlaneseq  ;;  %vm20771_vm13 = vmmov %vm20753_vm0 }
 0x6f9   :  { %v9123_v18 = vpop.permute.xlu1 %9122  ;;  %v9063_v51 = vpop.permute.xlu0 %9062  ;;  %v9314_v19 = vsel %vm20763_vm14, %v9305_v12, %v9313_v10  ;;  %v9328_v63 = vsel %vm20765_vm3, %v9317_v58, %v9327_v34  ;;  %vm20776_vm14 = vmmov %vm20753_vm0 }
 0x6fa   :  { %v9251_v41 = vsel %vm5516_vm9, %v19589_v60, %v9123_v18  ;;  %v9236_v7 = vsel %vm5516_vm9, %v8996_v44, %v9063_v51  ;;  %10103 = vmatprep.mubr.bf16.mxu0 %v9314_v19  ;;  %vm20780_vm3 = vmmov %vm20753_vm0 }
 0x6fb   :  { %v9321_v17 = vrot.slane %v9251_v41, 4  ;;  %v9329_v23 = vrot.slane %v9236_v7, 4  ;;  %10104 = vmatmul.mubr.bf16.gmra.mxu0 %v9312_v5 }
 0x6fd   :  { %v8982_v16 = vpop.permute.xlu1 %8981  ;;  %v9191_v43 = vpop.permute.xlu0 %9190  ;;  %v9330_v56 = vsel %vm20753_vm0, %v9319_v45, %v9329_v23  ;;  %v9322_v53 = vsel %vm20764_vm5, %v9311_v48, %v9321_v17  ;;  %vm20778_vm5 = vmmov %vm20753_vm0 }
 0x6fe   :  { %v9267_v12 = vsel %vm5516_vm9, %v8996_v44, %v9191_v43  ;;  %9980 = vmatprep.mubr.bf16.mxu1 %v9330_v56  ;;  %v9221_v60 = vsel %vm5516_vm9, %v19573_v14, %v8982_v16 }
 0x6ff   :  { %v9323_v20 = vrot.slane %v9267_v12, 4  ;;  %9981 = vmatmul.mubr.bf16.gmra.mxu1 %v9328_v63  ;;  %v9337_v38 = vrot.slane %v9221_v60, 4  ;;  %v20775_v60 = vmov 0  }
 0x701   :  { %v9125_v21 = vpop.permute.xlu1 %9124  ;;  %v9065_v22 = vpop.permute.xlu0 %9064  ;;  %v9324_v15 = vsel %vm20766_vm10, %v9313_v10, %v9323_v20  ;;  %v9338_v1 = vsel %vm20769_vm2, %v9327_v34, %v9337_v38  ;;  %v9467_v34 = vshrl.u32 %v9466_v3, 7  ;;  %vm20782_vm10 = vmmov %vm20753_vm0 }
 0x702   :  { %v9254_v6 = vsel %vm5516_vm9, %v19624_v31, %v9125_v21  ;;  %v9239_v48 = vsel %vm5516_vm9, %v8998_v9, %v9065_v22  ;;  %10113 = vmatprep.mubr.bf16.mxu0 %v9324_v15 }
 0x703   :  { %v9331_v45 = vrot.slane %v9254_v6, 4  ;;  %v9339_v58 = vrot.slane %v9239_v48, 4  ;;  %10114 = vmatmul.mubr.bf16.gmra.mxu0 %v9322_v53  ;;  %v19789_v63 = vsub.s32 0, %v9467_v34  ;;  %v19799_v22 = vsub.s32 1, %v9467_v34 }
 0x704   :  { %v8782_v48 = vrot.slane %v19270_v11, 2 }
 0x705   :  { %v8984_v52 = vpop.permute.xlu1 %8983  ;;  %v9193_v5 = vpop.permute.xlu0 %9192  ;;  %v9340_v40 = vsel %vm20767_vm12, %v9329_v23, %v9339_v58  ;;  %v9332_v26 = vsel %vm20768_vm15, %v9321_v17, %v9331_v45  ;;  %20774 = vst [vmem:[#allocation18_spill] sm:$0xff] %v19789_v63  ;;  %20777 = vst [vmem:[#allocation10_spill] sm:$0xff] %v19799_v22 }
 0x706   :  { %v9270_v31 = vsel %vm5516_vm9, %v9142_v0, %v9193_v5  ;;  %9990 = vmatprep.mubr.bf16.mxu1 %v9340_v40  ;;  %v9224_v10 = vsel %vm5516_vm9, %v12489_v62, %v8984_v52  ;;  %v8470_v52 = vld [vmem:[#allocation5 + $0x8] sm:$0xc]  ;;  %vm20783_vm12 = vmmov %vm20753_vm0 }
 0x707   :  { %v9333_v18 = vrot.slane %v9270_v31, 4  ;;  %9991 = vmatmul.mubr.bf16.gmra.mxu1 %v9338_v1  ;;  %v9347_v36 = vrot.slane %v9224_v10, 4  ;;  %v14110_v31 = vld [vmem:[#allocation5 + $0xc] sm:$0xf] }
 0x708   :  { %v12483_v1 = vcombine.low %v8470_v52, %v14110_v31 }
 0x709   :  { %v9127_v44 = vpop.permute.xlu1 %9126  ;;  %v9067_v51 = vpop.permute.xlu0 %9066  ;;  %v9334_v35 = vsel %vm20770_vm4, %v9323_v20, %v9333_v18 }
 0x70a   :  { %v9257_v8 = vsel %vm5516_vm9, %v19656_v49, %v9127_v44  ;;  %v9242_v19 = vsel %vm5516_vm9, %v8997_v29, %v9067_v51  ;;  %10123 = vmatprep.mubr.bf16.mxu0 %v9334_v35  ;;  %v9348_v29 = vsel %vm20773_vm11, %v9337_v38, %v9347_v36  ;;  %v19802_v38 = vrot.slane %v9464_v50, %v19789_v63 }
 0x70b   :  { %v9341_v41 = vrot.slane %v9257_v8, 4  ;;  %v9349_v7 = vrot.slane %v9242_v19, 4  ;;  %10124 = vmatmul.mubr.bf16.gmra.mxu0 %v9332_v26  ;;  %v8777_v36 = vrot.slane %v12483_v1, 2  ;;  %v8778_v8 = vrot.slane %v19239_v59, 2 }
 0x70d   :  { %v9129_v17 = vpop.permute.xlu1 %9128  ;;  %v9195_v23 = vpop.permute.xlu0 %9194  ;;  %v9350_v16 = vsel %vm20771_vm13, %v9339_v58, %v9349_v7  ;;  %v9342_v43 = vsel %vm20772_vm7, %v9331_v45, %v9341_v41  ;;  %v19807_v58 = vrot.slane %v9464_v50, %v19799_v22 }
 0x70e   :  { %v9260_v56 = vsel %vm5516_vm9, %v9080_v33, %v9129_v17  ;;  %v9273_v49 = vsel %vm5516_vm9, %v19667_v37, %v9195_v23  ;;  %10000 = vmatprep.mubr.bf16.mxu1 %v9350_v16 }
 0x70f   :  { %v9351_v53 = vrot.slane %v9260_v56, 4  ;;  %v9343_v12 = vrot.slane %v9273_v49, 4  ;;  %10001 = vmatmul.mubr.bf16.gmra.mxu1 %v9348_v29  ;;  %v8779_v56 = vsel %vm578_vm1, %v8777_v36, %v8778_v8 }
 0x710   :  { %10216 = vmatprep.mubr.bf16.mxu1 %v20775_v60 }
 0x711   :  { %v9197_v20 = vpop.permute.xlu0 %9196  ;;  %v9344_v33 = vsel %vm20776_vm14, %v9333_v18, %v9343_v12  ;;  %v9352_v21 = vsel %vm20753_vm0, %v9341_v41, %v9351_v53 }
 0x712   :  { %v9276_v37 = vsel %vm5516_vm9, %v19658_v57, %v9197_v20  ;;  %v9902_v9 = vpop.f32.mrf.mxu1  ;;  %10133 = vmatprep.mubr.bf16.mxu0 %v9344_v33  ;;  %v8785_v57 = vsel %vm578_vm1, %v8782_v48, %v8784_v47 }
 0x713   :  { %v9353_v15 = vrot.slane %v9276_v37, 4  ;;  %10134 = vmatmul.mubr.bf16.gmra.mxu0 %v9342_v43  ;;  %v9903_v0 = vadd.f32 %v9902_v9, %v19802_v38 }
 0x714   :  { %v9904_v6 = vpop.f32.mrf.mxu1 }
 0x715   :  { %v9354_v45 = vsel %vm20778_vm5, %v9343_v12, %v9353_v15  ;;  %v9905_v40 = vadd.f32 %v9904_v6, %v19807_v58 }
 0x716   :  { %10143 = vmatprep.mubr.bf16.mxu0 %v9354_v45  ;;  %v9906_v62 = vpop.f32.mrf.mxu1 }
 0x717   :  { %12580 = vmatmul.mubr.msk.bf16.vlgmr.msra.gmra.mxu1 %vm5516_vm9, %v8785_v57  ;;  %v9907_v47 = vadd.f32 %v9906_v62, %v19802_v38 }
 0x718   :  { %10226 = vmatprep.mubr.bf16.mxu1 %v20775_v60  ;;  %v9908_v61 = vpop.f32.mrf.mxu1 }
 0x719   :  { %v10045_v5 = vpop.f32.mrf.mxu0  ;;  %v9909_v51 = vadd.f32 %v9908_v61, %v19807_v58 }
 0x71a   :  { %v19818_v26 = vadd.f32 %v10045_v5, %v9903_v0 }
 0x71b   :  { %v10047_v10 = vpop.f32.mrf.mxu0  ;;  %10144 = vmatmul.mubr.bf16.gmra.mxu0 %v9352_v21  ;;  %v8780_v21 = vrot.slane %v19253_v55, 2 }
 0x71c   :  { %v19821_v18 = vadd.f32 %v10047_v10, %v9905_v40  ;;  %10186 = vmatprep.mubr.bf16.mxu0 %v20775_v60 }
 0x71d   :  { %v9912_v3 = vpop.f32.mrf.mxu1  ;;  %v10049_v44 = vpop.f32.mrf.mxu0  ;;  %v8781_v52 = vsel %vm578_vm1, %v8778_v8, %v8780_v21 }
 0x71e   :  { %v19825_v35 = vadd.f32 %v10049_v44, %v9907_v47  ;;  %v9913_v7 = vadd.f32 %v9912_v3, %v19802_v38  ;;  %v8783_v44 = vsel %vm578_vm1, %v8780_v21, %v8782_v48 }
 0x71f   :  { %v9914_v19 = vpop.f32.mrf.mxu1  ;;  %v10051_v41 = vpop.f32.mrf.mxu0  ;;  %12581 = vmatmul.mubr.msk.bf16.gmra.mxu1 %vm5516_vm9, %v19356_v28  ;;  %v9204_v28 = vrot.slane %v19509_v30, 2 }
 0x720   :  { %v19831_v34 = vadd.f32 %v10051_v41, %v9909_v51  ;;  %10236 = vmatprep.mubr.bf16.mxu1 %v20775_v60  ;;  %v9915_v16 = vadd.f32 %v9914_v19, %v19807_v58 }
 0x721   :  { %v9916_v17 = vpop.f32.mrf.mxu1  ;;  %v10055_v23 = vpop.f32.mrf.mxu0  ;;  %v9205_v30 = vsel %vm578_vm1, %v9202_v24, %v9204_v28  ;;  %v9207_v47 = vsel %vm578_vm1, %v9204_v28, %v9206_v2 }
 0x722   :  { %v19835_v43 = vadd.f32 %v10055_v23, %v9913_v7  ;;  %v9917_v29 = vadd.f32 %v9916_v17, %v19802_v38  ;;  %v9315_v0 = vrot.slane %v9205_v30, 4  ;;  %v9325_v51 = vrot.slane %v9207_v47, 4 }
 0x723   :  { %v9918_v59 = vpop.f32.mrf.mxu1  ;;  %v10057_v49 = vpop.f32.mrf.mxu0  ;;  %12577 = vmatmul.mubr.msk.bf16.vlgmr.msra.gmra.mxu0 %vm5516_vm9, %v8779_v56 }
 0x724   :  { %v19841_v53 = vadd.f32 %v10057_v49, %v9915_v16  ;;  %10196 = vmatprep.mubr.bf16.mxu0 %v20775_v60  ;;  %v9919_v50 = vadd.f32 %v9918_v59, %v19807_v58  ;;  %v9316_v61 = vsel %vm20780_vm3, %v9306_v39, %v9315_v0  ;;  %v9326_v4 = vsel %vm20782_vm10, %v9315_v0, %v9325_v51 }
 0x725   :  { %v9922_v12 = vpop.f32.mrf.mxu1  ;;  %v10059_v20 = vpop.f32.mrf.mxu0  ;;  %v9336_v14 = vsel %vm20783_vm12, %v9325_v51, %v9335_v13 }
 0x726   :  { %v19845_v33 = vadd.f32 %v10059_v20, %v9917_v29  ;;  %v9923_v15 = vadd.f32 %v9922_v12, %v19802_v38 }
 0x727   :  { %v9924_v37 = vpop.f32.mrf.mxu1  ;;  %v10061_v9 = vpop.f32.mrf.mxu0  ;;  %12582 = vmatmul.mubr.msk.bf16.gmra.mxu1 %vm5516_vm9, %v19605_v42 }
 0x728   :  { %v19854_v6 = vadd.f32 %v10061_v9, %v9919_v50  ;;  %10246 = vmatprep.mubr.bf16.mxu1 %v20775_v60  ;;  %v9925_v62 = vadd.f32 %v9924_v37, %v19807_v58 }
 0x729   :  { %v9926_v45 = vpop.f32.mrf.mxu1  ;;  %v10065_v57 = vpop.f32.mrf.mxu0 }
 0x72a   :  { %v19858_v55 = vadd.f32 %v10065_v57, %v9923_v15  ;;  %v9927_v25 = vadd.f32 %v9926_v45, %v19802_v38 }
 0x72b   :  { %v9928_v42 = vpop.f32.mrf.mxu1  ;;  %v10067_v5 = vpop.f32.mrf.mxu0  ;;  %12578 = vmatmul.mubr.msk.bf16.gmra.mxu0 %vm5516_vm9, %v8781_v52 }
 0x72c   :  { %v19863_v24 = vadd.f32 %v10067_v5, %v9925_v62  ;;  %10206 = vmatprep.mubr.bf16.mxu0 %v20775_v60  ;;  %v9929_v31 = vadd.f32 %v9928_v42, %v19807_v58 }
 0x72d   :  { %v10069_v40 = vpop.f32.mrf.mxu0  ;;  %v9932_v11 = vpop.f32.mrf.mxu1 }
 0x72e   :  { %v19867_v1 = vadd.f32 %v10069_v40, %v9927_v25 }
 0x72f   :  { %v10071_v10 = vpop.f32.mrf.mxu0  ;;  %12583 = vmatmul.mubr.msk.bf16.gmra.mxu1 %vm5516_vm9, %v9316_v61  ;;  %v9934_v39 = vpop.f32.mrf.mxu1 }
 0x730   :  { %20779 = vst [vmem:[#allocation13_spill] sm:$0xff] %v19867_v1  ;;  %v19876_v3 = vadd.f32 %v10071_v10, %v9929_v31  ;;  %10256 = vmatprep.mubr.bf16.mxu1 %v20775_v60 }
 0x731   :  { %v9936_v2 = vpop.f32.mrf.mxu1  ;;  %v10075_v36 = vpop.f32.mrf.mxu0 }
 0x732   :  { %20781 = vst [vmem:[#allocation20_spill] sm:$0xff] %v19876_v3 }
 0x733   :  { %12579 = vmatmul.mubr.msk.bf16.gmra.mxu0 %vm5516_vm9, %v8783_v44  ;;  %v9938_v48 = vpop.f32.mrf.mxu1  ;;  %v10077_v8 = vpop.f32.mrf.mxu0 }
 0x734   :  { %10766 = vmatprep.mubr.bf16.mxu0 %v20775_v60  ;;  %v9939_v63 = vadd.f32 %v9938_v48, %v19807_v58  ;;  %v13911_v48 = vld [vmem:[%s20594_s10 + $0x54] ss:$8 sps:$4 sm:$0xff]  }
 0x735   :  { %v9942_v54 = vpop.f32.mrf.mxu1  ;;  %v10079_v19 = vpop.f32.mrf.mxu0 }
 0x737   :  { %12584 = vmatmul.mubr.msk.bf16.gmra.mxu1 %vm5516_vm9, %v9326_v4  ;;  %v9944_v13 = vpop.f32.mrf.mxu1  ;;  %v10081_v7 = vpop.f32.mrf.mxu0 }
 0x738   :  { %10266 = vmatprep.mubr.bf16.mxu1 %v20775_v60  ;;  %v10082_v3 = vadd.f32 %v10081_v7, %v9939_v63 }
 0x739   :  { %v9946_v41 = vpop.f32.mrf.mxu1 }
 0x73b   :  { %v9948_v17 = vpop.f32.mrf.mxu1 }
 0x73d   :  { %v10085_v23 = vpop.f32.mrf.mxu0 }
 0x73f   :  { %12585 = vmatmul.mubr.msk.bf16.gmra.mxu1 %vm5516_vm9, %v9336_v14  ;;  %v10087_v56 = vpop.f32.mrf.mxu0 }
 0x740   :  { %10276 = vmatprep.mubr.bf16.mxu1 %v20775_v60  ;;  %v9933_v56 = vadd.f32 %v9932_v11, %v19802_v38 }
 0x741   :  { %v10089_v49 = vpop.f32.mrf.mxu0 }
 0x747   :  { %12586 = vmatmul.mubr.msk.bf16.gmra.mxu1 %vm5516_vm9, %v19692_v27 }
 0x748   :  { %10286 = vmatprep.mubr.bf16.mxu1 %v20775_v60 }
 0x74f   :  { %12587 = vmatmul.mubr.msk.bf16.gmra.mxu1 %vm5516_vm9, %v19695_v46  ;;  %v10091_v46 = vpop.f32.mrf.mxu0 }
 0x7a4   :  { %v9952_v16 = vpop.f32.mrf.mxu1 }
 0x7a6   :  { %v9954_v27 = vpop.f32.mrf.mxu1 }
 0x7a7   :  { %v13903_v27 = vld [vmem:[%s20594_s10 + $0x70] ss:$8 sps:$4 sm:$0xff]  }
 0x7a8   :  { %v9956_v59 = vpop.f32.mrf.mxu1 }
 0x7aa   :  { %v9958_v28 = vpop.f32.mrf.mxu1 }
 0x7af   :  { %v9962_v29 = vpop.f32.mrf.mxu1 }
 0x7b1   :  { %v9964_v12 = vpop.f32.mrf.mxu1  ;;  %v10095_v20 = vpop.f32.mrf.mxu0 }
 0x7b2   :  { %v13905_v20 = vld [vmem:[%s20594_s10 + $0x74] ss:$8 sps:$4 sm:$0xff]  }
 0x7b3   :  { %v9966_v50 = vpop.f32.mrf.mxu1  ;;  %v10097_v21 = vpop.f32.mrf.mxu0  ;;  %11257 = vmatprep.subr.bf16.mxu1 %v13905_v20 }
 0x7b4   :  { %v9935_v21 = vadd.f32 %v9934_v39, %v19807_v58  ;;  %11258 = vmatpush1.bf16.msra.mxu1 %v13903_v27  ;;  %v13906_v39 = vld [vmem:[%s20594_s10 + $0x60] ss:$8 sps:$4 sm:$0xff]   ;;  %v9967_v63 = vadd.f32 %v9966_v50, %v19802_v38  ;;  %v13914_v50 = vld [vmem:[%s20594_s10 + $0x44] ss:$8 sps:$4 sm:$0xff]  }
 0x7b5   :  { %v9968_v37 = vpop.f32.mrf.mxu1  ;;  %v10099_v9 = vpop.f32.mrf.mxu0 }
 0x7b6   :  { %v9969_v7 = vadd.f32 %v9968_v37, %v19807_v58 }
 0x7b7   :  { %v9972_v30 = vpop.f32.mrf.mxu1  ;;  %v10101_v15 = vpop.f32.mrf.mxu0 }
 0x7b9   :  { %v9974_v45 = vpop.f32.mrf.mxu1 }
 0x7bb   :  { %v19897_v57 = vpop.f32.mrf.mxu1  ;;  %v19899_v62 = vpop.f32.mrf.mxu0 }
 0x7bc   :  { %v9977_v37 = vadd.f32 %v19897_v57, %v19802_v38 }
 0x7bd   :  { %v19901_v52 = vpop.f32.mrf.mxu1  ;;  %v19903_v0 = vpop.f32.mrf.mxu0 }
 0x7bf   :  { %v19905_v42 = vpop.f32.mrf.mxu1  ;;  %v19907_v5 = vpop.f32.mrf.mxu0 }
 0x7c1   :  { %v19909_v25 = vpop.f32.mrf.mxu1  ;;  %v19911_v40 = vpop.f32.mrf.mxu0 }
 0x7c3   :  { %v19913_v31 = vpop.f32.mrf.mxu1  ;;  %v19915_v61 = vpop.f32.mrf.mxu0 }
 0x7c5   :  { %v19917_v10 = vpop.f32.mrf.mxu1  ;;  %v19919_v47 = vpop.f32.mrf.mxu0 }
 0x7c7   :  { %v19921_v44 = vpop.f32.mrf.mxu1  ;;  %v19923_v51 = vpop.f32.mrf.mxu0 }
 0x7c9   :  { %v19925_v4 = vpop.f32.mrf.mxu1  ;;  %v19927_v14 = vpop.f32.mrf.mxu0 }
 0x7cb   :  { %v9996_v54 = vpop.f32.mrf.mxu1  ;;  %v19929_v13 = vpop.f32.mrf.mxu0 }
 0x7cc   :  { %v9937_v54 = vadd.f32 %v9936_v2, %v19802_v38 }
 0x7cd   :  { %v9998_v41 = vpop.f32.mrf.mxu1  ;;  %v19931_v17 = vpop.f32.mrf.mxu0 }
 0x7ce   :  { %v13908_v41 = vld [vmem:[%s20594_s10 + $0x64] ss:$8 sps:$4 sm:$0xff]   ;;  %v10080_v60 = vadd.f32 %v10079_v19, %v9937_v54  ;;  %v9965_v19 = vadd.f32 %v9964_v12, %v19807_v58 }
 0x7cf   :  { %v10002_v23 = vpop.f32.mrf.mxu1  ;;  %v19933_v16 = vpop.f32.mrf.mxu0  ;;  %11259 = vmatprep.subr.bf16.mxu1 %v13908_v41 }
 0x7d0   :  { %v10076_v23 = vadd.f32 %v10075_v36, %v9933_v56  ;;  %v9959_v36 = vadd.f32 %v9958_v28, %v19807_v58  ;;  %11260 = vmatpush1.bf16.msra.mxu1 %v13906_v39  ;;  %v19991_v39 = vadd.f32 %v19907_v5, %v9967_v63 }
 0x7d1   :  { %v10004_v49 = vpop.f32.mrf.mxu1  ;;  %v19939_v46 = vpop.f32.mrf.mxu0  ;;  %11261 = vmatprep.subr.bf16.mxu1 %v13911_v48 }
 0x7d2   :  { %v10078_v49 = vadd.f32 %v10077_v8, %v9935_v21  ;;  %v9963_v8 = vadd.f32 %v9962_v29, %v19802_v38  ;;  %v13909_v21 = vld [vmem:[%s20594_s10 + $0x50] ss:$8 sps:$4 sm:$0xff]   ;;  %v19972_v28 = vadd.f32 %v10101_v15, %v9959_v36  ;;  %v9975_v29 = vadd.f32 %v9974_v45, %v19807_v58 }
 0x7d3   :  { %v10006_v22 = vpop.f32.mrf.mxu1  ;;  %v19950_v11 = vpop.f32.mrf.mxu0  ;;  %v19986_v15 = vadd.f32 %v19903_v0, %v9965_v19  ;;  %v9983_v45 = vadd.f32 %v19905_v42, %v19802_v38  ;;  %v13912_v0 = vld [vmem:[%s20594_s10 + $0x40] ss:$8 sps:$4 sm:$0xff]   ;;  %v9987_v42 = vadd.f32 %v19913_v31, %v19802_v38  ;;  %v9993_v19 = vadd.f32 %v19921_v44, %v19802_v38 }
 0x7d4   :  { %v9957_v22 = vadd.f32 %v9956_v59, %v19802_v38  ;;  %v9973_v59 = vadd.f32 %v9972_v30, %v19802_v38  ;;  %11262 = vmatpush1.bf16.msra.mxu1 %v13909_v21  ;;  %v20017_v31 = vadd.f32 %v19923_v51, %v9977_v37  ;;  %v13915_v38 = vld [vmem:[%s20594_s10 + $0x30] ss:$8 sps:$4 sm:$0xff]  }
 0x7d5   :  { %v10008_v2 = vpop.f32.mrf.mxu1  ;;  %v19955_v1 = vpop.f32.mrf.mxu0  ;;  %11263 = vmatprep.subr.bf16.mxu1 %v13914_v50  ;;  %v20042_v21 = vadd.f32 %v19933_v16, %v9987_v42  ;;  %v20050_v37 = vadd.f32 %v19950_v11, %v9993_v19  ;;  %v13918_v16 = vld [vmem:[%s20594_s10 + $0x20] ss:$8 sps:$4 sm:$0xff]   ;;  %v13921_v42 = vld [vmem:[%s20594_s10 + $0x10] ss:$8 sps:$4 sm:$0xff]  }
 0x7d6   :  { %v19969_v54 = vadd.f32 %v10099_v9, %v9957_v22  ;;  %v9979_v9 = vadd.f32 %v19901_v52, %v19807_v58  ;;  %v9985_v2 = vadd.f32 %v19909_v25, %v19807_v58  ;;  %v20004_v5 = vadd.f32 %v19915_v61, %v9973_v59 }
 0x7d7   :  { %v10139_v27 = vpop.f32.mrf.mxu0  ;;  %v10218_v56 = vpop.f32.mrf.mxu1  ;;  %v9989_v25 = vadd.f32 %v19917_v10, %v19807_v58  ;;  %v9995_v10 = vadd.f32 %v19925_v4, %v19807_v58 }
 0x7d8   :  { %v10219_v20 = vadd.f32 %v10218_v56, %v10076_v23  ;;  %v19981_v23 = vadd.f32 %v19899_v62, %v9963_v8  ;;  %v19996_v62 = vadd.f32 %v19911_v40, %v9969_v7  ;;  %v20009_v40 = vadd.f32 %v19919_v47, %v9975_v29  ;;  %11264 = vmatpush1.bf16.msra.mxu1 %v13912_v0 }
 0x7d9   :  { %v10141_v12 = vpop.f32.mrf.mxu0  ;;  %v10220_v41 = vpop.f32.mrf.mxu1  ;;  %v20024_v47 = vadd.f32 %v19927_v14, %v9979_v9  ;;  %v20027_v56 = vadd.f32 %v19929_v13, %v9983_v45  ;;  %v20035_v58 = vadd.f32 %v19931_v17, %v9985_v2  ;;  %v20045_v29 = vadd.f32 %v19939_v46, %v9989_v25  ;;  %v13923_v2 = vld [vmem:[%s20594_s10 + $0x14] ss:$8 sps:$4 sm:$0xff]  }
 0x7da   :  { %v10221_v30 = vadd.f32 %v10220_v41, %v10078_v49  ;;  %v10309_v22 = vmax.f32 %v10219_v20, 0.0  ;;  %v13920_v20 = vld [vmem:[%s20594_s10 + $0x24] ss:$8 sps:$4 sm:$0xff]  }
 0x7db   :  { %v10145_v57 = vpop.f32.mrf.mxu0  ;;  %v10222_v48 = vpop.f32.mrf.mxu1 }
 0x7dc   :  { %v10310_v52 = vmax.f32 %v10221_v30, 0.0  ;;  %v10223_v49 = vadd.f32 %v10222_v48, %v10080_v60  ;;  %v13917_v60 = vld [vmem:[%s20594_s10 + $0x34] ss:$8 sps:$4 sm:$0xff]   ;;  %v20057_v30 = vadd.f32 %v19955_v1, %v9995_v10 }
 0x7dd   :  { %v10147_v36 = vpop.f32.mrf.mxu0  ;;  %v10224_v8 = vpop.f32.mrf.mxu1  ;;  %11265 = vmatprep.subr.bf16.mxu1 %v13917_v60 }
 0x7de   :  { %v20019_v61 = vpack.c.bf16 %v10310_v52, %v10309_v22  ;;  %v10225_v27 = vadd.f32 %v10224_v8, %v10082_v3  ;;  %v10311_v44 = vmax.f32 %v10223_v49, 0.0  ;;  %11266 = vmatpush1.bf16.msra.mxu1 %v13915_v38 }
 0x7df   :  { %v10149_v63 = vpop.f32.mrf.mxu0  ;;  %v10228_v7 = vpop.f32.mrf.mxu1  ;;  %11267 = vmatprep.subr.bf16.mxu1 %v13920_v20 }
 0x7e0   :  { %10479 = vst [vmem:[#allocation6 + $0x70] sm:$0xff] %v20019_v61  ;;  %v10312_v51 = vmax.f32 %v10225_v27, 0.0  ;;  %v10594_v3 = vshll.u32 %v20019_v61, 16  ;;  %v10598_v13 = vshrl.u32 %v20019_v61, 16 }
 0x7e1   :  { %v10151_v4 = vpop.f32.mrf.mxu0  ;;  %v10230_v14 = vpop.f32.mrf.mxu1 }
 0x7e2   :  { %v12954_v59 = vpack.c.bf16 %v10312_v51, %v10311_v44  ;;  %v20047_v17 = vrot.slane %v10594_v3, 5  ;;  %v10600_v50 = vrot.slane %v10598_v13, 4  ;;  %11268 = vmatpush1.bf16.msra.mxu1 %v13918_v16  ;;  %v13924_v4 = vld [vmem:[%s20594_s10] ss:$8 sps:$4 sm:$0xff]  }
 0x7e3   :  { %v10188_v12 = vpop.f32.mrf.mxu0  ;;  %v10232_v41 = vpop.f32.mrf.mxu1  ;;  %11269 = vmatprep.subr.bf16.mxu1 %v13923_v2 }
 0x7e4   :  { %10480 = vst [vmem:[#allocation6 + $0x80] sm:$0xff] %v12954_v59  ;;  %v10189_v9 = vadd.f32 %v10188_v12, %v19818_v26  ;;  %v10601_v57 = vor.u32 %v10600_v50, %v20047_v17 }
 0x7e5   :  { %v10190_v46 = vpop.f32.mrf.mxu0  ;;  %v10234_v45 = vpop.f32.mrf.mxu1 }
 0x7e6   :  { %v10191_v11 = vadd.f32 %v10190_v46, %v19821_v18  ;;  %v10297_v26 = vmax.f32 %v10189_v9, 0.0  ;;  %v13926_v18 = vld [vmem:[%s20594_s10 + $0x4] ss:$8 sps:$4 sm:$0xff]   ;;  %v10602_v27 = vrot.slane %v10601_v57, 4  ;;  %11270 = vmatpush1.bf16.msra.mxu1 %v13921_v42 }
 0x7e7   :  { %v10192_v48 = vpop.f32.mrf.mxu0  ;;  %v10238_v22 = vpop.f32.mrf.mxu1  ;;  %v10503_v52 = vld [vmem:[#allocation6 + $0x70] sm:$0x11]  ;;  %11271 = vmatprep.subr.bf16.mxu1 %v13926_v18 }
 0x7e8   :  { %v10298_v49 = vmax.f32 %v10191_v11, 0.0  ;;  %v10193_v0 = vadd.f32 %v10192_v48, %v19825_v35  ;;  %v10564_v1 = vshll.u32 %v10503_v52, 16 }
 0x7e9   :  { %v10194_v25 = vpop.f32.mrf.mxu0  ;;  %v10240_v36 = vpop.f32.mrf.mxu1 }
 0x7ea   :  { %v20071_v8 = vpack.c.bf16 %v10298_v49, %v10297_v26  ;;  %v10299_v60 = vmax.f32 %v10193_v0, 0.0  ;;  %v10195_v19 = vadd.f32 %v10194_v25, %v19831_v34  ;;  %v20074_v63 = vrot.slane %v10564_v1, 5  ;;  %11272 = vmatpush1.bf16.msra.mxu1 %v13924_v4 }
 0x7eb   :  { %v10198_v35 = vpop.f32.mrf.mxu0  ;;  %v10242_v10 = vpop.f32.mrf.mxu1  ;;  %v10581_v7 = vld [vmem:[#allocation6 + $0x80] sm:$0x11] }
 0x7ec   :  { %v10300_v38 = vmax.f32 %v10195_v19, 0.0  ;;  %v10199_v44 = vadd.f32 %v10198_v35, %v19835_v43  ;;  %v10243_v51 = vadd.f32 %v10242_v10, %v19969_v54  ;;  %v10604_v3 = vshll.u32 %v10581_v7, 16  ;;  %v13929_v43 = vld [vmem:[%s20594_s10 + $0xf4] ss:$8 sps:$4 sm:$0xff]  }
 0x7ed   :  { %v10200_v14 = vpop.f32.mrf.mxu0  ;;  %v10244_v13 = vpop.f32.mrf.mxu1  ;;  %v10608_v34 = vshrl.u32 %v10581_v7, 16  ;;  %v10505_v20 = vshrl.u32 %v20071_v8, 16  ;;  %v10508_v59 = vshll.u32 %v20071_v8, 16  ;;  %11273 = vmatprep.subr.bf16.mxu1 %v13929_v43 }
 0x7ee   :  { %v20086_v12 = vpack.c.bf16 %v10300_v38, %v10299_v60  ;;  %v10301_v54 = vmax.f32 %v10199_v44, 0.0  ;;  %v10319_v41 = vmax.f32 %v10243_v51, 0.0  ;;  %v10201_v50 = vadd.f32 %v10200_v14, %v19841_v53  ;;  %v13927_v53 = vld [vmem:[%s20594_s10 + $0xf0] ss:$8 sps:$4 sm:$0xff]  }
 0x7ef   :  { %v10245_v9 = vadd.f32 %v10244_v13, %v19972_v28  ;;  %v10202_v16 = vpop.f32.mrf.mxu0  ;;  %v10248_v46 = vpop.f32.mrf.mxu1  ;;  %v10606_v45 = vrot.slane %v10604_v3, 5  ;;  %v10619_v2 = vmax.bf16 %v10608_v34, %v10581_v7  ;;  %v20093_v48 = vrot.slane %v10505_v20, 4  ;;  %11274 = vmatpush2.bf16.msra.mxu1 %v13927_v53 }
 0x7f0   :  { %10474 = vst [vmem:[#allocation6 + $0x8] sm:$0xff] %v20086_v12  ;;  %v10302_v11 = vmax.f32 %v10201_v50, 0.0  ;;  %v10203_v57 = vadd.f32 %v10202_v16, %v19845_v33  ;;  %v10249_v26 = vadd.f32 %v10248_v46, %v19981_v23  ;;  %v20100_v1 = vrot.slane %v10508_v59, 5  ;;  %v13932_v33 = vld [vmem:[%s20594_s10 + $0xe4] ss:$8 sps:$4 sm:$0xff]  }
 0x7f1   :  { %v10320_v22 = vmax.f32 %v10245_v9, 0.0  ;;  %v10204_v28 = vpop.f32.mrf.mxu0  ;;  %v10250_v52 = vpop.f32.mrf.mxu1  ;;  %v10607_v49 = vsel %vm14436_vm6, %v10602_v27, %v10606_v45  ;;  %v10680_v0 = vshll.u32 %v10619_v2, 16  ;;  %11275 = vmatprep.subr.bf16.mxu1 %v13932_v33  ;;  %v20784_v45 = vld [vmem:[#allocation13_spill] sm:$0xff] }
 0x7f2   :  { %v20105_v23 = vpack.c.bf16 %v10302_v11, %v10301_v54  ;;  %v10303_v42 = vmax.f32 %v10203_v57, 0.0  ;;  %v10321_v25 = vmax.f32 %v10249_v26, 0.0  ;;  %v10205_v36 = vadd.f32 %v10204_v28, %v19854_v6  ;;  %v13930_v6 = vld [vmem:[%s20594_s10 + $0xe0] ss:$8 sps:$4 sm:$0xff]  }
 0x7f3   :  { %v20108_v18 = vpack.c.bf16 %v10320_v22, %v10319_v41  ;;  %v10251_v60 = vadd.f32 %v10250_v52, %v19986_v15  ;;  %v10208_v19 = vpop.f32.mrf.mxu0  ;;  %v10252_v27 = vpop.f32.mrf.mxu1  ;;  %v10618_v35 = vmax.bf16 %v20019_v61, %v10607_v49  ;;  %v20112_v10 = vrot.slane %v10680_v0, 5  ;;  %11276 = vmatpush2.bf16.msra.mxu1 %v13930_v6  ;;  %v13936_v6 = vld [vmem:[%s20594_s10 + $0xc0] ss:$8 sps:$4 sm:$0xff]  }
 0x7f4   :  { %v10304_v7 = vmax.f32 %v10205_v36, 0.0  ;;  %v10209_v38 = vadd.f32 %v10208_v19, %v19858_v55  ;;  %v10253_v44 = vadd.f32 %v10252_v27, %v19991_v39  ;;  %v10524_v51 = vshll.u32 %v20105_v23, 16  ;;  %v13935_v55 = vld [vmem:[%s20594_s10 + $0xd4] ss:$8 sps:$4 sm:$0xff]  }
 0x7f5   :  { %v10322_v3 = vmax.f32 %v10251_v60, 0.0  ;;  %v10210_v15 = vpop.f32.mrf.mxu0  ;;  %v10254_v4 = vpop.f32.mrf.mxu1  ;;  %v10670_v14 = vshll.u32 %v10618_v35, 16  ;;  %v10674_v13 = vshrl.u32 %v10618_v35, 16  ;;  %v10528_v61 = vshrl.u32 %v20105_v23, 16  ;;  %11277 = vmatprep.subr.bf16.mxu1 %v13935_v55 }
 0x7f6   :  { %v20124_v39 = vpack.c.bf16 %v10304_v7, %v10303_v42  ;;  %v10305_v34 = vmax.f32 %v10209_v38, 0.0  ;;  %v10323_v20 = vmax.f32 %v10253_v44, 0.0  ;;  %v10211_v59 = vadd.f32 %v10210_v15, %v19863_v24  ;;  %v13933_v24 = vld [vmem:[%s20594_s10 + $0xd0] ss:$8 sps:$4 sm:$0xff]  }
 0x7f7   :  { %v20127_v43 = vpack.c.bf16 %v10322_v3, %v10321_v25  ;;  %v10255_v54 = vadd.f32 %v10254_v4, %v19996_v62  ;;  %v10212_v41 = vpop.f32.mrf.mxu0  ;;  %v10258_v50 = vpop.f32.mrf.mxu1  ;;  %v20130_v9 = vrot.slane %v10670_v14, 5  ;;  %v10676_v16 = vrot.slane %v10674_v13, 4  ;;  %v20785_v42 = vld [vmem:[#allocation20_spill] sm:$0xff]  ;;  %11278 = vmatpush2.bf16.msra.mxu1 %v13933_v24 }
 0x7f8   :  { %v10306_v46 = vmax.f32 %v10211_v59, 0.0  ;;  %v10213_v2 = vadd.f32 %v10212_v41, %v20784_v45  ;;  %v10259_v11 = vadd.f32 %v10258_v50, %v20004_v5  ;;  %v20134_v57 = vrot.slane %v10524_v51, 5  ;;  %v13938_v5 = vld [vmem:[%s20594_s10 + $0xc4] ss:$8 sps:$4 sm:$0xff]  }
 0x7f9   :  { %10485 = vst [vmem:[#allocation6 + $0x48] sm:$0xff] %v20127_v43  ;;  %v10324_v62 = vmax.f32 %v10255_v54, 0.0  ;;  %v10214_v26 = vpop.f32.mrf.mxu0  ;;  %v10260_v53 = vpop.f32.mrf.mxu1  ;;  %v10677_v22 = vor.u32 %v10676_v16, %v20130_v9  ;;  %v10530_v28 = vrot.slane %v10528_v61, 4  ;;  %v10534_v52 = vshll.u32 %v20124_v39, 16  ;;  %11279 = vmatprep.subr.bf16.mxu1 %v13938_v5 }
 0x7fa   :  { %v20145_v49 = vpack.c.bf16 %v10306_v46, %v10305_v34  ;;  %v10307_v0 = vmax.f32 %v10213_v2, 0.0  ;;  %v10325_v33 = vmax.f32 %v10259_v11, 0.0  ;;  %v10215_v25 = vadd.f32 %v10214_v26, %v20785_v42 }
 0x7fb   :  { %v20148_v36 = vpack.c.bf16 %v10324_v62, %v10323_v20  ;;  %v10261_v60 = vadd.f32 %v10260_v53, %v20009_v40  ;;  %v10262_v19 = vpop.f32.mrf.mxu1  ;;  %v20151_v27 = vrot.slane %v10677_v22, 4  ;;  %v10531_v35 = vor.u32 %v10530_v28, %v20134_v57  ;;  %11280 = vmatpush2.bf16.msra.mxu1 %v13936_v6 }
 0x7fc   :  { %v10308_v7 = vmax.f32 %v10215_v25, 0.0  ;;  %v10263_v38 = vadd.f32 %v10262_v19, %v20017_v31  ;;  %v10544_v44 = vshll.u32 %v20145_v49, 16  ;;  %v10548_v51 = vshrl.u32 %v20145_v49, 16  ;;  %v13941_v31 = vld [vmem:[%s20594_s10 + $0xb4] ss:$8 sps:$4 sm:$0xff]  }
 0x7fd   :  { %v10326_v3 = vmax.f32 %v10261_v60, 0.0  ;;  %v10264_v15 = vpop.f32.mrf.mxu1  ;;  %v10683_v40 = vsel %vm14436_vm6, %v20151_v27, %v20112_v10  ;;  %v10532_v4 = vrot.slane %v10531_v35, 4  ;;  %v10536_v14 = vrot.slane %v10534_v52, 5  ;;  %11281 = vmatprep.subr.bf16.mxu1 %v13941_v31 }
 0x7fe   :  { %v20167_v13 = vpack.c.bf16 %v10308_v7, %v10307_v0  ;;  %v10327_v61 = vmax.f32 %v10263_v38, 0.0  ;;  %v10265_v55 = vadd.f32 %v10264_v15, %v20024_v47  ;;  %v10546_v34 = vrot.slane %v10544_v44, 5  ;;  %v13939_v47 = vld [vmem:[%s20594_s10 + $0xb0] ss:$8 sps:$4 sm:$0xff]   ;;  %v20192_v0 = vld [vmem:[#allocation6 + $0x8] sm:$0xee] }
 0x7ff   :  { %v20170_v20 = vpack.c.bf16 %v10326_v3, %v10325_v33  ;;  %v10268_v59 = vpop.f32.mrf.mxu1  ;;  %v10550_v54 = vrot.slane %v10548_v51, 4  ;;  %v10537_v41 = vsel %vm14436_vm6, %v10532_v4, %v10536_v14  ;;  %v10538_v50 = vshrl.u32 %v20124_v39, 16  ;;  %11282 = vmatpush2.bf16.msra.mxu1 %v13939_v47 }
 0x800   :  { %v10328_v16 = vmax.f32 %v10265_v55, 0.0  ;;  %v10269_v46 = vadd.f32 %v10268_v59, %v20027_v56  ;;  %v10554_v45 = vshll.u32 %v20167_v13, 16  ;;  %v10558_v2 = vshrl.u32 %v20167_v13, 16  ;;  %v13944_v56 = vld [vmem:[%s20594_s10 + $0xa4] ss:$8 sps:$4 sm:$0xff]  }
 0x801   :  { %v10270_v11 = vpop.f32.mrf.mxu1  ;;  %v10551_v24 = vor.u32 %v10550_v54, %v10546_v34  ;;  %v10540_v62 = vrot.slane %v10538_v50, 4  ;;  %v20182_v26 = vmax.bf16 %v20105_v23, %v10537_v41  ;;  %v10511_v53 = vor.u32 %v20100_v1, %v20093_v48  ;;  %11283 = vmatprep.subr.bf16.mxu1 %v13944_v56 }
 0x802   :  { %v20189_v22 = vpack.c.bf16 %v10328_v16, %v10327_v61  ;;  %v10329_v28 = vmax.f32 %v10269_v46, 0.0  ;;  %v10271_v52 = vadd.f32 %v10270_v11, %v20035_v58  ;;  %v10556_v5 = vrot.slane %v10554_v45, 5  ;;  %v13942_v58 = vld [vmem:[%s20594_s10 + $0xa0] ss:$8 sps:$4 sm:$0xff]  }
 0x803   :  { %v10272_v33 = vpop.f32.mrf.mxu1  ;;  %v10552_v42 = vrot.slane %v10551_v24, 4  ;;  %v10560_v23 = vrot.slane %v10558_v2, 4  ;;  %v10541_v25 = vor.u32 %v10540_v62, %v10536_v14  ;;  %v10512_v60 = vrot.slane %v10511_v53, 4  ;;  %11284 = vmatpush2.bf16.msra.mxu1 %v13942_v58 }
 0x804   :  { %v10330_v19 = vmax.f32 %v10271_v52, 0.0  ;;  %v10273_v48 = vadd.f32 %v10272_v33, %v20042_v21  ;;  %v10514_v1 = vshll.u32 %v20086_v12, 16  ;;  %v10518_v35 = vshrl.u32 %v20086_v12, 16 }
 0x805   :  { %v10274_v7 = vpop.f32.mrf.mxu1  ;;  %v10557_v38 = vsel %vm14436_vm6, %v10552_v42, %v10556_v5  ;;  %v10561_v44 = vor.u32 %v10560_v23, %v10556_v5  ;;  %v10542_v51 = vrot.slane %v10541_v25, 4  ;;  %v10584_v6 = vshrl.u32 %v20192_v0, 16 }
 0x806   :  { %v20203_v3 = vpack.c.bf16 %v10330_v19, %v10329_v28  ;;  %v10331_v21 = vmax.f32 %v10273_v48, 0.0  ;;  %v10275_v15 = vadd.f32 %v10274_v7, %v20045_v29  ;;  %v10578_v4 = vmax.bf16 %v20145_v49, %v10557_v38 }
 0x807   :  { %v10278_v14 = vpop.f32.mrf.mxu1  ;;  %v10562_v31 = vrot.slane %v10561_v44, 4  ;;  %v10547_v61 = vsel %vm14436_vm6, %v10542_v51, %v10546_v34  ;;  %v10516_v55 = vrot.slane %v10514_v1, 5  ;;  %v10520_v59 = vrot.slane %v10518_v35, 4 }
 0x808   :  { %v10332_v54 = vmax.f32 %v10275_v15, 0.0  ;;  %v10279_v41 = vadd.f32 %v10278_v14, %v20050_v37  ;;  %v10577_v50 = vmax.bf16 %v20124_v39, %v10547_v61  ;;  %v10650_v16 = vshll.u32 %v10578_v4, 16 }
 0x809   :  { %v10280_v46 = vpop.f32.mrf.mxu1  ;;  %v10567_v29 = vsel %vm14436_vm6, %v10562_v31, %v20074_v63  ;;  %v10597_v49 = vsel %vm14436_vm6, %v10562_v31, %v20047_v17  ;;  %v10654_v45 = vshrl.u32 %v10578_v4, 16  ;;  %v10517_v34 = vsel %vm14436_vm6, %v10512_v60, %v10516_v55 }
 0x80a   :  { %v20219_v2 = vpack.c.bf16 %v10332_v54, %v10331_v21  ;;  %v10333_v37 = vmax.f32 %v10279_v41, 0.0  ;;  %v10281_v39 = vadd.f32 %v10280_v46, %v20057_v30  ;;  %v10579_v47 = vmax.bf16 %v20167_v13, %v10567_v29 }
 0x80b   :  { %v10282_v11 = vpop.f32.mrf.mxu1  ;;  %v10617_v24 = vmax.bf16 %v20167_v13, %v10597_v49  ;;  %v10640_v62 = vshll.u32 %v10577_v50, 16  ;;  %v10644_v63 = vshrl.u32 %v10577_v50, 16  ;;  %v10652_v53 = vrot.slane %v10650_v16, 5 }
 0x80c   :  { %10490 = vst [vmem:[#allocation6 + $0x28] sm:$0xff] %v20219_v2  ;;  %v10334_v17 = vmax.f32 %v10281_v39, 0.0  ;;  %v10695_v56 = vmax.bf16 %v10683_v40, %v10579_v47  ;;  %v10656_v28 = vrot.slane %v10654_v45, 4  ;;  %v10521_v1 = vor.u32 %v10520_v59, %v10516_v55 }
 0x80d   :  { %v10284_v52 = vpop.f32.mrf.mxu1  ;;  %v10660_v30 = vshll.u32 %v10617_v24, 16  ;;  %v10664_v5 = vshrl.u32 %v10617_v24, 16  ;;  %v20230_v33 = vrot.slane %v10640_v62, 5  ;;  %v10646_v42 = vrot.slane %v10644_v63, 4 }
 0x80e   :  { %v12965_v13 = vpack.c.bf16 %v10334_v17, %v10333_v37  ;;  %v10657_v23 = vor.u32 %v10656_v28, %v10652_v53  ;;  %v20234_v10 = vmax.bf16 %v20071_v8, %v10517_v34  ;;  %v10522_v7 = vrot.slane %v10521_v1, 4 }
 0x80f   :  { %v10288_v25 = vpop.f32.mrf.mxu1  ;;  %v10662_v60 = vrot.slane %v10660_v30, 5  ;;  %v10666_v19 = vrot.slane %v10664_v5, 4  ;;  %v10647_v48 = vor.u32 %v10646_v42, %v20230_v33  ;;  %v10586_v38 = vrot.slane %v10584_v6, 4 }
 0x810   :  { %10491 = vst [vmem:[#allocation6 + $0x50] sm:$0xff] %v12965_v13  ;;  %v10658_v35 = vrot.slane %v10657_v23, 4  ;;  %v10527_v31 = vsel %vm14436_vm6, %v10522_v7, %v20134_v57  ;;  %v10587_v59 = vshll.u32 %v20192_v0, 16  ;;  %v10630_v54 = vshll.u32 %v20182_v26, 16 }
 0x811   :  { %v10290_v27 = vpop.f32.mrf.mxu1  ;;  %v10667_v40 = vor.u32 %v10666_v19, %v10662_v60  ;;  %v10648_v58 = vrot.slane %v10647_v48, 4  ;;  %v10575_v61 = vmax.bf16 %v20086_v12, %v10527_v31  ;;  %v10634_v41 = vshrl.u32 %v20182_v26, 16 }
 0x812   :  { %v10663_v44 = vsel %vm14436_vm6, %v10658_v35, %v10662_v60  ;;  %v10589_v29 = vrot.slane %v10587_v59, 5  ;;  %v20251_v49 = vrot.slane %v10630_v54, 5  ;;  %v10824_v47 = vshll.u32 %v20189_v22, 16 }
 0x813   :  { %v10292_v51 = vpop.f32.mrf.mxu1  ;;  %v10668_v21 = vrot.slane %v10667_v40, 4  ;;  %v10653_v15 = vsel %vm14436_vm6, %v10648_v58, %v10652_v53  ;;  %v10693_v14 = vmax.bf16 %v10663_v44, %v10577_v50  ;;  %v10636_v37 = vrot.slane %v10634_v41, 4 }
 0x814   :  { %v10692_v8 = vmax.bf16 %v10653_v15, %v20182_v26  ;;  %v10590_v39 = vor.u32 %v10589_v29, %v10586_v38  ;;  %v10834_v0 = vshll.u32 %v20203_v3, 16  ;;  %v10838_v26 = vshrl.u32 %v20203_v3, 16 }
 0x815   :  { %v10294_v55 = vpop.f32.mrf.mxu1  ;;  %v10673_v6 = vsel %vm14436_vm6, %v10668_v21, %v20130_v9  ;;  %v10828_v9 = vshrl.u32 %v20189_v22, 16  ;;  %v10637_v11 = vor.u32 %v10636_v37, %v20251_v49  ;;  %v20258_v62 = vrot.slane %v10824_v47, 5 }
 0x816   :  { %v10694_v50 = vmax.bf16 %v10673_v6, %v10578_v4  ;;  %v12615_v16 = vcombine.high %v10692_v8, %v10693_v14  ;;  %v12614_v46 = vcombine.low %v10692_v8, %v10693_v14  ;;  %v10591_v24 = vrot.slane %v10590_v39, 4 }
 0x817   :  { %v10861_v4 = vld [vmem:[#allocation6 + $0x50] sm:$0x11]  ;;  %v10830_v63 = vrot.slane %v10828_v9, 4  ;;  %v10836_v53 = vrot.slane %v10834_v0, 5  ;;  %v10638_v17 = vrot.slane %v10637_v11, 4  ;;  %v10840_v28 = vrot.slane %v10838_v26, 4 }
 0x818   :  { %v12617_v45 = vcombine.high %v10694_v50, %v10695_v56  ;;  %v12616_v34 = vcombine.low %v10694_v50, %v10695_v56  ;;  %v10783_v56 = vld [vmem:[#allocation6 + $0x28] sm:$0x11]  ;;  %v10874_v52 = vshll.u32 %v20219_v2, 16  ;;  %v10592_v30 = vsel %vm14436_vm6, %v10591_v24, %v20134_v57 }
 0x819   :  { %v10831_v5 = vor.u32 %v10830_v63, %v20258_v62  ;;  %v10878_v42 = vshrl.u32 %v20219_v2, 16  ;;  %v10884_v13 = vshll.u32 %v10861_v4, 16  ;;  %v10616_v23 = vmax.bf16 %v20086_v12, %v10592_v30 }
 0x81a   :  { %10744 = vmatprep.subr.bf16.mxu0 %v12617_v45  ;;  %v10643_v25 = vsel %vm14436_vm6, %v10638_v17, %v20230_v33  ;;  %v10841_v60 = vor.u32 %v10840_v28, %v10836_v53  ;;  %v10876_v19 = vrot.slane %v10874_v52, 5  ;;  %v10844_v35 = vshll.u32 %v10783_v56, 16 }
 0x81b   :  { %10745 = vmatpush1.bf16.msra.mxu0 %v12616_v34  ;;  %v10691_v48 = vmax.bf16 %v10643_v25, %v10575_v61  ;;  %v10832_v1 = vrot.slane %v10831_v5, 4  ;;  %v10880_v27 = vrot.slane %v10878_v42, 4  ;;  %v10621_v40 = vshrl.u32 %v10616_v23, 16 }
 0x81c   :  { %10746 = vmatprep.subr.bf16.mxu0 %v12615_v16  ;;  %v10624_v57 = vshll.u32 %v10616_v23, 16  ;;  %v10842_v58 = vrot.slane %v10841_v60, 4  ;;  %v10888_v7 = vshrl.u32 %v10861_v4, 16  ;;  %v10886_v44 = vrot.slane %v10884_v13, 5 }
 0x81d   :  { %v10881_v38 = vor.u32 %v10880_v27, %v10876_v19  ;;  %v10804_v51 = vshll.u32 %v20148_v36, 16  ;;  %v10808_v12 = vshrl.u32 %v20148_v36, 16  ;;  %v10623_v21 = vrot.slane %v10621_v40, 4 }
 0x81e   :  { %v10626_v15 = vrot.slane %v10624_v57, 5  ;;  %v10837_v33 = vsel %vm14436_vm6, %v10832_v1, %v10836_v53  ;;  %v10846_v14 = vrot.slane %v10844_v35, 5  ;;  %v10877_v31 = vsel %vm14436_vm6, %v10842_v58, %v10876_v19 }
 0x81f   :  { %10747 = vmatpush1.bf16.msra.mxu0 %v12614_v46  ;;  %v10882_v8 = vrot.slane %v10881_v38, 4  ;;  %v10899_v61 = vmax.bf16 %v10888_v7, %v10861_v4  ;;  %v10897_v6 = vmax.bf16 %v20203_v3, %v10877_v31  ;;  %v20277_v59 = vrot.slane %v10804_v51, 5  ;;  %v10862_v38 = vld [vmem:[#allocation6 + $0x48] sm:$0xee] }
 0x820   :  { %v10627_v55 = vor.u32 %v10626_v15, %v10623_v21  ;;  %v10810_v54 = vrot.slane %v10808_v12, 4  ;;  %v10858_v41 = vmax.bf16 %v20189_v22, %v10837_v33  ;;  %v10814_v16 = vshll.u32 %v20170_v20, 16 }
 0x821   :  { %v10887_v50 = vsel %vm14436_vm6, %v10882_v8, %v10886_v44  ;;  %v10818_v46 = vshrl.u32 %v20170_v20, 16  ;;  %v10940_v34 = vshll.u32 %v10897_v6, 16  ;;  %v10944_v37 = vshrl.u32 %v10897_v6, 16 }
 0x822   :  { %v10628_v29 = vrot.slane %v10627_v55, 4  ;;  %v10898_v45 = vmax.bf16 %v20219_v2, %v10887_v50  ;;  %v10960_v39 = vshll.u32 %v10899_v61, 16  ;;  %v10811_v47 = vor.u32 %v10810_v54, %v20277_v59 }
 0x823   :  { %v10816_v9 = vrot.slane %v10814_v16, 5  ;;  %v10820_v0 = vrot.slane %v10818_v46, 4  ;;  %v20289_v11 = vrot.slane %v10940_v34, 5  ;;  %v10946_v26 = vrot.slane %v10944_v37, 4 }
 0x824   :  { %v10633_v22 = vsel %vm14436_vm6, %v10628_v29, %v20251_v49  ;;  %v10950_v4 = vshll.u32 %v10898_v45, 16  ;;  %v10954_v63 = vshrl.u32 %v10898_v45, 16  ;;  %v10812_v53 = vrot.slane %v10811_v47, 4 }
 0x825   :  { %v10690_v24 = vmax.bf16 %v10633_v22, %v20234_v10  ;;  %v10821_v2 = vor.u32 %v10820_v0, %v10816_v9  ;;  %v10947_v17 = vor.u32 %v10946_v26, %v20289_v11  ;;  %v10930_v28 = vshll.u32 %v10858_v41, 16  ;;  %v20298_v10 = vld [vmem:[%s20593_s9] sm:$0xff]  }
 0x826   :  { %v10952_v56 = vrot.slane %v10950_v4, 5  ;;  %v10934_v52 = vshrl.u32 %v10858_v41, 16  ;;  %v10847_v42 = vsel %vm14436_vm6, %v10842_v58, %v10846_v14  ;;  %v10956_v49 = vrot.slane %v10954_v63, 4 }
 0x827   :  { %v12613_v30 = vcombine.high %v10690_v24, %v10691_v48  ;;  %v12612_v5 = vcombine.low %v10690_v24, %v10691_v48  ;;  %v10822_v13 = vrot.slane %v10821_v2, 4  ;;  %v10932_v23 = vrot.slane %v10930_v28, 5 }
 0x828   :  { %v10948_v25 = vrot.slane %v10947_v17, 4  ;;  %v10957_v60 = vor.u32 %v10956_v49, %v10952_v56  ;;  %v10817_v19 = vsel %vm14436_vm6, %v10812_v53, %v10816_v9  ;;  %v10936_v1 = vrot.slane %v10934_v52, 4 }
 0x829   :  { %10748 = vmatprep.subr.bf16.mxu0 %v12613_v30  ;;  %v10859_v48 = vmax.bf16 %v20203_v3, %v10847_v42  ;;  %v10962_v35 = vrot.slane %v10960_v39, 5  ;;  %v10827_v27 = vsel %vm14436_vm6, %v10822_v13, %v20258_v62  ;;  %v10856_v44 = vmax.bf16 %v20148_v36, %v10817_v19 }
 0x82a   :  { %10749 = vmatpush1.bf16.msra.mxu0 %v12612_v5  ;;  %v10953_v40 = vsel %vm14436_vm6, %v10948_v25, %v10952_v56  ;;  %v10958_v57 = vrot.slane %v10957_v60, 4  ;;  %v10857_v58 = vmax.bf16 %v20170_v20, %v10827_v27  ;;  %v10937_v7 = vor.u32 %v10936_v1, %v10932_v23 }
 0x82b   :  { %v10785_v51 = vshrl.u32 %v20108_v18, 16  ;;  %v10788_v12 = vshll.u32 %v20108_v18, 16  ;;  %v10794_v3 = vshll.u32 %v20127_v43, 16  ;;  %v10974_v20 = vmax.bf16 %v10953_v40, %v10858_v41 }
 0x82c   :  { %v10963_v62 = vsel %vm14436_vm6, %v10958_v57, %v10962_v35  ;;  %v10920_v21 = vshll.u32 %v10857_v58, 16  ;;  %v10924_v15 = vshrl.u32 %v10857_v58, 16  ;;  %v10938_v33 = vrot.slane %v10937_v7, 4 }
 0x82d   :  { %12618 = vmatmul.mubr.msk.bf16.vlgmr.msra.gmra.mxu0 %vm5493_vm8, %v20298_v10  ;;  %v10975_v14 = vmax.bf16 %v10963_v62, %v10859_v48  ;;  %v10798_v31 = vshrl.u32 %v20127_v43, 16  ;;  %v10864_v36 = vshrl.u32 %v10862_v38, 16  ;;  %v20786_v8 = vmov 0   ;;  %v13956_v62 = vld [vmem:[%s20595_s12 + $0x64] ss:$8 sps:$4 sm:$0xff]  }
 0x82e   :  { %11038 = vmatprep.mubr.bf16.mxu0 %v20786_v8  ;;  %v10922_v61 = vrot.slane %v10920_v21, 5  ;;  %v10926_v55 = vrot.slane %v10924_v15, 4  ;;  %v10867_v6 = vshll.u32 %v10862_v38, 16  ;;  %v10787_v16 = vrot.slane %v10785_v51, 4  ;;  %v13954_v21 = vld [vmem:[%s20595_s12 + $0x60] ss:$8 sps:$4 sm:$0xff]  }
 0x82f   :  { %v12625_v54 = vcombine.high %v10974_v20, %v10975_v14  ;;  %v12624_v50 = vcombine.low %v10974_v20, %v10975_v14  ;;  %v10790_v46 = vrot.slane %v10788_v12, 5  ;;  %v10943_v45 = vsel %vm14436_vm6, %v10938_v33, %v20289_v11  ;;  %v13959_v15 = vld [vmem:[%s20595_s12 + $0x54] ss:$8 sps:$4 sm:$0xff]   ;;  %v13957_v33 = vld [vmem:[%s20595_s12 + $0x50] ss:$8 sps:$4 sm:$0xff]  }
 0x830   :  { %v10927_v29 = vor.u32 %v10926_v55, %v10922_v61  ;;  %v10866_v34 = vrot.slane %v10864_v36, 4  ;;  %v10869_v41 = vrot.slane %v10867_v6, 5  ;;  %v10796_v37 = vrot.slane %v10794_v3, 5  ;;  %v13953_v3 = vld [vmem:[%s20595_s12 + $0x74] ss:$8 sps:$4 sm:$0xff]  }
 0x831   :  { %11016 = vmatprep.subr.bf16.mxu0 %v12625_v54  ;;  %v10800_v39 = vrot.slane %v10798_v31, 4  ;;  %v10910_v47 = vshll.u32 %v10856_v44, 16  ;;  %v10914_v9 = vshrl.u32 %v10856_v44, 16  ;;  %v10973_v26 = vmax.bf16 %v10943_v45, %v10857_v58  ;;  %v13962_v20 = vld [vmem:[%s20595_s12 + $0x44] ss:$8 sps:$4 sm:$0xff]  }
 0x832   :  { %11017 = vmatpush1.bf16.msra.mxu0 %v12624_v50  ;;  %v10928_v0 = vrot.slane %v10927_v29, 4  ;;  %v10870_v22 = vor.u32 %v10869_v41, %v10866_v34  ;;  %v10791_v17 = vor.u32 %v10790_v46, %v10787_v16  ;;  %v13960_v14 = vld [vmem:[%s20595_s12 + $0x40] ss:$8 sps:$4 sm:$0xff]   ;;  %v13965_v31 = vld [vmem:[%s20595_s12 + $0x34] ss:$8 sps:$4 sm:$0xff]  }
 0x833   :  { %v10912_v4 = vrot.slane %v10910_v47, 5  ;;  %v10916_v24 = vrot.slane %v10914_v9, 4  ;;  %v10801_v11 = vor.u32 %v10800_v39, %v10796_v37  ;;  %v13963_v36 = vld [vmem:[%s20595_s12 + $0x30] ss:$8 sps:$4 sm:$0xff]   ;;  %v13968_v8 = vld [vmem:[%s20595_s12 + $0x24] ss:$8 sps:$4 sm:$0xff]  }
 0x834   :  { %v10933_v63 = vsel %vm14436_vm6, %v10928_v0, %v10932_v23  ;;  %v10871_v53 = vrot.slane %v10870_v22, 4  ;;  %v10792_v42 = vrot.slane %v10791_v17, 4  ;;  %v13971_v55 = vld [vmem:[%s20595_s12 + $0x14] ss:$8 sps:$4 sm:$0xff]   ;;  %v13969_v6 = vld [vmem:[%s20595_s12 + $0x10] ss:$8 sps:$4 sm:$0xff]  }
 0x835   :  { %v10972_v2 = vmax.bf16 %v10933_v63, %v10856_v44  ;;  %v10917_v30 = vor.u32 %v10916_v24, %v10912_v4  ;;  %v10802_v49 = vrot.slane %v10801_v11, 4  ;;  %v13974_v54 = vld [vmem:[%s20595_s12 + $0x4] ss:$8 sps:$4 sm:$0xff]   ;;  %v13972_v50 = vld [vmem:[%s20595_s12] ss:$8 sps:$4 sm:$0xff]  }
 0x836   :  { %v10872_v56 = vsel %vm14436_vm6, %v10871_v53, %v20277_v59  ;;  %v10797_v1 = vsel %vm14436_vm6, %v10792_v42, %v10796_v37  ;;  %v13977_v16 = vld [vmem:[%s20595_s12 + $0xf4] ss:$8 sps:$4 sm:$0xff]   ;;  %v13975_v46 = vld [vmem:[%s20595_s12 + $0xf0] ss:$8 sps:$4 sm:$0xff]   ;;  %v13980_v29 = vld [vmem:[%s20595_s12 + $0xe4] ss:$8 sps:$4 sm:$0xff]  }
 0x837   :  { %v12623_v28 = vcombine.high %v10972_v2, %v10973_v26  ;;  %v10896_v52 = vmax.bf16 %v20127_v43, %v10872_v56  ;;  %v12622_v5 = vcombine.low %v10972_v2, %v10973_v26  ;;  %v10918_v19 = vrot.slane %v10917_v30, 4  ;;  %v13978_v45 = vld [vmem:[%s20595_s12 + $0xe0] ss:$8 sps:$4 sm:$0xff]   ;;  %v13983_v34 = vld [vmem:[%s20595_s12 + $0xd4] ss:$8 sps:$4 sm:$0xff]  }
 0x838   :  { %v10807_v48 = vsel %vm14436_vm6, %v10802_v49, %v20277_v59  ;;  %v10854_v57 = vmax.bf16 %v20108_v18, %v10797_v1  ;;  %v13945_v59 = vld [vmem:[%s20594_s10 + $0x90] ss:$8 sps:$4 sm:$0xff]   ;;  %v13947_v18 = vld [vmem:[%s20594_s10 + $0x94] ss:$8 sps:$4 sm:$0xff]   ;;  %v13986_v37 = vld [vmem:[%s20595_s12 + $0xc4] ss:$8 sps:$4 sm:$0xff]  }
 0x839   :  { %11018 = vmatprep.subr.bf16.mxu0 %v12623_v28  ;;  %v10901_v13 = vshrl.u32 %v10896_v52, 16  ;;  %v10904_v25 = vshll.u32 %v10896_v52, 16  ;;  %v10923_v40 = vsel %vm14436_vm6, %v10918_v19, %v10922_v61  ;;  %v10855_v58 = vmax.bf16 %v20127_v43, %v10807_v48  ;;  %11285 = vmatprep.subr.bf16.mxu1 %v13947_v18  ;;  %v13950_v43 = vld [vmem:[%s20594_s10 + $0x84] ss:$8 sps:$4 sm:$0xff]   ;;  %v13966_v61 = vld [vmem:[%s20595_s12 + $0x20] ss:$8 sps:$4 sm:$0xff]  }
 0x83a   :  { %11019 = vmatpush1.bf16.msra.mxu0 %v12622_v5  ;;  %11286 = vmatpush2.bf16.msra.mxu1 %v13945_v59  ;;  %v13981_v41 = vld [vmem:[%s20595_s12 + $0xd0] ss:$8 sps:$4 sm:$0xff]   ;;  %v13984_v39 = vld [vmem:[%s20595_s12 + $0xc0] ss:$8 sps:$4 sm:$0xff]   ;;  %v13989_v47 = vld [vmem:[%s20595_s12 + $0xb4] ss:$8 sps:$4 sm:$0xff]  }
 0x83b   :  { %v10903_v23 = vrot.slane %v10901_v13, 4  ;;  %v10906_v60 = vrot.slane %v10904_v25, 5  ;;  %v10971_v44 = vmax.bf16 %v10923_v40, %v10855_v58  ;;  %11287 = vmatprep.subr.bf16.mxu1 %v13950_v43  ;;  %v13987_v9 = vld [vmem:[%s20595_s12 + $0xb0] ss:$8 sps:$4 sm:$0xff]   ;;  %v13990_v52 = vld [vmem:[%s20595_s12 + $0xa0] ss:$8 sps:$4 sm:$0xff]  }
 0x83c   :  { %v13992_v30 = vld [vmem:[%s20595_s12 + $0xa4] ss:$8 sps:$4 sm:$0xff]   ;;  %v13993_v5 = vld [vmem:[%s20595_s12 + $0x90] ss:$8 sps:$4 sm:$0xff]   ;;  %v13995_v42 = vld [vmem:[%s20595_s12 + $0x94] ss:$8 sps:$4 sm:$0xff]  }
 0x83d   :  { %v10907_v35 = vor.u32 %v10906_v60, %v10903_v23  ;;  %v13998_v49 = vld [vmem:[%s20595_s12 + $0x84] ss:$8 sps:$4 sm:$0xff]   ;;  %v13996_v13 = vld [vmem:[%s20595_s12 + $0x80] ss:$8 sps:$4 sm:$0xff]   ;;  %v13999_v25 = vld [vmem:[%s20596_s14 + $0x70] ss:$8 sps:$4 sm:$0xff]  }
 0x83e   :  { %11288 = vmatpush2.bf16.msra.mxu1 %v13948_v32  ;;  %v14001_v23 = vld [vmem:[%s20596_s14 + $0x74] ss:$8 sps:$4 sm:$0xff]   ;;  %v14004_v60 = vld [vmem:[%s20596_s14 + $0x64] ss:$8 sps:$4 sm:$0xff]   ;;  %v14002_v19 = vld [vmem:[%s20596_s14 + $0x60] ss:$8 sps:$4 sm:$0xff]  }
 0x83f   :  { %v10908_v27 = vrot.slane %v10907_v35, 4  ;;  %11795 = vmatprep.subr.bf16.mxu1 %v14001_v23  ;;  %v14007_v1 = vld [vmem:[%s20596_s14 + $0x54] ss:$8 sps:$4 sm:$0xff]   ;;  %v14005_v48 = vld [vmem:[%s20596_s14 + $0x50] ss:$8 sps:$4 sm:$0xff]  }
 0x840   :  { %v14010_v35 = vld [vmem:[%s20596_s14 + $0x44] ss:$8 sps:$4 sm:$0xff]   ;;  %v14013_v40 = vld [vmem:[%s20596_s14 + $0x34] ss:$8 sps:$4 sm:$0xff]   ;;  %v14023_v18 = vld [vmem:[%s20596_s14 + $0xf0] ss:$8 sps:$4 sm:$0xff]  }
 0x841   :  { %v10913_v7 = vsel %vm14436_vm6, %v10908_v27, %v10912_v4  ;;  %v14008_v27 = vld [vmem:[%s20596_s14 + $0x40] ss:$8 sps:$4 sm:$0xff]   ;;  %v14016_v58 = vld [vmem:[%s20596_s14 + $0x24] ss:$8 sps:$4 sm:$0xff]   ;;  %v14025_v59 = vld [vmem:[%s20596_s14 + $0xf4] ss:$8 sps:$4 sm:$0xff]  }
 0x842   :  { %v10970_v38 = vmax.bf16 %v10913_v7, %v10854_v57  ;;  %v14011_v57 = vld [vmem:[%s20596_s14 + $0x30] ss:$8 sps:$4 sm:$0xff]   ;;  %v14014_v7 = vld [vmem:[%s20596_s14 + $0x20] ss:$8 sps:$4 sm:$0xff]   ;;  %v14028_v32 = vld [vmem:[%s20596_s14 + $0xe4] ss:$8 sps:$4 sm:$0xff]  }
 0x843   :  { %v14026_v43 = vld [vmem:[%s20596_s14 + $0xe0] ss:$8 sps:$4 sm:$0xff]  }
 0x844   :  { %v12621_v51 = vcombine.high %v10970_v38, %v10971_v44  ;;  %v12620_v12 = vcombine.low %v10970_v38, %v10971_v44  ;;  %v14019_v38 = vld [vmem:[%s20596_s14 + $0x14] ss:$8 sps:$4 sm:$0xff]   ;;  %v14017_v44 = vld [vmem:[%s20596_s14 + $0x10] ss:$8 sps:$4 sm:$0xff]   ;;  %v11354_v23 = vld [vmem:[%s20598_s13] sm:$0x3] }
 0x846   :  { %11020 = vmatprep.subr.bf16.mxu0 %v12621_v51  ;;  %v14022_v51 = vld [vmem:[%s20596_s14 + $0x4] ss:$8 sps:$4 sm:$0xff]  }
 0x847   :  { %11021 = vmatpush1.bf16.msra.mxu0 %v12620_v12  ;;  %v14020_v12 = vld [vmem:[%s20596_s14] ss:$8 sps:$4 sm:$0xff]  }
 0x848   :  { %11526 = vmatprep.subr.bf16.mxu0 %v13953_v3  ;;  %v14029_v3 = vld [vmem:[%s20596_s14 + $0xd0] ss:$8 sps:$4 sm:$0xff]  }
 0x84a   :  { %12626 = vmatmul.mubr.msk.bf16.vlgmr.msra.gmra.mxu0 %vm5493_vm8, %v20298_v10  ;;  %v13951_v10 = vld [vmem:[%s20595_s12 + $0x70] ss:$8 sps:$4 sm:$0xff]  }
 0x84b   :  { %11527 = vmatpush1.bf16.msra.mxu0 %v13951_v10  ;;  %v14031_v10 = vld [vmem:[%s20596_s14 + $0xd4] ss:$8 sps:$4 sm:$0xff]  }
 0x84c   :  { %11528 = vmatprep.subr.bf16.mxu0 %v13956_v62  ;;  %v14034_v62 = vld [vmem:[%s20596_s14 + $0xc4] ss:$8 sps:$4 sm:$0xff]  }
 0x84f   :  { %11529 = vmatpush1.bf16.msra.mxu0 %v13954_v21  ;;  %v14032_v21 = vld [vmem:[%s20596_s14 + $0xc0] ss:$8 sps:$4 sm:$0xff]  }
 0x850   :  { %11530 = vmatprep.subr.bf16.mxu0 %v13959_v15  ;;  %v14037_v15 = vld [vmem:[%s20596_s14 + $0xb4] ss:$8 sps:$4 sm:$0xff]  }
 0x853   :  { %11531 = vmatpush1.bf16.msra.mxu0 %v13957_v33  ;;  %v14035_v33 = vld [vmem:[%s20596_s14 + $0xb0] ss:$8 sps:$4 sm:$0xff]  }
 0x854   :  { %11532 = vmatprep.subr.bf16.mxu0 %v13962_v20  ;;  %v11085_v20 = vld [vmem:[%s20597_s11] sm:$0x3] }
 0x857   :  { %11533 = vmatpush1.bf16.msra.mxu0 %v13960_v14 }
 0x858   :  { %11534 = vmatprep.subr.bf16.mxu0 %v13965_v31  ;;  %v20787_v31 = vld [vmem:[#allocation10_spill] sm:$0xff] }
 0x85b   :  { %11535 = vmatpush1.bf16.msra.mxu0 %v13963_v36  ;;  %v11094_v36 = vrot.slane %v11085_v20, %v20787_v31 }
 0x85c   :  { %11536 = vmatprep.subr.bf16.mxu0 %v13968_v8  ;;  %v20788_v8 = vld [vmem:[#allocation18_spill] sm:$0xff] }
 0x85f   :  { %11537 = vmatpush1.bf16.msra.mxu0 %v13966_v61  ;;  %v11090_v61 = vrot.slane %v11085_v20, %v20788_v8 }
 0x860   :  { %11538 = vmatprep.subr.bf16.mxu0 %v13971_v55 }
 0x863   :  { %11539 = vmatpush1.bf16.msra.mxu0 %v13969_v6 }
 0x864   :  { %11540 = vmatprep.subr.bf16.mxu0 %v13974_v54 }
 0x867   :  { %11541 = vmatpush1.bf16.msra.mxu0 %v13972_v50 }
 0x868   :  { %11542 = vmatprep.subr.bf16.mxu0 %v13977_v16 }
 0x86b   :  { %11543 = vmatpush2.bf16.msra.mxu0 %v13975_v46 }
 0x86c   :  { %11544 = vmatprep.subr.bf16.mxu0 %v13980_v29 }
 0x86f   :  { %11545 = vmatpush2.bf16.msra.mxu0 %v13978_v45 }
 0x870   :  { %11546 = vmatprep.subr.bf16.mxu0 %v13983_v34 }
 0x873   :  { %11547 = vmatpush2.bf16.msra.mxu0 %v13981_v41 }
 0x874   :  { %11548 = vmatprep.subr.bf16.mxu0 %v13986_v37 }
 0x877   :  { %11549 = vmatpush2.bf16.msra.mxu0 %v13984_v39 }
 0x878   :  { %11550 = vmatprep.subr.bf16.mxu0 %v13989_v47 }
 0x87b   :  { %11551 = vmatpush2.bf16.msra.mxu0 %v13987_v9 }
 0x87c   :  { %11552 = vmatprep.subr.bf16.mxu0 %v13992_v30  ;;  %v14038_v30 = vld [vmem:[%s20596_s14 + $0xa0] ss:$8 sps:$4 sm:$0xff]  }
 0x87f   :  { %11553 = vmatpush2.bf16.msra.mxu0 %v13990_v52 }
 0x880   :  { %11554 = vmatprep.subr.bf16.mxu0 %v13995_v42  ;;  %v14041_v42 = vld [vmem:[%s20596_s14 + $0x90] ss:$8 sps:$4 sm:$0xff]  }
 0x883   :  { %11555 = vmatpush2.bf16.msra.mxu0 %v13993_v5  ;;  %v14040_v5 = vld [vmem:[%s20596_s14 + $0xa4] ss:$8 sps:$4 sm:$0xff]  }
 0x884   :  { %11556 = vmatprep.subr.bf16.mxu0 %v13998_v49  ;;  %v14043_v49 = vld [vmem:[%s20596_s14 + $0x94] ss:$8 sps:$4 sm:$0xff]  }
 0x887   :  { %11557 = vmatpush2.bf16.msra.mxu0 %v13996_v13  ;;  %v14046_v13 = vld [vmem:[%s20596_s14 + $0x84] ss:$8 sps:$4 sm:$0xff]  }
 0x8ed   :  { %v10768_v0 = vpop.f32.mrf.mxu0 }
 0x8ef   :  { %v10770_v22 = vpop.f32.mrf.mxu0 }
 0x8f1   :  { %v10772_v26 = vpop.f32.mrf.mxu0 }
 0x8f2   :  { %v11049_v4 = vpack.c.bf16 %v10772_v26, %v10768_v0 }
 0x8f3   :  { %v10774_v24 = vpop.f32.mrf.mxu0 }
 0x8f4   :  { %v11050_v63 = vpack.c.bf16 %v10774_v24, %v10770_v22 }
 0x8f6   :  { %11289 = vmatprep.mubr.bf16.mxu1 %v11050_v63 }
 0x8f7   :  { %11290 = vmatmul.mubr.bf16.vlgmr.msra.gmra.mxu1 %v11049_v4 }
 0x8f8   :  { %11796 = vmatpush1.bf16.msra.mxu1 %v13999_v25  ;;  %v14044_v25 = vld [vmem:[%s20596_s14 + $0x80] ss:$8 sps:$4 sm:$0xff]  }
 0x8f9   :  { %11797 = vmatprep.subr.bf16.mxu1 %v14004_v60 }
 0x8fc   :  { %11798 = vmatpush1.bf16.msra.mxu1 %v14002_v19  ;;  %v11363_v19 = vrot.slane %v11354_v23, %v20787_v31 }
 0x8fd   :  { %11799 = vmatprep.subr.bf16.mxu1 %v14007_v1  ;;  %v11359_v1 = vrot.slane %v11354_v23, %v20788_v8 }
 0x900   :  { %11800 = vmatpush1.bf16.msra.mxu1 %v14005_v48 }
 0x901   :  { %11801 = vmatprep.subr.bf16.mxu1 %v14010_v35 }
 0x904   :  { %11802 = vmatpush1.bf16.msra.mxu1 %v14008_v27 }
 0x905   :  { %11803 = vmatprep.subr.bf16.mxu1 %v14013_v40 }
 0x908   :  { %11804 = vmatpush1.bf16.msra.mxu1 %v14011_v57 }
 0x909   :  { %11805 = vmatprep.subr.bf16.mxu1 %v14016_v58 }
 0x90a   :  { %v11040_v53 = vpop.f32.mrf.mxu0 }
 0x90c   :  { %v11042_v2 = vpop.f32.mrf.mxu0  ;;  %11806 = vmatpush1.bf16.msra.mxu1 %v14014_v7 }
 0x90d   :  { %11807 = vmatprep.subr.bf16.mxu1 %v14019_v38 }
 0x90e   :  { %v11044_v17 = vpop.f32.mrf.mxu0 }
 0x90f   :  { %v11051_v28 = vpack.c.bf16 %v11044_v17, %v11040_v53 }
 0x910   :  { %v11046_v11 = vpop.f32.mrf.mxu0  ;;  %11808 = vmatpush1.bf16.msra.mxu1 %v14017_v44 }
 0x911   :  { %v11052_v56 = vpack.c.bf16 %v11046_v11, %v11042_v2  ;;  %11809 = vmatprep.subr.bf16.mxu1 %v14022_v51 }
 0x913   :  { %11299 = vmatprep.mubr.bf16.mxu1 %v11052_v56 }
 0x914   :  { %11300 = vmatmul.mubr.bf16.gmra.mxu1 %v11051_v28 }
 0x915   :  { %11810 = vmatpush1.bf16.msra.mxu1 %v14020_v12 }
 0x916   :  { %11811 = vmatprep.subr.bf16.mxu1 %v14025_v59 }
 0x919   :  { %11812 = vmatpush2.bf16.msra.mxu1 %v14023_v18 }
 0x91a   :  { %11813 = vmatprep.subr.bf16.mxu1 %v14028_v32 }
 0x91d   :  { %11814 = vmatpush2.bf16.msra.mxu1 %v14026_v43 }
 0x91e   :  { %11815 = vmatprep.subr.bf16.mxu1 %v14031_v10 }
 0x921   :  { %11816 = vmatpush2.bf16.msra.mxu1 %v14029_v3 }
 0x922   :  { %11817 = vmatprep.subr.bf16.mxu1 %v14034_v62 }
 0x925   :  { %11818 = vmatpush2.bf16.msra.mxu1 %v14032_v21 }
 0x926   :  { %11819 = vmatprep.subr.bf16.mxu1 %v14037_v15 }
 0x929   :  { %11820 = vmatpush2.bf16.msra.mxu1 %v14035_v33 }
 0x92a   :  { %11821 = vmatprep.subr.bf16.mxu1 %v14040_v5 }
 0x92d   :  { %11822 = vmatpush2.bf16.msra.mxu1 %v14038_v30 }
 0x92e   :  { %11823 = vmatprep.subr.bf16.mxu1 %v14043_v49 }
 0x931   :  { %11824 = vmatpush2.bf16.msra.mxu1 %v14041_v42 }
 0x932   :  { %11825 = vmatprep.subr.bf16.mxu1 %v14046_v13 }
 0x935   :  { %11826 = vmatpush2.bf16.msra.mxu1 %v14044_v25 }
 0x9b7   :  { %v11291_v14 = vpop.f32.mrf.mxu1 }
 0x9b8   :  { %v11292_v16 = vadd.f32 %v11291_v14, %v11090_v61 }
 0x9b9   :  { %v11293_v55 = vpop.f32.mrf.mxu1 }
 0x9ba   :  { %v11294_v54 = vadd.f32 %v11293_v55, %v11094_v36  ;;  %v11310_v37 = vmax.f32 %v11292_v16, 0.0 }
 0x9bb   :  { %v11295_v6 = vpop.f32.mrf.mxu1 }
 0x9bc   :  { %v11296_v50 = vadd.f32 %v11295_v6, %v11090_v61  ;;  %v11311_v34 = vmax.f32 %v11294_v54, 0.0  ;;  %v11623_v54 = vld [vmem:[%s20599_s15] sm:$0x3] }
 0x9bd   :  { %v11297_v46 = vpop.f32.mrf.mxu1  ;;  %v11632_v16 = vrot.slane %v11623_v54, %v20787_v31 }
 0x9be   :  { %v11298_v29 = vadd.f32 %v11297_v46, %v11094_v36  ;;  %v11312_v45 = vmax.f32 %v11296_v50, 0.0  ;;  %v11628_v50 = vrot.slane %v11623_v54, %v20788_v8 }
 0x9c0   :  { %v11313_v41 = vmax.f32 %v11298_v29, 0.0  ;;  %v11318_v47 = vpack.c.bf16 %v11312_v45, %v11310_v37 }
 0x9c2   :  { %v11319_v39 = vpack.c.bf16 %v11313_v41, %v11311_v34 }
 0x9c4   :  { %11558 = vmatprep.mubr.bf16.mxu0 %v11319_v39 }
 0x9c5   :  { %11559 = vmatmul.mubr.bf16.vlgmr.msra.gmra.mxu0 %v11318_v47 }
 0x9d4   :  { %v11301_v9 = vpop.f32.mrf.mxu1 }
 0x9d5   :  { %v11302_v24 = vadd.f32 %v11301_v9, %v11090_v61 }
 0x9d6   :  { %v11303_v0 = vpop.f32.mrf.mxu1 }
 0x9d7   :  { %v11304_v26 = vadd.f32 %v11303_v0, %v11094_v36  ;;  %v11314_v56 = vmax.f32 %v11302_v24, 0.0 }
 0x9d8   :  { %v11305_v22 = vpop.f32.mrf.mxu1 }
 0x9d9   :  { %v11306_v4 = vadd.f32 %v11305_v22, %v11090_v61  ;;  %v11315_v17 = vmax.f32 %v11304_v26, 0.0 }
 0x9da   :  { %v11307_v63 = vpop.f32.mrf.mxu1 }
 0x9db   :  { %v11308_v53 = vadd.f32 %v11307_v63, %v11094_v36  ;;  %v11316_v2 = vmax.f32 %v11306_v4, 0.0 }
 0x9dd   :  { %v11317_v11 = vmax.f32 %v11308_v53, 0.0  ;;  %v11320_v52 = vpack.c.bf16 %v11316_v2, %v11314_v56 }
 0x9df   :  { %v11321_v28 = vpack.c.bf16 %v11317_v11, %v11315_v17 }
 0x9e1   :  { %11568 = vmatprep.mubr.bf16.mxu0 %v11321_v28 }
 0x9e2   :  { %11569 = vmatmul.mubr.bf16.gmra.mxu0 %v11320_v52 }
 0xa85   :  { %v11560_v60 = vpop.f32.mrf.mxu0 }
 0xa86   :  { %v11561_v57 = vadd.f32 %v11560_v60, %v11359_v1 }
 0xa87   :  { %v11562_v48 = vpop.f32.mrf.mxu0 }
 0xa88   :  { %v11563_v27 = vadd.f32 %v11562_v48, %v11363_v19  ;;  %v11579_v12 = vmax.f32 %v11561_v57, 0.0 }
 0xa89   :  { %v11564_v35 = vpop.f32.mrf.mxu0 }
 0xa8a   :  { %v11565_v40 = vadd.f32 %v11564_v35, %v11359_v1  ;;  %v11580_v44 = vmax.f32 %v11563_v27, 0.0 }
 0xa8b   :  { %v11566_v58 = vpop.f32.mrf.mxu0 }
 0xa8c   :  { %v11567_v7 = vadd.f32 %v11566_v58, %v11363_v19  ;;  %v11581_v38 = vmax.f32 %v11565_v40, 0.0 }
 0xa8e   :  { %v11582_v51 = vmax.f32 %v11567_v7, 0.0  ;;  %v11587_v18 = vpack.c.bf16 %v11581_v38, %v11579_v12 }
 0xa90   :  { %v11588_v59 = vpack.c.bf16 %v11582_v51, %v11580_v44 }
 0xa92   :  { %11827 = vmatprep.mubr.bf16.mxu1 %v11588_v59 }
 0xa93   :  { %11828 = vmatmul.mubr.bf16.vlgmr.msra.gmra.mxu1 %v11587_v18 }
 0xaa2   :  { %v11570_v32 = vpop.f32.mrf.mxu0 }
 0xaa3   :  { %v11571_v21 = vadd.f32 %v11570_v32, %v11359_v1 }
 0xaa4   :  { %v11572_v43 = vpop.f32.mrf.mxu0 }
 0xaa5   :  { %v11573_v3 = vadd.f32 %v11572_v43, %v11363_v19  ;;  %v11583_v61 = vmax.f32 %v11571_v21, 0.0 }
 0xaa6   :  { %v11574_v10 = vpop.f32.mrf.mxu0 }
 0xaa7   :  { %v11575_v62 = vadd.f32 %v11574_v10, %v11359_v1  ;;  %v11584_v14 = vmax.f32 %v11573_v3, 0.0 }
 0xaa8   :  { %v11576_v15 = vpop.f32.mrf.mxu0 }
 0xaa9   :  { %v11577_v33 = vadd.f32 %v11576_v15, %v11363_v19  ;;  %v11585_v20 = vmax.f32 %v11575_v62, 0.0 }
 0xaab   :  { %v11586_v36 = vmax.f32 %v11577_v33, 0.0  ;;  %v11589_v6 = vpack.c.bf16 %v11585_v20, %v11583_v61 }
 0xaad   :  { %v11590_v55 = vpack.c.bf16 %v11586_v36, %v11584_v14 }
 0xaaf   :  { %11837 = vmatprep.mubr.bf16.mxu1 %v11590_v55 }
 0xab0   :  { %11838 = vmatmul.mubr.bf16.gmra.mxu1 %v11589_v6 }
 0xb53   :  { %v11829_v46 = vpop.f32.mrf.mxu1 }
 0xb54   :  { %v11830_v29 = vadd.f32 %v11829_v46, %v11628_v50 }
 0xb55   :  { %v11831_v45 = vpop.f32.mrf.mxu1 }
 0xb56   :  { %v11848_v34 = vmul.f32 0.5, %v11830_v29  ;;  %v11832_v41 = vadd.f32 %v11831_v45, %v11632_v16 }
 0xb57   :  { %v11833_v37 = vpop.f32.mrf.mxu1 }
 0xb58   :  { %14047 = vtanh.f32 %v11848_v34  ;;  %v11849_v39 = vmul.f32 0.5, %v11832_v41  ;;  %v11834_v47 = vadd.f32 %v11833_v37, %v11628_v50 }
 0xb59   :  { %v11835_v9 = vpop.f32.mrf.mxu1 }
 0xb5a   :  { %14049 = vtanh.f32 %v11849_v39  ;;  %v11850_v0 = vmul.f32 0.5, %v11834_v47  ;;  %v11836_v22 = vadd.f32 %v11835_v9, %v11632_v16 }
 0xb5c   :  { %14051 = vtanh.f32 %v11850_v0  ;;  %v11851_v26 = vmul.f32 0.5, %v11836_v22 }
 0xb5e   :  { %14053 = vtanh.f32 %v11851_v26 }
 0xb65   :  { %v14048_v4 = vpop.eup %14047 }
 0xb66   :  { %v11864_v8 = vadd.f32 1.0, %v14048_v4 }
 0xb67   :  { %v14050_v24 = vpop.eup %14049 }
 0xb68   :  { %v11872_v31 = vmul.f32 0.5, %v11864_v8  ;;  %v11865_v63 = vadd.f32 1.0, %v14050_v24 }
 0xb69   :  { %v14052_v53 = vpop.eup %14051 }
 0xb6a   :  { %11880 = vst [vmem:[%s20600_s16] sm:$0xff] %v11872_v31  ;;  %v11873_v2 = vmul.f32 0.5, %v11865_v63  ;;  %v11866_v17 = vadd.f32 1.0, %v14052_v53 }
 0xb6b   :  { %v14054_v11 = vpop.eup %14053 }
 0xb6c   :  { %11881 = vst [vmem:[%s20600_s16 + $0x8] sm:$0xff] %v11873_v2  ;;  %v11874_v56 = vmul.f32 0.5, %v11866_v17  ;;  %v11867_v28 = vadd.f32 1.0, %v14054_v11 }
 0xb6e   :  { %11882 = vst [vmem:[%s20600_s16 + $0x10] sm:$0xff] %v11874_v56  ;;  %v11875_v52 = vmul.f32 0.5, %v11867_v28 }
 0xb70   :  { %11883 = vst [vmem:[%s20600_s16 + $0x18] sm:$0xff] %v11875_v52  ;;  %v11839_v30 = vpop.f32.mrf.mxu1 }
 0xb71   :  { %v11840_v5 = vadd.f32 %v11839_v30, %v11628_v50 }
 0xb72   :  { %v11841_v42 = vpop.f32.mrf.mxu1 }
 0xb73   :  { %v11852_v49 = vmul.f32 0.5, %v11840_v5  ;;  %v11842_v13 = vadd.f32 %v11841_v42, %v11632_v16 }
 0xb74   :  { %v11843_v25 = vpop.f32.mrf.mxu1 }
 0xb75   :  { %14055 = vtanh.f32 %v11852_v49  ;;  %v11853_v23 = vmul.f32 0.5, %v11842_v13  ;;  %v11844_v60 = vadd.f32 %v11843_v25, %v11628_v50 }
 0xb76   :  { %v11845_v19 = vpop.f32.mrf.mxu1 }
 0xb77   :  { %14057 = vtanh.f32 %v11853_v23  ;;  %v11854_v1 = vmul.f32 0.5, %v11844_v60  ;;  %v11846_v48 = vadd.f32 %v11845_v19, %v11632_v16 }
 0xb79   :  { %14059 = vtanh.f32 %v11854_v1  ;;  %v11855_v35 = vmul.f32 0.5, %v11846_v48 }
 0xb7b   :  { %14061 = vtanh.f32 %v11855_v35 }
 0xb82   :  { %v14056_v27 = vpop.eup %14055 }
 0xb83   :  { %v11868_v40 = vadd.f32 1.0, %v14056_v27 }
 0xb84   :  { %v14058_v57 = vpop.eup %14057 }
 0xb85   :  { %v11876_v58 = vmul.f32 0.5, %v11868_v40  ;;  %v11869_v7 = vadd.f32 1.0, %v14058_v57 }
 0xb86   :  { %v14060_v38 = vpop.eup %14059 }
 0xb87   :  { %11884 = vst [vmem:[%s20600_s16 + $0x20] sm:$0xff] %v11876_v58  ;;  %v11877_v44 = vmul.f32 0.5, %v11869_v7  ;;  %v11870_v51 = vadd.f32 1.0, %v14060_v38 }
 0xb88   :  { %v14062_v12 = vpop.eup %14061 }
 0xb89   :  { %11885 = vst [vmem:[%s20600_s16 + $0x28] sm:$0xff] %v11877_v44  ;;  %v11878_v59 = vmul.f32 0.5, %v11870_v51  ;;  %v11871_v18 = vadd.f32 1.0, %v14062_v12 }
 0xb8b   :  { %11886 = vst [vmem:[%s20600_s16 + $0x30] sm:$0xff] %v11878_v59  ;;  %v11879_v32 = vmul.f32 0.5, %v11871_v18 }
 0xb8d   :  { %11887 = vst [vmem:[%s20600_s16 + $0x38] sm:$0xff] %v11879_v32 }

</bundles_post_ra>
